<compile_context>
chip_gen: v7x
topology: tpu7x:2x2x1
jax: 0.10.0
libtpu: 0.0.40
codegen_flags: <defaults>
</compile_context>

<pallas_src>
import numpy as np
import jax
import jax.numpy as jnp
from jax.experimental import pallas as pl
from jax.experimental.pallas import tpu as pltpu

LRELU_SLOPE = 0.2
# Normalized resample filter [1,3,3,1] (outer product), as in upfirdn2d.setup_filter.
_FIR = (np.outer([1.0, 3.0, 3.0, 1.0], [1.0, 3.0, 3.0, 1.0]) / 64.0).astype(np.float32)


# ----------------------------- Pallas kernels -----------------------------

def _conv_flat(x_flat, w_flat, bias, *, shifts, cin, rows_out, act, gain, out_dtype):
    """Stride-1 KxK conv as shifted matmuls over a row-flattened padded input.

    x_flat : [N, L, cin]            (bf16) padded image, rows flattened (one extra
                                    zero row appended so every tap slice is in-bounds)
    w_flat : [len(shifts)*cin, cout] (bf16) tap-major weight matrix
    bias   : [cout] f32 or None
    shifts : per-tap row offset a*Wp + b into the flattened input
    rows_out = Ho * Wp (output computed over the padded width; the wrapper slices
               off the Wp-Wo garbage columns afterwards).
    """
    N, L, _ = x_flat.shape
    num_taps = len(shifts)
    cout = w_flat.shape[-1]
    assert w_flat.shape[0] == num_taps * cin
    b2 = (jnp.zeros((1, cout), jnp.float32) if bias is None
          else bias.reshape(1, cout).astype(jnp.float32))
    gain = float(gain)

    def kernel(x_ref, w_ref, b_ref, o_ref):
        acc = jnp.zeros((rows_out, cout), jnp.float32)
        for t, s in enumerate(shifts):                      # fully static unroll (<=9)
            xs = x_ref[pl.ds(s, rows_out), :]               # bf16 tap slice (VMEM)
            wt = w_ref[pl.ds(t * cin, cin), :]              # bf16 [cin, cout]
            acc = acc + jnp.dot(xs, wt, preferred_element_type=jnp.float32)
        acc = acc + b_ref[...]
        if act == 'lrelu':
            acc = jnp.where(acc >= 0.0, acc, acc * LRELU_SLOPE)
        if gain != 1.0:
            acc = acc * gain
        o_ref[...] = acc.astype(out_dtype)

    return pl.pallas_call(
        kernel,
        grid=(N,),
        in_specs=[
            pl.BlockSpec((None, L, cin), lambda n: (n, 0, 0)),
            pl.BlockSpec((num_taps * cin, cout), lambda n: (0, 0)),
            pl.BlockSpec((1, cout), lambda n: (0, 0)),
        ],
        out_specs=pl.BlockSpec((None, rows_out, cout), lambda n: (n, 0, 0)),
        out_shape=jax.ShapeDtypeStruct((N, rows_out, cout), out_dtype),
        compiler_params=pltpu.CompilerParams(dimension_semantics=("parallel",)),
    )(x_flat, w_flat, b2)


def _res_tail(x1, w1, b1, x2, w2, *, shifts1, shifts2, cin1, cin2, rows_out,
              gain1, gain2, out_dtype):
    """Fused resnet tail: conv1 (blur+3x3 down2, folded) + bias + lrelu + gain,
    plus skip (blur+1x1 down2, folded) * gain, plus the residual add.

    Both inputs are space-to-depth, padded and row-flattened by the wrapper so
    they share the same flat output width; shifts are per-tap row offsets."""
    N, L1, _ = x1.shape
    L2 = x2.shape[1]
    cout = w1.shape[-1]
    b2 = b1.reshape(1, cout).astype(jnp.float32)
    gain1 = float(gain1)
    gain2 = float(gain2)

    def kernel(x1_ref, w1_ref, b_ref, x2_ref, w2_ref, o_ref):
        # conv1 branch (lrelu)
        acc = jnp.zeros((rows_out, cout), jnp.float32)
        for t, s in enumerate(shifts1):
            acc = acc + jnp.dot(x1_ref[pl.ds(s, rows_out), :],
                                w1_ref[pl.ds(t * cin1, cin1), :],
                                preferred_element_type=jnp.float32)
        acc = acc + b_ref[...]
        acc = jnp.where(acc >= 0.0, acc, acc * LRELU_SLOPE) * gain1
        # skip branch (linear, no bias)
        skip = jnp.zeros((rows_out, cout), jnp.float32)
        for t, s in enumerate(shifts2):
            skip = skip + jnp.dot(x2_ref[pl.ds(s, rows_out), :],
                                  w2_ref[pl.ds(t * cin2, cin2), :],
                                  preferred_element_type=jnp.float32)
        o_ref[...] = (acc + skip * gain2).astype(out_dtype)

    return pl.pallas_call(
        kernel,
        grid=(N,),
        in_specs=[
            pl.BlockSpec((None, L1, cin1), lambda n: (n, 0, 0)),
            pl.BlockSpec((len(shifts1) * cin1, cout), lambda n: (0, 0)),
            pl.BlockSpec((1, cout), lambda n: (0, 0)),
            pl.BlockSpec((None, L2, cin2), lambda n: (n, 0, 0)),
            pl.BlockSpec((len(shifts2) * cin2, cout), lambda n: (0, 0)),
        ],
        out_specs=pl.BlockSpec((None, rows_out, cout), lambda n: (n, 0, 0)),
        out_shape=jax.ShapeDtypeStruct((N, rows_out, cout), out_dtype),
        compiler_params=pltpu.CompilerParams(dimension_semantics=("parallel",)),
    )(x1, w1, b2, x2, w2)


# ----------------------------- weight / layout prep (trace-time glue) -----------------------------

def _prep_conv_w(w):
    """[Co, Ci, K, K] torch weight -> [K*K*Ci, Co] tap-major matrix (incl. weight_gain)."""
    co, ci, kh, kw = w.shape
    w = w * (1.0 / np.sqrt(ci * kh * kw))
    return jnp.transpose(w, (2, 3, 1, 0)).reshape(kh * kw * ci, co)


def _prep_down_w(w):
    """Fold FIR blur + stride-2 into a stride-1 conv over space-to-depth input.

    [Co, Ci, K, K] -> ([(Ks*Ks)*(4*Ci), Co], Ks) with Ks = (K+3)//2 (3x3->3, 1x1->2).
    """
    co, ci, kh, kw = w.shape
    w = (w * (1.0 / np.sqrt(ci * kh * kw))).astype(jnp.float32)
    ke = kh + 3                                            # effective kernel = conv ∘ 4-tap FIR
    f = jnp.asarray(_FIR)
    w_eff = jnp.zeros((co, ci, ke, ke), jnp.float32)
    for a in range(kh):
        for b in range(kw):
            w_eff = w_eff.at[:, :, a:a + 4, b:b + 4].add(w[:, :, a:a + 1, b:b + 1] * f)
    ks = ke // 2
    w_eff = w_eff.reshape(co, ci, ks, 2, ks, 2)            # (co, ci, qa, pa, qb, pb)
    w_eff = jnp.transpose(w_eff, (2, 4, 3, 5, 1, 0))       # (qa, qb, pa, pb, ci, co)
    return w_eff.reshape(ks * ks * 4 * ci, co), ks


def _pad_hw(x, p):
    return jnp.pad(x, ((0, 0), (p, p), (p, p), (0, 0)))


def _space_to_depth(x):
    n, h, w, c = x.shape
    x = x.reshape(n, h // 2, 2, w // 2, 2, c)
    x = jnp.transpose(x, (0, 1, 3, 2, 4, 5))               # (n, P, Q, pa, pb, c)
    return x.reshape(n, h // 2, w // 2, 4 * c)


def _flatten_rows(x, extra_rows=1):
    """[N, Hp, Wp, C] -> [N, (Hp+extra)*Wp, C]; extra zero rows keep tap slices in-bounds."""
    n, hp, wp, c = x.shape
    x = jnp.pad(x, ((0, 0), (0, extra_rows), (0, 0), (0, 0)))
    return x.reshape(n, (hp + extra_rows) * wp, c)


# ----------------------------- DiscriminatorBlock forward -----------------------------

def discriminator_block_forward(params, x, img, *, in_channels, tmp_channels,
                                out_channels, resolution, img_channels=3):
    """resnet DiscriminatorBlock forward (activation='lrelu', resample_filter=[1,3,3,1],
    conv_clamp=None, fp32).  x/img are NCHW; returns (x_out NCHW f32, img_out)."""
    H = W = resolution
    sqrt2 = float(np.sqrt(2.0))
    sqrt_half = float(np.sqrt(0.5))

    x_nhwc = None
    if x is not None:
        x_nhwc = jnp.transpose(x.astype(jnp.float32), (0, 2, 3, 1))

    if in_channels == 0:
        img_nhwc = jnp.transpose(img.astype(jnp.float32), (0, 2, 3, 1))
        n = img_nhwc.shape[0]
        # fromrgb: 1x1 conv + bias + lrelu (gain sqrt(2))
        w_rgb = _prep_conv_w(params['fromrgb_w']).astype(jnp.bfloat16)
        rgb_in = img_nhwc.reshape(n, H * W, img_channels).astype(jnp.bfloat16)
        y = _conv_flat(rgb_in, w_rgb, params['fromrgb_b'], shifts=(0,),
                       cin=img_channels, rows_out=H * W, act='lrelu', gain=sqrt2,
                       out_dtype=jnp.float32)
        y = y.reshape(n, H, W, tmp_channels)
        x_nhwc = y if x_nhwc is None else x_nhwc + y
        img_out = None                                     # architecture == 'resnet'
    else:
        img_out = img                                      # passed through untouched

    n = x_nhwc.shape[0]
    cin0 = x_nhwc.shape[-1]                                # in_channels or tmp_channels
    x_bf = x_nhwc.astype(jnp.bfloat16)

    # conv0: 3x3, stride 1, bias + lrelu, gain sqrt(2)
    wp0 = W + 2
    x0_in = _flatten_rows(_pad_hw(x_bf, 1))                          # [n, (H+3)*wp0, cin0]
    shifts0 = tuple(a * wp0 + b for a in range(3) for b in range(3))
    w0 = _prep_conv_w(params['conv0_w']).astype(jnp.bfloat16)
    x0 = _conv_flat(x0_in, w0, params['conv0_b'], shifts=shifts0, cin=cin0,
                    rows_out=H * wp0, act='lrelu', gain=sqrt2, out_dtype=jnp.bfloat16)
    x0 = x0.reshape(n, H, wp0, tmp_channels)[:, :, :W, :]

    # conv1 (down=2) + skip (down=2) + residual add, fused into one kernel.
    ho, wo = H // 2, W // 2
    wp = wo + 2
    in1 = _flatten_rows(_space_to_depth(_pad_hw(x0, 2)))             # [(ho+3)*wp, 4*tmp]
    x_sk = _space_to_depth(_pad_hw(x_bf, 1))                         # [ho+1, wo+1, 4*cin0]
    x_sk = jnp.pad(x_sk, ((0, 0), (0, 0), (0, 1), (0, 0)))           # width -> wp
    in2 = _flatten_rows(x_sk)                                        # [(ho+2)*wp, 4*cin0]
    w1, ks1 = _prep_down_w(params['conv1_w'])                        # ks1 == 3
    wsk, ks2 = _prep_down_w(params['skip_w'])                        # ks2 == 2
    shifts1 = tuple(a * wp + b for a in range(ks1) for b in range(ks1))
    shifts2 = tuple(a * wp + b for a in range(ks2) for b in range(ks2))
    out = _res_tail(in1, w1.astype(jnp.bfloat16), params['conv1_b'],
                    in2, wsk.astype(jnp.bfloat16),
                    shifts1=shifts1, shifts2=shifts2,
                    cin1=4 * tmp_channels, cin2=4 * cin0, rows_out=ho * wp,
                    gain1=sqrt2 * sqrt_half,          # lrelu def_gain * gain=sqrt(0.5)
                    gain2=sqrt_half,                  # linear skip, gain=sqrt(0.5)
                    out_dtype=jnp.float32)
    out = out.reshape(n, ho, wp, out_channels)[:, :, :wo, :]
    x_out = jnp.transpose(out, (0, 3, 1, 2))                         # back to NCHW, f32
    return x_out, img_out


# ----------------------------- parameter init (deterministic) -----------------------------

def init_block_params(key, *, in_channels, tmp_channels, out_channels, img_channels=3):
    ks = jax.random.split(key, 4)
    cin0 = in_channels if in_channels > 0 else tmp_channels
    p = {}
    if in_channels == 0:
        p['fromrgb_w'] = jax.random.normal(ks[0], (tmp_channels, img_channels, 1, 1), jnp.float32)
        p['fromrgb_b'] = jnp.zeros((tmp_channels,), jnp.float32)
    p['conv0_w'] = jax.random.normal(ks[1], (tmp_channels, cin0, 3, 3), jnp.float32)
    p['conv0_b'] = jnp.zeros((tmp_channels,), jnp.float32)
    p['conv1_w'] = jax.random.normal(ks[2], (out_channels, tmp_channels, 3, 3), jnp.float32)
    p['conv1_b'] = jnp.zeros((out_channels,), jnp.float32)
    p['skip_w'] = jax.random.normal(ks[3], (out_channels, cin0, 1, 1), jnp.float32)
    return p


# ----------------------------- main -----------------------------

if __name__ == "__main__":
    key = jax.random.PRNGKey(0)
    k_img, k_b1, k_b2 = jax.random.split(key, 3)

    N = 4
    RES = 16
    IMG_CH = 3
    TMP1, OUT1 = 32, 64      # first block (in_channels == 0, uses fromrgb)
    TMP2, OUT2 = 64, 64      # second block (in_channels > 0)

    params1 = init_block_params(k_b1, in_channels=0, tmp_channels=TMP1,
                                out_channels=OUT1, img_channels=IMG_CH)
    params2 = init_block_params(k_b2, in_channels=OUT1, tmp_channels=TMP2,
                                out_channels=OUT2)

    img = jax.random.normal(k_img, (N, IMG_CH, RES, RES), jnp.float32)

    @jax.jit
    def forward(p1, p2, img):
        x, img1 = discriminator_block_forward(p1, None, img, in_channels=0,
                                              tmp_channels=TMP1, out_channels=OUT1,
                                              resolution=RES, img_channels=IMG_CH)
        x, _ = discriminator_block_forward(p2, x, img1, in_channels=OUT1,
                                           tmp_channels=TMP2, out_channels=OUT2,
                                           resolution=RES // 2)
        return x

    out = jax.block_until_ready(forward(params1, params2, img))

    assert out.shape == (N, OUT2, RES // 4, RES // 4)
    assert out.dtype == jnp.float32
    assert bool(jnp.all(jnp.isfinite(out)))
    # TODO(synk): use_fp16 / channels_last / conv_clamp / freeze_layers only affect
    # training-time dtype & trainability bookkeeping, not this fp32 forward.
    print("KERNEL_OK")
</pallas_src>

<mosaic_0001>
module attributes {stable_mosaic.version = 11 : i64} {
  func.func @kernel(%arg0: i32, %arg1: memref<1x256x3xbf16, #tpu.memory_space<vmem>>, %arg2: memref<3x32xbf16, #tpu.memory_space<vmem>>, %arg3: memref<1x32xf32, #tpu.memory_space<vmem>>, %arg4: memref<1x256x32xf32, #tpu.memory_space<vmem>>) attributes {dimension_semantics = [#tpu.dimension_semantics<parallel>], iteration_bounds = array<i64: 4>, scalar_prefetch = 0 : i64, scratch_operands = 0 : i64, tpu.core_type = #tpu.core_type<tc>, window_params = [{transform_indices = @transform_0, window_bounds = array<i64: 1, 256, 3>}, {pipeline_mode = #tpu.pipeline_mode<synchronous>, transform_indices = @transform_1, window_bounds = array<i64: 3, 32>}, {pipeline_mode = #tpu.pipeline_mode<synchronous>, transform_indices = @transform_2, window_bounds = array<i64: 1, 32>}, {transform_indices = @transform_3, window_bounds = array<i64: 1, 256, 32>}]} {
    %cst = arith.constant 0.000000e+00 : f32
    %0 = vector.broadcast %cst : f32 to vector<256x32xf32>
    %c0 = arith.constant 0 : index
    %c0_0 = arith.constant 0 : index
    %c0_1 = arith.constant 0 : index
    %1 = vector.load %arg1[%c0, %c0_0, %c0_1] : memref<1x256x3xbf16, #tpu.memory_space<vmem>>, vector<1x256x3xbf16>
    %2 = vector.shape_cast %1 : vector<1x256x3xbf16> to vector<256x3xbf16>
    %c0_2 = arith.constant 0 : index
    %c0_3 = arith.constant 0 : index
    %3 = vector.load %arg2[%c0_2, %c0_3] : memref<3x32xbf16, #tpu.memory_space<vmem>>, vector<3x32xbf16>
    %cst_4 = arith.constant dense<0.000000e+00> : vector<256x32xf32>
    %4 = tpu.matmul %2, %3, %cst_4 {dimension_numbers = #tpu.dot_dimension_numbers<[1], [0], [0], [1], [0, 0, 1, 1], [], []>} : vector<256x3xbf16>, vector<3x32xbf16>, vector<256x32xf32> -> vector<256x32xf32>
    %5 = arith.addf %0, %4 : vector<256x32xf32>
    %c0_5 = arith.constant 0 : index
    %c0_6 = arith.constant 0 : index
    %6 = vector.load %arg3[%c0_5, %c0_6] : memref<1x32xf32, #tpu.memory_space<vmem>>, vector<1x32xf32>
    %7 = vector.broadcast %6 : vector<1x32xf32> to vector<256x32xf32>
    %8 = arith.addf %5, %7 : vector<256x32xf32>
    %cst_7 = arith.constant 0.000000e+00 : f32
    %9 = vector.broadcast %cst_7 : f32 to vector<256x32xf32>
    %10 = arith.cmpf oge, %8, %9 : vector<256x32xf32>
    %cst_8 = arith.constant 2.000000e-01 : f32
    %11 = vector.broadcast %cst_8 : f32 to vector<256x32xf32>
    %12 = arith.mulf %8, %11 : vector<256x32xf32>
    %13 = arith.select %10, %8, %12 : vector<256x32xi1>, vector<256x32xf32>
    %cst_9 = arith.constant 1.41421354 : f32
    %14 = vector.broadcast %cst_9 : f32 to vector<256x32xf32>
    %15 = arith.mulf %13, %14 : vector<256x32xf32>
    %c0_10 = arith.constant 0 : index
    %c0_11 = arith.constant 0 : index
    %c0_12 = arith.constant 0 : index
    %16 = vector.load %arg4[%c0_10, %c0_11, %c0_12] : memref<1x256x32xf32, #tpu.memory_space<vmem>>, vector<1x256x32xf32>
    %17 = vector.shape_cast %16 : vector<1x256x32xf32> to vector<256x32xf32>
    %18 = vector.shape_cast %15 : vector<256x32xf32> to vector<1x256x32xf32>
    tpu.vector_store %arg4[%c0_10, %c0_11, %c0_12], %18 {strides = array<i32>} : memref<1x256x32xf32, #tpu.memory_space<vmem>>, vector<1x256x32xf32>,
    return
  }
  func.func @transform_0(%arg0: i32) -> (i32, i32, i32) {
    %c0_i32 = arith.constant 0 : i32
    %c0_i32_0 = arith.constant 0 : i32
    %c0_i32_1 = arith.constant 0 : i32
    return %arg0, %c0_i32, %c0_i32_0 : i32, i32, i32
  }
  func.func @transform_1(%arg0: i32) -> (i32, i32) {
    %c0_i32 = arith.constant 0 : i32
    %c0_i32_0 = arith.constant 0 : i32
    %c0_i32_1 = arith.constant 0 : i32
    return %c0_i32, %c0_i32_0 : i32, i32
  }
  func.func @transform_2(%arg0: i32) -> (i32, i32) {
    %c0_i32 = arith.constant 0 : i32
    %c0_i32_0 = arith.constant 0 : i32
    %c0_i32_1 = arith.constant 0 : i32
    return %c0_i32, %c0_i32_0 : i32, i32
  }
  func.func @transform_3(%arg0: i32) -> (i32, i32, i32) {
    %c0_i32 = arith.constant 0 : i32
    %c0_i32_0 = arith.constant 0 : i32
    %c0_i32_1 = arith.constant 0 : i32
    return %arg0, %c0_i32, %c0_i32_0 : i32, i32, i32
  }
}

module attributes {stable_mosaic.version = 11 : i64} {
  func.func @kernel(%arg0: i32, %arg1: memref<1x342x32xbf16, #tpu.memory_space<vmem>>, %arg2: memref<288x32xbf16, #tpu.memory_space<vmem>>, %arg3: memref<1x32xf32, #tpu.memory_space<vmem>>, %arg4: memref<1x288x32xbf16, #tpu.memory_space<vmem>>) attributes {dimension_semantics = [#tpu.dimension_semantics<parallel>], iteration_bounds = array<i64: 4>, scalar_prefetch = 0 : i64, scratch_operands = 0 : i64, tpu.core_type = #tpu.core_type<tc>, window_params = [{transform_indices = @transform_0, window_bounds = array<i64: 1, 342, 32>}, {pipeline_mode = #tpu.pipeline_mode<synchronous>, transform_indices = @transform_1, window_bounds = array<i64: 288, 32>}, {pipeline_mode = #tpu.pipeline_mode<synchronous>, transform_indices = @transform_2, window_bounds = array<i64: 1, 32>}, {transform_indices = @transform_3, window_bounds = array<i64: 1, 288, 32>}]} {
    %cst = arith.constant 0.000000e+00 : f32
    %0 = vector.broadcast %cst : f32 to vector<288x32xf32>
    %c0 = arith.constant 0 : index
    %c0_0 = arith.constant 0 : index
    %c0_1 = arith.constant 0 : index
    %1 = vector.load %arg1[%c0, %c0_0, %c0_1] : memref<1x342x32xbf16, #tpu.memory_space<vmem>>, vector<1x288x32xbf16>
    %2 = vector.shape_cast %1 : vector<1x288x32xbf16> to vector<288x32xbf16>
    %c0_2 = arith.constant 0 : index
    %c0_3 = arith.constant 0 : index
    %3 = vector.load %arg2[%c0_2, %c0_3] : memref<288x32xbf16, #tpu.memory_space<vmem>>, vector<32x32xbf16>
    %cst_4 = arith.constant dense<0.000000e+00> : vector<288x32xf32>
    %4 = tpu.matmul %2, %3, %cst_4 {dimension_numbers = #tpu.dot_dimension_numbers<[1], [0], [0], [1], [0, 0, 1, 1], [], []>} : vector<288x32xbf16>, vector<32x32xbf16>, vector<288x32xf32> -> vector<288x32xf32>
    %5 = arith.addf %0, %4 : vector<288x32xf32>
    %c0_5 = arith.constant 0 : index
    %c1 = arith.constant 1 : index
    %c0_6 = arith.constant 0 : index
    %6 = vector.load %arg1[%c0_5, %c1, %c0_6] : memref<1x342x32xbf16, #tpu.memory_space<vmem>>, vector<1x288x32xbf16>
    %7 = vector.shape_cast %6 : vector<1x288x32xbf16> to vector<288x32xbf16>
    %c32 = arith.constant 32 : index
    %c0_7 = arith.constant 0 : index
    %8 = vector.load %arg2[%c32, %c0_7] : memref<288x32xbf16, #tpu.memory_space<vmem>>, vector<32x32xbf16>
    %cst_8 = arith.constant dense<0.000000e+00> : vector<288x32xf32>
    %9 = tpu.matmul %7, %8, %cst_8 {dimension_numbers = #tpu.dot_dimension_numbers<[1], [0], [0], [1], [0, 0, 1, 1], [], []>} : vector<288x32xbf16>, vector<32x32xbf16>, vector<288x32xf32> -> vector<288x32xf32>
    %10 = arith.addf %5, %9 : vector<288x32xf32>
    %c0_9 = arith.constant 0 : index
    %c2 = arith.constant 2 : index
    %c0_10 = arith.constant 0 : index
    %11 = vector.load %arg1[%c0_9, %c2, %c0_10] : memref<1x342x32xbf16, #tpu.memory_space<vmem>>, vector<1x288x32xbf16>
    %12 = vector.shape_cast %11 : vector<1x288x32xbf16> to vector<288x32xbf16>
    %c64 = arith.constant 64 : index
    %c0_11 = arith.constant 0 : index
    %13 = vector.load %arg2[%c64, %c0_11] : memref<288x32xbf16, #tpu.memory_space<vmem>>, vector<32x32xbf16>
    %cst_12 = arith.constant dense<0.000000e+00> : vector<288x32xf32>
    %14 = tpu.matmul %12, %13, %cst_12 {dimension_numbers = #tpu.dot_dimension_numbers<[1], [0], [0], [1], [0, 0, 1, 1], [], []>} : vector<288x32xbf16>, vector<32x32xbf16>, vector<288x32xf32> -> vector<288x32xf32>
    %15 = arith.addf %10, %14 : vector<288x32xf32>
    %c0_13 = arith.constant 0 : index
    %c18 = arith.constant 18 : index
    %c0_14 = arith.constant 0 : index
    %16 = vector.load %arg1[%c0_13, %c18, %c0_14] : memref<1x342x32xbf16, #tpu.memory_space<vmem>>, vector<1x288x32xbf16>
    %17 = vector.shape_cast %16 : vector<1x288x32xbf16> to vector<288x32xbf16>
    %c96 = arith.constant 96 : index
    %c0_15 = arith.constant 0 : index
    %18 = vector.load %arg2[%c96, %c0_15] : memref<288x32xbf16, #tpu.memory_space<vmem>>, vector<32x32xbf16>
    %cst_16 = arith.constant dense<0.000000e+00> : vector<288x32xf32>
    %19 = tpu.matmul %17, %18, %cst_16 {dimension_numbers = #tpu.dot_dimension_numbers<[1], [0], [0], [1], [0, 0, 1, 1], [], []>} : vector<288x32xbf16>, vector<32x32xbf16>, vector<288x32xf32> -> vector<288x32xf32>
    %20 = arith.addf %15, %19 : vector<288x32xf32>
    %c0_17 = arith.constant 0 : index
    %c19 = arith.constant 19 : index
    %c0_18 = arith.constant 0 : index
    %21 = vector.load %arg1[%c0_17, %c19, %c0_18] : memref<1x342x32xbf16, #tpu.memory_space<vmem>>, vector<1x288x32xbf16>
    %22 = vector.shape_cast %21 : vector<1x288x32xbf16> to vector<288x32xbf16>
    %c128 = arith.constant 128 : index
    %c0_19 = arith.constant 0 : index
    %23 = vector.load %arg2[%c128, %c0_19] : memref<288x32xbf16, #tpu.memory_space<vmem>>, vector<32x32xbf16>
    %cst_20 = arith.constant dense<0.000000e+00> : vector<288x32xf32>
    %24 = tpu.matmul %22, %23, %cst_20 {dimension_numbers = #tpu.dot_dimension_numbers<[1], [0], [0], [1], [0, 0, 1, 1], [], []>} : vector<288x32xbf16>, vector<32x32xbf16>, vector<288x32xf32> -> vector<288x32xf32>
    %25 = arith.addf %20, %24 : vector<288x32xf32>
    %c0_21 = arith.constant 0 : index
    %c20 = arith.constant 20 : index
    %c0_22 = arith.constant 0 : index
    %26 = vector.load %arg1[%c0_21, %c20, %c0_22] : memref<1x342x32xbf16, #tpu.memory_space<vmem>>, vector<1x288x32xbf16>
    %27 = vector.shape_cast %26 : vector<1x288x32xbf16> to vector<288x32xbf16>
    %c160 = arith.constant 160 : index
    %c0_23 = arith.constant 0 : index
    %28 = vector.load %arg2[%c160, %c0_23] : memref<288x32xbf16, #tpu.memory_space<vmem>>, vector<32x32xbf16>
    %cst_24 = arith.constant dense<0.000000e+00> : vector<288x32xf32>
    %29 = tpu.matmul %27, %28, %cst_24 {dimension_numbers = #tpu.dot_dimension_numbers<[1], [0], [0], [1], [0, 0, 1, 1], [], []>} : vector<288x32xbf16>, vector<32x32xbf16>, vector<288x32xf32> -> vector<288x32xf32>
    %30 = arith.addf %25, %29 : vector<288x32xf32>
    %c0_25 = arith.constant 0 : index
    %c36 = arith.constant 36 : index
    %c0_26 = arith.constant 0 : index
    %31 = vector.load %arg1[%c0_25, %c36, %c0_26] : memref<1x342x32xbf16, #tpu.memory_space<vmem>>, vector<1x288x32xbf16>
    %32 = vector.shape_cast %31 : vector<1x288x32xbf16> to vector<288x32xbf16>
    %c192 = arith.constant 192 : index
    %c0_27 = arith.constant 0 : index
    %33 = vector.load %arg2[%c192, %c0_27] : memref<288x32xbf16, #tpu.memory_space<vmem>>, vector<32x32xbf16>
    %cst_28 = arith.constant dense<0.000000e+00> : vector<288x32xf32>
    %34 = tpu.matmul %32, %33, %cst_28 {dimension_numbers = #tpu.dot_dimension_numbers<[1], [0], [0], [1], [0, 0, 1, 1], [], []>} : vector<288x32xbf16>, vector<32x32xbf16>, vector<288x32xf32> -> vector<288x32xf32>
    %35 = arith.addf %30, %34 : vector<288x32xf32>
    %c0_29 = arith.constant 0 : index
    %c37 = arith.constant 37 : index
    %c0_30 = arith.constant 0 : index
    %36 = vector.load %arg1[%c0_29, %c37, %c0_30] : memref<1x342x32xbf16, #tpu.memory_space<vmem>>, vector<1x288x32xbf16>
    %37 = vector.shape_cast %36 : vector<1x288x32xbf16> to vector<288x32xbf16>
    %c224 = arith.constant 224 : index
    %c0_31 = arith.constant 0 : index
    %38 = vector.load %arg2[%c224, %c0_31] : memref<288x32xbf16, #tpu.memory_space<vmem>>, vector<32x32xbf16>
    %cst_32 = arith.constant dense<0.000000e+00> : vector<288x32xf32>
    %39 = tpu.matmul %37, %38, %cst_32 {dimension_numbers = #tpu.dot_dimension_numbers<[1], [0], [0], [1], [0, 0, 1, 1], [], []>} : vector<288x32xbf16>, vector<32x32xbf16>, vector<288x32xf32> -> vector<288x32xf32>
    %40 = arith.addf %35, %39 : vector<288x32xf32>
    %c0_33 = arith.constant 0 : index
    %c38 = arith.constant 38 : index
    %c0_34 = arith.constant 0 : index
    %41 = vector.load %arg1[%c0_33, %c38, %c0_34] : memref<1x342x32xbf16, #tpu.memory_space<vmem>>, vector<1x288x32xbf16>
    %42 = vector.shape_cast %41 : vector<1x288x32xbf16> to vector<288x32xbf16>
    %c256 = arith.constant 256 : index
    %c0_35 = arith.constant 0 : index
    %43 = vector.load %arg2[%c256, %c0_35] : memref<288x32xbf16, #tpu.memory_space<vmem>>, vector<32x32xbf16>
    %cst_36 = arith.constant dense<0.000000e+00> : vector<288x32xf32>
    %44 = tpu.matmul %42, %43, %cst_36 {dimension_numbers = #tpu.dot_dimension_numbers<[1], [0], [0], [1], [0, 0, 1, 1], [], []>} : vector<288x32xbf16>, vector<32x32xbf16>, vector<288x32xf32> -> vector<288x32xf32>
    %45 = arith.addf %40, %44 : vector<288x32xf32>
    %c0_37 = arith.constant 0 : index
    %c0_38 = arith.constant 0 : index
    %46 = vector.load %arg3[%c0_37, %c0_38] : memref<1x32xf32, #tpu.memory_space<vmem>>, vector<1x32xf32>
    %47 = vector.broadcast %46 : vector<1x32xf32> to vector<288x32xf32>
    %48 = arith.addf %45, %47 : vector<288x32xf32>
    %cst_39 = arith.constant 0.000000e+00 : f32
    %49 = vector.broadcast %cst_39 : f32 to vector<288x32xf32>
    %50 = arith.cmpf oge, %48, %49 : vector<288x32xf32>
    %cst_40 = arith.constant 2.000000e-01 : f32
    %51 = vector.broadcast %cst_40 : f32 to vector<288x32xf32>
    %52 = arith.mulf %48, %51 : vector<288x32xf32>
    %53 = arith.select %50, %48, %52 : vector<288x32xi1>, vector<288x32xf32>
    %cst_41 = arith.constant 1.41421354 : f32
    %54 = vector.broadcast %cst_41 : f32 to vector<288x32xf32>
    %55 = arith.mulf %53, %54 : vector<288x32xf32>
    %56 = arith.truncf %55 : vector<288x32xf32> to vector<288x32xbf16>
    %c0_42 = arith.constant 0 : index
    %c0_43 = arith.constant 0 : index
    %c0_44 = arith.constant 0 : index
    %57 = vector.load %arg4[%c0_42, %c0_43, %c0_44] : memref<1x288x32xbf16, #tpu.memory_space<vmem>>, vector<1x288x32xbf16>
    %58 = vector.shape_cast %57 : vector<1x288x32xbf16> to vector<288x32xbf16>
    %59 = vector.shape_cast %56 : vector<288x32xbf16> to vector<1x288x32xbf16>
    tpu.vector_store %arg4[%c0_42, %c0_43, %c0_44], %59 {strides = array<i32>} : memref<1x288x32xbf16, #tpu.memory_space<vmem>>, vector<1x288x32xbf16>,
    return
  }
  func.func @transform_0(%arg0: i32) -> (i32, i32, i32) {
    %c0_i32 = arith.constant 0 : i32
    %c0_i32_0 = arith.constant 0 : i32
    %c0_i32_1 = arith.constant 0 : i32
    return %arg0, %c0_i32, %c0_i32_0 : i32, i32, i32
  }
  func.func @transform_1(%arg0: i32) -> (i32, i32) {
    %c0_i32 = arith.constant 0 : i32
    %c0_i32_0 = arith.constant 0 : i32
    %c0_i32_1 = arith.constant 0 : i32
    return %c0_i32, %c0_i32_0 : i32, i32
  }
  func.func @transform_2(%arg0: i32) -> (i32, i32) {
    %c0_i32 = arith.constant 0 : i32
    %c0_i32_0 = arith.constant 0 : i32
    %c0_i32_1 = arith.constant 0 : i32
    return %c0_i32, %c0_i32_0 : i32, i32
  }
  func.func @transform_3(%arg0: i32) -> (i32, i32, i32) {
    %c0_i32 = arith.constant 0 : i32
    %c0_i32_0 = arith.constant 0 : i32
    %c0_i32_1 = arith.constant 0 : i32
    return %arg0, %c0_i32, %c0_i32_0 : i32, i32, i32
  }
}

module attributes {stable_mosaic.version = 11 : i64} {
  func.func @kernel(%arg0: i32, %arg1: memref<1x110x128xbf16, #tpu.memory_space<vmem>>, %arg2: memref<1152x64xbf16, #tpu.memory_space<vmem>>, %arg3: memref<1x64xf32, #tpu.memory_space<vmem>>, %arg4: memref<1x100x128xbf16, #tpu.memory_space<vmem>>, %arg5: memref<512x64xbf16, #tpu.memory_space<vmem>>, %arg6: memref<1x80x64xf32, #tpu.memory_space<vmem>>) attributes {dimension_semantics = [#tpu.dimension_semantics<parallel>], iteration_bounds = array<i64: 4>, scalar_prefetch = 0 : i64, scratch_operands = 0 : i64, tpu.core_type = #tpu.core_type<tc>, window_params = [{transform_indices = @transform_0, window_bounds = array<i64: 1, 110, 128>}, {pipeline_mode = #tpu.pipeline_mode<synchronous>, transform_indices = @transform_1, window_bounds = array<i64: 1152, 64>}, {pipeline_mode = #tpu.pipeline_mode<synchronous>, transform_indices = @transform_2, window_bounds = array<i64: 1, 64>}, {transform_indices = @transform_3, window_bounds = array<i64: 1, 100, 128>}, {pipeline_mode = #tpu.pipeline_mode<synchronous>, transform_indices = @transform_4, window_bounds = array<i64: 512, 64>}, {transform_indices = @transform_5, window_bounds = array<i64: 1, 80, 64>}]} {
    %cst = arith.constant 0.000000e+00 : f32
    %0 = vector.broadcast %cst : f32 to vector<80x64xf32>
    %c0 = arith.constant 0 : index
    %c0_0 = arith.constant 0 : index
    %c0_1 = arith.constant 0 : index
    %1 = vector.load %arg1[%c0, %c0_0, %c0_1] : memref<1x110x128xbf16, #tpu.memory_space<vmem>>, vector<1x80x128xbf16>
    %2 = vector.shape_cast %1 : vector<1x80x128xbf16> to vector<80x128xbf16>
    %c0_2 = arith.constant 0 : index
    %c0_3 = arith.constant 0 : index
    %3 = vector.load %arg2[%c0_2, %c0_3] : memref<1152x64xbf16, #tpu.memory_space<vmem>>, vector<128x64xbf16>
    %cst_4 = arith.constant dense<0.000000e+00> : vector<80x64xf32>
    %4 = tpu.matmul %2, %3, %cst_4 {dimension_numbers = #tpu.dot_dimension_numbers<[1], [0], [0], [1], [0, 0, 1, 1], [], []>} : vector<80x128xbf16>, vector<128x64xbf16>, vector<80x64xf32> -> vector<80x64xf32>
    %5 = arith.addf %0, %4 : vector<80x64xf32>
    %c0_5 = arith.constant 0 : index
    %c1 = arith.constant 1 : index
    %c0_6 = arith.constant 0 : index
    %6 = vector.load %arg1[%c0_5, %c1, %c0_6] : memref<1x110x128xbf16, #tpu.memory_space<vmem>>, vector<1x80x128xbf16>
    %7 = vector.shape_cast %6 : vector<1x80x128xbf16> to vector<80x128xbf16>
    %c128 = arith.constant 128 : index
    %c0_7 = arith.constant 0 : index
    %8 = vector.load %arg2[%c128, %c0_7] : memref<1152x64xbf16, #tpu.memory_space<vmem>>, vector<128x64xbf16>
    %cst_8 = arith.constant dense<0.000000e+00> : vector<80x64xf32>
    %9 = tpu.matmul %7, %8, %cst_8 {dimension_numbers = #tpu.dot_dimension_numbers<[1], [0], [0], [1], [0, 0, 1, 1], [], []>} : vector<80x128xbf16>, vector<128x64xbf16>, vector<80x64xf32> -> vector<80x64xf32>
    %10 = arith.addf %5, %9 : vector<80x64xf32>
    %c0_9 = arith.constant 0 : index
    %c2 = arith.constant 2 : index
    %c0_10 = arith.constant 0 : index
    %11 = vector.load %arg1[%c0_9, %c2, %c0_10] : memref<1x110x128xbf16, #tpu.memory_space<vmem>>, vector<1x80x128xbf16>
    %12 = vector.shape_cast %11 : vector<1x80x128xbf16> to vector<80x128xbf16>
    %c256 = arith.constant 256 : index
    %c0_11 = arith.constant 0 : index
    %13 = vector.load %arg2[%c256, %c0_11] : memref<1152x64xbf16, #tpu.memory_space<vmem>>, vector<128x64xbf16>
    %cst_12 = arith.constant dense<0.000000e+00> : vector<80x64xf32>
    %14 = tpu.matmul %12, %13, %cst_12 {dimension_numbers = #tpu.dot_dimension_numbers<[1], [0], [0], [1], [0, 0, 1, 1], [], []>} : vector<80x128xbf16>, vector<128x64xbf16>, vector<80x64xf32> -> vector<80x64xf32>
    %15 = arith.addf %10, %14 : vector<80x64xf32>
    %c0_13 = arith.constant 0 : index
    %c10 = arith.constant 10 : index
    %c0_14 = arith.constant 0 : index
    %16 = vector.load %arg1[%c0_13, %c10, %c0_14] : memref<1x110x128xbf16, #tpu.memory_space<vmem>>, vector<1x80x128xbf16>
    %17 = vector.shape_cast %16 : vector<1x80x128xbf16> to vector<80x128xbf16>
    %c384 = arith.constant 384 : index
    %c0_15 = arith.constant 0 : index
    %18 = vector.load %arg2[%c384, %c0_15] : memref<1152x64xbf16, #tpu.memory_space<vmem>>, vector<128x64xbf16>
    %cst_16 = arith.constant dense<0.000000e+00> : vector<80x64xf32>
    %19 = tpu.matmul %17, %18, %cst_16 {dimension_numbers = #tpu.dot_dimension_numbers<[1], [0], [0], [1], [0, 0, 1, 1], [], []>} : vector<80x128xbf16>, vector<128x64xbf16>, vector<80x64xf32> -> vector<80x64xf32>
    %20 = arith.addf %15, %19 : vector<80x64xf32>
    %c0_17 = arith.constant 0 : index
    %c11 = arith.constant 11 : index
    %c0_18 = arith.constant 0 : index
    %21 = vector.load %arg1[%c0_17, %c11, %c0_18] : memref<1x110x128xbf16, #tpu.memory_space<vmem>>, vector<1x80x128xbf16>
    %22 = vector.shape_cast %21 : vector<1x80x128xbf16> to vector<80x128xbf16>
    %c512 = arith.constant 512 : index
    %c0_19 = arith.constant 0 : index
    %23 = vector.load %arg2[%c512, %c0_19] : memref<1152x64xbf16, #tpu.memory_space<vmem>>, vector<128x64xbf16>
    %cst_20 = arith.constant dense<0.000000e+00> : vector<80x64xf32>
    %24 = tpu.matmul %22, %23, %cst_20 {dimension_numbers = #tpu.dot_dimension_numbers<[1], [0], [0], [1], [0, 0, 1, 1], [], []>} : vector<80x128xbf16>, vector<128x64xbf16>, vector<80x64xf32> -> vector<80x64xf32>
    %25 = arith.addf %20, %24 : vector<80x64xf32>
    %c0_21 = arith.constant 0 : index
    %c12 = arith.constant 12 : index
    %c0_22 = arith.constant 0 : index
    %26 = vector.load %arg1[%c0_21, %c12, %c0_22] : memref<1x110x128xbf16, #tpu.memory_space<vmem>>, vector<1x80x128xbf16>
    %27 = vector.shape_cast %26 : vector<1x80x128xbf16> to vector<80x128xbf16>
    %c640 = arith.constant 640 : index
    %c0_23 = arith.constant 0 : index
    %28 = vector.load %arg2[%c640, %c0_23] : memref<1152x64xbf16, #tpu.memory_space<vmem>>, vector<128x64xbf16>
    %cst_24 = arith.constant dense<0.000000e+00> : vector<80x64xf32>
    %29 = tpu.matmul %27, %28, %cst_24 {dimension_numbers = #tpu.dot_dimension_numbers<[1], [0], [0], [1], [0, 0, 1, 1], [], []>} : vector<80x128xbf16>, vector<128x64xbf16>, vector<80x64xf32> -> vector<80x64xf32>
    %30 = arith.addf %25, %29 : vector<80x64xf32>
    %c0_25 = arith.constant 0 : index
    %c20 = arith.constant 20 : index
    %c0_26 = arith.constant 0 : index
    %31 = vector.load %arg1[%c0_25, %c20, %c0_26] : memref<1x110x128xbf16, #tpu.memory_space<vmem>>, vector<1x80x128xbf16>
    %32 = vector.shape_cast %31 : vector<1x80x128xbf16> to vector<80x128xbf16>
    %c768 = arith.constant 768 : index
    %c0_27 = arith.constant 0 : index
    %33 = vector.load %arg2[%c768, %c0_27] : memref<1152x64xbf16, #tpu.memory_space<vmem>>, vector<128x64xbf16>
    %cst_28 = arith.constant dense<0.000000e+00> : vector<80x64xf32>
    %34 = tpu.matmul %32, %33, %cst_28 {dimension_numbers = #tpu.dot_dimension_numbers<[1], [0], [0], [1], [0, 0, 1, 1], [], []>} : vector<80x128xbf16>, vector<128x64xbf16>, vector<80x64xf32> -> vector<80x64xf32>
    %35 = arith.addf %30, %34 : vector<80x64xf32>
    %c0_29 = arith.constant 0 : index
    %c21 = arith.constant 21 : index
    %c0_30 = arith.constant 0 : index
    %36 = vector.load %arg1[%c0_29, %c21, %c0_30] : memref<1x110x128xbf16, #tpu.memory_space<vmem>>, vector<1x80x128xbf16>
    %37 = vector.shape_cast %36 : vector<1x80x128xbf16> to vector<80x128xbf16>
    %c896 = arith.constant 896 : index
    %c0_31 = arith.constant 0 : index
    %38 = vector.load %arg2[%c896, %c0_31] : memref<1152x64xbf16, #tpu.memory_space<vmem>>, vector<128x64xbf16>
    %cst_32 = arith.constant dense<0.000000e+00> : vector<80x64xf32>
    %39 = tpu.matmul %37, %38, %cst_32 {dimension_numbers = #tpu.dot_dimension_numbers<[1], [0], [0], [1], [0, 0, 1, 1], [], []>} : vector<80x128xbf16>, vector<128x64xbf16>, vector<80x64xf32> -> vector<80x64xf32>
    %40 = arith.addf %35, %39 : vector<80x64xf32>
    %c0_33 = arith.constant 0 : index
    %c22 = arith.constant 22 : index
    %c0_34 = arith.constant 0 : index
    %41 = vector.load %arg1[%c0_33, %c22, %c0_34] : memref<1x110x128xbf16, #tpu.memory_space<vmem>>, vector<1x80x128xbf16>
    %42 = vector.shape_cast %41 : vector<1x80x128xbf16> to vector<80x128xbf16>
    %c1024 = arith.constant 1024 : index
    %c0_35 = arith.constant 0 : index
    %43 = vector.load %arg2[%c1024, %c0_35] : memref<1152x64xbf16, #tpu.memory_space<vmem>>, vector<128x64xbf16>
    %cst_36 = arith.constant dense<0.000000e+00> : vector<80x64xf32>
    %44 = tpu.matmul %42, %43, %cst_36 {dimension_numbers = #tpu.dot_dimension_numbers<[1], [0], [0], [1], [0, 0, 1, 1], [], []>} : vector<80x128xbf16>, vector<128x64xbf16>, vector<80x64xf32> -> vector<80x64xf32>
    %45 = arith.addf %40, %44 : vector<80x64xf32>
    %c0_37 = arith.constant 0 : index
    %c0_38 = arith.constant 0 : index
    %46 = vector.load %arg3[%c0_37, %c0_38] : memref<1x64xf32, #tpu.memory_space<vmem>>, vector<1x64xf32>
    %47 = vector.broadcast %46 : vector<1x64xf32> to vector<80x64xf32>
    %48 = arith.addf %45, %47 : vector<80x64xf32>
    %cst_39 = arith.constant 0.000000e+00 : f32
    %49 = vector.broadcast %cst_39 : f32 to vector<80x64xf32>
    %50 = arith.cmpf oge, %48, %49 : vector<80x64xf32>
    %cst_40 = arith.constant 2.000000e-01 : f32
    %51 = vector.broadcast %cst_40 : f32 to vector<80x64xf32>
    %52 = arith.mulf %48, %51 : vector<80x64xf32>
    %53 = arith.select %50, %48, %52 : vector<80x64xi1>, vector<80x64xf32>
    %cst_41 = arith.constant 1.000000e+00 : f32
    %54 = vector.broadcast %cst_41 : f32 to vector<80x64xf32>
    %55 = arith.mulf %53, %54 : vector<80x64xf32>
    %cst_42 = arith.constant 0.000000e+00 : f32
    %56 = vector.broadcast %cst_42 : f32 to vector<80x64xf32>
    %c0_43 = arith.constant 0 : index
    %c0_44 = arith.constant 0 : index
    %c0_45 = arith.constant 0 : index
    %57 = vector.load %arg4[%c0_43, %c0_44, %c0_45] : memref<1x100x128xbf16, #tpu.memory_space<vmem>>, vector<1x80x128xbf16>
    %58 = vector.shape_cast %57 : vector<1x80x128xbf16> to vector<80x128xbf16>
    %c0_46 = arith.constant 0 : index
    %c0_47 = arith.constant 0 : index
    %59 = vector.load %arg5[%c0_46, %c0_47] : memref<512x64xbf16, #tpu.memory_space<vmem>>, vector<128x64xbf16>
    %cst_48 = arith.constant dense<0.000000e+00> : vector<80x64xf32>
    %60 = tpu.matmul %58, %59, %cst_48 {dimension_numbers = #tpu.dot_dimension_numbers<[1], [0], [0], [1], [0, 0, 1, 1], [], []>} : vector<80x128xbf16>, vector<128x64xbf16>, vector<80x64xf32> -> vector<80x64xf32>
    %61 = arith.addf %56, %60 : vector<80x64xf32>
    %c0_49 = arith.constant 0 : index
    %c1_50 = arith.constant 1 : index
    %c0_51 = arith.constant 0 : index
    %62 = vector.load %arg4[%c0_49, %c1_50, %c0_51] : memref<1x100x128xbf16, #tpu.memory_space<vmem>>, vector<1x80x128xbf16>
    %63 = vector.shape_cast %62 : vector<1x80x128xbf16> to vector<80x128xbf16>
    %c128_52 = arith.constant 128 : index
    %c0_53 = arith.constant 0 : index
    %64 = vector.load %arg5[%c128_52, %c0_53] : memref<512x64xbf16, #tpu.memory_space<vmem>>, vector<128x64xbf16>
    %cst_54 = arith.constant dense<0.000000e+00> : vector<80x64xf32>
    %65 = tpu.matmul %63, %64, %cst_54 {dimension_numbers = #tpu.dot_dimension_numbers<[1], [0], [0], [1], [0, 0, 1, 1], [], []>} : vector<80x128xbf16>, vector<128x64xbf16>, vector<80x64xf32> -> vector<80x64xf32>
    %66 = arith.addf %61, %65 : vector<80x64xf32>
    %c0_55 = arith.constant 0 : index
    %c10_56 = arith.constant 10 : index
    %c0_57 = arith.constant 0 : index
    %67 = vector.load %arg4[%c0_55, %c10_56, %c0_57] : memref<1x100x128xbf16, #tpu.memory_space<vmem>>, vector<1x80x128xbf16>
    %68 = vector.shape_cast %67 : vector<1x80x128xbf16> to vector<80x128xbf16>
    %c256_58 = arith.constant 256 : index
    %c0_59 = arith.constant 0 : index
    %69 = vector.load %arg5[%c256_58, %c0_59] : memref<512x64xbf16, #tpu.memory_space<vmem>>, vector<128x64xbf16>
    %cst_60 = arith.constant dense<0.000000e+00> : vector<80x64xf32>
    %70 = tpu.matmul %68, %69, %cst_60 {dimension_numbers = #tpu.dot_dimension_numbers<[1], [0], [0], [1], [0, 0, 1, 1], [], []>} : vector<80x128xbf16>, vector<128x64xbf16>, vector<80x64xf32> -> vector<80x64xf32>
    %71 = arith.addf %66, %70 : vector<80x64xf32>
    %c0_61 = arith.constant 0 : index
    %c11_62 = arith.constant 11 : index
    %c0_63 = arith.constant 0 : index
    %72 = vector.load %arg4[%c0_61, %c11_62, %c0_63] : memref<1x100x128xbf16, #tpu.memory_space<vmem>>, vector<1x80x128xbf16>
    %73 = vector.shape_cast %72 : vector<1x80x128xbf16> to vector<80x128xbf16>
    %c384_64 = arith.constant 384 : index
    %c0_65 = arith.constant 0 : index
    %74 = vector.load %arg5[%c384_64, %c0_65] : memref<512x64xbf16, #tpu.memory_space<vmem>>, vector<128x64xbf16>
    %cst_66 = arith.constant dense<0.000000e+00> : vector<80x64xf32>
    %75 = tpu.matmul %73, %74, %cst_66 {dimension_numbers = #tpu.dot_dimension_numbers<[1], [0], [0], [1], [0, 0, 1, 1], [], []>} : vector<80x128xbf16>, vector<128x64xbf16>, vector<80x64xf32> -> vector<80x64xf32>
    %76 = arith.addf %71, %75 : vector<80x64xf32>
    %cst_67 = arith.constant 0.707106769 : f32
    %77 = vector.broadcast %cst_67 : f32 to vector<80x64xf32>
    %78 = arith.mulf %76, %77 : vector<80x64xf32>
    %79 = arith.addf %55, %78 : vector<80x64xf32>
    %c0_68 = arith.constant 0 : index
    %c0_69 = arith.constant 0 : index
    %c0_70 = arith.constant 0 : index
    %80 = vector.load %arg6[%c0_68, %c0_69, %c0_70] : memref<1x80x64xf32, #tpu.memory_space<vmem>>, vector<1x80x64xf32>
    %81 = vector.shape_cast %80 : vector<1x80x64xf32> to vector<80x64xf32>
    %82 = vector.shape_cast %79 : vector<80x64xf32> to vector<1x80x64xf32>
    tpu.vector_store %arg6[%c0_68, %c0_69, %c0_70], %82 {strides = array<i32>} : memref<1x80x64xf32, #tpu.memory_space<vmem>>, vector<1x80x64xf32>,
    return
  }
  func.func @transform_0(%arg0: i32) -> (i32, i32, i32) {
    %c0_i32 = arith.constant 0 : i32
    %c0_i32_0 = arith.constant 0 : i32
    %c0_i32_1 = arith.constant 0 : i32
    return %arg0, %c0_i32, %c0_i32_0 : i32, i32, i32
  }
  func.func @transform_1(%arg0: i32) -> (i32, i32) {
    %c0_i32 = arith.constant 0 : i32
    %c0_i32_0 = arith.constant 0 : i32
    %c0_i32_1 = arith.constant 0 : i32
    return %c0_i32, %c0_i32_0 : i32, i32
  }
  func.func @transform_2(%arg0: i32) -> (i32, i32) {
    %c0_i32 = arith.constant 0 : i32
    %c0_i32_0 = arith.constant 0 : i32
    %c0_i32_1 = arith.constant 0 : i32
    return %c0_i32, %c0_i32_0 : i32, i32
  }
  func.func @transform_3(%arg0: i32) -> (i32, i32, i32) {
    %c0_i32 = arith.constant 0 : i32
    %c0_i32_0 = arith.constant 0 : i32
    %c0_i32_1 = arith.constant 0 : i32
    return %arg0, %c0_i32, %c0_i32_0 : i32, i32, i32
  }
  func.func @transform_4(%arg0: i32) -> (i32, i32) {
    %c0_i32 = arith.constant 0 : i32
    %c0_i32_0 = arith.constant 0 : i32
    %c0_i32_1 = arith.constant 0 : i32
    return %c0_i32, %c0_i32_0 : i32, i32
  }
  func.func @transform_5(%arg0: i32) -> (i32, i32, i32) {
    %c0_i32 = arith.constant 0 : i32
    %c0_i32_0 = arith.constant 0 : i32
    %c0_i32_1 = arith.constant 0 : i32
    return %arg0, %c0_i32, %c0_i32_0 : i32, i32, i32
  }
}

module attributes {stable_mosaic.version = 11 : i64} {
  func.func @kernel(%arg0: i32, %arg1: memref<1x110x64xbf16, #tpu.memory_space<vmem>>, %arg2: memref<576x64xbf16, #tpu.memory_space<vmem>>, %arg3: memref<1x64xf32, #tpu.memory_space<vmem>>, %arg4: memref<1x80x64xbf16, #tpu.memory_space<vmem>>) attributes {dimension_semantics = [#tpu.dimension_semantics<parallel>], iteration_bounds = array<i64: 4>, scalar_prefetch = 0 : i64, scratch_operands = 0 : i64, tpu.core_type = #tpu.core_type<tc>, window_params = [{transform_indices = @transform_0, window_bounds = array<i64: 1, 110, 64>}, {pipeline_mode = #tpu.pipeline_mode<synchronous>, transform_indices = @transform_1, window_bounds = array<i64: 576, 64>}, {pipeline_mode = #tpu.pipeline_mode<synchronous>, transform_indices = @transform_2, window_bounds = array<i64: 1, 64>}, {transform_indices = @transform_3, window_bounds = array<i64: 1, 80, 64>}]} {
    %cst = arith.constant 0.000000e+00 : f32
    %0 = vector.broadcast %cst : f32 to vector<80x64xf32>
    %c0 = arith.constant 0 : index
    %c0_0 = arith.constant 0 : index
    %c0_1 = arith.constant 0 : index
    %1 = vector.load %arg1[%c0, %c0_0, %c0_1] : memref<1x110x64xbf16, #tpu.memory_space<vmem>>, vector<1x80x64xbf16>
    %2 = vector.shape_cast %1 : vector<1x80x64xbf16> to vector<80x64xbf16>
    %c0_2 = arith.constant 0 : index
    %c0_3 = arith.constant 0 : index
    %3 = vector.load %arg2[%c0_2, %c0_3] : memref<576x64xbf16, #tpu.memory_space<vmem>>, vector<64x64xbf16>
    %cst_4 = arith.constant dense<0.000000e+00> : vector<80x64xf32>
    %4 = tpu.matmul %2, %3, %cst_4 {dimension_numbers = #tpu.dot_dimension_numbers<[1], [0], [0], [1], [0, 0, 1, 1], [], []>} : vector<80x64xbf16>, vector<64x64xbf16>, vector<80x64xf32> -> vector<80x64xf32>
    %5 = arith.addf %0, %4 : vector<80x64xf32>
    %c0_5 = arith.constant 0 : index
    %c1 = arith.constant 1 : index
    %c0_6 = arith.constant 0 : index
    %6 = vector.load %arg1[%c0_5, %c1, %c0_6] : memref<1x110x64xbf16, #tpu.memory_space<vmem>>, vector<1x80x64xbf16>
    %7 = vector.shape_cast %6 : vector<1x80x64xbf16> to vector<80x64xbf16>
    %c64 = arith.constant 64 : index
    %c0_7 = arith.constant 0 : index
    %8 = vector.load %arg2[%c64, %c0_7] : memref<576x64xbf16, #tpu.memory_space<vmem>>, vector<64x64xbf16>
    %cst_8 = arith.constant dense<0.000000e+00> : vector<80x64xf32>
    %9 = tpu.matmul %7, %8, %cst_8 {dimension_numbers = #tpu.dot_dimension_numbers<[1], [0], [0], [1], [0, 0, 1, 1], [], []>} : vector<80x64xbf16>, vector<64x64xbf16>, vector<80x64xf32> -> vector<80x64xf32>
    %10 = arith.addf %5, %9 : vector<80x64xf32>
    %c0_9 = arith.constant 0 : index
    %c2 = arith.constant 2 : index
    %c0_10 = arith.constant 0 : index
    %11 = vector.load %arg1[%c0_9, %c2, %c0_10] : memref<1x110x64xbf16, #tpu.memory_space<vmem>>, vector<1x80x64xbf16>
    %12 = vector.shape_cast %11 : vector<1x80x64xbf16> to vector<80x64xbf16>
    %c128 = arith.constant 128 : index
    %c0_11 = arith.constant 0 : index
    %13 = vector.load %arg2[%c128, %c0_11] : memref<576x64xbf16, #tpu.memory_space<vmem>>, vector<64x64xbf16>
    %cst_12 = arith.constant dense<0.000000e+00> : vector<80x64xf32>
    %14 = tpu.matmul %12, %13, %cst_12 {dimension_numbers = #tpu.dot_dimension_numbers<[1], [0], [0], [1], [0, 0, 1, 1], [], []>} : vector<80x64xbf16>, vector<64x64xbf16>, vector<80x64xf32> -> vector<80x64xf32>
    %15 = arith.addf %10, %14 : vector<80x64xf32>
    %c0_13 = arith.constant 0 : index
    %c10 = arith.constant 10 : index
    %c0_14 = arith.constant 0 : index
    %16 = vector.load %arg1[%c0_13, %c10, %c0_14] : memref<1x110x64xbf16, #tpu.memory_space<vmem>>, vector<1x80x64xbf16>
    %17 = vector.shape_cast %16 : vector<1x80x64xbf16> to vector<80x64xbf16>
    %c192 = arith.constant 192 : index
    %c0_15 = arith.constant 0 : index
    %18 = vector.load %arg2[%c192, %c0_15] : memref<576x64xbf16, #tpu.memory_space<vmem>>, vector<64x64xbf16>
    %cst_16 = arith.constant dense<0.000000e+00> : vector<80x64xf32>
    %19 = tpu.matmul %17, %18, %cst_16 {dimension_numbers = #tpu.dot_dimension_numbers<[1], [0], [0], [1], [0, 0, 1, 1], [], []>} : vector<80x64xbf16>, vector<64x64xbf16>, vector<80x64xf32> -> vector<80x64xf32>
    %20 = arith.addf %15, %19 : vector<80x64xf32>
    %c0_17 = arith.constant 0 : index
    %c11 = arith.constant 11 : index
    %c0_18 = arith.constant 0 : index
    %21 = vector.load %arg1[%c0_17, %c11, %c0_18] : memref<1x110x64xbf16, #tpu.memory_space<vmem>>, vector<1x80x64xbf16>
    %22 = vector.shape_cast %21 : vector<1x80x64xbf16> to vector<80x64xbf16>
    %c256 = arith.constant 256 : index
    %c0_19 = arith.constant 0 : index
    %23 = vector.load %arg2[%c256, %c0_19] : memref<576x64xbf16, #tpu.memory_space<vmem>>, vector<64x64xbf16>
    %cst_20 = arith.constant dense<0.000000e+00> : vector<80x64xf32>
    %24 = tpu.matmul %22, %23, %cst_20 {dimension_numbers = #tpu.dot_dimension_numbers<[1], [0], [0], [1], [0, 0, 1, 1], [], []>} : vector<80x64xbf16>, vector<64x64xbf16>, vector<80x64xf32> -> vector<80x64xf32>
    %25 = arith.addf %20, %24 : vector<80x64xf32>
    %c0_21 = arith.constant 0 : index
    %c12 = arith.constant 12 : index
    %c0_22 = arith.constant 0 : index
    %26 = vector.load %arg1[%c0_21, %c12, %c0_22] : memref<1x110x64xbf16, #tpu.memory_space<vmem>>, vector<1x80x64xbf16>
    %27 = vector.shape_cast %26 : vector<1x80x64xbf16> to vector<80x64xbf16>
    %c320 = arith.constant 320 : index
    %c0_23 = arith.constant 0 : index
    %28 = vector.load %arg2[%c320, %c0_23] : memref<576x64xbf16, #tpu.memory_space<vmem>>, vector<64x64xbf16>
    %cst_24 = arith.constant dense<0.000000e+00> : vector<80x64xf32>
    %29 = tpu.matmul %27, %28, %cst_24 {dimension_numbers = #tpu.dot_dimension_numbers<[1], [0], [0], [1], [0, 0, 1, 1], [], []>} : vector<80x64xbf16>, vector<64x64xbf16>, vector<80x64xf32> -> vector<80x64xf32>
    %30 = arith.addf %25, %29 : vector<80x64xf32>
    %c0_25 = arith.constant 0 : index
    %c20 = arith.constant 20 : index
    %c0_26 = arith.constant 0 : index
    %31 = vector.load %arg1[%c0_25, %c20, %c0_26] : memref<1x110x64xbf16, #tpu.memory_space<vmem>>, vector<1x80x64xbf16>
    %32 = vector.shape_cast %31 : vector<1x80x64xbf16> to vector<80x64xbf16>
    %c384 = arith.constant 384 : index
    %c0_27 = arith.constant 0 : index
    %33 = vector.load %arg2[%c384, %c0_27] : memref<576x64xbf16, #tpu.memory_space<vmem>>, vector<64x64xbf16>
    %cst_28 = arith.constant dense<0.000000e+00> : vector<80x64xf32>
    %34 = tpu.matmul %32, %33, %cst_28 {dimension_numbers = #tpu.dot_dimension_numbers<[1], [0], [0], [1], [0, 0, 1, 1], [], []>} : vector<80x64xbf16>, vector<64x64xbf16>, vector<80x64xf32> -> vector<80x64xf32>
    %35 = arith.addf %30, %34 : vector<80x64xf32>
    %c0_29 = arith.constant 0 : index
    %c21 = arith.constant 21 : index
    %c0_30 = arith.constant 0 : index
    %36 = vector.load %arg1[%c0_29, %c21, %c0_30] : memref<1x110x64xbf16, #tpu.memory_space<vmem>>, vector<1x80x64xbf16>
    %37 = vector.shape_cast %36 : vector<1x80x64xbf16> to vector<80x64xbf16>
    %c448 = arith.constant 448 : index
    %c0_31 = arith.constant 0 : index
    %38 = vector.load %arg2[%c448, %c0_31] : memref<576x64xbf16, #tpu.memory_space<vmem>>, vector<64x64xbf16>
    %cst_32 = arith.constant dense<0.000000e+00> : vector<80x64xf32>
    %39 = tpu.matmul %37, %38, %cst_32 {dimension_numbers = #tpu.dot_dimension_numbers<[1], [0], [0], [1], [0, 0, 1, 1], [], []>} : vector<80x64xbf16>, vector<64x64xbf16>, vector<80x64xf32> -> vector<80x64xf32>
    %40 = arith.addf %35, %39 : vector<80x64xf32>
    %c0_33 = arith.constant 0 : index
    %c22 = arith.constant 22 : index
    %c0_34 = arith.constant 0 : index
    %41 = vector.load %arg1[%c0_33, %c22, %c0_34] : memref<1x110x64xbf16, #tpu.memory_space<vmem>>, vector<1x80x64xbf16>
    %42 = vector.shape_cast %41 : vector<1x80x64xbf16> to vector<80x64xbf16>
    %c512 = arith.constant 512 : index
    %c0_35 = arith.constant 0 : index
    %43 = vector.load %arg2[%c512, %c0_35] : memref<576x64xbf16, #tpu.memory_space<vmem>>, vector<64x64xbf16>
    %cst_36 = arith.constant dense<0.000000e+00> : vector<80x64xf32>
    %44 = tpu.matmul %42, %43, %cst_36 {dimension_numbers = #tpu.dot_dimension_numbers<[1], [0], [0], [1], [0, 0, 1, 1], [], []>} : vector<80x64xbf16>, vector<64x64xbf16>, vector<80x64xf32> -> vector<80x64xf32>
    %45 = arith.addf %40, %44 : vector<80x64xf32>
    %c0_37 = arith.constant 0 : index
    %c0_38 = arith.constant 0 : index
    %46 = vector.load %arg3[%c0_37, %c0_38] : memref<1x64xf32, #tpu.memory_space<vmem>>, vector<1x64xf32>
    %47 = vector.broadcast %46 : vector<1x64xf32> to vector<80x64xf32>
    %48 = arith.addf %45, %47 : vector<80x64xf32>
    %cst_39 = arith.constant 0.000000e+00 : f32
    %49 = vector.broadcast %cst_39 : f32 to vector<80x64xf32>
    %50 = arith.cmpf oge, %48, %49 : vector<80x64xf32>
    %cst_40 = arith.constant 2.000000e-01 : f32
    %51 = vector.broadcast %cst_40 : f32 to vector<80x64xf32>
    %52 = arith.mulf %48, %51 : vector<80x64xf32>
    %53 = arith.select %50, %48, %52 : vector<80x64xi1>, vector<80x64xf32>
    %cst_41 = arith.constant 1.41421354 : f32
    %54 = vector.broadcast %cst_41 : f32 to vector<80x64xf32>
    %55 = arith.mulf %53, %54 : vector<80x64xf32>
    %56 = arith.truncf %55 : vector<80x64xf32> to vector<80x64xbf16>
    %c0_42 = arith.constant 0 : index
    %c0_43 = arith.constant 0 : index
    %c0_44 = arith.constant 0 : index
    %57 = vector.load %arg4[%c0_42, %c0_43, %c0_44] : memref<1x80x64xbf16, #tpu.memory_space<vmem>>, vector<1x80x64xbf16>
    %58 = vector.shape_cast %57 : vector<1x80x64xbf16> to vector<80x64xbf16>
    %59 = vector.shape_cast %56 : vector<80x64xbf16> to vector<1x80x64xbf16>
    tpu.vector_store %arg4[%c0_42, %c0_43, %c0_44], %59 {strides = array<i32>} : memref<1x80x64xbf16, #tpu.memory_space<vmem>>, vector<1x80x64xbf16>,
    return
  }
  func.func @transform_0(%arg0: i32) -> (i32, i32, i32) {
    %c0_i32 = arith.constant 0 : i32
    %c0_i32_0 = arith.constant 0 : i32
    %c0_i32_1 = arith.constant 0 : i32
    return %arg0, %c0_i32, %c0_i32_0 : i32, i32, i32
  }
  func.func @transform_1(%arg0: i32) -> (i32, i32) {
    %c0_i32 = arith.constant 0 : i32
    %c0_i32_0 = arith.constant 0 : i32
    %c0_i32_1 = arith.constant 0 : i32
    return %c0_i32, %c0_i32_0 : i32, i32
  }
  func.func @transform_2(%arg0: i32) -> (i32, i32) {
    %c0_i32 = arith.constant 0 : i32
    %c0_i32_0 = arith.constant 0 : i32
    %c0_i32_1 = arith.constant 0 : i32
    return %c0_i32, %c0_i32_0 : i32, i32
  }
  func.func @transform_3(%arg0: i32) -> (i32, i32, i32) {
    %c0_i32 = arith.constant 0 : i32
    %c0_i32_0 = arith.constant 0 : i32
    %c0_i32_1 = arith.constant 0 : i32
    return %arg0, %c0_i32, %c0_i32_0 : i32, i32, i32
  }
}

module attributes {stable_mosaic.version = 11 : i64} {
  func.func @kernel(%arg0: i32, %arg1: memref<1x42x256xbf16, #tpu.memory_space<vmem>>, %arg2: memref<2304x64xbf16, #tpu.memory_space<vmem>>, %arg3: memref<1x64xf32, #tpu.memory_space<vmem>>, %arg4: memref<1x36x256xbf16, #tpu.memory_space<vmem>>, %arg5: memref<1024x64xbf16, #tpu.memory_space<vmem>>, %arg6: memref<1x24x64xf32, #tpu.memory_space<vmem>>) attributes {dimension_semantics = [#tpu.dimension_semantics<parallel>], iteration_bounds = array<i64: 4>, scalar_prefetch = 0 : i64, scratch_operands = 0 : i64, tpu.core_type = #tpu.core_type<tc>, window_params = [{transform_indices = @transform_0, window_bounds = array<i64: 1, 42, 256>}, {pipeline_mode = #tpu.pipeline_mode<synchronous>, transform_indices = @transform_1, window_bounds = array<i64: 2304, 64>}, {pipeline_mode = #tpu.pipeline_mode<synchronous>, transform_indices = @transform_2, window_bounds = array<i64: 1, 64>}, {transform_indices = @transform_3, window_bounds = array<i64: 1, 36, 256>}, {pipeline_mode = #tpu.pipeline_mode<synchronous>, transform_indices = @transform_4, window_bounds = array<i64: 1024, 64>}, {transform_indices = @transform_5, window_bounds = array<i64: 1, 24, 64>}]} {
    %cst = arith.constant 0.000000e+00 : f32
    %0 = vector.broadcast %cst : f32 to vector<24x64xf32>
    %c0 = arith.constant 0 : index
    %c0_0 = arith.constant 0 : index
    %c0_1 = arith.constant 0 : index
    %1 = vector.load %arg1[%c0, %c0_0, %c0_1] : memref<1x42x256xbf16, #tpu.memory_space<vmem>>, vector<1x24x256xbf16>
    %2 = vector.shape_cast %1 : vector<1x24x256xbf16> to vector<24x256xbf16>
    %c0_2 = arith.constant 0 : index
    %c0_3 = arith.constant 0 : index
    %3 = vector.load %arg2[%c0_2, %c0_3] : memref<2304x64xbf16, #tpu.memory_space<vmem>>, vector<256x64xbf16>
    %cst_4 = arith.constant dense<0.000000e+00> : vector<24x64xf32>
    %4 = tpu.matmul %2, %3, %cst_4 {dimension_numbers = #tpu.dot_dimension_numbers<[1], [0], [0], [1], [0, 0, 1, 1], [], []>} : vector<24x256xbf16>, vector<256x64xbf16>, vector<24x64xf32> -> vector<24x64xf32>
    %5 = arith.addf %0, %4 : vector<24x64xf32>
    %c0_5 = arith.constant 0 : index
    %c1 = arith.constant 1 : index
    %c0_6 = arith.constant 0 : index
    %6 = vector.load %arg1[%c0_5, %c1, %c0_6] : memref<1x42x256xbf16, #tpu.memory_space<vmem>>, vector<1x24x256xbf16>
    %7 = vector.shape_cast %6 : vector<1x24x256xbf16> to vector<24x256xbf16>
    %c256 = arith.constant 256 : index
    %c0_7 = arith.constant 0 : index
    %8 = vector.load %arg2[%c256, %c0_7] : memref<2304x64xbf16, #tpu.memory_space<vmem>>, vector<256x64xbf16>
    %cst_8 = arith.constant dense<0.000000e+00> : vector<24x64xf32>
    %9 = tpu.matmul %7, %8, %cst_8 {dimension_numbers = #tpu.dot_dimension_numbers<[1], [0], [0], [1], [0, 0, 1, 1], [], []>} : vector<24x256xbf16>, vector<256x64xbf16>, vector<24x64xf32> -> vector<24x64xf32>
    %10 = arith.addf %5, %9 : vector<24x64xf32>
    %c0_9 = arith.constant 0 : index
    %c2 = arith.constant 2 : index
    %c0_10 = arith.constant 0 : index
    %11 = vector.load %arg1[%c0_9, %c2, %c0_10] : memref<1x42x256xbf16, #tpu.memory_space<vmem>>, vector<1x24x256xbf16>
    %12 = vector.shape_cast %11 : vector<1x24x256xbf16> to vector<24x256xbf16>
    %c512 = arith.constant 512 : index
    %c0_11 = arith.constant 0 : index
    %13 = vector.load %arg2[%c512, %c0_11] : memref<2304x64xbf16, #tpu.memory_space<vmem>>, vector<256x64xbf16>
    %cst_12 = arith.constant dense<0.000000e+00> : vector<24x64xf32>
    %14 = tpu.matmul %12, %13, %cst_12 {dimension_numbers = #tpu.dot_dimension_numbers<[1], [0], [0], [1], [0, 0, 1, 1], [], []>} : vector<24x256xbf16>, vector<256x64xbf16>, vector<24x64xf32> -> vector<24x64xf32>
    %15 = arith.addf %10, %14 : vector<24x64xf32>
    %c0_13 = arith.constant 0 : index
    %c6 = arith.constant 6 : index
    %c0_14 = arith.constant 0 : index
    %16 = vector.load %arg1[%c0_13, %c6, %c0_14] : memref<1x42x256xbf16, #tpu.memory_space<vmem>>, vector<1x24x256xbf16>
    %17 = vector.shape_cast %16 : vector<1x24x256xbf16> to vector<24x256xbf16>
    %c768 = arith.constant 768 : index
    %c0_15 = arith.constant 0 : index
    %18 = vector.load %arg2[%c768, %c0_15] : memref<2304x64xbf16, #tpu.memory_space<vmem>>, vector<256x64xbf16>
    %cst_16 = arith.constant dense<0.000000e+00> : vector<24x64xf32>
    %19 = tpu.matmul %17, %18, %cst_16 {dimension_numbers = #tpu.dot_dimension_numbers<[1], [0], [0], [1], [0, 0, 1, 1], [], []>} : vector<24x256xbf16>, vector<256x64xbf16>, vector<24x64xf32> -> vector<24x64xf32>
    %20 = arith.addf %15, %19 : vector<24x64xf32>
    %c0_17 = arith.constant 0 : index
    %c7 = arith.constant 7 : index
    %c0_18 = arith.constant 0 : index
    %21 = vector.load %arg1[%c0_17, %c7, %c0_18] : memref<1x42x256xbf16, #tpu.memory_space<vmem>>, vector<1x24x256xbf16>
    %22 = vector.shape_cast %21 : vector<1x24x256xbf16> to vector<24x256xbf16>
    %c1024 = arith.constant 1024 : index
    %c0_19 = arith.constant 0 : index
    %23 = vector.load %arg2[%c1024, %c0_19] : memref<2304x64xbf16, #tpu.memory_space<vmem>>, vector<256x64xbf16>
    %cst_20 = arith.constant dense<0.000000e+00> : vector<24x64xf32>
    %24 = tpu.matmul %22, %23, %cst_20 {dimension_numbers = #tpu.dot_dimension_numbers<[1], [0], [0], [1], [0, 0, 1, 1], [], []>} : vector<24x256xbf16>, vector<256x64xbf16>, vector<24x64xf32> -> vector<24x64xf32>
    %25 = arith.addf %20, %24 : vector<24x64xf32>
    %c0_21 = arith.constant 0 : index
    %c8 = arith.constant 8 : index
    %c0_22 = arith.constant 0 : index
    %26 = vector.load %arg1[%c0_21, %c8, %c0_22] : memref<1x42x256xbf16, #tpu.memory_space<vmem>>, vector<1x24x256xbf16>
    %27 = vector.shape_cast %26 : vector<1x24x256xbf16> to vector<24x256xbf16>
    %c1280 = arith.constant 1280 : index
    %c0_23 = arith.constant 0 : index
    %28 = vector.load %arg2[%c1280, %c0_23] : memref<2304x64xbf16, #tpu.memory_space<vmem>>, vector<256x64xbf16>
    %cst_24 = arith.constant dense<0.000000e+00> : vector<24x64xf32>
    %29 = tpu.matmul %27, %28, %cst_24 {dimension_numbers = #tpu.dot_dimension_numbers<[1], [0], [0], [1], [0, 0, 1, 1], [], []>} : vector<24x256xbf16>, vector<256x64xbf16>, vector<24x64xf32> -> vector<24x64xf32>
    %30 = arith.addf %25, %29 : vector<24x64xf32>
    %c0_25 = arith.constant 0 : index
    %c12 = arith.constant 12 : index
    %c0_26 = arith.constant 0 : index
    %31 = vector.load %arg1[%c0_25, %c12, %c0_26] : memref<1x42x256xbf16, #tpu.memory_space<vmem>>, vector<1x24x256xbf16>
    %32 = vector.shape_cast %31 : vector<1x24x256xbf16> to vector<24x256xbf16>
    %c1536 = arith.constant 1536 : index
    %c0_27 = arith.constant 0 : index
    %33 = vector.load %arg2[%c1536, %c0_27] : memref<2304x64xbf16, #tpu.memory_space<vmem>>, vector<256x64xbf16>
    %cst_28 = arith.constant dense<0.000000e+00> : vector<24x64xf32>
    %34 = tpu.matmul %32, %33, %cst_28 {dimension_numbers = #tpu.dot_dimension_numbers<[1], [0], [0], [1], [0, 0, 1, 1], [], []>} : vector<24x256xbf16>, vector<256x64xbf16>, vector<24x64xf32> -> vector<24x64xf32>
    %35 = arith.addf %30, %34 : vector<24x64xf32>
    %c0_29 = arith.constant 0 : index
    %c13 = arith.constant 13 : index
    %c0_30 = arith.constant 0 : index
    %36 = vector.load %arg1[%c0_29, %c13, %c0_30] : memref<1x42x256xbf16, #tpu.memory_space<vmem>>, vector<1x24x256xbf16>
    %37 = vector.shape_cast %36 : vector<1x24x256xbf16> to vector<24x256xbf16>
    %c1792 = arith.constant 1792 : index
    %c0_31 = arith.constant 0 : index
    %38 = vector.load %arg2[%c1792, %c0_31] : memref<2304x64xbf16, #tpu.memory_space<vmem>>, vector<256x64xbf16>
    %cst_32 = arith.constant dense<0.000000e+00> : vector<24x64xf32>
    %39 = tpu.matmul %37, %38, %cst_32 {dimension_numbers = #tpu.dot_dimension_numbers<[1], [0], [0], [1], [0, 0, 1, 1], [], []>} : vector<24x256xbf16>, vector<256x64xbf16>, vector<24x64xf32> -> vector<24x64xf32>
    %40 = arith.addf %35, %39 : vector<24x64xf32>
    %c0_33 = arith.constant 0 : index
    %c14 = arith.constant 14 : index
    %c0_34 = arith.constant 0 : index
    %41 = vector.load %arg1[%c0_33, %c14, %c0_34] : memref<1x42x256xbf16, #tpu.memory_space<vmem>>, vector<1x24x256xbf16>
    %42 = vector.shape_cast %41 : vector<1x24x256xbf16> to vector<24x256xbf16>
    %c2048 = arith.constant 2048 : index
    %c0_35 = arith.constant 0 : index
    %43 = vector.load %arg2[%c2048, %c0_35] : memref<2304x64xbf16, #tpu.memory_space<vmem>>, vector<256x64xbf16>
    %cst_36 = arith.constant dense<0.000000e+00> : vector<24x64xf32>
    %44 = tpu.matmul %42, %43, %cst_36 {dimension_numbers = #tpu.dot_dimension_numbers<[1], [0], [0], [1], [0, 0, 1, 1], [], []>} : vector<24x256xbf16>, vector<256x64xbf16>, vector<24x64xf32> -> vector<24x64xf32>
    %45 = arith.addf %40, %44 : vector<24x64xf32>
    %c0_37 = arith.constant 0 : index
    %c0_38 = arith.constant 0 : index
    %46 = vector.load %arg3[%c0_37, %c0_38] : memref<1x64xf32, #tpu.memory_space<vmem>>, vector<1x64xf32>
    %47 = vector.broadcast %46 : vector<1x64xf32> to vector<24x64xf32>
    %48 = arith.addf %45, %47 : vector<24x64xf32>
    %cst_39 = arith.constant 0.000000e+00 : f32
    %49 = vector.broadcast %cst_39 : f32 to vector<24x64xf32>
    %50 = arith.cmpf oge, %48, %49 : vector<24x64xf32>
    %cst_40 = arith.constant 2.000000e-01 : f32
    %51 = vector.broadcast %cst_40 : f32 to vector<24x64xf32>
    %52 = arith.mulf %48, %51 : vector<24x64xf32>
    %53 = arith.select %50, %48, %52 : vector<24x64xi1>, vector<24x64xf32>
    %cst_41 = arith.constant 1.000000e+00 : f32
    %54 = vector.broadcast %cst_41 : f32 to vector<24x64xf32>
    %55 = arith.mulf %53, %54 : vector<24x64xf32>
    %cst_42 = arith.constant 0.000000e+00 : f32
    %56 = vector.broadcast %cst_42 : f32 to vector<24x64xf32>
    %c0_43 = arith.constant 0 : index
    %c0_44 = arith.constant 0 : index
    %c0_45 = arith.constant 0 : index
    %57 = vector.load %arg4[%c0_43, %c0_44, %c0_45] : memref<1x36x256xbf16, #tpu.memory_space<vmem>>, vector<1x24x256xbf16>
    %58 = vector.shape_cast %57 : vector<1x24x256xbf16> to vector<24x256xbf16>
    %c0_46 = arith.constant 0 : index
    %c0_47 = arith.constant 0 : index
    %59 = vector.load %arg5[%c0_46, %c0_47] : memref<1024x64xbf16, #tpu.memory_space<vmem>>, vector<256x64xbf16>
    %cst_48 = arith.constant dense<0.000000e+00> : vector<24x64xf32>
    %60 = tpu.matmul %58, %59, %cst_48 {dimension_numbers = #tpu.dot_dimension_numbers<[1], [0], [0], [1], [0, 0, 1, 1], [], []>} : vector<24x256xbf16>, vector<256x64xbf16>, vector<24x64xf32> -> vector<24x64xf32>
    %61 = arith.addf %56, %60 : vector<24x64xf32>
    %c0_49 = arith.constant 0 : index
    %c1_50 = arith.constant 1 : index
    %c0_51 = arith.constant 0 : index
    %62 = vector.load %arg4[%c0_49, %c1_50, %c0_51] : memref<1x36x256xbf16, #tpu.memory_space<vmem>>, vector<1x24x256xbf16>
    %63 = vector.shape_cast %62 : vector<1x24x256xbf16> to vector<24x256xbf16>
    %c256_52 = arith.constant 256 : index
    %c0_53 = arith.constant 0 : index
    %64 = vector.load %arg5[%c256_52, %c0_53] : memref<1024x64xbf16, #tpu.memory_space<vmem>>, vector<256x64xbf16>
    %cst_54 = arith.constant dense<0.000000e+00> : vector<24x64xf32>
    %65 = tpu.matmul %63, %64, %cst_54 {dimension_numbers = #tpu.dot_dimension_numbers<[1], [0], [0], [1], [0, 0, 1, 1], [], []>} : vector<24x256xbf16>, vector<256x64xbf16>, vector<24x64xf32> -> vector<24x64xf32>
    %66 = arith.addf %61, %65 : vector<24x64xf32>
    %c0_55 = arith.constant 0 : index
    %c6_56 = arith.constant 6 : index
    %c0_57 = arith.constant 0 : index
    %67 = vector.load %arg4[%c0_55, %c6_56, %c0_57] : memref<1x36x256xbf16, #tpu.memory_space<vmem>>, vector<1x24x256xbf16>
    %68 = vector.shape_cast %67 : vector<1x24x256xbf16> to vector<24x256xbf16>
    %c512_58 = arith.constant 512 : index
    %c0_59 = arith.constant 0 : index
    %69 = vector.load %arg5[%c512_58, %c0_59] : memref<1024x64xbf16, #tpu.memory_space<vmem>>, vector<256x64xbf16>
    %cst_60 = arith.constant dense<0.000000e+00> : vector<24x64xf32>
    %70 = tpu.matmul %68, %69, %cst_60 {dimension_numbers = #tpu.dot_dimension_numbers<[1], [0], [0], [1], [0, 0, 1, 1], [], []>} : vector<24x256xbf16>, vector<256x64xbf16>, vector<24x64xf32> -> vector<24x64xf32>
    %71 = arith.addf %66, %70 : vector<24x64xf32>
    %c0_61 = arith.constant 0 : index
    %c7_62 = arith.constant 7 : index
    %c0_63 = arith.constant 0 : index
    %72 = vector.load %arg4[%c0_61, %c7_62, %c0_63] : memref<1x36x256xbf16, #tpu.memory_space<vmem>>, vector<1x24x256xbf16>
    %73 = vector.shape_cast %72 : vector<1x24x256xbf16> to vector<24x256xbf16>
    %c768_64 = arith.constant 768 : index
    %c0_65 = arith.constant 0 : index
    %74 = vector.load %arg5[%c768_64, %c0_65] : memref<1024x64xbf16, #tpu.memory_space<vmem>>, vector<256x64xbf16>
    %cst_66 = arith.constant dense<0.000000e+00> : vector<24x64xf32>
    %75 = tpu.matmul %73, %74, %cst_66 {dimension_numbers = #tpu.dot_dimension_numbers<[1], [0], [0], [1], [0, 0, 1, 1], [], []>} : vector<24x256xbf16>, vector<256x64xbf16>, vector<24x64xf32> -> vector<24x64xf32>
    %76 = arith.addf %71, %75 : vector<24x64xf32>
    %cst_67 = arith.constant 0.707106769 : f32
    %77 = vector.broadcast %cst_67 : f32 to vector<24x64xf32>
    %78 = arith.mulf %76, %77 : vector<24x64xf32>
    %79 = arith.addf %55, %78 : vector<24x64xf32>
    %c0_68 = arith.constant 0 : index
    %c0_69 = arith.constant 0 : index
    %c0_70 = arith.constant 0 : index
    %80 = vector.load %arg6[%c0_68, %c0_69, %c0_70] : memref<1x24x64xf32, #tpu.memory_space<vmem>>, vector<1x24x64xf32>
    %81 = vector.shape_cast %80 : vector<1x24x64xf32> to vector<24x64xf32>
    %82 = vector.shape_cast %79 : vector<24x64xf32> to vector<1x24x64xf32>
    tpu.vector_store %arg6[%c0_68, %c0_69, %c0_70], %82 {strides = array<i32>} : memref<1x24x64xf32, #tpu.memory_space<vmem>>, vector<1x24x64xf32>,
    return
  }
  func.func @transform_0(%arg0: i32) -> (i32, i32, i32) {
    %c0_i32 = arith.constant 0 : i32
    %c0_i32_0 = arith.constant 0 : i32
    %c0_i32_1 = arith.constant 0 : i32
    return %arg0, %c0_i32, %c0_i32_0 : i32, i32, i32
  }
  func.func @transform_1(%arg0: i32) -> (i32, i32) {
    %c0_i32 = arith.constant 0 : i32
    %c0_i32_0 = arith.constant 0 : i32
    %c0_i32_1 = arith.constant 0 : i32
    return %c0_i32, %c0_i32_0 : i32, i32
  }
  func.func @transform_2(%arg0: i32) -> (i32, i32) {
    %c0_i32 = arith.constant 0 : i32
    %c0_i32_0 = arith.constant 0 : i32
    %c0_i32_1 = arith.constant 0 : i32
    return %c0_i32, %c0_i32_0 : i32, i32
  }
  func.func @transform_3(%arg0: i32) -> (i32, i32, i32) {
    %c0_i32 = arith.constant 0 : i32
    %c0_i32_0 = arith.constant 0 : i32
    %c0_i32_1 = arith.constant 0 : i32
    return %arg0, %c0_i32, %c0_i32_0 : i32, i32, i32
  }
  func.func @transform_4(%arg0: i32) -> (i32, i32) {
    %c0_i32 = arith.constant 0 : i32
    %c0_i32_0 = arith.constant 0 : i32
    %c0_i32_1 = arith.constant 0 : i32
    return %c0_i32, %c0_i32_0 : i32, i32
  }
  func.func @transform_5(%arg0: i32) -> (i32, i32, i32) {
    %c0_i32 = arith.constant 0 : i32
    %c0_i32_0 = arith.constant 0 : i32
    %c0_i32_1 = arith.constant 0 : i32
    return %arg0, %c0_i32, %c0_i32_0 : i32, i32, i32
  }
}

</mosaic_0001>

<bundles_post_ra>
// kernel: forward.5
= control target key start
LH: loop header
LB: loop body
LE: loop exit
PB: predicated region body
PF: predicated region fallthrough
CT: control target
= control target key end

     0   :  { %s878_s12 = smov 0   ;;  %s1044_s0 = inlined_call_operand.vmem [shape: bf16[4,256,3], index: 0, kind: input, shape index: {}]   ;;  %s1045_s1 = inlined_call_operand.vmem [shape: bf16[3,32], index: 1, kind: input, shape index: {}]   ;;  %s1046_s2 = inlined_call_operand.vmem [shape: f32[1,32], index: 2, kind: input, shape index: {}]   ;;  %s1047_s3 = inlined_call_operand.vmem [shape: f32[4,256,32], index: 3, kind: output, shape index: {}]  }
   0x1 LB: > { %s725_s13 = sadd.s32 4294967295, %s855_s12   ;;  %p729_p0 = scmp.ge.s32.totalorder %s855_s12, 1  ;;  %s855_s12 = sphi %s878_s12, %s13_s12  }
   0x2   : > { %p137_p1 = scmp.lt.s32.totalorder %s855_s12, 5 }
   0x4   : > { %p138_p2 = pnand %p729_p0, %p137_p1 }
   0x5   : > { %v204_v0 = vld [vmem:[%s1045_s1] sm:$0x3] (!%p138_p2)  ;;  %vm341_vm0 = vcmask (!%p138_p2), 1040384   ;;  %vm342_vm1 = vcmask (!%p138_p2), 1041408   ;;  %p161_p3 = scmp.lt.s32.totalorder (!%p138_p2), %s725_s13, 3  ;;  %v857_v1 = vmov (!%p138_p2), 65535  }
   0x6   : > { %141 = sbr.rel (%p138_p2) target bundleno = 276 (0x114), region = 32  ;;  %v343_v2 = vsel (!%p138_p2), %vm341_vm0, 4294967295, %v857_v1  ;;  %vm292_vm2 = vcmask (!%p138_p2), 23552   ;;  %v932_v21 = vld [vmem:[%s1046_s2] ss:$0 sm:$0xff] (!%p138_p2)  ;;  %vm637_vm3 = vcmask (!%p138_p2), 261120  }
   0x7   : > { %v344_v3 = vsel (!%p138_p2), %vm342_vm1, %v343_v2, 0 }
   0x8   : > { %v346_v4 = vand.u32 (!%p138_p2), %v344_v3, %v204_v0 }
   0xa   : > { %788 = vmatprep.subr.bf16.mxu0 (!%p138_p2), %v346_v4  ;;  %822 = vmatprep.subr.bf16.mxu1 (!%p138_p2), %v346_v4 }
   0xb   : > { %789 = vmatpush3.bf16.msra.mxu0 (!%p138_p2), %v346_v4  ;;  %823 = vmatpush3.bf16.msra.mxu1 (!%p138_p2), %v346_v4 }
   0xd   : > { %s1049_s13 = smov (!%p161_p3, %s725_s13), 3 }
   0xe   : > { %s769_s16 = sshll.u32 %s1049_s13, 7  ;;  %s770_s22 = sshll.u32 %s1049_s13, 8 }
   0xf   : > { %s895_s19 = scalar_lea.vmem %s1044_s0, %s769_s16  ;;  %s943_s25 = scalar_lea.vmem %s1047_s3, %s770_s22 }
  0x10   : > { %v833_v5 = vld [vmem:[%s895_s19] sm:$0xff]   ;;  %v835_v7 = vld [vmem:[%s895_s19 + $0x8] sm:$0xff]   ;;  %v837_v9 = vld [vmem:[%s895_s19 + $0x10] sm:$0xff]  }
  0x11   : > { %v834_v6 = vld [vmem:[%s895_s19 + $0x40] sm:$0xff]   ;;  %790 = vmatprep.mubr.msk.bf16.mxu0 %vm292_vm2, %v833_v5  ;;  %v836_v8 = vld [vmem:[%s895_s19 + $0x48] sm:$0xff]   ;;  %v838_v10 = vld [vmem:[%s895_s19 + $0x50] sm:$0xff]  }
  0x12   : > { %806 = vmatprep.mubr.msk.bf16.mxu1 %vm292_vm2, %v834_v6  ;;  %791 = vmatmul.mubr.msk.bf16.vlgmr.msra.gmra.mrb[0].mxu0 %vm292_vm2, %v835_v7  ;;  %v839_v11 = vld [vmem:[%s895_s19 + $0x18] sm:$0xff]   ;;  %v841_v13 = vld [vmem:[%s895_s19 + $0x20] sm:$0xff]   ;;  %v843_v15 = vld [vmem:[%s895_s19 + $0x28] sm:$0xff]  }
  0x13   : > { %807 = vmatmul.mubr.msk.bf16.vlgmr.msra.gmra.mrb[0].mxu1 %vm292_vm2, %v836_v8  ;;  %794 = vmatprep.mubr.msk.bf16.mxu0 %vm292_vm2, %v837_v9  ;;  %v840_v12 = vld [vmem:[%s895_s19 + $0x58] sm:$0xff]   ;;  %v842_v14 = vld [vmem:[%s895_s19 + $0x60] sm:$0xff]   ;;  %v844_v16 = vld [vmem:[%s895_s19 + $0x68] sm:$0xff]  }
  0x14   : > { %810 = vmatprep.mubr.msk.bf16.mxu1 %vm292_vm2, %v838_v10  ;;  %v845_v17 = vld [vmem:[%s895_s19 + $0x30] sm:$0xff]   ;;  %v847_v19 = vld [vmem:[%s895_s19 + $0x38] sm:$0xff]  }
  0x15   : > { %v846_v18 = vld [vmem:[%s895_s19 + $0x70] sm:$0xff]   ;;  %v848_v20 = vld [vmem:[%s895_s19 + $0x78] sm:$0xff]  }
  0x1a   : > { %795 = vmatmul.mubr.msk.bf16.gmra.mrb[4].mxu0 %vm292_vm2, %v839_v11 }
  0x1b   : > { %811 = vmatmul.mubr.msk.bf16.gmra.mrb[4].mxu1 %vm292_vm2, %v840_v12  ;;  %798 = vmatprep.mubr.msk.bf16.mxu0 %vm292_vm2, %v841_v13 }
  0x1c   : > { %814 = vmatprep.mubr.msk.bf16.mxu1 %vm292_vm2, %v842_v14 }
  0x22   : > { %799 = vmatmul.mubr.msk.bf16.gmra.mrb[8].mxu0 %vm292_vm2, %v843_v15 }
  0x23   : > { %815 = vmatmul.mubr.msk.bf16.gmra.mrb[8].mxu1 %vm292_vm2, %v844_v16  ;;  %802 = vmatprep.mubr.msk.bf16.mxu0 %vm292_vm2, %v845_v17 }
  0x24   : > { %818 = vmatprep.mubr.msk.bf16.mxu1 %vm292_vm2, %v846_v18 }
  0x2a   : > { %803 = vmatmul.mubr.msk.bf16.gmra.mrb[12].mxu0 %vm292_vm2, %v847_v19 }
  0x2b   : > { %819 = vmatmul.mubr.msk.bf16.gmra.mrb[12].mxu1 %vm292_vm2, %v848_v20 }
  0xe5   : > { %v792_v22 = vpop.f32.mrb[0].mxu0 }
  0xe6   : > { %v391_v23 = vadd.f32 %v792_v22, %v932_v21  ;;  %v808_v24 = vpop.f32.mrb[0].mxu1  ;;  %v382_v25 = vpop.f32.mrb[1].mxu0 }
  0xe7   : > { %v455_v26 = vadd.f32 %v808_v24, %v932_v21  ;;  %v383_v27 = vadd.f32 %v932_v21, %v382_v25  ;;  %v446_v28 = vpop.f32.mrb[1].mxu1  ;;  %v793_v29 = vpop.f32.mrb[2].mxu0 }
  0xe8   : > { %vm511_vm4 = vcmp.ge.f32.partialorder %v391_v23, 0.0  ;;  %v543_v30 = vmul.f32 0.2, %v391_v23  ;;  %v447_v31 = vadd.f32 %v932_v21, %v446_v28  ;;  %v394_v32 = vadd.f32 %v793_v29, %v932_v21  ;;  %v809_v33 = vpop.f32.mrb[2].mxu1  ;;  %v385_v34 = vpop.f32.mrb[3].mxu0 }
  0xe9   : > { %vm527_vm5 = vcmp.ge.f32.partialorder %v455_v26, 0.0  ;;  %v559_v35 = vmul.f32 0.2, %v455_v26  ;;  %vm509_vm6 = vcmp.ge.f32.partialorder %v383_v27, 0.0  ;;  %v541_v36 = vmul.f32 0.2, %v383_v27 }
  0xea   : > { %v575_v37 = vsel %vm511_vm4, %v391_v23, %v543_v30  ;;  %vm525_vm7 = vcmp.ge.f32.partialorder %v447_v31, 0.0  ;;  %v557_v38 = vmul.f32 0.2, %v447_v31  ;;  %vm512_vm8 = vcmp.ge.f32.partialorder %v394_v32, 0.0  ;;  %v449_v39 = vpop.f32.mrb[3].mxu1 }
  0xeb   : > { %v607_v40 = vmul.f32 1.4142135, %v575_v37  ;;  %v591_v41 = vsel %vm527_vm5, %v455_v26, %v559_v35  ;;  %v573_v42 = vsel %vm509_vm6, %v383_v27, %v541_v36  ;;  %v544_v43 = vmul.f32 0.2, %v394_v32 }
  0xec   : > { %v623_v44 = vmul.f32 1.4142135, %v591_v41  ;;  %v605_v45 = vmul.f32 1.4142135, %v573_v42  ;;  %v589_v46 = vsel %vm525_vm7, %v447_v31, %v557_v38  ;;  %v458_v47 = vadd.f32 %v809_v33, %v932_v21 }
  0xed   : > { %640 = vst.msk [vmem:[%s943_s25 + $0x10] sm:$0xff] %vm637_vm3, %v607_v40  ;;  %v621_v48 = vmul.f32 1.4142135, %v589_v46  ;;  %v576_v49 = vsel %vm512_vm8, %v394_v32, %v544_v43  ;;  %v386_v50 = vadd.f32 %v932_v21, %v385_v34  ;;  %v450_v51 = vadd.f32 %v932_v21, %v449_v39  ;;  %v796_v52 = vpop.f32.mrb[4].mxu0 }
  0xee   : > { %656 = vst.msk [vmem:[%s943_s25 + $0x90] sm:$0xff] %vm637_vm3, %v623_v44  ;;  %638 = vst.msk [vmem:[%s943_s25] sm:$0xff] %vm637_vm3, %v605_v45  ;;  %v608_v53 = vmul.f32 1.4142135, %v576_v49  ;;  %vm528_vm9 = vcmp.ge.f32.partialorder %v458_v47, 0.0  ;;  %v407_v55 = vadd.f32 %v796_v52, %v932_v21  ;;  %v812_v56 = vpop.f32.mrb[4].mxu1 }
  0xef   : > { %v560_v54 = vmul.f32 0.2, %v458_v47  ;;  %654 = vst.msk [vmem:[%s943_s25 + $0x80] sm:$0xff] %vm637_vm3, %v621_v48  ;;  %vm510_vm10 = vcmp.ge.f32.partialorder %v386_v50, 0.0  ;;  %v542_v57 = vmul.f32 0.2, %v386_v50  ;;  %v471_v61 = vadd.f32 %v812_v56, %v932_v21 }
  0xf0   : > { %vm526_vm11 = vcmp.ge.f32.partialorder %v450_v51, 0.0  ;;  %v558_v58 = vmul.f32 0.2, %v450_v51  ;;  %641 = vst.msk [vmem:[%s943_s25 + $0x18] sm:$0xff] %vm637_vm3, %v608_v53  ;;  %vm515_vm12 = vcmp.ge.f32.partialorder %v407_v55, 0.0  ;;  %v398_v62 = vpop.f32.mrb[5].mxu0 }
  0xf1   : > { %v592_v59 = vsel %vm528_vm9, %v458_v47, %v560_v54  ;;  %v547_v60 = vmul.f32 0.2, %v407_v55  ;;  %v462_v63 = vpop.f32.mrb[5].mxu1  ;;  %v574_v1 = vsel %vm510_vm10, %v386_v50, %v542_v57  ;;  %v399_v3 = vadd.f32 %v932_v21, %v398_v62  ;;  %v797_v4 = vpop.f32.mrb[6].mxu0 }
  0xf2   : > { %v624_v0 = vmul.f32 1.4142135, %v592_v59  ;;  %v590_v2 = vsel %vm526_vm11, %v450_v51, %v558_v58  ;;  %v813_v5 = vpop.f32.mrb[6].mxu1  ;;  %v606_v6 = vmul.f32 1.4142135, %v574_v1  ;;  %vm531_vm13 = vcmp.ge.f32.partialorder %v471_v61, 0.0 }
  0xf3   : > { %v622_v7 = vmul.f32 1.4142135, %v590_v2  ;;  %v579_v8 = vsel %vm515_vm12, %v407_v55, %v547_v60  ;;  %v401_v9 = vpop.f32.mrb[7].mxu0  ;;  %v563_v11 = vmul.f32 0.2, %v471_v61  ;;  %vm513_vm14 = vcmp.ge.f32.partialorder %v399_v3, 0.0 }
  0xf4   : > { %657 = vst.msk [vmem:[%s943_s25 + $0x98] sm:$0xff] %vm637_vm3, %v624_v0  ;;  %v611_v10 = vmul.f32 1.4142135, %v579_v8  ;;  %v463_v12 = vadd.f32 %v932_v21, %v462_v63  ;;  %v465_v13 = vpop.f32.mrb[7].mxu1  ;;  %639 = vst.msk [vmem:[%s943_s25 + $0x8] sm:$0xff] %vm637_vm3, %v606_v6  ;;  %v410_v15 = vadd.f32 %v797_v4, %v932_v21  ;;  %v474_v16 = vadd.f32 %v813_v5, %v932_v21 }
  0xf5   : > { %655 = vst.msk [vmem:[%s943_s25 + $0x88] sm:$0xff] %vm637_vm3, %v622_v7  ;;  %v545_v14 = vmul.f32 0.2, %v399_v3  ;;  %v402_v17 = vadd.f32 %v932_v21, %v401_v9  ;;  %v595_v18 = vsel %vm531_vm13, %v471_v61, %v563_v11  ;;  %v466_v20 = vadd.f32 %v932_v21, %v465_v13  ;;  %v800_v22 = vpop.f32.mrb[8].mxu0 }
  0xf6   : > { %644 = vst.msk [vmem:[%s943_s25 + $0x30] sm:$0xff] %vm637_vm3, %v611_v10  ;;  %vm529_vm15 = vcmp.ge.f32.partialorder %v463_v12, 0.0  ;;  %v561_v19 = vmul.f32 0.2, %v463_v12  ;;  %v627_v23 = vmul.f32 1.4142135, %v595_v18  ;;  %v423_v41 = vadd.f32 %v800_v22, %v932_v21 }
  0xf7   : > { %v577_v24 = vsel %vm513_vm14, %v399_v3, %v545_v14  ;;  %vm516_vm0 = vcmp.ge.f32.partialorder %v410_v15, 0.0  ;;  %v548_v25 = vmul.f32 0.2, %v410_v15  ;;  %v816_v26 = vpop.f32.mrb[8].mxu1  ;;  %vm532_vm1 = vcmp.ge.f32.partialorder %v474_v16, 0.0  ;;  %v414_v30 = vpop.f32.mrb[9].mxu0 }
  0xf8   : > { %v609_v27 = vmul.f32 1.4142135, %v577_v24  ;;  %v593_v28 = vsel %vm529_vm15, %v463_v12, %v561_v19  ;;  %v564_v29 = vmul.f32 0.2, %v474_v16  ;;  %660 = vst.msk [vmem:[%s943_s25 + $0xb0] sm:$0xff] %vm637_vm3, %v627_v23  ;;  %vm514_vm2 = vcmp.ge.f32.partialorder %v402_v17, 0.0 }
  0xf9   : > { %v625_v31 = vmul.f32 1.4142135, %v593_v28  ;;  %v580_v32 = vsel %vm516_vm0, %v410_v15, %v548_v25  ;;  %v546_v33 = vmul.f32 0.2, %v402_v17  ;;  %v478_v34 = vpop.f32.mrb[9].mxu1  ;;  %vm530_vm4 = vcmp.ge.f32.partialorder %v466_v20, 0.0 }
  0xfa   : > { %642 = vst.msk [vmem:[%s943_s25 + $0x20] sm:$0xff] %vm637_vm3, %v609_v27  ;;  %v612_v35 = vmul.f32 1.4142135, %v580_v32  ;;  %v596_v36 = vsel %vm532_vm1, %v474_v16, %v564_v29  ;;  %v562_v37 = vmul.f32 0.2, %v466_v20  ;;  %v487_v42 = vadd.f32 %v816_v26, %v932_v21 }
  0xfb   : > { %v801_v38 = vpop.f32.mrb[10].mxu0  ;;  %658 = vst.msk [vmem:[%s943_s25 + $0xa0] sm:$0xff] %vm637_vm3, %v625_v31  ;;  %v628_v39 = vmul.f32 1.4142135, %v596_v36  ;;  %v578_v40 = vsel %vm514_vm2, %v402_v17, %v546_v33  ;;  %v817_v43 = vpop.f32.mrb[10].mxu1  ;;  %v415_v47 = vadd.f32 %v932_v21, %v414_v30  ;;  %v479_v48 = vadd.f32 %v932_v21, %v478_v34 }
  0xfc   : > { %v417_v44 = vpop.f32.mrb[11].mxu0  ;;  %645 = vst.msk [vmem:[%s943_s25 + $0x38] sm:$0xff] %vm637_vm3, %v612_v35  ;;  %v610_v45 = vmul.f32 1.4142135, %v578_v40  ;;  %v594_v46 = vsel %vm530_vm4, %v466_v20, %v562_v37  ;;  %v481_v49 = vpop.f32.mrb[11].mxu1  ;;  %vm519_vm5 = vcmp.ge.f32.partialorder %v423_v41, 0.0  ;;  %v426_v56 = vadd.f32 %v801_v38, %v932_v21 }
  0xfd   : > { %661 = vst.msk [vmem:[%s943_s25 + $0xb8] sm:$0xff] %vm637_vm3, %v628_v39  ;;  %v626_v50 = vmul.f32 1.4142135, %v594_v46  ;;  %v551_v51 = vmul.f32 0.2, %v423_v41  ;;  %vm535_vm6 = vcmp.ge.f32.partialorder %v487_v42, 0.0  ;;  %v490_v57 = vadd.f32 %v817_v43, %v932_v21 }
  0xfe   : > { %643 = vst.msk [vmem:[%s943_s25 + $0x28] sm:$0xff] %vm637_vm3, %v610_v45  ;;  %v567_v52 = vmul.f32 0.2, %v487_v42  ;;  %vm517_vm7 = vcmp.ge.f32.partialorder %v415_v47, 0.0  ;;  %v549_v53 = vmul.f32 0.2, %v415_v47  ;;  %v418_v63 = vadd.f32 %v932_v21, %v417_v44 }
  0xff   : > { %vm533_vm8 = vcmp.ge.f32.partialorder %v479_v48, 0.0  ;;  %659 = vst.msk [vmem:[%s943_s25 + $0xa8] sm:$0xff] %vm637_vm3, %v626_v50  ;;  %v583_v54 = vsel %vm519_vm5, %v423_v41, %v551_v51  ;;  %v565_v55 = vmul.f32 0.2, %v479_v48  ;;  %v804_v58 = vpop.f32.mrb[12].mxu0  ;;  %v820_v59 = vpop.f32.mrb[12].mxu1  ;;  %v482_v10 = vadd.f32 %v932_v21, %v481_v49 }
 0x100   : > { %v615_v60 = vmul.f32 1.4142135, %v583_v54  ;;  %v599_v61 = vsel %vm535_vm6, %v487_v42, %v567_v52  ;;  %v581_v62 = vsel %vm517_vm7, %v415_v47, %v549_v53  ;;  %v430_v0 = vpop.f32.mrb[13].mxu0  ;;  %v494_v1 = vpop.f32.mrb[13].mxu1  ;;  %vm520_vm9 = vcmp.ge.f32.partialorder %v426_v56, 0.0 }
 0x101   : > { %v631_v2 = vmul.f32 1.4142135, %v599_v61  ;;  %v613_v3 = vmul.f32 1.4142135, %v581_v62  ;;  %v597_v4 = vsel %vm533_vm8, %v479_v48, %v565_v55  ;;  %v805_v5 = vpop.f32.mrb[14].mxu0  ;;  %vm536_vm10 = vcmp.ge.f32.partialorder %v490_v57, 0.0 }
 0x102   : > { %648 = vst.msk [vmem:[%s943_s25 + $0x50] sm:$0xff] %vm637_vm3, %v615_v60  ;;  %v629_v6 = vmul.f32 1.4142135, %v597_v4  ;;  %v552_v7 = vmul.f32 0.2, %v426_v56  ;;  %vm518_vm11 = vcmp.ge.f32.partialorder %v418_v63, 0.0  ;;  %v439_v11 = vadd.f32 %v804_v58, %v932_v21 }
 0x103   : > { %664 = vst.msk [vmem:[%s943_s25 + $0xd0] sm:$0xff] %vm637_vm3, %v631_v2  ;;  %646 = vst.msk [vmem:[%s943_s25 + $0x40] sm:$0xff] %vm637_vm3, %v613_v3  ;;  %v568_v8 = vmul.f32 0.2, %v490_v57  ;;  %v550_v9 = vmul.f32 0.2, %v418_v63  ;;  %v503_v15 = vadd.f32 %v820_v59, %v932_v21  ;;  %v431_v16 = vadd.f32 %v932_v21, %v430_v0 }
 0x104   : > { %v821_v12 = vpop.f32.mrb[14].mxu1  ;;  %v433_v13 = vpop.f32.mrb[15].mxu0  ;;  %662 = vst.msk [vmem:[%s943_s25 + $0xc0] sm:$0xff] %vm637_vm3, %v629_v6  ;;  %v584_v14 = vsel %vm520_vm9, %v426_v56, %v552_v7  ;;  %v495_v17 = vadd.f32 %v932_v21, %v494_v1  ;;  %vm534_vm12 = vcmp.ge.f32.partialorder %v482_v10, 0.0  ;;  %v566_v25 = vmul.f32 0.2, %v482_v10 }
 0x105   : > { %v497_v18 = vpop.f32.mrb[15].mxu1  ;;  %v616_v19 = vmul.f32 1.4142135, %v584_v14  ;;  %v600_v20 = vsel %vm536_vm10, %v490_v57, %v568_v8  ;;  %v582_v22 = vsel %vm518_vm11, %v418_v63, %v550_v9  ;;  %v442_v26 = vadd.f32 %v805_v5, %v932_v21 }
 0x106   : > { %v632_v23 = vmul.f32 1.4142135, %v600_v20  ;;  %v614_v24 = vmul.f32 1.4142135, %v582_v22  ;;  %vm523_vm13 = vcmp.ge.f32.partialorder %v439_v11, 0.0  ;;  %vm539_vm14 = vcmp.ge.f32.partialorder %v503_v15, 0.0 }
 0x107   : > { %649 = vst.msk [vmem:[%s943_s25 + $0x58] sm:$0xff] %vm637_vm3, %v616_v19  ;;  %v555_v27 = vmul.f32 0.2, %v439_v11  ;;  %v571_v28 = vmul.f32 0.2, %v503_v15  ;;  %v598_v29 = vsel %vm534_vm12, %v482_v10, %v566_v25  ;;  %vm521_vm15 = vcmp.ge.f32.partialorder %v431_v16, 0.0 }
 0x108   : > { %665 = vst.msk [vmem:[%s943_s25 + $0xd8] sm:$0xff] %vm637_vm3, %v632_v23  ;;  %647 = vst.msk [vmem:[%s943_s25 + $0x48] sm:$0xff] %vm637_vm3, %v614_v24  ;;  %v553_v30 = vmul.f32 0.2, %v431_v16  ;;  %vm537_vm0 = vcmp.ge.f32.partialorder %v495_v17, 0.0  ;;  %vm524_vm1 = vcmp.ge.f32.partialorder %v442_v26, 0.0  ;;  %v506_v41 = vadd.f32 %v821_v12, %v932_v21 }
 0x109   : > { %v630_v31 = vmul.f32 1.4142135, %v598_v29  ;;  %v587_v32 = vsel %vm523_vm13, %v439_v11, %v555_v27  ;;  %v603_v33 = vsel %vm539_vm14, %v503_v15, %v571_v28  ;;  %v569_v34 = vmul.f32 0.2, %v495_v17 }
 0x10a   : > { %v619_v35 = vmul.f32 1.4142135, %v587_v32  ;;  %v635_v36 = vmul.f32 1.4142135, %v603_v33  ;;  %v585_v37 = vsel %vm521_vm15, %v431_v16, %v553_v30  ;;  %v556_v40 = vmul.f32 0.2, %v442_v26 }
 0x10b   : > { %663 = vst.msk [vmem:[%s943_s25 + $0xc8] sm:$0xff] %vm637_vm3, %v630_v31  ;;  %v617_v38 = vmul.f32 1.4142135, %v585_v37  ;;  %v601_v39 = vsel %vm537_vm0, %v495_v17, %v569_v34  ;;  %v434_v43 = vadd.f32 %v932_v21, %v433_v13  ;;  %v498_v44 = vadd.f32 %v932_v21, %v497_v18 }
 0x10c   : > { %652 = vst.msk [vmem:[%s943_s25 + $0x70] sm:$0xff] %vm637_vm3, %v619_v35  ;;  %668 = vst.msk [vmem:[%s943_s25 + $0xf0] sm:$0xff] %vm637_vm3, %v635_v36  ;;  %v633_v42 = vmul.f32 1.4142135, %v601_v39  ;;  %v588_v45 = vsel %vm524_vm1, %v442_v26, %v556_v40  ;;  %vm540_vm2 = vcmp.ge.f32.partialorder %v506_v41, 0.0 }
 0x10d   : > { %650 = vst.msk [vmem:[%s943_s25 + $0x60] sm:$0xff] %vm637_vm3, %v617_v38  ;;  %v572_v46 = vmul.f32 0.2, %v506_v41  ;;  %v620_v47 = vmul.f32 1.4142135, %v588_v45  ;;  %vm522_vm4 = vcmp.ge.f32.partialorder %v434_v43, 0.0 }
 0x10e   : > { %666 = vst.msk [vmem:[%s943_s25 + $0xe0] sm:$0xff] %vm637_vm3, %v633_v42  ;;  %v554_v48 = vmul.f32 0.2, %v434_v43  ;;  %vm538_vm5 = vcmp.ge.f32.partialorder %v498_v44, 0.0  ;;  %v570_v50 = vmul.f32 0.2, %v498_v44 }
 0x10f   : > { %v604_v49 = vsel %vm540_vm2, %v506_v41, %v572_v46  ;;  %653 = vst.msk [vmem:[%s943_s25 + $0x78] sm:$0xff] %vm637_vm3, %v620_v47 }
 0x110   : > { %v636_v51 = vmul.f32 1.4142135, %v604_v49  ;;  %v586_v21 = vsel %vm522_vm4, %v434_v43, %v554_v48  ;;  %v602_v53 = vsel %vm538_vm5, %v498_v44, %v570_v50 }
 0x111   : > { %v618_v52 = vmul.f32 1.4142135, %v586_v21  ;;  %v634_v54 = vmul.f32 1.4142135, %v602_v53 }
 0x112   : > { %669 = vst.msk [vmem:[%s943_s25 + $0xf8] sm:$0xff] %vm637_vm3, %v636_v51 }
 0x113   : > { %651 = vst.msk [vmem:[%s943_s25 + $0x68] sm:$0xff] %vm637_vm3, %v618_v52  ;;  %667 = vst.msk [vmem:[%s943_s25 + $0xe8] sm:$0xff] %vm637_vm3, %v634_v54 }
 0x114 PF: > { %s13_s12 = sadd.s32 1, %s855_s12  }
 0x115   : > { %p10_p4 = scmp.ge.s32.totalorder %s13_s12, 6  }
 0x117   :  { %12 = sbr.rel (!%p10_p4) target bundleno = 1 (0x1), region = 62 }

// kernel: forward.6
= control target key start
LH: loop header
LB: loop body
LE: loop exit
PB: predicated region body
PF: predicated region fallthrough
CT: control target
= control target key end

     0   :  { %s5428_s12 = smov 0   ;;  %s6460_s0 = inlined_call_operand.vmem [shape: bf16[4,342,32], index: 0, kind: input, shape index: {}]   ;;  %s6461_s1 = inlined_call_operand.vmem [shape: bf16[288,32], index: 1, kind: input, shape index: {}]   ;;  %s6462_s2 = inlined_call_operand.vmem [shape: f32[1,32], index: 2, kind: input, shape index: {}]   ;;  %s6463_s3 = inlined_call_operand.vmem [shape: bf16[4,288,32], index: 3, kind: output, shape index: {}]  }
   0x1 LB: > { %s4142_s13 = sadd.s32 4294967295, %s5406_s12   ;;  %p4146_p0 = scmp.ge.s32.totalorder %s5406_s12, 1  ;;  %s5406_s12 = sphi %s5428_s12, %s13_s12  }
   0x2   : > { %p137_p1 = scmp.lt.s32.totalorder %s5406_s12, 5 }
   0x4   : > { %p138_p2 = pnand %p4146_p0, %p137_p1 }
   0x5   : > { %v5308_v0 = vld [vmem:[%s6461_s1 + $0x40] sm:$0xff] (!%p138_p2)   ;;  %p161_p3 = scmp.lt.s32.totalorder (!%p138_p2), %s4142_s13, 3  ;;  %v5309_v1 = vld [vmem:[%s6461_s1 + $0x10] sm:$0xff] (!%p138_p2)   ;;  %v5310_v2 = vld [vmem:[%s6461_s1 + $0x48] sm:$0xff] (!%p138_p2)   ;;  %vm310_vm0 = vsmask.f32 (!%p138_p2), 7424 }
   0x6   : > { %141 = sbr.rel (%p138_p2) target bundleno = 579 (0x243), region = 32  ;;  %4806 = vmatprep.subr.bf16.mxu0 (!%p138_p2), %v5308_v0  ;;  %4646 = vmatprep.subr.bf16.mxu1 (!%p138_p2), %v5309_v1  ;;  %v5311_v3 = vld [vmem:[%s6461_s1 + $0x18] sm:$0xff] (!%p138_p2)   ;;  %v5454_v4 = vld [vmem:[%s6461_s1 + $0x50] sm:$0xff] (!%p138_p2)   ;;  %v5320_v5 = vld [vmem:[%s6461_s1] sm:$0xff] (!%p138_p2)   ;;  %vm471_vm1 = vcmask (!%p138_p2), 261120   ;;  %vm2169_vm3 = vcmask (!%p138_p2), 1045504  }
   0x7   : > { %4807 = vmatpush3.bf16.msra.mxu0 (!%p138_p2), %v5308_v0  ;;  %4647 = vmatpush3.bf16.msra.mxu1 (!%p138_p2), %v5309_v1  ;;  %vm1711_vm2 = vsmask.f32 (!%p138_p2), 6400  ;;  %vm936_vm4 = vcmask (!%p138_p2), 1046528   ;;  %vm2944_vm5 = vsmask.f32 (!%p138_p2), 5376  ;;  %vm3402_vm6 = vcmask (!%p138_p2), 1044480  }
   0x8   : > { %4808 = vmatprep.subr.bf16.mxu0 (!%p138_p2), %v5310_v2  ;;  %4648 = vmatprep.subr.bf16.mxu1 (!%p138_p2), %v5311_v3  ;;  %vm4050_vm11 = vcmask (!%p138_p2), 257024  }
   0xb   : > { %4809 = vmatpush3.bf16.msra.mxu0 (!%p138_p2), %v5310_v2  ;;  %4649 = vmatpush3.bf16.msra.mxu1 (!%p138_p2), %v5311_v3 }
   0xc   : > { %4846 = vmatprep.subr.bf16.mxu0 (!%p138_p2), %v5454_v4  ;;  %4686 = vmatprep.subr.bf16.mxu1 (!%p138_p2), %v5320_v5 }
   0xd   : > { %s6465_s13 = smov (!%p161_p3, %s4142_s13), 3 }
   0xe   : > { %s5298_s22 = smul.u32 172, %s6465_s13 }
   0xf   : > { %s5299_s8 = smul.u32 144, %s6465_s13 }
  0x10   : > { %s5459_s27 = scalar_lea.vmem %s6460_s0, %s5298_s22 }
  0x11   : > { %v172_v6 = vld [vmem:[%s5459_s27] sm:$0xf]  ;;  %v5466_v7 = vld [vmem:[%s5459_s27 + $0x4] sm:$0xf]  ;;  %v5472_v9 = vld [vmem:[%s5459_s27 + $0x8] sm:$0xff]   ;;  %s6291_s13 = scalar_lea.vmem %s6463_s3, %s5299_s8 }
  0x12   : > { %v5469_v8 = vcombine.low %v172_v6, %v5466_v7  ;;  %v1253_v10 = vld [vmem:[%s5459_s27 + $0x8] sm:$0xe]  ;;  %v5477_v11 = vld [vmem:[%s5459_s27 + $0xc] sm:$0xf]  ;;  %v319_v14 = vshll.u32 %v5472_v9, 16  ;;  %v323_v15 = vshrl.u32 %v5472_v9, 16 }
  0x13   : > { %v5484_v16 = vld [vmem:[%s5459_s27 + $0x10] sm:$0xff]   ;;  %v5490_v18 = vcombine.low %v1253_v10, %v5477_v11  ;;  %v5498_v26 = vld [vmem:[%s5459_s27 + $0x18] sm:$0xff]   ;;  %v5504_v32 = vld [vmem:[%s5459_s27 + $0x20] sm:$0xff]  }
  0x14   : > { %v312_v12 = vshrl.u32 %v5469_v8, 16  ;;  %v314_v13 = vshll.u32 %v5469_v8, 16  ;;  %v5487_v17 = vld [vmem:[%s5459_s27 + $0x10] sm:$0xff]   ;;  %v321_v20 = vrot.slane %v319_v14, 1  ;;  %v1721_v21 = vshrl.u32 %v5484_v16, 16  ;;  %v5501_v31 = vld [vmem:[%s5459_s27 + $0x18] sm:$0xff]  }
  0x15   : > { %v1724_v22 = vshll.u32 %v5484_v16, 16  ;;  %v1713_v23 = vshrl.u32 %v5490_v18, 16  ;;  %v1716_v24 = vshll.u32 %v5490_v18, 16  ;;  %v327_v25 = vshll.u32 %v5487_v17, 16  ;;  %v5514_v45 = vld [vmem:[%s5459_s27 + $0x20] sm:$0xff]   ;;  %v5517_v46 = vld [vmem:[%s5459_s27 + $0x28] sm:$0xff]  }
  0x16   : > { %v316_v19 = vrot.slane %v314_v13, 1  ;;  %v325_v28 = vor.u32 %v323_v15, %v321_v20  ;;  %v1723_v29 = vrot.slane %v1721_v21, 1  ;;  %v1730_v36 = vshrl.u32 %v5498_v26, 16  ;;  %v5523_v51 = vld [vmem:[%s5459_s27 + $0x28] sm:$0xff]   ;;  %v5529_v56 = vld [vmem:[%s5459_s27 + $0x30] sm:$0xff]   ;;  %v5546_v15 = vld [vmem:[%s5459_s27 + $0x38] sm:$0xff]  }
  0x17   : > { %v1726_v30 = vrot.slane %v1724_v22, 2  ;;  %v1715_v33 = vrot.slane %v1713_v23, 1  ;;  %v1718_v34 = vrot.slane %v1716_v24, 2  ;;  %v329_v35 = vrot.slane %v327_v25, 1  ;;  %v5534_v61 = vld [vmem:[%s5459_s27 + $0x30] sm:$0xff]  }
  0x18   : > { %v317_v27 = vor.u32 %v316_v19, %v312_v12  ;;  %v1733_v39 = vshll.u32 %v5498_v26, 16  ;;  %v331_v40 = vshrl.u32 %v5487_v17, 16  ;;  %v1732_v43 = vrot.slane %v1730_v36, 1 }
  0x19   : > { %v1727_v38 = vor.u32 %v1726_v30, %v1723_v29  ;;  %v1719_v41 = vor.u32 %v1718_v34, %v1715_v33  ;;  %v330_v42 = vsel %vm310_vm0, %v325_v28, %v329_v35  ;;  %v335_v44 = vshll.u32 %v5501_v31, 16  ;;  %v5328_v28 = vld [vmem:[%s6461_s1 + $0x58] sm:$0xff]  }
  0x1a   : > { %v322_v37 = vsel %vm310_vm0, %v317_v27, %v321_v20  ;;  %v1735_v47 = vrot.slane %v1733_v39, 2  ;;  %v333_v48 = vor.u32 %v331_v40, %v329_v35  ;;  %v1739_v49 = vshrl.u32 %v5504_v32, 16  ;;  %v5561_v33 = vld [vmem:[%s5459_s27 + $0x38] sm:$0xff]  }
  0x1b   : > { %4650 = vmatprep.mubr.msk.bf16.mxu1 %vm471_vm1, %v322_v37  ;;  %v1742_v50 = vshll.u32 %v5504_v32, 16  ;;  %v1728_v52 = vsel %vm1711_vm2, %v1719_v41, %v1727_v38  ;;  %v337_v53 = vrot.slane %v335_v44, 1  ;;  %v339_v54 = vshrl.u32 %v5501_v31, 16 }
  0x1c   : > { %4651 = vmatmul.mubr.msk.bf16.vlgmr.msra.gmra.mrb[0].mxu1 %vm471_vm1, %v330_v42  ;;  %v343_v55 = vshll.u32 %v5514_v45, 16  ;;  %4810 = vmatprep.mubr.msk.bf16.mxu0 %vm471_vm1, %v1728_v52  ;;  %v1736_v57 = vor.u32 %v1735_v47, %v1732_v43  ;;  %v1741_v58 = vrot.slane %v1739_v49, 1  ;;  %v1748_v60 = vshrl.u32 %v5517_v46, 16  ;;  %v5571_v43 = vld [vmem:[%s5459_s27 + $0x40] sm:$0xff]   ;;  %v5577_v49 = vld [vmem:[%s5459_s27 + $0x48] sm:$0xff]  }
  0x1d   : > { %4687 = vmatpush3.bf16.msra.mxu1 %v5320_v5  ;;  %v1744_v59 = vrot.slane %v1742_v50, 2  ;;  %v338_v62 = vsel %vm310_vm0, %v333_v48, %v337_v53  ;;  %v341_v63 = vor.u32 %v339_v54, %v337_v53  ;;  %v1751_v1 = vshll.u32 %v5517_v46, 16 }
  0x1e   : > { %v345_v0 = vrot.slane %v343_v55, 1  ;;  %v1737_v2 = vsel %vm1711_vm2, %v1727_v38, %v1736_v57  ;;  %4654 = vmatprep.mubr.msk.bf16.mxu1 %vm471_vm1, %v338_v62  ;;  %v1750_v5 = vrot.slane %v1748_v60, 1  ;;  %v347_v6 = vshrl.u32 %v5514_v45, 16  ;;  %v5566_v38 = vld [vmem:[%s5459_s27 + $0x40] sm:$0xff]   ;;  %v5583_v55 = vld [vmem:[%s5459_s27 + $0x48] sm:$0xff]  }
  0x1f   : > { %v1745_v3 = vor.u32 %v1744_v59, %v1741_v58  ;;  %4811 = vmatmul.mubr.msk.bf16.vlgmr.msra.gmra.mrb[0].mxu0 %vm471_vm1, %v1737_v2  ;;  %v1753_v12 = vrot.slane %v1751_v1, 2  ;;  %v351_v13 = vshll.u32 %v5523_v51, 16  ;;  %v1757_v14 = vshrl.u32 %v5529_v56, 16 }
  0x20   : > { %v346_v10 = vsel %vm310_vm0, %v341_v63, %v345_v0  ;;  %4847 = vmatpush3.bf16.msra.mxu0 %v5454_v4  ;;  %v349_v20 = vor.u32 %v347_v6, %v345_v0  ;;  %v1760_v21 = vshll.u32 %v5529_v56, 16  ;;  %v355_v22 = vshrl.u32 %v5523_v51, 16 }
  0x21   : > { %v1746_v19 = vsel %vm1711_vm2, %v1736_v57, %v1745_v3  ;;  %v1754_v23 = vor.u32 %v1753_v12, %v1750_v5  ;;  %v353_v24 = vrot.slane %v351_v13, 1  ;;  %v1759_v25 = vrot.slane %v1757_v14, 1  ;;  %4848 = vmatprep.subr.bf16.mxu0 %v5328_v28 }
  0x22   : > { %4814 = vmatprep.mubr.msk.bf16.mxu0 %vm471_vm1, %v1746_v19  ;;  %v359_v27 = vshll.u32 %v5534_v61, 16  ;;  %v1762_v4 = vrot.slane %v1760_v21, 2  ;;  %v1766_v29 = vshrl.u32 %v5546_v15, 16  ;;  %v1769_v30 = vshll.u32 %v5546_v15, 16  ;;  %v5604_v21 = vld [vmem:[%s5459_s27 + $0x58] sm:$0xff]  }
  0x23   : > { %v1755_v34 = vsel %vm1711_vm2, %v1745_v3, %v1754_v23  ;;  %v354_v35 = vsel %vm310_vm0, %v349_v20, %v353_v24  ;;  %v357_v36 = vor.u32 %v355_v22, %v353_v24  ;;  %v363_v42 = vshrl.u32 %v5534_v61, 16  ;;  %v5592_v3 = vld [vmem:[%s5459_s27 + $0x50] sm:$0xff]  }
  0x24   : > { %4655 = vmatmul.mubr.msk.bf16.gmra.mrb[4].mxu1 %vm471_vm1, %v346_v10  ;;  %v361_v37 = vrot.slane %v359_v27, 1  ;;  %v1763_v39 = vor.u32 %v1762_v4, %v1759_v25  ;;  %v1768_v40 = vrot.slane %v1766_v29, 1  ;;  %v1771_v41 = vrot.slane %v1769_v30, 2  ;;  %4849 = vmatpush3.bf16.msra.mxu0 %v5328_v28  ;;  %v5601_v20 = vld [vmem:[%s5459_s27 + $0x50] sm:$0xff]  }
  0x25   : > { %4658 = vmatprep.mubr.msk.bf16.mxu1 %vm471_vm1, %v354_v35  ;;  %v367_v44 = vshll.u32 %v5561_v33, 16  ;;  %v1775_v47 = vshrl.u32 %v5566_v38, 16  ;;  %v1778_v48 = vshll.u32 %v5566_v38, 16  ;;  %v371_v54 = vshrl.u32 %v5561_v33, 16  ;;  %v5612_v35 = vld [vmem:[%s5459_s27 + $0x58] sm:$0xff]  }
  0x26   : > { %v1764_v50 = vsel %vm1711_vm2, %v1754_v23, %v1763_v39  ;;  %v362_v52 = vsel %vm310_vm0, %v357_v36, %v361_v37  ;;  %v365_v53 = vor.u32 %v363_v42, %v361_v37  ;;  %v375_v60 = vshll.u32 %v5571_v43, 16 }
  0x27   : > { %4815 = vmatmul.mubr.msk.bf16.gmra.mrb[4].mxu0 %vm471_vm1, %v1755_v34  ;;  %v369_v57 = vrot.slane %v367_v44, 1  ;;  %v1777_v58 = vrot.slane %v1775_v47, 1  ;;  %v1780_v59 = vrot.slane %v1778_v48, 2  ;;  %v1772_v62 = vor.u32 %v1771_v41, %v1768_v40  ;;  %v2161_v47 = vld [vmem:[%s5459_s27 + $0x8] sm:$0xc] }
  0x28   : > { %4818 = vmatprep.mubr.msk.bf16.mxu0 %vm471_vm1, %v1764_v50  ;;  %v1784_v63 = vshrl.u32 %v5577_v49, 16  ;;  %v1787_v0 = vshll.u32 %v5577_v49, 16  ;;  %v377_v5 = vrot.slane %v375_v60, 1  ;;  %v379_v10 = vshrl.u32 %v5571_v43, 16  ;;  %v5341_v50 = vld [vmem:[%s6461_s1 + $0x8] sm:$0xff]  }
  0x29   : > { %v370_v1 = vsel %vm310_vm0, %v365_v53, %v369_v57  ;;  %v1781_v2 = vor.u32 %v1780_v59, %v1777_v58  ;;  %v383_v12 = vshll.u32 %v5583_v55, 16  ;;  %v373_v13 = vor.u32 %v371_v54, %v369_v57  ;;  %v5633_v57 = vld [vmem:[%s5459_s27 + $0x60] sm:$0xff]   ;;  %4688 = vmatprep.subr.bf16.mxu1 %v5341_v50  ;;  %v5637_v60 = vld [vmem:[%s5459_s27 + $0x68] sm:$0xff]  }
  0x2a   : > { %v1786_v6 = vrot.slane %v1784_v63, 1  ;;  %v1793_v14 = vshrl.u32 %v5592_v3, 16  ;;  %v1796_v19 = vshll.u32 %v5592_v3, 16  ;;  %v1773_v22 = vsel %vm1711_vm2, %v1763_v39, %v1772_v62  ;;  %v5620_v39 = vld [vmem:[%s6461_s1 + $0x60] sm:$0xff]   ;;  %4689 = vmatpush3.bf16.msra.mxu1 %v5341_v50 }
  0x2b   : > { %v1789_v23 = vrot.slane %v1787_v0, 2  ;;  %v381_v24 = vor.u32 %v379_v10, %v377_v5  ;;  %v385_v25 = vrot.slane %v383_v12, 1  ;;  %v1782_v27 = vsel %vm1711_vm2, %v1772_v62, %v1781_v2  ;;  %4886 = vmatprep.subr.bf16.mxu0 %v5620_v39 }
  0x2c   : > { %4659 = vmatmul.mubr.msk.bf16.gmra.mrb[8].mxu1 %vm471_vm1, %v362_v52  ;;  %v1795_v28 = vrot.slane %v1793_v14, 1  ;;  %v1798_v4 = vrot.slane %v1796_v19, 2  ;;  %v391_v29 = vshll.u32 %v5601_v20, 16  ;;  %v1802_v30 = vshrl.u32 %v5604_v21, 16 }
  0x2d   : > { %4662 = vmatprep.mubr.msk.bf16.mxu1 %vm471_vm1, %v370_v1  ;;  %v1805_v34 = vshll.u32 %v5604_v21, 16  ;;  %v378_v36 = vsel %vm310_vm0, %v373_v13, %v377_v5  ;;  %v387_v37 = vshrl.u32 %v5583_v55, 16  ;;  %v1790_v40 = vor.u32 %v1789_v23, %v1786_v6  ;;  %v5655_v23 = vld [vmem:[%s5459_s27 + $0x70] sm:$0xff]  }
  0x2e   : > { %v386_v41 = vsel %vm310_vm0, %v381_v24, %v385_v25  ;;  %v395_v42 = vshrl.u32 %v5601_v20, 16  ;;  %v399_v44 = vshll.u32 %v5612_v35, 16  ;;  %v1799_v48 = vor.u32 %v1798_v4, %v1795_v28 }
  0x2f   : > { %4819 = vmatmul.mubr.msk.bf16.gmra.mrb[8].mxu0 %vm471_vm1, %v1773_v22  ;;  %v393_v52 = vrot.slane %v391_v29, 1  ;;  %v1804_v53 = vrot.slane %v1802_v30, 1  ;;  %v1807_v54 = vrot.slane %v1805_v34, 2  ;;  %v389_v58 = vor.u32 %v387_v37, %v385_v25  ;;  %v5659_v25 = vld [vmem:[%s5459_s27 + $0x78] sm:$0xff]  }
  0x30   : > { %4822 = vmatprep.mubr.msk.bf16.mxu0 %vm471_vm1, %v1782_v27  ;;  %v401_v59 = vrot.slane %v399_v44, 1  ;;  %v1791_v62 = vsel %vm1711_vm2, %v1781_v2, %v1790_v40  ;;  %v1800_v0 = vsel %vm1711_vm2, %v1790_v40, %v1799_v48  ;;  %v4289_v1 = vcombine.low %v2161_v47, %v5477_v11 }
  0x31   : > { %v397_v63 = vor.u32 %v395_v42, %v393_v52  ;;  %v407_v5 = vshll.u32 %v5633_v57, 16  ;;  %v394_v6 = vsel %vm310_vm0, %v389_v58, %v393_v52  ;;  %v403_v10 = vshrl.u32 %v5612_v35, 16 }
  0x32   : > { %v5647_v12 = vor.u32 %v1807_v54, %v1804_v53  ;;  %v411_v13 = vshrl.u32 %v5633_v57, 16  ;;  %v415_v14 = vshll.u32 %v5637_v60, 16  ;;  %v2170_v11 = vrot.slane %v4289_v1, 2  ;;  %v5687_v54 = vld [vmem:[%s5459_s27 + $0x88] sm:$0xff]  }
  0x33   : > { %v402_v2 = vsel %vm310_vm0, %v397_v63, %v401_v59  ;;  %v2171_v19 = vrot.slane %v5484_v16, 2  ;;  %v409_v22 = vrot.slane %v407_v5, 1  ;;  %v405_v24 = vor.u32 %v403_v10, %v401_v59  ;;  %v5666_v16 = vld [vmem:[%s6461_s1 + $0x20] sm:$0xff]  }
  0x34   : > { %4663 = vmatmul.mubr.msk.bf16.gmra.mrb[12].mxu1 %vm471_vm1, %v378_v36  ;;  %v1809_v27 = vsel %vm1711_vm2, %v1799_v48, %v5647_v12  ;;  %v417_v4 = vrot.slane %v415_v14, 1  ;;  %v423_v30 = vshll.u32 %v5655_v23, 16  ;;  %4726 = vmatprep.subr.bf16.mxu1 %v5666_v16  ;;  %v2173_v36 = vrot.slane %v5498_v26, 2  ;;  %v5682_v48 = vld [vmem:[%s5459_s27 + $0x80] sm:$0xff]  }
  0x35   : > { %4666 = vmatprep.mubr.msk.bf16.mxu1 %vm471_vm1, %v386_v41  ;;  %v413_v28 = vor.u32 %v411_v13, %v409_v22  ;;  %v2172_v29 = vsel %vm2169_vm3, %v2170_v11, %v2171_v19  ;;  %v410_v34 = vsel %vm310_vm0, %v405_v24, %v409_v22  ;;  %v419_v37 = vshrl.u32 %v5637_v60, 16 }
  0x36   : > { %v427_v41 = vshrl.u32 %v5655_v23, 16  ;;  %v431_v42 = vshll.u32 %v5659_v25, 16  ;;  %v2175_v44 = vrot.slane %v5504_v32, 2  ;;  %v425_v47 = vrot.slane %v423_v30, 1  ;;  %v5348_v32 = vld [vmem:[%s6461_s1 + $0x68] sm:$0xff]  }
  0x37   : > { %4823 = vmatmul.mubr.msk.bf16.gmra.mrb[12].mxu0 %vm471_vm1, %v1791_v62  ;;  %v418_v40 = vsel %vm310_vm0, %v413_v28, %v417_v4  ;;  %v421_v26 = vor.u32 %v419_v37, %v417_v4  ;;  %v2174_v50 = vsel %vm2169_vm3, %v2171_v19, %v2173_v36  ;;  %v439_v59 = vshll.u32 %v5682_v48, 16 }
  0x38   : > { %4826 = vmatprep.mubr.msk.bf16.mxu0 %vm471_vm1, %v1800_v0  ;;  %v429_v52 = vor.u32 %v427_v41, %v425_v47  ;;  %v433_v53 = vrot.slane %v431_v42, 1  ;;  %v2176_v58 = vsel %vm2169_vm3, %v2173_v36, %v2175_v44  ;;  %v2177_v63 = vrot.slane %v5517_v46, 2  ;;  %v5710_v46 = vld [vmem:[%s6461_s1 + $0x70] sm:$0xff]  }
  0x39   : > { %v426_v62 = vsel %vm310_vm0, %v421_v26, %v425_v47  ;;  %v435_v0 = vshrl.u32 %v5659_v25, 16  ;;  %v443_v5 = vshrl.u32 %v5682_v48, 16  ;;  %v2179_v10 = vrot.slane %v5529_v56, 2  ;;  %v5756_v26 = vld [vmem:[%s5459_s27 + $0x68] sm:$0xff]  }
  0x3a   : > { %v434_v1 = vsel %vm310_vm0, %v429_v52, %v433_v53  ;;  %v2178_v14 = vsel %vm2169_vm3, %v2175_v44, %v2177_v63  ;;  %v451_v24 = vshrl.u32 %v5687_v54, 16  ;;  %v2181_v28 = vrot.slane %v5546_v15, 2  ;;  %v5740_v44 = vld [vmem:[%s5459_s27 + $0x60] sm:$0xff]   ;;  %v5765_v52 = vld [vmem:[%s5459_s27 + $0x70] sm:$0xff]  }
  0x3b   : > { %v437_v13 = vor.u32 %v435_v0, %v433_v53  ;;  %v2180_v56 = vsel %vm2169_vm3, %v2177_v63, %v2179_v10  ;;  %v2185_v15 = vrot.slane %v5577_v49, 2  ;;  %v2189_v49 = vrot.slane %v5604_v21, 2  ;;  %v5761_v21 = vld [vmem:[%s6461_s1 + $0x30] sm:$0xff]  }
  0x3c   : > { %4667 = vmatmul.mubr.msk.bf16.gmra.mrb[16].mxu1 %vm471_vm1, %v394_v6  ;;  %v447_v6 = vshll.u32 %v5687_v54, 16  ;;  %v2182_v36 = vsel %vm2169_vm3, %v2179_v10, %v2181_v28  ;;  %v2191_v47 = vrot.slane %v5740_v44, 2  ;;  %v2195_v53 = vrot.slane %v5765_v52, 2  ;;  %v5798_v10 = vld [vmem:[%s5459_s27 + $0x90] sm:$0xff]  }
  0x3d   : > { %4670 = vmatprep.mubr.msk.bf16.mxu1 %vm471_vm1, %v402_v2  ;;  %v5705_v2 = vld [vmem:[%s5459_s27 + $0x90] ss:$0 sps:$4 sm:$0x11]  }
  0x3e   : > { %v449_v19 = vrot.slane %v447_v6, 1 }
  0x3f   : > { %4827 = vmatmul.mubr.msk.bf16.gmra.mrb[16].mxu0 %vm471_vm1, %v1809_v27  ;;  %v455_v27 = vshll.u32 %v5705_v2, 16 }
  0x40   : > { %4850 = vmatprep.mubr.msk.bf16.mxu0 %vm471_vm1, %v2172_v29  ;;  %v2183_v29 = vrot.slane %v5566_v38, 2  ;;  %v453_v30 = vor.u32 %v451_v24, %v449_v19  ;;  %v2187_v38 = vrot.slane %v5592_v3, 2  ;;  %v5362_v3 = vld [vmem:[%s6461_s1 + $0x28] sm:$0xff]  }
  0x42   : > { %v2184_v37 = vsel %vm2169_vm3, %v2181_v28, %v2183_v29  ;;  %v2186_v41 = vsel %vm2169_vm3, %v2183_v29, %v2185_v15  ;;  %v2188_v42 = vsel %vm2169_vm3, %v2185_v15, %v2187_v38 }
  0x44   : > { %4671 = vmatmul.mubr.msk.bf16.gmra.mrb[20].mxu1 %vm471_vm1, %v410_v34  ;;  %v457_v34 = vrot.slane %v455_v27, 1  ;;  %v5821_v27 = vld [vmem:[%s5459_s27 + $0x18] sm:$0xff]  }
  0x45   : > { %4674 = vmatprep.mubr.msk.bf16.mxu1 %vm471_vm1, %v418_v40  ;;  %v2621_v29 = vrot.slane %v5821_v27, 2 }
  0x46   : > { %v458_v40 = vsel %vm310_vm0, %v453_v30, %v457_v34  ;;  %v5834_v34 = vld [vmem:[%s5459_s27 + $0x20] sm:$0xff]  }
  0x47   : > { %4851 = vmatmul.mubr.msk.bf16.vlgmr.msra.gmra.mrb[0].mxu0 %vm471_vm1, %v2174_v50  ;;  %v2192_v50 = vsel %vm2169_vm3, %v2189_v49, %v2191_v47 }
  0x48   : > { %4887 = vmatpush3.bf16.msra.mxu0 %v5620_v39  ;;  %4854 = vmatprep.mubr.msk.bf16.mxu0 %vm471_vm1, %v2176_v58  ;;  %v441_v39 = vrot.slane %v439_v59, 1 }
  0x49   : > { %4888 = vmatprep.subr.bf16.mxu0 %v5348_v32 }
  0x4a   : > { %v445_v11 = vor.u32 %v443_v5, %v441_v39  ;;  %v442_v22 = vsel %vm310_vm0, %v437_v13, %v441_v39  ;;  %v5794_v5 = vld [vmem:[%s5459_s27 + $0x88] sm:$0xff]   ;;  %v2203_v13 = vrot.slane %v5798_v10, 2 }
  0x4b   : > { %v2201_v39 = vrot.slane %v5794_v5, 2 }
  0x4c   : > { %4675 = vmatmul.mubr.msk.bf16.gmra.mrb[24].mxu1 %vm471_vm1, %v426_v62  ;;  %4889 = vmatpush3.bf16.msra.mxu0 %v5348_v32  ;;  %v450_v4 = vsel %vm310_vm0, %v445_v11, %v449_v19  ;;  %v5778_v32 = vld [vmem:[%s5459_s27 + $0x78] sm:$0xff]   ;;  %v5782_v62 = vld [vmem:[%s5459_s27 + $0x80] sm:$0xff]   ;;  %v5808_v11 = vld [vmem:[%s5459_s27 + $0x14] sm:$0xf] }
  0x4d   : > { %4678 = vmatprep.mubr.msk.bf16.mxu1 %vm471_vm1, %v434_v1  ;;  %4926 = vmatprep.subr.bf16.mxu0 %v5710_v46  ;;  %v2197_v63 = vrot.slane %v5778_v32, 2  ;;  %v2199_v0 = vrot.slane %v5782_v62, 2 }
  0x4f   : > { %4855 = vmatmul.mubr.msk.bf16.gmra.mrb[4].mxu0 %vm471_vm1, %v2178_v14  ;;  %v2198_v1 = vsel %vm2169_vm3, %v2195_v53, %v2197_v63  ;;  %v2200_v6 = vsel %vm2169_vm3, %v2197_v63, %v2199_v0  ;;  %v2486_v14 = vld [vmem:[%s5459_s27 + $0x10] sm:$0xc]  ;;  %v2202_v19 = vsel %vm2169_vm3, %v2199_v0, %v2201_v39 }
  0x50   : > { %4858 = vmatprep.mubr.msk.bf16.mxu0 %vm471_vm1, %v2180_v56  ;;  %v5814_v56 = vld [vmem:[%s5459_s27 + $0x98] ss:$0 sps:$4 sm:$0x33]   ;;  %v5818_v24 = vcombine.low %v2486_v14, %v5808_v11  ;;  %v938_v14 = vrot.slane %v5472_v9, 1 }
  0x51   : > { %v2205_v28 = vrot.slane %v5814_v56, 2 }
  0x53   : > { %v2206_v30 = vsel %vm2169_vm3, %v2203_v13, %v2205_v28 }
  0x54   : > { %4679 = vmatmul.mubr.msk.bf16.gmra.mrb[28].mxu1 %vm471_vm1, %v442_v22  ;;  %v2204_v22 = vsel %vm2169_vm3, %v2201_v39, %v2203_v13  ;;  %v5894_v39 = vld [vmem:[%s5459_s27 + $0x50] sm:$0xff]  }
  0x55   : > { %4682 = vmatprep.mubr.msk.bf16.mxu1 %vm471_vm1, %v450_v4  ;;  %v2620_v4 = vrot.slane %v5818_v24, 2 }
  0x57   : > { %4859 = vmatmul.mubr.msk.bf16.gmra.mrb[8].mxu0 %vm471_vm1, %v2182_v36  ;;  %v2622_v36 = vsel %vm2169_vm3, %v2620_v4, %v2621_v29 }
  0x58   : > { %4862 = vmatprep.mubr.msk.bf16.mxu0 %vm471_vm1, %v2184_v37  ;;  %v5838_v37 = vld [vmem:[%s5459_s27 + $0x28] sm:$0xff]  }
  0x59   : > { %v2625_v15 = vrot.slane %v5838_v37, 2 }
  0x5c   : > { %4683 = vmatmul.mubr.msk.bf16.gmra.mrb[32].mxu1 %vm471_vm1, %v458_v40  ;;  %v2623_v40 = vrot.slane %v5834_v34, 2 }
  0x5d   : > { %4690 = vmatprep.mubr.msk.bf16.mxu1 %vm471_vm1, %v5469_v8  ;;  %v2190_v8 = vsel %vm2169_vm3, %v2187_v38, %v2189_v49  ;;  %v5854_v49 = vld [vmem:[%s5459_s27 + $0x38] sm:$0xff]  }
  0x5e   : > { %v2624_v38 = vsel %vm2169_vm3, %v2621_v29, %v2623_v40 }
  0x5f   : > { %4863 = vmatmul.mubr.msk.bf16.gmra.mrb[12].mxu0 %vm471_vm1, %v2186_v41  ;;  %v5850_v41 = vld [vmem:[%s5459_s27 + $0x30] sm:$0xff]  }
  0x60   : > { %4866 = vmatprep.mubr.msk.bf16.mxu0 %vm471_vm1, %v2188_v42  ;;  %v2626_v42 = vsel %vm2169_vm3, %v2623_v40, %v2625_v15 }
  0x64   : > { %4691 = vmatmul.mubr.msk.bf16.vlgmr.msra.gmra.mrb[0].mxu1 %vm471_vm1, %v5472_v9  ;;  %v940_v9 = vrot.slane %v5487_v17, 1 }
  0x65   : > { %4694 = vmatprep.mubr.msk.bf16.mxu1 %vm471_vm1, %v5487_v17  ;;  %4727 = vmatpush3.bf16.msra.mxu1 %v5666_v16  ;;  %v2193_v16 = vrot.slane %v5756_v26, 2 }
  0x66   : > { %4728 = vmatprep.subr.bf16.mxu1 %v5362_v3 }
  0x67   : > { %4867 = vmatmul.mubr.msk.bf16.gmra.mrb[16].mxu0 %vm471_vm1, %v2190_v8  ;;  %v2194_v58 = vsel %vm2169_vm3, %v2191_v47, %v2193_v16  ;;  %v2196_v59 = vsel %vm2169_vm3, %v2193_v16, %v2195_v53  ;;  %v2627_v47 = vrot.slane %v5850_v41, 2  ;;  %v2629_v8 = vrot.slane %v5854_v49, 2  ;;  %v5875_v16 = vld [vmem:[%s5459_s27 + $0x40] sm:$0xff]  }
  0x68   : > { %4870 = vmatprep.mubr.msk.bf16.mxu0 %vm471_vm1, %v2192_v50  ;;  %v5867_v50 = vld [vmem:[%s6461_s1 + $0x80] sm:$0xff]   ;;  %v2631_v63 = vrot.slane %v5875_v16, 2 }
  0x69   : > { %4729 = vmatpush3.bf16.msra.mxu1 %v5362_v3  ;;  %v5372_v3 = vld [vmem:[%s6461_s1 + $0x78] sm:$0xff]   ;;  %v2630_v53 = vsel %vm2169_vm3, %v2627_v47, %v2629_v8 }
  0x6a   : > { %4766 = vmatprep.subr.bf16.mxu1 %v5761_v21 }
  0x6c   : > { %4695 = vmatmul.mubr.msk.bf16.gmra.mrb[4].mxu1 %vm471_vm1, %v5501_v31 }
  0x6d   : > { %4698 = vmatprep.mubr.msk.bf16.mxu1 %vm471_vm1, %v5514_v45 }
  0x6f   : > { %4871 = vmatmul.mubr.msk.bf16.gmra.mrb[20].mxu0 %vm471_vm1, %v2194_v58  ;;  %v5879_v58 = vld [vmem:[%s5459_s27 + $0x48] sm:$0xff]  }
  0x70   : > { %4874 = vmatprep.mubr.msk.bf16.mxu0 %vm471_vm1, %v2196_v59  ;;  %v928_v59 = vld [vmem:[%s5459_s27] sm:$0xe] }
  0x71   : > { %v4208_v0 = vcombine.low %v928_v59, %v5466_v7  ;;  %v5899_v7 = vld [vmem:[%s5459_s27 + $0x58] sm:$0xff]  }
  0x72   : > { %v2637_v4 = vrot.slane %v5899_v7, 2 }
  0x73   : > { %v937_v13 = vrot.slane %v4208_v0, 1 }
  0x74   : > { %4699 = vmatmul.mubr.msk.bf16.gmra.mrb[8].mxu1 %vm471_vm1, %v5523_v51 }
  0x75   : > { %4702 = vmatprep.mubr.msk.bf16.mxu1 %vm471_vm1, %v5534_v61  ;;  %v939_v28 = vsel %vm936_vm4, %v937_v13, %v938_v14 }
  0x77   : > { %4875 = vmatmul.mubr.msk.bf16.gmra.mrb[24].mxu0 %vm471_vm1, %v2198_v1  ;;  %v2633_v1 = vrot.slane %v5879_v58, 2 }
  0x78   : > { %4878 = vmatprep.mubr.msk.bf16.mxu0 %vm471_vm1, %v2200_v6  ;;  %v2632_v6 = vsel %vm2169_vm3, %v2629_v8, %v2631_v63 }
  0x7c   : > { %4703 = vmatmul.mubr.msk.bf16.gmra.mrb[12].mxu1 %vm471_vm1, %v5561_v33 }
  0x7d   : > { %4706 = vmatprep.mubr.msk.bf16.mxu1 %vm471_vm1, %v5571_v43 }
  0x7f   : > { %4879 = vmatmul.mubr.msk.bf16.gmra.mrb[28].mxu0 %vm471_vm1, %v2202_v19  ;;  %v2634_v19 = vsel %vm2169_vm3, %v2631_v63, %v2633_v1  ;;  %v5939_v63 = vld [vmem:[%s5459_s27 + $0x78] sm:$0xff]  }
  0x80   : > { %4882 = vmatprep.mubr.msk.bf16.mxu0 %vm471_vm1, %v2204_v22  ;;  %v2635_v22 = vrot.slane %v5894_v39, 2 }
  0x82   : > { %v2636_v29 = vsel %vm2169_vm3, %v2633_v1, %v2635_v22  ;;  %v2638_v40 = vsel %vm2169_vm3, %v2635_v22, %v2637_v4  ;;  %v2645_v1 = vrot.slane %v5939_v63, 2 }
  0x84   : > { %4707 = vmatmul.mubr.msk.bf16.gmra.mrb[16].mxu1 %vm471_vm1, %v5583_v55 }
  0x85   : > { %4710 = vmatprep.mubr.msk.bf16.mxu1 %vm471_vm1, %v5601_v20 }
  0x87   : > { %4883 = vmatmul.mubr.msk.bf16.gmra.mrb[32].mxu0 %vm471_vm1, %v2206_v30  ;;  %v5912_v30 = vld [vmem:[%s5459_s27 + $0x60] sm:$0xff]  }
  0x88   : > { %4890 = vmatprep.mubr.msk.bf16.mxu0 %vm471_vm1, %v2622_v36  ;;  %v942_v36 = vrot.slane %v5501_v31, 1  ;;  %v2639_v17 = vrot.slane %v5912_v30, 2 }
  0x8a   : > { %v2640_v8 = vsel %vm2169_vm3, %v2637_v4, %v2639_v17 }
  0x8c   : > { %4711 = vmatmul.mubr.msk.bf16.gmra.mrb[20].mxu1 %vm471_vm1, %v5612_v35 }
  0x8d   : > { %4714 = vmatprep.mubr.msk.bf16.mxu1 %vm471_vm1, %v5633_v57 }
  0x8f   : > { %4891 = vmatmul.mubr.msk.bf16.vlgmr.msra.gmra.mrb[0].mxu0 %vm471_vm1, %v2624_v38  ;;  %v941_v38 = vsel %vm936_vm4, %v938_v14, %v940_v9  ;;  %v5958_v14 = vld [vmem:[%s5459_s27 + $0x80] sm:$0xff]  }
  0x90   : > { %4927 = vmatpush3.bf16.msra.mxu0 %v5710_v46  ;;  %4894 = vmatprep.mubr.msk.bf16.mxu0 %vm471_vm1, %v2626_v42  ;;  %v2628_v46 = vsel %vm2169_vm3, %v2625_v15, %v2627_v47  ;;  %v5917_v15 = vld [vmem:[%s5459_s27 + $0x68] sm:$0xff]   ;;  %v943_v42 = vsel %vm936_vm4, %v940_v9, %v942_v36  ;;  %v944_v47 = vrot.slane %v5514_v45, 1 }
  0x91   : > { %4928 = vmatprep.subr.bf16.mxu0 %v5372_v3  ;;  %v2641_v31 = vrot.slane %v5917_v15, 2 }
  0x92   : > { %v945_v0 = vsel %vm936_vm4, %v942_v36, %v944_v47 }
  0x93   : > { %v2642_v59 = vsel %vm2169_vm3, %v2639_v17, %v2641_v31  ;;  %v5980_v17 = vld [vmem:[%s5459_s27 + $0x98] sm:$0xff]  }
  0x94   : > { %4715 = vmatmul.mubr.msk.bf16.gmra.mrb[24].mxu1 %vm471_vm1, %v5637_v60  ;;  %4929 = vmatpush3.bf16.msra.mxu0 %v5372_v3  ;;  %v5383_v3 = vld [vmem:[%s6461_s1 + $0x38] sm:$0xff]  }
  0x95   : > { %4718 = vmatprep.mubr.msk.bf16.mxu1 %vm471_vm1, %v5655_v23  ;;  %4966 = vmatprep.subr.bf16.mxu0 %v5867_v50 }
  0x97   : > { %4895 = vmatmul.mubr.msk.bf16.gmra.mrb[4].mxu0 %vm471_vm1, %v2628_v46  ;;  %v5934_v46 = vld [vmem:[%s5459_s27 + $0x70] sm:$0xff]  }
  0x98   : > { %4898 = vmatprep.mubr.msk.bf16.mxu0 %vm471_vm1, %v2630_v53  ;;  %v946_v53 = vrot.slane %v5523_v51, 1  ;;  %v2643_v45 = vrot.slane %v5934_v46, 2  ;;  %v5949_v51 = vld [vmem:[%s6461_s1 + $0x40] sm:$0xff]  }
  0x9a   : > { %v2644_v13 = vsel %vm2169_vm3, %v2641_v31, %v2643_v45  ;;  %v2646_v22 = vsel %vm2169_vm3, %v2643_v45, %v2645_v1 }
  0x9c   : > { %4719 = vmatmul.mubr.msk.bf16.gmra.mrb[28].mxu1 %vm471_vm1, %v5659_v25 }
  0x9d   : > { %4722 = vmatprep.mubr.msk.bf16.mxu1 %vm471_vm1, %v5682_v48 }
  0x9f   : > { %4899 = vmatmul.mubr.msk.bf16.gmra.mrb[8].mxu0 %vm471_vm1, %v2632_v6  ;;  %v948_v6 = vrot.slane %v5534_v61, 1  ;;  %v2647_v61 = vrot.slane %v5958_v14, 2 }
  0xa0   : > { %4902 = vmatprep.mubr.msk.bf16.mxu0 %vm471_vm1, %v2634_v19  ;;  %v950_v19 = vrot.slane %v5561_v33, 1  ;;  %v952_v33 = vrot.slane %v5571_v43, 1 }
  0xa1   : > { %v949_v4 = vsel %vm936_vm4, %v946_v53, %v948_v6  ;;  %v2648_v36 = vsel %vm2169_vm3, %v2645_v1, %v2647_v61  ;;  %v5381_v1 = vld [vmem:[%s5459_s27 + $0xa0] ss:$0 sps:$4 sm:$0x33]  }
  0xa2   : > { %v951_v9 = vsel %vm936_vm4, %v948_v6, %v950_v19  ;;  %v958_v6 = vrot.slane %v5612_v35, 1  ;;  %v2972_v35 = vshrl.u32 %v5838_v37, 16 }
  0xa4   : > { %4723 = vmatmul.mubr.msk.bf16.gmra.mrb[32].mxu1 %vm471_vm1, %v5687_v54 }
  0xa5   : > { %4730 = vmatprep.mubr.msk.bf16.mxu1 %vm471_vm1, %v939_v28  ;;  %v5963_v28 = vld [vmem:[%s5459_s27 + $0x88] sm:$0xff]  }
  0xa7   : > { %4903 = vmatmul.mubr.msk.bf16.gmra.mrb[12].mxu0 %vm471_vm1, %v2636_v29  ;;  %v2649_v29 = vrot.slane %v5963_v28, 2 }
  0xa8   : > { %4906 = vmatprep.mubr.msk.bf16.mxu0 %vm471_vm1, %v2638_v40  ;;  %v5976_v40 = vld [vmem:[%s5459_s27 + $0x90] sm:$0xff]  }
  0xa9   : > { %v2651_v31 = vrot.slane %v5976_v40, 2 }
  0xab   : > { %v2652_v45 = vsel %vm2169_vm3, %v2649_v29, %v2651_v31 }
  0xac   : > { %4731 = vmatmul.mubr.msk.bf16.vlgmr.msra.gmra.mrb[0].mxu1 %vm471_vm1, %v941_v38  ;;  %v954_v38 = vrot.slane %v5583_v55, 1  ;;  %v2949_v55 = vshll.u32 %v5818_v24, 16 }
  0xad   : > { %4734 = vmatprep.mubr.msk.bf16.mxu1 %vm471_vm1, %v943_v42  ;;  %4767 = vmatpush3.bf16.msra.mxu1 %v5761_v21  ;;  %v947_v21 = vsel %vm936_vm4, %v944_v47, %v946_v53  ;;  %v2650_v42 = vsel %vm2169_vm3, %v2647_v61, %v2649_v29  ;;  %v2653_v47 = vrot.slane %v5980_v17, 2  ;;  %v2954_v53 = vshrl.u32 %v5821_v27, 16 }
  0xae   : > { %4768 = vmatprep.subr.bf16.mxu1 %v5383_v3  ;;  %v955_v43 = vsel %vm936_vm4, %v952_v33, %v954_v38  ;;  %v2655_v61 = vrot.slane %v5381_v1, 2  ;;  %v2966_v29 = vshll.u32 %v5834_v34, 16 }
  0xaf   : > { %4907 = vmatmul.mubr.msk.bf16.gmra.mrb[16].mxu0 %vm471_vm1, %v2640_v8  ;;  %v2946_v8 = vshrl.u32 %v5818_v24, 16  ;;  %v2956_v24 = vrot.slane %v2954_v53, 2  ;;  %v2974_v53 = vrot.slane %v2972_v35, 2  ;;  %v3002_v35 = vshll.u32 %v5875_v16, 16 }
  0xb0   : > { %4910 = vmatprep.mubr.msk.bf16.mxu0 %vm471_vm1, %v2642_v59  ;;  %v2957_v59 = vshll.u32 %v5821_v27, 16 }
  0xb1   : > { %4769 = vmatpush3.bf16.msra.mxu1 %v5383_v3  ;;  %v953_v3 = vsel %vm936_vm4, %v950_v19, %v952_v33  ;;  %v2951_v19 = vrot.slane %v2949_v55, 3 }
  0xb2   : > { %5006 = vmatprep.subr.bf16.mxu1 %v5949_v51 }
  0xb4   : > { %4735 = vmatmul.mubr.msk.bf16.gmra.mrb[4].mxu1 %vm471_vm1, %v945_v0  ;;  %v956_v0 = vrot.slane %v5601_v20, 1 }
  0xb5   : > { %4738 = vmatprep.mubr.msk.bf16.mxu1 %vm471_vm1, %v947_v21  ;;  %v2654_v21 = vsel %vm2169_vm3, %v2651_v31, %v2653_v47 }
  0xb6   : > { %v959_v20 = vsel %vm936_vm4, %v956_v0, %v958_v6 }
  0xb7   : > { %4911 = vmatmul.mubr.msk.bf16.gmra.mrb[20].mxu0 %vm471_vm1, %v2644_v13  ;;  %v2948_v13 = vrot.slane %v2946_v8, 2  ;;  %v962_v8 = vrot.slane %v5637_v60, 1  ;;  %v2990_v60 = vshrl.u32 %v5854_v49, 16 }
  0xb8   : > { %4914 = vmatprep.mubr.msk.bf16.mxu0 %vm471_vm1, %v2646_v22  ;;  %v2959_v22 = vrot.slane %v2957_v59, 3 }
  0xb9   : > { %v2952_v33 = vor.u32 %v2951_v19, %v2948_v13  ;;  %v2993_v13 = vshll.u32 %v5854_v49, 16 }
  0xbc   : > { %4739 = vmatmul.mubr.msk.bf16.gmra.mrb[8].mxu1 %vm471_vm1, %v949_v4  ;;  %v957_v4 = vsel %vm936_vm4, %v954_v38, %v956_v0  ;;  %v960_v38 = vrot.slane %v5633_v57, 1  ;;  %v2981_v57 = vshrl.u32 %v5850_v41, 16 }
  0xbd   : > { %4742 = vmatprep.mubr.msk.bf16.mxu1 %vm471_vm1, %v951_v9  ;;  %v2963_v9 = vshrl.u32 %v5834_v34, 16 }
  0xbe   : > { %v961_v0 = vsel %vm936_vm4, %v958_v6, %v960_v38  ;;  %v964_v6 = vrot.slane %v5655_v23, 1 }
  0xbf   : > { %4915 = vmatmul.mubr.msk.bf16.gmra.mrb[24].mxu0 %vm471_vm1, %v2648_v36  ;;  %v2960_v36 = vor.u32 %v2959_v22, %v2956_v24  ;;  %v2965_v31 = vrot.slane %v2963_v9, 2  ;;  %v2983_v24 = vrot.slane %v2981_v57, 2  ;;  %v2995_v9 = vrot.slane %v2993_v13, 3 }
  0xc0   : > { %4918 = vmatprep.mubr.msk.bf16.mxu0 %vm471_vm1, %v2650_v42  ;;  %v2975_v42 = vshll.u32 %v5838_v37, 16  ;;  %v3017_v57 = vshrl.u32 %v5894_v39, 16  ;;  %v972_v13 = vrot.slane %v5705_v2, 1 }
  0xc1   : > { %v2961_v55 = vsel %vm2944_vm5, %v2952_v33, %v2960_v36  ;;  %v965_v33 = vsel %vm936_vm4, %v962_v8, %v964_v6 }
  0xc2   : > { %v2977_v59 = vrot.slane %v2975_v42, 3 }
  0xc4   : > { %4743 = vmatmul.mubr.msk.bf16.gmra.mrb[12].mxu1 %vm471_vm1, %v953_v3  ;;  %v2656_v3 = vsel %vm2169_vm3, %v2653_v47, %v2655_v61  ;;  %v2984_v47 = vshll.u32 %v5850_v41, 16  ;;  %v2978_v1 = vor.u32 %v2977_v59, %v2974_v53 }
  0xc5   : > { %4746 = vmatprep.mubr.msk.bf16.mxu1 %vm471_vm1, %v955_v43  ;;  %v2968_v43 = vrot.slane %v2966_v29, 3  ;;  %v5384_v29 = vld [vmem:[%s6461_s1 + $0x88] sm:$0xff]  }
  0xc6   : > { %v2986_v22 = vrot.slane %v2984_v47, 3  ;;  %v3020_v47 = vshll.u32 %v5894_v39, 16 }
  0xc7   : > { %4919 = vmatmul.mubr.msk.bf16.gmra.mrb[28].mxu0 %vm471_vm1, %v2652_v45  ;;  %v2969_v45 = vor.u32 %v2968_v43, %v2965_v31 }
  0xc8   : > { %4922 = vmatprep.mubr.msk.bf16.mxu0 %vm471_vm1, %v2654_v21  ;;  %v963_v21 = vsel %vm936_vm4, %v960_v38, %v962_v8  ;;  %v2987_v23 = vor.u32 %v2986_v22, %v2983_v24  ;;  %v3008_v38 = vshrl.u32 %v5879_v58, 16  ;;  %v3004_v8 = vrot.slane %v3002_v35, 3 }
  0xc9   : > { %v2970_v19 = vsel %vm2944_vm5, %v2960_v36, %v2969_v45  ;;  %v2979_v61 = vsel %vm2944_vm5, %v2969_v45, %v2978_v1  ;;  %v3019_v24 = vrot.slane %v3017_v57, 2  ;;  %v3022_v22 = vrot.slane %v3020_v47, 3 }
  0xca   : > { %v2988_v31 = vsel %vm2944_vm5, %v2978_v1, %v2987_v23  ;;  %v3010_v59 = vrot.slane %v3008_v38, 2  ;;  %v3026_v1 = vshrl.u32 %v5899_v7, 16  ;;  %v3044_v35 = vshrl.u32 %v5917_v15, 16  ;;  %v5390_v38 = vld [vmem:[%s5459_s27 + $0x18] sm:$0xff]  }
  0xcb   : > { %v3023_v2 = vor.u32 %v3022_v22, %v3019_v24  ;;  %v3053_v57 = vshrl.u32 %v5934_v46, 16  ;;  %v3056_v47 = vshll.u32 %v5934_v46, 16 }
  0xcc   : > { %4747 = vmatmul.mubr.msk.bf16.gmra.mrb[16].mxu1 %vm471_vm1, %v957_v4  ;;  %v966_v4 = vrot.slane %v5659_v25, 1  ;;  %v2999_v25 = vshrl.u32 %v5875_v16, 16 }
  0xcd   : > { %4750 = vmatprep.mubr.msk.bf16.mxu1 %vm471_vm1, %v959_v20  ;;  %v2992_v20 = vrot.slane %v2990_v60, 2  ;;  %v3029_v60 = vshll.u32 %v5899_v7, 16  ;;  %v3055_v24 = vrot.slane %v3053_v57, 2  ;;  %v3058_v22 = vrot.slane %v3056_v47, 3 }
  0xce   : > { %v967_v36 = vsel %vm936_vm4, %v964_v6, %v966_v4  ;;  %v3001_v43 = vrot.slane %v2999_v25, 2  ;;  %v1387_v6 = vrot.slane %v5490_v18, 1  ;;  %v3089_v57 = vshrl.u32 %v5976_v40, 16 }
  0xcf   : > { %4923 = vmatmul.mubr.msk.bf16.gmra.mrb[32].mxu0 %vm471_vm1, %v2656_v3  ;;  %v2996_v42 = vor.u32 %v2995_v9, %v2992_v20  ;;  %v3011_v3 = vshll.u32 %v5879_v58, 16  ;;  %v3028_v9 = vrot.slane %v3026_v1, 2  ;;  %v3062_v1 = vshrl.u32 %v5939_v63, 16 }
  0xd0   : > { %4930 = vmatprep.mubr.msk.bf16.mxu0 %vm471_vm1, %v2961_v55  ;;  %v970_v55 = vrot.slane %v5687_v54, 1  ;;  %v3092_v47 = vshll.u32 %v5976_v40, 16 }
  0xd1   : > { %v2997_v53 = vsel %vm2944_vm5, %v2987_v23, %v2996_v42  ;;  %v3035_v23 = vshrl.u32 %v5912_v30, 16 }
  0xd4   : > { %4751 = vmatmul.mubr.msk.bf16.gmra.mrb[20].mxu1 %vm471_vm1, %v961_v0  ;;  %v3013_v0 = vrot.slane %v3011_v3, 3  ;;  %v1390_v3 = vrot.slane %v5390_v38, 1  ;;  %v5395_v38 = vld [vmem:[%s5459_s27 + $0x38] sm:$0xff]  }
  0xd5   : > { %4754 = vmatprep.mubr.msk.bf16.mxu1 %vm471_vm1, %v963_v21  ;;  %v3005_v21 = vor.u32 %v3004_v8, %v3001_v43  ;;  %v5391_v8 = vld [vmem:[%s5459_s27 + $0x20] sm:$0xff]  }
  0xd6   : > { %v3014_v54 = vor.u32 %v3013_v0, %v3010_v59  ;;  %v3046_v59 = vrot.slane %v3044_v35, 2  ;;  %v3080_v35 = vshrl.u32 %v5963_v28, 16 }
  0xd7   : > { %4931 = vmatmul.mubr.msk.bf16.vlgmr.msra.gmra.mrb[0].mxu0 %vm471_vm1, %v2970_v19  ;;  %v3006_v19 = vsel %vm2944_vm5, %v2996_v42, %v3005_v21  ;;  %v3047_v42 = vshll.u32 %v5917_v15, 16 }
  0xd8   : > { %4967 = vmatpush3.bf16.msra.mxu0 %v5867_v50  ;;  %4934 = vmatprep.mubr.msk.bf16.mxu0 %vm471_vm1, %v2979_v61  ;;  %v968_v50 = vrot.slane %v5682_v48, 1  ;;  %v3015_v20 = vsel %vm2944_vm5, %v3005_v21, %v3014_v54 }
  0xd9   : > { %4968 = vmatprep.subr.bf16.mxu0 %v5384_v29  ;;  %v3049_v0 = vrot.slane %v3047_v42, 3  ;;  %v3083_v42 = vshll.u32 %v5963_v28, 16 }
  0xda   : > { %v969_v45 = vsel %vm936_vm4, %v966_v4, %v968_v50  ;;  %v971_v48 = vsel %vm936_vm4, %v968_v50, %v970_v55  ;;  %v5389_v4 = vld [vmem:[%s5459_s27 + $0x10] sm:$0xff]   ;;  %v3024_v50 = vsel %vm2944_vm5, %v3014_v54, %v3023_v2 }
  0xdb   : > { %v1388_v61 = vrot.slane %v5389_v4, 1  ;;  %v3050_v54 = vor.u32 %v3049_v0, %v3046_v59  ;;  %v5393_v4 = vld [vmem:[%s5459_s27 + $0x30] sm:$0xff]   ;;  %v3082_v59 = vrot.slane %v3080_v35, 2  ;;  %v3085_v0 = vrot.slane %v3083_v42, 3  ;;  %v5399_v42 = vld [vmem:[%s5459_s27 + $0x58] sm:$0xff]  }
  0xdc   : > { %4755 = vmatmul.mubr.msk.bf16.gmra.mrb[24].mxu1 %vm471_vm1, %v965_v33  ;;  %4969 = vmatpush3.bf16.msra.mxu0 %v5384_v29  ;;  %v3031_v29 = vrot.slane %v3029_v60, 3  ;;  %v973_v33 = vsel %vm936_vm4, %v970_v55, %v972_v13  ;;  %v1392_v55 = vrot.slane %v5391_v8, 1  ;;  %v3065_v60 = vshll.u32 %v5939_v63, 16  ;;  %v5392_v13 = vld [vmem:[%s5459_s27 + $0x28] sm:$0xff]   ;;  %v5396_v8 = vld [vmem:[%s5459_s27 + $0x40] sm:$0xff]  }
  0xdd   : > { %4758 = vmatprep.mubr.msk.bf16.mxu1 %vm471_vm1, %v967_v36  ;;  %v1389_v18 = vsel %vm936_vm4, %v1387_v6, %v1388_v61  ;;  %v3038_v36 = vshll.u32 %v5912_v30, 16  ;;  %v1394_v6 = vrot.slane %v5392_v13, 1  ;;  %v5397_v13 = vld [vmem:[%s5459_s27 + $0x48] sm:$0xff]   ;;  %v3394_v35 = vld [vmem:[%s5459_s27 + $0x10] sm:$0x8] }
  0xde   : > { %v3032_v25 = vor.u32 %v3031_v29, %v3028_v9  ;;  %v3064_v29 = vrot.slane %v3062_v1, 2  ;;  %v3098_v1 = vshrl.u32 %v5980_v17, 16 }
  0xdf   : > { %4935 = vmatmul.mubr.msk.bf16.gmra.mrb[4].mxu0 %vm471_vm1, %v2988_v31  ;;  %v3037_v31 = vrot.slane %v3035_v23, 2  ;;  %v3040_v43 = vrot.slane %v3038_v36, 3  ;;  %v3071_v23 = vshrl.u32 %v5958_v14, 16  ;;  %v3074_v36 = vshll.u32 %v5958_v14, 16 }
  0xe0   : > { %4938 = vmatprep.mubr.msk.bf16.mxu0 %vm471_vm1, %v2997_v53  ;;  %v3033_v53 = vsel %vm2944_vm5, %v3023_v2, %v3032_v25  ;;  %v3059_v2 = vor.u32 %v3058_v22, %v3055_v24  ;;  %v3091_v24 = vrot.slane %v3089_v57, 2  ;;  %v3094_v22 = vrot.slane %v3092_v47, 3 }
  0xe1   : > { %v3041_v21 = vor.u32 %v3040_v43, %v3037_v31  ;;  %v3073_v31 = vrot.slane %v3071_v23, 2  ;;  %v3076_v43 = vrot.slane %v3074_v36, 3  ;;  %v1412_v57 = vrot.slane %v5765_v52, 1 }
  0xe3   : > { %v3051_v9 = vsel %vm2944_vm5, %v3041_v21, %v3050_v54 }
  0xe4   : > { %4759 = vmatmul.mubr.msk.bf16.gmra.mrb[28].mxu1 %vm471_vm1, %v969_v45  ;;  %v1391_v45 = vsel %vm936_vm4, %v1388_v61, %v1390_v3  ;;  %v1396_v61 = vrot.slane %v5393_v4, 1  ;;  %v5398_v4 = vld [vmem:[%s5459_s27 + $0x50] sm:$0xff]  }
  0xe5   : > { %4762 = vmatprep.mubr.msk.bf16.mxu1 %vm471_vm1, %v971_v48  ;;  %v1393_v48 = vsel %vm936_vm4, %v1390_v3, %v1392_v55  ;;  %v1398_v3 = vrot.slane %v5395_v38, 1  ;;  %v1406_v38 = vrot.slane %v5399_v42, 1  ;;  %v1820_v42 = vshrl.u32 %v5756_v26, 16 }
  0xe7   : > { %4939 = vmatmul.mubr.msk.bf16.gmra.mrb[8].mxu0 %vm471_vm1, %v3006_v19  ;;  %v3042_v19 = vsel %vm2944_vm5, %v3032_v25, %v3041_v21  ;;  %v3077_v21 = vor.u32 %v3076_v43, %v3073_v31  ;;  %v1408_v43 = vrot.slane %v5740_v44, 1 }
  0xe8   : > { %4942 = vmatprep.mubr.msk.bf16.mxu0 %vm471_vm1, %v3015_v20  ;;  %v5394_v20 = vld [vmem:[%s6461_s1 + $0x48] sm:$0xff]  }
  0xec   : > { %4763 = vmatmul.mubr.msk.bf16.gmra.mrb[32].mxu1 %vm471_vm1, %v973_v33  ;;  %v3067_v33 = vrot.slane %v3065_v60, 3  ;;  %v3101_v60 = vshll.u32 %v5980_v17, 16 }
  0xed   : > { %4770 = vmatprep.mubr.msk.bf16.mxu1 %vm471_vm1, %v1389_v18  ;;  %v1397_v18 = vsel %vm936_vm4, %v1394_v6, %v1396_v61 }
  0xee   : > { %v3068_v25 = vor.u32 %v3067_v33, %v3064_v29  ;;  %v3100_v29 = vrot.slane %v3098_v1, 2  ;;  %v3103_v33 = vrot.slane %v3101_v60, 3  ;;  %v3408_v60 = vrot.slane %v5838_v37, 3 }
  0xef   : > { %4943 = vmatmul.mubr.msk.bf16.gmra.mrb[12].mxu0 %vm471_vm1, %v3024_v50  ;;  %v3060_v50 = vsel %vm2944_vm5, %v3050_v54, %v3059_v2  ;;  %v3086_v54 = vor.u32 %v3085_v0, %v3082_v59  ;;  %v1409_v0 = vsel %vm936_vm4, %v1406_v38, %v1408_v43  ;;  %v3410_v37 = vrot.slane %v5850_v41, 3 }
  0xf0   : > { %4946 = vmatprep.mubr.msk.bf16.mxu0 %vm471_vm1, %v3033_v53  ;;  %v3069_v53 = vsel %vm2944_vm5, %v3059_v2, %v3068_v25  ;;  %v3095_v2 = vor.u32 %v3094_v22, %v3091_v24 }
  0xf4   : > { %4771 = vmatmul.mubr.msk.bf16.vlgmr.msra.gmra.mrb[0].mxu1 %vm471_vm1, %v1391_v45  ;;  %v1399_v45 = vsel %vm936_vm4, %v1396_v61, %v1398_v3  ;;  %v1404_v61 = vrot.slane %v5398_v4, 1  ;;  %v3412_v4 = vrot.slane %v5854_v49, 3 }
  0xf5   : > { %4774 = vmatprep.mubr.msk.bf16.mxu1 %vm471_vm1, %v1393_v48  ;;  %5008 = vmatpush3.bf16.msra.mxu1 %v5949_v51  ;;  %v1395_v51 = vsel %vm936_vm4, %v1392_v55, %v1394_v6  ;;  %v1400_v55 = vrot.slane %v5396_v8, 1  ;;  %v1402_v6 = vrot.slane %v5397_v13, 1  ;;  %v1414_v13 = vrot.slane %v5778_v32, 1 }
  0xf6   : > { %5007 = vmatprep.subr.bf16.mxu1 %v5394_v20  ;;  %v3413_v41 = vsel %vm3402_vm6, %v3410_v37, %v3412_v4 }
  0xf7   : > { %4947 = vmatmul.mubr.msk.bf16.gmra.mrb[16].mxu0 %vm471_vm1, %v3042_v19  ;;  %v1401_v48 = vsel %vm936_vm4, %v1398_v3, %v1400_v55  ;;  %v3078_v19 = vsel %vm2944_vm5, %v3068_v25, %v3077_v21  ;;  %v3104_v25 = vor.u32 %v3103_v33, %v3100_v29  ;;  %v3096_v3 = vsel %vm2944_vm5, %v3086_v54, %v3095_v2 }
  0xf8   : > { %4950 = vmatprep.mubr.msk.bf16.mxu0 %vm471_vm1, %v3051_v9  ;;  %v3087_v9 = vsel %vm2944_vm5, %v3077_v21, %v3086_v54  ;;  %v3404_v21 = vrot.slane %v5821_v27, 3  ;;  %v3406_v27 = vrot.slane %v5834_v34, 3  ;;  %v1415_v34 = vsel %vm936_vm4, %v1412_v57, %v1414_v13 }
  0xf9   : > { %5009 = vmatpush3.bf16.msra.mxu1 %v5394_v20  ;;  %v6121_v20 = vld [vmem:[%s5459_s27 + $0xa0] ss:$0 sps:$4 sm:$0x77]   ;;  %v3105_v8 = vsel %vm2944_vm5, %v3095_v2, %v3104_v25  ;;  %v1420_v29 = vrot.slane %v5798_v10, 1  ;;  %v1811_v33 = vshrl.u32 %v5740_v44, 16 }
  0xfa   : > { %v3107_v23 = vshrl.u32 %v6121_v20, 16  ;;  %v3110_v36 = vshll.u32 %v6121_v20, 16  ;;  %v3409_v24 = vsel %vm3402_vm6, %v3406_v27, %v3408_v60  ;;  %v5387_v2 = vld [vmem:[%s5459_s27 + $0x98] ss:$0 sps:$4 sm:$0x11]  }
  0xfc   : > { %4775 = vmatmul.mubr.msk.bf16.gmra.mrb[4].mxu1 %vm471_vm1, %v1395_v51  ;;  %v1403_v51 = vsel %vm936_vm4, %v1400_v55, %v1402_v6  ;;  %v3112_v31 = vrot.slane %v3110_v36, 3  ;;  %v4370_v55 = vcombine.low %v3394_v35, %v5808_v11  ;;  %v1813_v36 = vrot.slane %v1811_v33, 1 }
  0xfd   : > { %4778 = vmatprep.mubr.msk.bf16.mxu1 %vm471_vm1, %v1397_v18  ;;  %v1405_v18 = vsel %vm936_vm4, %v1402_v6, %v1404_v61  ;;  %v3407_v6 = vsel %vm3402_vm6, %v3404_v21, %v3406_v27  ;;  %v3416_v35 = vrot.slane %v5879_v58, 3 }
  0xff   : > { %4951 = vmatmul.mubr.msk.bf16.gmra.mrb[20].mxu0 %vm471_vm1, %v3060_v50  ;;  %v3109_v50 = vrot.slane %v3107_v23, 2 }
 0x100   : > { %4954 = vmatprep.mubr.msk.bf16.mxu0 %vm471_vm1, %v3069_v53  ;;  %v1407_v53 = vsel %vm936_vm4, %v1404_v61, %v1406_v38  ;;  %v1418_v61 = vrot.slane %v5794_v5, 1  ;;  %v1823_v38 = vshll.u32 %v5756_v26, 16 }
 0x101   : > { %v3113_v59 = vor.u32 %v3112_v31, %v3109_v50  ;;  %v1832_v31 = vshll.u32 %v5765_v52, 16 }
 0x102   : > { %v1421_v23 = vsel %vm936_vm4, %v1418_v61, %v1420_v29 }
 0x103   : > { %v3114_v11 = vsel %vm2944_vm5, %v3104_v25, %v3113_v59 }
 0x104   : > { %4779 = vmatmul.mubr.msk.bf16.gmra.mrb[8].mxu1 %vm471_vm1, %v1399_v45  ;;  %v3403_v45 = vrot.slane %v4370_v55, 3  ;;  %v1825_v55 = vrot.slane %v1823_v38, 2 }
 0x105   : > { %4782 = vmatprep.mubr.msk.bf16.mxu1 %vm471_vm1, %v1401_v48  ;;  %v1410_v48 = vrot.slane %v5756_v26, 1 }
 0x106   : > { %v3405_v47 = vsel %vm3402_vm6, %v3403_v45, %v3404_v21  ;;  %v3420_v45 = vrot.slane %v5899_v7, 3  ;;  %v1838_v21 = vshrl.u32 %v5778_v32, 16 }
 0x107   : > { %4955 = vmatmul.mubr.msk.bf16.gmra.mrb[24].mxu0 %vm471_vm1, %v3078_v19  ;;  %v1411_v54 = vsel %vm936_vm4, %v1408_v43, %v1410_v48  ;;  %v1413_v1 = vsel %vm936_vm4, %v1410_v48, %v1412_v57  ;;  %v1416_v19 = vrot.slane %v5782_v62, 1  ;;  %v1841_v48 = vshll.u32 %v5778_v32, 16 }
 0x108   : > { %4958 = vmatprep.mubr.msk.bf16.mxu0 %vm471_vm1, %v3087_v9  ;;  %v3411_v9 = vsel %vm3402_vm6, %v3408_v60, %v3410_v37 }
 0x109   : > { %v1417_v22 = vsel %vm936_vm4, %v1414_v13, %v1416_v19  ;;  %v1419_v49 = vsel %vm936_vm4, %v1416_v19, %v1418_v61  ;;  %v1843_v27 = vrot.slane %v1841_v48, 2  ;;  %v1856_v19 = vshrl.u32 %v5794_v5, 16 }
 0x10b   : > { %v1858_v61 = vrot.slane %v1856_v19, 1 }
 0x10c   : > { %4783 = vmatmul.mubr.msk.bf16.gmra.mrb[12].mxu1 %vm471_vm1, %v1403_v51  ;;  %v1814_v51 = vshll.u32 %v5740_v44, 16  ;;  %v1422_v44 = vrot.slane %v5387_v2, 1  ;;  %v1877_v2 = vshll.u32 %v5814_v56, 16 }
 0x10d   : > { %4786 = vmatprep.mubr.msk.bf16.mxu1 %vm471_vm1, %v1405_v18  ;;  %v3414_v18 = vrot.slane %v5875_v16, 3  ;;  %v1829_v16 = vshrl.u32 %v5765_v52, 16 }
 0x10e   : > { %v1816_v25 = vrot.slane %v1814_v51, 2  ;;  %v1423_v58 = vsel %vm936_vm4, %v1420_v29, %v1422_v44  ;;  %v3426_v29 = vrot.slane %v5934_v46, 3 }
 0x10f   : > { %4959 = vmatmul.mubr.msk.bf16.gmra.mrb[28].mxu0 %vm471_vm1, %v3096_v3  ;;  %v3415_v3 = vsel %vm3402_vm6, %v3412_v4, %v3414_v18  ;;  %v3417_v43 = vsel %vm3402_vm6, %v3414_v18, %v3416_v35  ;;  %v1831_v59 = vrot.slane %v1829_v16, 1  ;;  %v3436_v16 = vrot.slane %v5980_v17, 3 }
 0x110   : > { %4962 = vmatprep.mubr.msk.bf16.mxu0 %vm471_vm1, %v3105_v8  ;;  %v1817_v50 = vor.u32 %v1816_v25, %v1813_v36  ;;  %v1822_v8 = vrot.slane %v1820_v42, 1  ;;  %v3432_v42 = vrot.slane %v5963_v28, 3 }
 0x112   : > { %v1818_v26 = vsel %vm1711_vm2, %v5647_v12, %v1817_v50  ;;  %v1826_v52 = vor.u32 %v1825_v55, %v1822_v8  ;;  %v1850_v12 = vshll.u32 %v5782_v62, 16 }
 0x114   : > { %4787 = vmatmul.mubr.msk.bf16.gmra.mrb[16].mxu1 %vm471_vm1, %v1407_v53  ;;  %v3418_v53 = vrot.slane %v5894_v39, 3  ;;  %v1847_v39 = vshrl.u32 %v5782_v62, 16  ;;  %v1827_v7 = vsel %vm1711_vm2, %v1817_v50, %v1826_v52  ;;  %v1852_v13 = vrot.slane %v1850_v12, 2 }
 0x115   : > { %4790 = vmatprep.mubr.msk.bf16.mxu1 %vm471_vm1, %v1409_v0  ;;  %v1834_v0 = vrot.slane %v1832_v31, 2 }
 0x116   : > { %v1849_v60 = vrot.slane %v1847_v39, 1 }
 0x117   : > { %4963 = vmatmul.mubr.msk.bf16.gmra.mrb[32].mxu0 %vm471_vm1, %v3114_v11  ;;  %v3419_v11 = vsel %vm3402_vm6, %v3416_v35, %v3418_v53  ;;  %v1835_v57 = vor.u32 %v1834_v0, %v1831_v59  ;;  %v3430_v35 = vrot.slane %v5958_v14, 3  ;;  %v3434_v14 = vrot.slane %v5976_v40, 3 }
 0x118   : > { %4970 = vmatprep.mubr.msk.bf16.mxu0 %vm471_vm1, %v3405_v47  ;;  %v3421_v47 = vsel %vm3402_vm6, %v3418_v53, %v3420_v45  ;;  %v1853_v37 = vor.u32 %v1852_v13, %v1849_v60 }
 0x119   : > { %v1836_v32 = vsel %vm1711_vm2, %v1826_v52, %v1835_v57  ;;  %v3435_v28 = vsel %vm3402_vm6, %v3432_v42, %v3434_v14  ;;  %v3437_v31 = vsel %vm3402_vm6, %v3434_v14, %v3436_v16 }
 0x11c   : > { %4791 = vmatmul.mubr.msk.bf16.gmra.mrb[20].mxu1 %vm471_vm1, %v1411_v54  ;;  %v1840_v54 = vrot.slane %v1838_v21, 1 }
 0x11d   : > { %4794 = vmatprep.mubr.msk.bf16.mxu1 %vm471_vm1, %v1413_v1  ;;  %v3422_v1 = vrot.slane %v5912_v30, 3  ;;  %v1865_v30 = vshrl.u32 %v5798_v10, 16 }
 0x11e   : > { %v1844_v62 = vor.u32 %v1843_v27, %v1840_v54 }
 0x11f   : > { %4971 = vmatmul.mubr.msk.bf16.vlgmr.msra.gmra.mrb[0].mxu0 %vm471_vm1, %v3407_v6  ;;  %v3424_v6 = vrot.slane %v5917_v15, 3  ;;  %v1867_v33 = vrot.slane %v1865_v30, 1 }
 0x120   : > { %4974 = vmatprep.mubr.msk.bf16.mxu0 %vm471_vm1, %v3409_v24  ;;  %v1859_v24 = vshll.u32 %v5794_v5, 16  ;;  %v1845_v15 = vsel %vm1711_vm2, %v1835_v57, %v1844_v62  ;;  %v1854_v5 = vsel %vm1711_vm2, %v1844_v62, %v1853_v37 }
 0x121   : > { %v3425_v4 = vsel %vm3402_vm6, %v3422_v1, %v3424_v6  ;;  %v3427_v18 = vsel %vm3402_vm6, %v3424_v6, %v3426_v29 }
 0x124   : > { %4795 = vmatmul.mubr.msk.bf16.gmra.mrb[24].mxu1 %vm471_vm1, %v1415_v34  ;;  %v3423_v34 = vsel %vm3402_vm6, %v3420_v45, %v3422_v1  ;;  %v6281_v1 = vld [vmem:[%s6462_s2] ss:$0 sm:$0xff] }
 0x125   : > { %4798 = vmatprep.mubr.msk.bf16.mxu1 %vm471_vm1, %v1417_v22  ;;  %v1868_v22 = vshll.u32 %v5798_v10, 16 }
 0x127   : > { %4975 = vmatmul.mubr.msk.bf16.gmra.mrb[4].mxu0 %vm471_vm1, %v3411_v9  ;;  %v1861_v9 = vrot.slane %v1859_v24, 2  ;;  %v1870_v51 = vrot.slane %v1868_v22, 2 }
 0x128   : > { %4978 = vmatprep.mubr.msk.bf16.mxu0 %vm471_vm1, %v3413_v41  ;;  %v3428_v41 = vrot.slane %v5939_v63, 3  ;;  %v1879_v63 = vrot.slane %v1877_v2, 2 }
 0x129   : > { %v1862_v10 = vor.u32 %v1861_v9, %v1858_v61 }
 0x12a   : > { %v3429_v46 = vsel %vm3402_vm6, %v3426_v29, %v3428_v41  ;;  %v3431_v38 = vsel %vm3402_vm6, %v3428_v41, %v3430_v35 }
 0x12b   : > { %v1863_v36 = vsel %vm1711_vm2, %v1853_v37, %v1862_v10 }
 0x12c   : > { %4799 = vmatmul.mubr.msk.bf16.gmra.mrb[28].mxu1 %vm471_vm1, %v1419_v49  ;;  %v1874_v49 = vshrl.u32 %v5814_v56, 16 }
 0x12d   : > { %4802 = vmatprep.mubr.msk.bf16.mxu1 %vm471_vm1, %v1421_v23  ;;  %v1871_v23 = vor.u32 %v1870_v51, %v1867_v33 }
 0x12e   : > { %v1876_v25 = vrot.slane %v1874_v49, 1 }
 0x12f   : > { %4979 = vmatmul.mubr.msk.bf16.gmra.mrb[8].mxu0 %vm471_vm1, %v3415_v3  ;;  %v1872_v44 = vsel %vm1711_vm2, %v1862_v10, %v1871_v23  ;;  %v3433_v3 = vsel %vm3402_vm6, %v3430_v35, %v3432_v42 }
 0x130   : > { %4982 = vmatprep.mubr.msk.bf16.mxu0 %vm471_vm1, %v3417_v43  ;;  %v1880_v56 = vor.u32 %v1879_v63, %v1876_v25  ;;  %v3438_v43 = vrot.slane %v6121_v20, 3 }
 0x132   : > { %v1881_v50 = vsel %vm1711_vm2, %v1871_v23, %v1880_v56 }
 0x134   : > { %4803 = vmatmul.mubr.msk.bf16.gmra.mrb[32].mxu1 %vm471_vm1, %v1423_v58  ;;  %v3439_v58 = vsel %vm3402_vm6, %v3436_v16, %v3438_v43 }
 0x135   : > { %4830 = vmatprep.mubr.msk.bf16.mxu1 %vm471_vm1, %v1818_v26 }
 0x137   : > { %4983 = vmatmul.mubr.msk.bf16.gmra.mrb[12].mxu0 %vm471_vm1, %v3419_v11 }
 0x138   : > { %4986 = vmatprep.mubr.msk.bf16.mxu0 %vm471_vm1, %v3421_v47 }
 0x13c   : > { %4831 = vmatmul.mubr.msk.bf16.vlgmr.msra.gmra.mrb[20].mxu1 %vm471_vm1, %v1827_v7 }
 0x13d   : > { %4834 = vmatprep.mubr.msk.bf16.mxu1 %vm471_vm1, %v1836_v32 }
 0x13f   : > { %4987 = vmatmul.mubr.msk.bf16.gmra.mrb[16].mxu0 %vm471_vm1, %v3423_v34 }
 0x140   : > { %4990 = vmatprep.mubr.msk.bf16.mxu0 %vm471_vm1, %v3425_v4 }
 0x144   : > { %4835 = vmatmul.mubr.msk.bf16.gmra.mrb[24].mxu1 %vm471_vm1, %v1845_v15 }
 0x145   : > { %4838 = vmatprep.mubr.msk.bf16.mxu1 %vm471_vm1, %v1854_v5 }
 0x147   : > { %4991 = vmatmul.mubr.msk.bf16.gmra.mrb[20].mxu0 %vm471_vm1, %v3427_v18 }
 0x148   : > { %4994 = vmatprep.mubr.msk.bf16.mxu0 %vm471_vm1, %v3429_v46 }
 0x14c   : > { %4839 = vmatmul.mubr.msk.bf16.gmra.mrb[28].mxu1 %vm471_vm1, %v1863_v36 }
 0x14d   : > { %4842 = vmatprep.mubr.msk.bf16.mxu1 %vm471_vm1, %v1872_v44 }
 0x14f   : > { %4995 = vmatmul.mubr.msk.bf16.gmra.mrb[24].mxu0 %vm471_vm1, %v3431_v38 }
 0x150   : > { %4998 = vmatprep.mubr.msk.bf16.mxu0 %vm471_vm1, %v3433_v3 }
 0x154   : > { %4843 = vmatmul.mubr.msk.bf16.gmra.mrb[32].mxu1 %vm471_vm1, %v1881_v50 }
 0x157   : > { %4999 = vmatmul.mubr.msk.bf16.gmra.mrb[28].mxu0 %vm471_vm1, %v3435_v28 }
 0x158   : > { %5002 = vmatprep.mubr.msk.bf16.mxu0 %vm471_vm1, %v3437_v31 }
 0x15f   : > { %5003 = vmatmul.mubr.msk.bf16.gmra.mrb[32].mxu0 %vm471_vm1, %v3439_v58 }
 0x1c7   : > { %v4772_v8 = vpop.f32.mrb[0].mxu1 }
 0x1c8   : > { %v1524_v40 = vpop.f32.mrb[1].mxu1 }
 0x1c9   : > { %v4773_v55 = vpop.f32.mrb[2].mxu1 }
 0x1ca   : > { %v1527_v17 = vpop.f32.mrb[3].mxu1 }
 0x1cf   : > { %v4776_v53 = vpop.f32.mrb[4].mxu1 }
 0x1d0   : > { %v1540_v26 = vpop.f32.mrb[5].mxu1 }
 0x1d1   : > { %v4777_v59 = vpop.f32.mrb[6].mxu1 }
 0x1d2   : > { %v1543_v0 = vpop.f32.mrb[7].mxu1 }
 0x1d7   : > { %v6254_v45 = vpop.f32.mrb[8].mxu1 }
 0x1d8   : > { %v6256_v52 = vpop.f32.mrb[9].mxu1 }
 0x1d9   : > { %v6258_v21 = vpop.f32.mrb[10].mxu1 }
 0x1da   : > { %v6260_v48 = vpop.f32.mrb[11].mxu1 }
 0x1df   : > { %v6262_v20 = vpop.f32.mrb[12].mxu1 }
 0x1e0   : > { %v6264_v11 = vpop.f32.mrb[13].mxu1 }
 0x1e1   : > { %v6266_v57 = vpop.f32.mrb[14].mxu1 }
 0x1e2   : > { %v6268_v39 = vpop.f32.mrb[15].mxu1 }
 0x1e7   : > { %v6270_v12 = vpop.f32.mrb[16].mxu1 }
 0x1e8   : > { %v6272_v47 = vpop.f32.mrb[17].mxu1 }
 0x1e9   : > { %v6274_v7 = vpop.f32.mrb[18].mxu1 }
 0x1ea   : > { %v6276_v54 = vpop.f32.mrb[19].mxu1 }
 0x1f2   : > { %v4972_v27 = vpop.f32.mrb[0].mxu0 }
 0x1f3   : > { %v5010_v32 = vadd.f32 %v4972_v27, %v4772_v8  ;;  %v3540_v60 = vpop.f32.mrb[1].mxu0 }
 0x1f4   : > { %v5011_v13 = vadd.f32 %v3540_v60, %v1524_v40  ;;  %v4973_v6 = vpop.f32.mrb[2].mxu0 }
 0x1f5   : > { %v3728_v62 = vadd.f32 %v5010_v32, %v6281_v1  ;;  %v5012_v19 = vadd.f32 %v4973_v6, %v4773_v55  ;;  %v3543_v24 = vpop.f32.mrb[3].mxu0 }
 0x1f6   : > { %v3726_v34 = vadd.f32 %v5011_v13, %v6281_v1  ;;  %v5013_v37 = vadd.f32 %v3543_v24, %v1527_v17 }
 0x1f7   : > { %vm3764_vm7 = vcmp.ge.f32.partialorder %v3728_v62, 0.0  ;;  %v3800_v30 = vmul.f32 0.2, %v3728_v62  ;;  %v3729_v22 = vadd.f32 %v5012_v19, %v6281_v1 }
 0x1f8   : > { %vm3762_vm8 = vcmp.ge.f32.partialorder %v3726_v34, 0.0  ;;  %v3798_v4 = vmul.f32 0.2, %v3726_v34  ;;  %v3727_v15 = vadd.f32 %v5013_v37, %v6281_v1 }
 0x1f9   : > { %v3836_v61 = vsel %vm3764_vm7, %v3728_v62, %v3800_v30  ;;  %vm3765_vm9 = vcmp.ge.f32.partialorder %v3729_v22, 0.0  ;;  %v3801_v9 = vmul.f32 0.2, %v3729_v22 }
 0x1fa   : > { %v3872_v29 = vmul.f32 1.4142135, %v3836_v61  ;;  %v3834_v5 = vsel %vm3762_vm8, %v3726_v34, %v3798_v4  ;;  %vm3763_vm10 = vcmp.ge.f32.partialorder %v3727_v15, 0.0  ;;  %v3799_v33 = vmul.f32 0.2, %v3727_v15  ;;  %v4976_v51 = vpop.f32.mrb[4].mxu0 }
 0x1fb   : > { %v3870_v41 = vmul.f32 1.4142135, %v3834_v5  ;;  %v3837_v10 = vsel %vm3765_vm9, %v3729_v22, %v3801_v9  ;;  %v5014_v49 = vadd.f32 %v4976_v51, %v4776_v53  ;;  %v3556_v2 = vpop.f32.mrb[5].mxu0 }
 0x1fc   : > { %v4432_v18 = vpack.c.bf16 %v3872_v29, %v3872_v29  ;;  %v3873_v23 = vmul.f32 1.4142135, %v3837_v10  ;;  %v3835_v46 = vsel %vm3763_vm10, %v3727_v15, %v3799_v33  ;;  %v5015_v36 = vadd.f32 %v3556_v2, %v1540_v26  ;;  %v4977_v25 = vpop.f32.mrb[6].mxu0 }
 0x1fd   : > { %v4430_v63 = vpack.c.bf16 %v3870_v41, %v3870_v41  ;;  %v3871_v35 = vmul.f32 1.4142135, %v3835_v46  ;;  %v3732_v44 = vadd.f32 %v5014_v49, %v6281_v1  ;;  %v5016_v42 = vadd.f32 %v4977_v25, %v4777_v59  ;;  %v3559_v56 = vpop.f32.mrb[7].mxu0 }
 0x1fe   : > { %4053 = vst.msk [vmem:[%s6291_s13 + $0x8] sm:$0xf] %vm4050_vm11, %v4432_v18  ;;  %v4433_v38 = vpack.c.bf16 %v3873_v23, %v3873_v23  ;;  %v3730_v3 = vadd.f32 %v5015_v36, %v6281_v1  ;;  %v5017_v50 = vadd.f32 %v3559_v56, %v1543_v0 }
 0x1ff   : > { %4051 = vst.msk [vmem:[%s6291_s13] sm:$0xf] %vm4050_vm11, %v4430_v63  ;;  %v4431_v14 = vpack.c.bf16 %v3871_v35, %v3871_v35  ;;  %vm3768_vm12 = vcmp.ge.f32.partialorder %v3732_v44, 0.0  ;;  %v3804_v16 = vmul.f32 0.2, %v3732_v44  ;;  %v3733_v28 = vadd.f32 %v5016_v42, %v6281_v1 }
 0x200   : > { %4054 = vst.msk [vmem:[%s6291_s13 + $0xc] sm:$0xf] %vm4050_vm11, %v4433_v38  ;;  %vm3766_vm13 = vcmp.ge.f32.partialorder %v3730_v3, 0.0  ;;  %v3802_v31 = vmul.f32 0.2, %v3730_v3  ;;  %v3731_v43 = vadd.f32 %v5017_v50, %v6281_v1 }
 0x201   : > { %4052 = vst.msk [vmem:[%s6291_s13 + $0x4] sm:$0xf] %vm4050_vm11, %v4431_v14  ;;  %v3840_v58 = vsel %vm3768_vm12, %v3732_v44, %v3804_v16  ;;  %vm3769_vm14 = vcmp.ge.f32.partialorder %v3733_v28, 0.0  ;;  %v3805_v8 = vmul.f32 0.2, %v3733_v28 }
 0x202   : > { %v3876_v40 = vmul.f32 1.4142135, %v3840_v58  ;;  %v3838_v55 = vsel %vm3766_vm13, %v3730_v3, %v3802_v31  ;;  %vm3767_vm15 = vcmp.ge.f32.partialorder %v3731_v43, 0.0  ;;  %v3803_v17 = vmul.f32 0.2, %v3731_v43  ;;  %v4980_v53 = vpop.f32.mrb[8].mxu0 }
 0x203   : > { %v3874_v26 = vmul.f32 1.4142135, %v3838_v55  ;;  %v3841_v59 = vsel %vm3769_vm14, %v3733_v28, %v3805_v8  ;;  %v5018_v0 = vadd.f32 %v4980_v53, %v6254_v45  ;;  %v3572_v27 = vpop.f32.mrb[9].mxu0 }
 0x204   : > { %v4436_v32 = vpack.c.bf16 %v3876_v40, %v3876_v40  ;;  %v3877_v60 = vmul.f32 1.4142135, %v3841_v59  ;;  %v3839_v13 = vsel %vm3767_vm15, %v3731_v43, %v3803_v17  ;;  %v5019_v6 = vadd.f32 %v3572_v27, %v6256_v52  ;;  %v4981_v62 = vpop.f32.mrb[10].mxu0 }
 0x205   : > { %v4434_v19 = vpack.c.bf16 %v3874_v26, %v3874_v26  ;;  %v3875_v24 = vmul.f32 1.4142135, %v3839_v13  ;;  %v3736_v34 = vadd.f32 %v5018_v0, %v6281_v1  ;;  %v5020_v37 = vadd.f32 %v4981_v62, %v6258_v21  ;;  %v3575_v30 = vpop.f32.mrb[11].mxu0 }
 0x206   : > { %4057 = vst.msk [vmem:[%s6291_s13 + $0x18] sm:$0xf] %vm4050_vm11, %v4436_v32  ;;  %v4437_v45 = vpack.c.bf16 %v3877_v60, %v3877_v60  ;;  %v3734_v22 = vadd.f32 %v5019_v6, %v6281_v1  ;;  %v5021_v4 = vadd.f32 %v3575_v30, %v6260_v48 }
 0x207   : > { %4055 = vst.msk [vmem:[%s6291_s13 + $0x10] sm:$0xf] %vm4050_vm11, %v4434_v19  ;;  %v4435_v52 = vpack.c.bf16 %v3875_v24, %v3875_v24  ;;  %vm3772_vm0 = vcmp.ge.f32.partialorder %v3736_v34, 0.0  ;;  %v3808_v15 = vmul.f32 0.2, %v3736_v34  ;;  %v3737_v61 = vadd.f32 %v5020_v37, %v6281_v1 }
 0x208   : > { %4058 = vst.msk [vmem:[%s6291_s13 + $0x1c] sm:$0xf] %vm4050_vm11, %v4437_v45  ;;  %vm3770_vm1 = vcmp.ge.f32.partialorder %v3734_v22, 0.0  ;;  %v3806_v9 = vmul.f32 0.2, %v3734_v22  ;;  %v3735_v21 = vadd.f32 %v5021_v4, %v6281_v1 }
 0x209   : > { %4056 = vst.msk [vmem:[%s6291_s13 + $0x14] sm:$0xf] %vm4050_vm11, %v4435_v52  ;;  %v3844_v29 = vsel %vm3772_vm0, %v3736_v34, %v3808_v15  ;;  %vm3773_vm2 = vcmp.ge.f32.partialorder %v3737_v61, 0.0  ;;  %v3809_v5 = vmul.f32 0.2, %v3737_v61 }
 0x20a   : > { %v3880_v33 = vmul.f32 1.4142135, %v3844_v29  ;;  %v3842_v48 = vsel %vm3770_vm1, %v3734_v22, %v3806_v9  ;;  %vm3771_vm3 = vcmp.ge.f32.partialorder %v3735_v21, 0.0  ;;  %v3807_v51 = vmul.f32 0.2, %v3735_v21  ;;  %v4984_v41 = vpop.f32.mrb[12].mxu0 }
 0x20b   : > { %v3878_v10 = vmul.f32 1.4142135, %v3842_v48  ;;  %v3845_v49 = vsel %vm3773_vm2, %v3737_v61, %v3809_v5  ;;  %v5022_v2 = vadd.f32 %v4984_v41, %v6262_v20  ;;  %v3588_v18 = vpop.f32.mrb[13].mxu0 }
 0x20c   : > { %v4440_v23 = vpack.c.bf16 %v3880_v33, %v3880_v33  ;;  %v3881_v46 = vmul.f32 1.4142135, %v3845_v49  ;;  %v3843_v36 = vsel %vm3771_vm3, %v3735_v21, %v3807_v51  ;;  %v5023_v25 = vadd.f32 %v3588_v18, %v6264_v11  ;;  %v4985_v63 = vpop.f32.mrb[14].mxu0 }
 0x20d   : > { %v4438_v35 = vpack.c.bf16 %v3878_v10, %v3878_v10  ;;  %v3879_v44 = vmul.f32 1.4142135, %v3843_v36  ;;  %v3740_v42 = vadd.f32 %v5022_v2, %v6281_v1  ;;  %v5024_v56 = vadd.f32 %v4985_v63, %v6266_v57  ;;  %v3591_v38 = vpop.f32.mrb[15].mxu0 }
 0x20e   : > { %4061 = vst.msk [vmem:[%s6291_s13 + $0x28] sm:$0xf] %vm4050_vm11, %v4440_v23  ;;  %v4441_v20 = vpack.c.bf16 %v3881_v46, %v3881_v46  ;;  %v3738_v50 = vadd.f32 %v5023_v25, %v6281_v1  ;;  %v5025_v14 = vadd.f32 %v3591_v38, %v6268_v39 }
 0x20f   : > { %v6325_v3 = vpop.f32.mrb[20].mxu1  ;;  %4059 = vst.msk [vmem:[%s6291_s13 + $0x20] sm:$0xf] %vm4050_vm11, %v4438_v35  ;;  %v4439_v16 = vpack.c.bf16 %v3879_v44, %v3879_v44  ;;  %vm3776_vm4 = vcmp.ge.f32.partialorder %v3740_v42, 0.0  ;;  %v3812_v28 = vmul.f32 0.2, %v3740_v42  ;;  %v3741_v57 = vadd.f32 %v5024_v56, %v6281_v1 }
 0x210   : > { %v6331_v11 = vpop.f32.mrb[21].mxu1  ;;  %4062 = vst.msk [vmem:[%s6291_s13 + $0x2c] sm:$0xf] %vm4050_vm11, %v4441_v20  ;;  %vm3774_vm5 = vcmp.ge.f32.partialorder %v3738_v50, 0.0  ;;  %v3810_v43 = vmul.f32 0.2, %v3738_v50  ;;  %v3739_v58 = vadd.f32 %v5025_v14, %v6281_v1 }
 0x211   : > { %v6336_v31 = vpop.f32.mrb[22].mxu1  ;;  %4060 = vst.msk [vmem:[%s6291_s13 + $0x24] sm:$0xf] %vm4050_vm11, %v4439_v16  ;;  %v3848_v39 = vsel %vm3776_vm4, %v3740_v42, %v3812_v28  ;;  %vm3777_vm6 = vcmp.ge.f32.partialorder %v3741_v57, 0.0  ;;  %v3813_v40 = vmul.f32 0.2, %v3741_v57 }
 0x212   : > { %v6341_v8 = vpop.f32.mrb[23].mxu1  ;;  %v3884_v55 = vmul.f32 1.4142135, %v3848_v39  ;;  %v3846_v17 = vsel %vm3774_vm5, %v3738_v50, %v3810_v43  ;;  %vm3775_vm7 = vcmp.ge.f32.partialorder %v3739_v58, 0.0  ;;  %v3811_v53 = vmul.f32 0.2, %v3739_v58 }
 0x213   : > { %v4988_v26 = vpop.f32.mrb[16].mxu0  ;;  %v3882_v59 = vmul.f32 1.4142135, %v3846_v17  ;;  %v3849_v0 = vsel %vm3777_vm6, %v3741_v57, %v3813_v40 }
 0x214   : > { %v5026_v27 = vadd.f32 %v4988_v26, %v6270_v12  ;;  %v3604_v32 = vpop.f32.mrb[17].mxu0  ;;  %v4444_v60 = vpack.c.bf16 %v3884_v55, %v3884_v55  ;;  %v3885_v13 = vmul.f32 1.4142135, %v3849_v0  ;;  %v3847_v6 = vsel %vm3775_vm7, %v3739_v58, %v3811_v53 }
 0x215   : > { %v5027_v62 = vadd.f32 %v3604_v32, %v6272_v47  ;;  %v4989_v19 = vpop.f32.mrb[18].mxu0  ;;  %v4442_v24 = vpack.c.bf16 %v3882_v59, %v3882_v59  ;;  %v3883_v34 = vmul.f32 1.4142135, %v3847_v6 }
 0x216   : > { %v3744_v37 = vadd.f32 %v5026_v27, %v6281_v1  ;;  %v5028_v30 = vadd.f32 %v4989_v19, %v6274_v7  ;;  %v3607_v45 = vpop.f32.mrb[19].mxu0  ;;  %4065 = vst.msk [vmem:[%s6291_s13 + $0x38] sm:$0xf] %vm4050_vm11, %v4444_v60  ;;  %v4445_v12 = vpack.c.bf16 %v3885_v13, %v3885_v13 }
 0x217   : > { %v6349_v22 = vpop.f32.mrb[24].mxu1  ;;  %v3742_v4 = vadd.f32 %v5027_v62, %v6281_v1  ;;  %v5029_v52 = vadd.f32 %v3607_v45, %v6276_v54  ;;  %4063 = vst.msk [vmem:[%s6291_s13 + $0x30] sm:$0xf] %vm4050_vm11, %v4442_v24  ;;  %v4443_v15 = vpack.c.bf16 %v3883_v34, %v3883_v34 }
 0x218   : > { %v6355_v47 = vpop.f32.mrb[25].mxu1  ;;  %vm3780_vm8 = vcmp.ge.f32.partialorder %v3744_v37, 0.0  ;;  %v3816_v61 = vmul.f32 0.2, %v3744_v37  ;;  %v3745_v7 = vadd.f32 %v5028_v30, %v6281_v1  ;;  %4066 = vst.msk [vmem:[%s6291_s13 + $0x3c] sm:$0xf] %vm4050_vm11, %v4445_v12 }
 0x219   : > { %v6360_v9 = vpop.f32.mrb[26].mxu1  ;;  %vm3778_vm9 = vcmp.ge.f32.partialorder %v3742_v4, 0.0  ;;  %v3814_v21 = vmul.f32 0.2, %v3742_v4  ;;  %v3743_v29 = vadd.f32 %v5029_v52, %v6281_v1  ;;  %4064 = vst.msk [vmem:[%s6291_s13 + $0x34] sm:$0xf] %vm4050_vm11, %v4443_v15 }
 0x21a   : > { %v6365_v5 = vpop.f32.mrb[27].mxu1  ;;  %v3852_v54 = vsel %vm3780_vm8, %v3744_v37, %v3816_v61  ;;  %vm3781_vm10 = vcmp.ge.f32.partialorder %v3745_v7, 0.0  ;;  %v3817_v33 = vmul.f32 0.2, %v3745_v7  ;;  %v4992_v10 = vpop.f32.mrb[20].mxu0 }
 0x21b   : > { %v3888_v48 = vmul.f32 1.4142135, %v3852_v54  ;;  %v3850_v51 = vsel %vm3778_vm9, %v3742_v4, %v3814_v21  ;;  %vm3779_vm12 = vcmp.ge.f32.partialorder %v3743_v29, 0.0  ;;  %v3815_v41 = vmul.f32 0.2, %v3743_v29  ;;  %v3620_v23 = vpop.f32.mrb[21].mxu0 }
 0x21c   : > { %v3886_v49 = vmul.f32 1.4142135, %v3850_v51  ;;  %v3853_v2 = vsel %vm3781_vm10, %v3745_v7, %v3817_v33  ;;  %v5030_v18 = vadd.f32 %v4992_v10, %v6325_v3  ;;  %v5031_v63 = vadd.f32 %v3620_v23, %v6331_v11  ;;  %v4993_v35 = vpop.f32.mrb[22].mxu0 }
 0x21d   : > { %v4448_v46 = vpack.c.bf16 %v3888_v48, %v3888_v48  ;;  %v3889_v36 = vmul.f32 1.4142135, %v3853_v2  ;;  %v3851_v25 = vsel %vm3779_vm12, %v3743_v29, %v3815_v41  ;;  %v5032_v38 = vadd.f32 %v4993_v35, %v6336_v31  ;;  %v3623_v20 = vpop.f32.mrb[23].mxu0 }
 0x21e   : > { %v4446_v44 = vpack.c.bf16 %v3886_v49, %v3886_v49  ;;  %v3887_v42 = vmul.f32 1.4142135, %v3851_v25  ;;  %v3748_v56 = vadd.f32 %v5030_v18, %v6281_v1  ;;  %v3746_v14 = vadd.f32 %v5031_v63, %v6281_v1 }
 0x21f   : > { %v6373_v50 = vpop.f32.mrb[28].mxu1  ;;  %4069 = vst.msk [vmem:[%s6291_s13 + $0x48] sm:$0xf] %vm4050_vm11, %v4448_v46  ;;  %v4449_v3 = vpack.c.bf16 %v3889_v36, %v3889_v36  ;;  %v5033_v16 = vadd.f32 %v3623_v20, %v6341_v8  ;;  %v3749_v31 = vadd.f32 %v5032_v38, %v6281_v1 }
 0x220   : > { %v6379_v11 = vpop.f32.mrb[29].mxu1  ;;  %4067 = vst.msk [vmem:[%s6291_s13 + $0x40] sm:$0xf] %vm4050_vm11, %v4446_v44  ;;  %v4447_v28 = vpack.c.bf16 %v3887_v42, %v3887_v42  ;;  %vm3784_vm13 = vcmp.ge.f32.partialorder %v3748_v56, 0.0  ;;  %v3820_v57 = vmul.f32 0.2, %v3748_v56 }
 0x221   : > { %v6384_v43 = vpop.f32.mrb[30].mxu1  ;;  %4070 = vst.msk [vmem:[%s6291_s13 + $0x4c] sm:$0xf] %vm4050_vm11, %v4449_v3  ;;  %vm3782_vm14 = vcmp.ge.f32.partialorder %v3746_v14, 0.0  ;;  %v3818_v58 = vmul.f32 0.2, %v3746_v14  ;;  %v3747_v39 = vadd.f32 %v5033_v16, %v6281_v1 }
 0x222   : > { %v6389_v40 = vpop.f32.mrb[31].mxu1  ;;  %4068 = vst.msk [vmem:[%s6291_s13 + $0x44] sm:$0xf] %vm4050_vm11, %v4447_v28  ;;  %v3856_v8 = vsel %vm3784_vm13, %v3748_v56, %v3820_v57  ;;  %vm3785_vm15 = vcmp.ge.f32.partialorder %v3749_v31, 0.0  ;;  %v3821_v55 = vmul.f32 0.2, %v3749_v31 }
 0x223   : > { %v3892_v17 = vmul.f32 1.4142135, %v3856_v8  ;;  %v3854_v53 = vsel %vm3782_vm14, %v3746_v14, %v3818_v58  ;;  %vm3783_vm0 = vcmp.ge.f32.partialorder %v3747_v39, 0.0  ;;  %v3819_v26 = vmul.f32 0.2, %v3747_v39  ;;  %v4996_v59 = vpop.f32.mrb[24].mxu0 }
 0x224   : > { %v3890_v0 = vmul.f32 1.4142135, %v3854_v53  ;;  %v3857_v27 = vsel %vm3785_vm15, %v3749_v31, %v3821_v55  ;;  %v5034_v32 = vadd.f32 %v4996_v59, %v6349_v22  ;;  %v3636_v60 = vpop.f32.mrb[25].mxu0 }
 0x225   : > { %v4452_v13 = vpack.c.bf16 %v3892_v17, %v3892_v17  ;;  %v3893_v6 = vmul.f32 1.4142135, %v3857_v27  ;;  %v3855_v62 = vsel %vm3783_vm0, %v3747_v39, %v3819_v26  ;;  %v5035_v19 = vadd.f32 %v3636_v60, %v6355_v47  ;;  %v4997_v24 = vpop.f32.mrb[26].mxu0 }
 0x226   : > { %v4450_v34 = vpack.c.bf16 %v3890_v0, %v3890_v0  ;;  %v3891_v37 = vmul.f32 1.4142135, %v3855_v62  ;;  %v3752_v30 = vadd.f32 %v5034_v32, %v6281_v1  ;;  %v5036_v45 = vadd.f32 %v4997_v24, %v6360_v9  ;;  %v3639_v12 = vpop.f32.mrb[27].mxu0 }
 0x227   : > { %v6397_v4 = vpop.f32.mrb[32].mxu1  ;;  %4073 = vst.msk [vmem:[%s6291_s13 + $0x58] sm:$0xf] %vm4050_vm11, %v4452_v13  ;;  %v4453_v22 = vpack.c.bf16 %v3893_v6, %v3893_v6  ;;  %v3750_v52 = vadd.f32 %v5035_v19, %v6281_v1  ;;  %v5037_v15 = vadd.f32 %v3639_v12, %v6365_v5 }
 0x228   : > { %v6403_v47 = vpop.f32.mrb[33].mxu1  ;;  %4071 = vst.msk [vmem:[%s6291_s13 + $0x50] sm:$0xf] %vm4050_vm11, %v4450_v34  ;;  %v4451_v61 = vpack.c.bf16 %v3891_v37, %v3891_v37  ;;  %vm3788_vm1 = vcmp.ge.f32.partialorder %v3752_v30, 0.0  ;;  %v3824_v7 = vmul.f32 0.2, %v3752_v30  ;;  %v3753_v9 = vadd.f32 %v5036_v45, %v6281_v1 }
 0x229   : > { %v6408_v21 = vpop.f32.mrb[34].mxu1  ;;  %4074 = vst.msk [vmem:[%s6291_s13 + $0x5c] sm:$0xf] %vm4050_vm11, %v4453_v22  ;;  %vm3786_vm2 = vcmp.ge.f32.partialorder %v3750_v52, 0.0  ;;  %v3822_v29 = vmul.f32 0.2, %v3750_v52  ;;  %v3751_v54 = vadd.f32 %v5037_v15, %v6281_v1 }
 0x22a   : > { %v6413_v33 = vpop.f32.mrb[35].mxu1  ;;  %4072 = vst.msk [vmem:[%s6291_s13 + $0x54] sm:$0xf] %vm4050_vm11, %v4451_v61  ;;  %v3860_v5 = vsel %vm3788_vm1, %v3752_v30, %v3824_v7  ;;  %vm3789_vm3 = vcmp.ge.f32.partialorder %v3753_v9, 0.0  ;;  %v3825_v48 = vmul.f32 0.2, %v3753_v9 }
 0x22b   : > { %v3896_v51 = vmul.f32 1.4142135, %v3860_v5  ;;  %v3858_v41 = vsel %vm3786_vm2, %v3750_v52, %v3822_v29  ;;  %vm3787_vm4 = vcmp.ge.f32.partialorder %v3751_v54, 0.0  ;;  %v3823_v10 = vmul.f32 0.2, %v3751_v54  ;;  %v5000_v49 = vpop.f32.mrb[28].mxu0 }
 0x22c   : > { %v3894_v2 = vmul.f32 1.4142135, %v3858_v41  ;;  %v3861_v18 = vsel %vm3789_vm3, %v3753_v9, %v3825_v48  ;;  %v5038_v23 = vadd.f32 %v5000_v49, %v6373_v50  ;;  %v3652_v46 = vpop.f32.mrb[29].mxu0 }
 0x22d   : > { %v4456_v36 = vpack.c.bf16 %v3896_v51, %v3896_v51  ;;  %v3897_v25 = vmul.f32 1.4142135, %v3861_v18  ;;  %v3859_v63 = vsel %vm3787_vm4, %v3751_v54, %v3823_v10  ;;  %v5039_v35 = vadd.f32 %v3652_v46, %v6379_v11  ;;  %v5001_v44 = vpop.f32.mrb[30].mxu0 }
 0x22e   : > { %v4454_v42 = vpack.c.bf16 %v3894_v2, %v3894_v2  ;;  %v3895_v56 = vmul.f32 1.4142135, %v3859_v63  ;;  %v3756_v38 = vadd.f32 %v5038_v23, %v6281_v1  ;;  %v5040_v20 = vadd.f32 %v5001_v44, %v6384_v43  ;;  %v3655_v3 = vpop.f32.mrb[31].mxu0 }
 0x22f   : > { %4077 = vst.msk [vmem:[%s6291_s13 + $0x68] sm:$0xf] %vm4050_vm11, %v4456_v36  ;;  %v4457_v50 = vpack.c.bf16 %v3897_v25, %v3897_v25  ;;  %v3754_v14 = vadd.f32 %v5039_v35, %v6281_v1  ;;  %v5041_v16 = vadd.f32 %v3655_v3, %v6389_v40 }
 0x230   : > { %4075 = vst.msk [vmem:[%s6291_s13 + $0x60] sm:$0xf] %vm4050_vm11, %v4454_v42  ;;  %v4455_v11 = vpack.c.bf16 %v3895_v56, %v3895_v56  ;;  %vm3792_vm5 = vcmp.ge.f32.partialorder %v3756_v38, 0.0  ;;  %v3828_v28 = vmul.f32 0.2, %v3756_v38  ;;  %v3757_v57 = vadd.f32 %v5040_v20, %v6281_v1 }
 0x231   : > { %4078 = vst.msk [vmem:[%s6291_s13 + $0x6c] sm:$0xf] %vm4050_vm11, %v4457_v50  ;;  %vm3790_vm6 = vcmp.ge.f32.partialorder %v3754_v14, 0.0  ;;  %v3826_v31 = vmul.f32 0.2, %v3754_v14  ;;  %v3755_v43 = vadd.f32 %v5041_v16, %v6281_v1 }
 0x232   : > { %4076 = vst.msk [vmem:[%s6291_s13 + $0x64] sm:$0xf] %vm4050_vm11, %v4455_v11  ;;  %v3864_v58 = vsel %vm3792_vm5, %v3756_v38, %v3828_v28  ;;  %vm3793_vm7 = vcmp.ge.f32.partialorder %v3757_v57, 0.0  ;;  %v3829_v39 = vmul.f32 0.2, %v3757_v57  ;;  %v5004_v17 = vpop.f32.mrb[32].mxu0 }
 0x233   : > { %v3900_v8 = vmul.f32 1.4142135, %v3864_v58  ;;  %v3862_v40 = vsel %vm3790_vm6, %v3754_v14, %v3826_v31  ;;  %vm3791_vm8 = vcmp.ge.f32.partialorder %v3755_v43, 0.0  ;;  %v3827_v55 = vmul.f32 0.2, %v3755_v43  ;;  %v3668_v0 = vpop.f32.mrb[33].mxu0 }
 0x234   : > { %v3898_v53 = vmul.f32 1.4142135, %v3862_v40  ;;  %v3865_v26 = vsel %vm3793_vm7, %v3757_v57, %v3829_v39  ;;  %v5042_v59 = vadd.f32 %v5004_v17, %v6397_v4  ;;  %v5043_v13 = vadd.f32 %v3668_v0, %v6403_v47  ;;  %v5005_v6 = vpop.f32.mrb[34].mxu0 }
 0x235   : > { %v4460_v27 = vpack.c.bf16 %v3900_v8, %v3900_v8  ;;  %v3901_v32 = vmul.f32 1.4142135, %v3865_v26  ;;  %v3863_v60 = vsel %vm3791_vm8, %v3755_v43, %v3827_v55  ;;  %v5044_v34 = vadd.f32 %v5005_v6, %v6408_v21  ;;  %v3671_v37 = vpop.f32.mrb[35].mxu0 }
 0x236   : > { %v4458_v62 = vpack.c.bf16 %v3898_v53, %v3898_v53  ;;  %v3899_v19 = vmul.f32 1.4142135, %v3863_v60  ;;  %v3760_v24 = vadd.f32 %v5042_v59, %v6281_v1  ;;  %v3758_v45 = vadd.f32 %v5043_v13, %v6281_v1 }
 0x237   : > { %4081 = vst.msk [vmem:[%s6291_s13 + $0x78] sm:$0xf] %vm4050_vm11, %v4460_v27  ;;  %v4461_v30 = vpack.c.bf16 %v3901_v32, %v3901_v32  ;;  %v5045_v12 = vadd.f32 %v3671_v37, %v6413_v33  ;;  %v3761_v52 = vadd.f32 %v5044_v34, %v6281_v1 }
 0x238   : > { %4079 = vst.msk [vmem:[%s6291_s13 + $0x70] sm:$0xf] %vm4050_vm11, %v4458_v62  ;;  %v4459_v4 = vpack.c.bf16 %v3899_v19, %v3899_v19  ;;  %vm3796_vm9 = vcmp.ge.f32.partialorder %v3760_v24, 0.0  ;;  %v3832_v22 = vmul.f32 0.2, %v3760_v24  ;;  %vm3794_vm10 = vcmp.ge.f32.partialorder %v3758_v45, 0.0 }
 0x239   : > { %4082 = vst.msk [vmem:[%s6291_s13 + $0x7c] sm:$0xf] %vm4050_vm11, %v4461_v30  ;;  %v3830_v15 = vmul.f32 0.2, %v3758_v45  ;;  %v3759_v47 = vadd.f32 %v5045_v12, %v6281_v1  ;;  %vm3797_vm12 = vcmp.ge.f32.partialorder %v3761_v52, 0.0 }
 0x23a   : > { %4080 = vst.msk [vmem:[%s6291_s13 + $0x74] sm:$0xf] %vm4050_vm11, %v4459_v4  ;;  %v3868_v61 = vsel %vm3796_vm9, %v3760_v24, %v3832_v22  ;;  %v3833_v7 = vmul.f32 0.2, %v3761_v52 }
 0x23b   : > { %v3904_v9 = vmul.f32 1.4142135, %v3868_v61  ;;  %v3866_v21 = vsel %vm3794_vm10, %v3758_v45, %v3830_v15  ;;  %vm3795_vm13 = vcmp.ge.f32.partialorder %v3759_v47, 0.0  ;;  %v3831_v29 = vmul.f32 0.2, %v3759_v47 }
 0x23c   : > { %v3902_v54 = vmul.f32 1.4142135, %v3866_v21  ;;  %v3869_v33 = vsel %vm3797_vm12, %v3761_v52, %v3833_v7 }
 0x23d   : > { %v4464_v5 = vpack.c.bf16 %v3904_v9, %v3904_v9  ;;  %v3905_v48 = vmul.f32 1.4142135, %v3869_v33  ;;  %v3867_v51 = vsel %vm3795_vm13, %v3759_v47, %v3831_v29 }
 0x23e   : > { %v4462_v41 = vpack.c.bf16 %v3902_v54, %v3902_v54  ;;  %v3903_v1 = vmul.f32 1.4142135, %v3867_v51 }
 0x23f   : > { %4085 = vst.msk [vmem:[%s6291_s13 + $0x88] sm:$0xf] %vm4050_vm11, %v4464_v5  ;;  %v4465_v10 = vpack.c.bf16 %v3905_v48, %v3905_v48 }
 0x240   : > { %4083 = vst.msk [vmem:[%s6291_s13 + $0x80] sm:$0xf] %vm4050_vm11, %v4462_v41  ;;  %v4463_v49 = vpack.c.bf16 %v3903_v1, %v3903_v1 }
 0x241   : > { %4086 = vst.msk [vmem:[%s6291_s13 + $0x8c] sm:$0xf] %vm4050_vm11, %v4465_v10 }
 0x242   : > { %4084 = vst.msk [vmem:[%s6291_s13 + $0x84] sm:$0xf] %vm4050_vm11, %v4463_v49 }
 0x243 PF: > { %s13_s12 = sadd.s32 1, %s5406_s12  }
 0x244   : > { %p10_p4 = scmp.ge.s32.totalorder %s13_s12, 6  }
 0x246   :  { %12 = sbr.rel (!%p10_p4) target bundleno = 1 (0x1), region = 62 }

// kernel: forward.8
= control target key start
LH: loop header
LB: loop body
LE: loop exit
PB: predicated region body
PF: predicated region fallthrough
CT: control target
= control target key end

     0   :  { %s2405_s12 = smov 0   ;;  %s2951_s0 = inlined_call_operand.vmem [shape: bf16[4,110,64], index: 0, kind: input, shape index: {}]   ;;  %s2952_s1 = inlined_call_operand.vmem [shape: bf16[576,64], index: 1, kind: input, shape index: {}]   ;;  %s2953_s2 = inlined_call_operand.vmem [shape: f32[1,64], index: 2, kind: input, shape index: {}]   ;;  %s2954_s3 = inlined_call_operand.vmem [shape: bf16[4,80,64], index: 3, kind: output, shape index: {}]  }
   0x1 LB: > { %s1829_s13 = sadd.s32 4294967295, %s2381_s12   ;;  %p1833_p0 = scmp.ge.s32.totalorder %s2381_s12, 1  ;;  %s2381_s12 = sphi %s2405_s12, %s13_s12  }
   0x2   : > { %p137_p1 = scmp.lt.s32.totalorder %s2381_s12, 5 }
   0x4   : > { %p138_p2 = pnand %p1833_p0, %p137_p1 }
   0x5   : > { %v2316_v0 = vld [vmem:[%s2952_s1 + $0x20] sm:$0xff] (!%p138_p2)   ;;  %v2383_v1 = vmov (!%p138_p2), 0.0   ;;  %v2317_v2 = vld [vmem:[%s2952_s1 + $0x28] sm:$0xff] (!%p138_p2)   ;;  %p161_p3 = scmp.lt.s32.totalorder (!%p138_p2), %s1829_s13, 3  ;;  %vm2384_vm0 = vmmov (!%p138_p2), 0   ;;  %v2318_v3 = vld [vmem:[%s2952_s1 + $0x30] sm:$0xff] (!%p138_p2)  }
   0x6   : > { %141 = sbr.rel (%p138_p2) target bundleno = 429 (0x1ad), region = 32  ;;  %2296 = vmatprep.subr.bf16.mxu1 (!%p138_p2), %v2383_v1  ;;  %2044 = vmatprep.subr.bf16.mxu0 (!%p138_p2), %v2383_v1  ;;  %v2319_v4 = vld [vmem:[%s2952_s1 + $0x38] sm:$0xff] (!%p138_p2)   ;;  %vm227_vm1 = vsmask.f32 (!%p138_p2), 7424  ;;  %vm296_vm2 = vcmask (!%p138_p2), 523264   ;;  %v2322_v21 = vld [vmem:[%s2952_s1] sm:$0xff] (!%p138_p2)  }
   0x7   : > { %2300 = vmatpush3.bf16.msra.mxu1 (!%p138_p2), %v2316_v0  ;;  %2045 = vmatpush3.bf16.msra.mxu0 (!%p138_p2), %v2316_v0  ;;  %v2327_v28 = vld [vmem:[%s2952_s1 + $0x40] sm:$0xff] (!%p138_p2)   ;;  %v2323_v31 = vld [vmem:[%s2952_s1 + $0x8] sm:$0xff] (!%p138_p2)   ;;  %v2328_v35 = vld [vmem:[%s2952_s1 + $0x10] sm:$0xff] (!%p138_p2)   ;;  %vm504_vm3 = vcmask (!%p138_p2), 1046528   ;;  %vm830_vm4 = vsmask.f32 (!%p138_p2), 6400 }
   0x8   : > { %2297 = vmatprep.subr.bf16.mxu1 (!%p138_p2), %v2383_v1  ;;  %2046 = vmatprep.subr.bf16.mxu0 (!%p138_p2), %v2383_v1  ;;  %v2329_v36 = vld [vmem:[%s2952_s1 + $0x48] sm:$0xff] (!%p138_p2)   ;;  %v2331_v43 = vld [vmem:[%s2952_s1 + $0x50] sm:$0xff] (!%p138_p2)   ;;  %v2332_v47 = vld [vmem:[%s2952_s1 + $0x18] sm:$0xff] (!%p138_p2)   ;;  %vm1018_vm5 = vcmask (!%p138_p2), 1045504   ;;  %vm1532_vm6 = vcmask (!%p138_p2), 1044480   ;;  %vm1763_vm10 = vcmask (!%p138_p2), 519168  }
   0x9   : > { %2060 = vmatprep.mubr.msk.bf16.mxu1 (!%p138_p2), %vm2384_vm0, %v2383_v1  ;;  %2052 = vmatprep.mubr.msk.bf16.mxu0 (!%p138_p2), %vm2384_vm0, %v2383_v1  ;;  %v2333_v48 = vld [vmem:[%s2952_s1 + $0x58] sm:$0xff] (!%p138_p2)   ;;  %v2336_v53 = vld [vmem:[%s2952_s1 + $0x80] sm:$0xff] (!%p138_p2)   ;;  %v2338_v55 = vld [vmem:[%s2952_s1 + $0x88] sm:$0xff] (!%p138_p2)   ;;  %vm1344_vm7 = vsmask.f32 (!%p138_p2), 5376 }
   0xa   : > { %v2335_v56 = vld [vmem:[%s2952_s1 + $0x60] sm:$0xff] (!%p138_p2)   ;;  %v2340_v60 = vld [vmem:[%s2952_s1 + $0x90] sm:$0xff] (!%p138_p2)   ;;  %v2337_v0 = vld [vmem:[%s2952_s1 + $0x68] sm:$0xff] (!%p138_p2)  }
   0xb   : > { %2301 = vmatpush3.bf16.msra.mxu1 (!%p138_p2), %v2317_v2  ;;  %2047 = vmatpush3.bf16.msra.mxu0 (!%p138_p2), %v2317_v2 }
   0xc   : > { %2298 = vmatprep.subr.bf16.mxu1 (!%p138_p2), %v2383_v1  ;;  %2048 = vmatprep.subr.bf16.mxu0 (!%p138_p2), %v2383_v1 }
   0xd   : > { %s2956_s13 = smov (!%p161_p3, %s1829_s13), 3 }
   0xe   : > { %s2304_s20 = smul.u32 56, %s2956_s13 }
   0xf   : > { %2302 = vmatpush3.bf16.msra.mxu1 %v2318_v3  ;;  %2049 = vmatpush3.bf16.msra.mxu0 %v2318_v3  ;;  %s2305_s18 = smul.u32 40, %s2956_s13 }
  0x10   : > { %s2441_s25 = scalar_lea.vmem %s2951_s0, %s2304_s20  ;;  %2299 = vmatprep.subr.bf16.mxu1 %v2383_v1  ;;  %2050 = vmatprep.subr.bf16.mxu0 %v2383_v1 }
  0x11   : > { %v2444_v5 = vld [vmem:[%s2441_s25 + $0x10] sm:$0xff]   ;;  %v2447_v6 = vld [vmem:[%s2441_s25 + $0x18] sm:$0xff]   ;;  %v172_v7 = vld [vmem:[%s2441_s25] sm:$0xf]  ;;  %s2911_s21 = scalar_lea.vmem %s2954_s3, %s2305_s18 }
  0x12   : > { %v2453_v8 = vld [vmem:[%s2441_s25 + $0x4] sm:$0xf]  ;;  %v244_v9 = vshll.u32 %v2444_v5, 16  ;;  %v248_v10 = vshrl.u32 %v2444_v5, 16  ;;  %v252_v11 = vshll.u32 %v2447_v6, 16  ;;  %v2462_v13 = vld [vmem:[%s2441_s25 + $0x8] sm:$0xff]  }
  0x13   : > { %v2459_v12 = vcombine.low %v172_v7, %v2453_v8  ;;  %v2465_v14 = vld [vmem:[%s2441_s25 + $0x20] sm:$0xff]   ;;  %2303 = vmatpush3.bf16.msra.mxu1 %v2319_v4  ;;  %2051 = vmatpush3.bf16.msra.mxu0 %v2319_v4  ;;  %v236_v19 = vshll.u32 %v2462_v13, 16  ;;  %v256_v23 = vshrl.u32 %v2447_v6, 16  ;;  %v240_v29 = vshrl.u32 %v2462_v13, 16  ;;  %v2342_v7 = vld [vmem:[%s2952_s1 + $0x98] sm:$0xff]  }
  0x14   : > { %v246_v15 = vrot.slane %v244_v9, 1  ;;  %v254_v16 = vrot.slane %v252_v11, 1  ;;  %2072 = vmatprep.subr.bf16.mxu1 %v2383_v1  ;;  %2100 = vmatprep.subr.bf16.mxu0 %v2383_v1  ;;  %v260_v24 = vshll.u32 %v2465_v14, 16  ;;  %v2484_v30 = vld [vmem:[%s2441_s25 + $0x28] ss:$0 sps:$4 sm:$0x11]  }
  0x15   : > { %v229_v17 = vshrl.u32 %v2459_v12, 16  ;;  %v231_v18 = vshll.u32 %v2459_v12, 16  ;;  %v238_v25 = vrot.slane %v236_v19, 1  ;;  %v492_v38 = vld [vmem:[%s2441_s25] sm:$0xe]  ;;  %v264_v40 = vshrl.u32 %v2465_v14, 16 }
  0x16   : > { %v250_v20 = vor.u32 %v248_v10, %v246_v15  ;;  %v258_v33 = vor.u32 %v256_v23, %v254_v16  ;;  %v262_v34 = vrot.slane %v260_v24, 1  ;;  %v268_v41 = vshll.u32 %v2484_v30, 16  ;;  %v2551_v57 = vld [vmem:[%s2441_s25 + $0x1c] sm:$0xff]   ;;  %v2554_v58 = vld [vmem:[%s2441_s25 + $0x24] sm:$0xff]   ;;  %v2339_v9 = vld [vmem:[%s2952_s1 + $0x70] sm:$0xff]  }
  0x17   : > { %v233_v22 = vrot.slane %v231_v18, 1  ;;  %v242_v37 = vor.u32 %v240_v29, %v238_v25  ;;  %v1860_v44 = vcombine.low %v492_v38, %v2453_v8  ;;  %v506_v50 = vrot.slane %v2462_v13, 1  ;;  %v2355_v63 = vld [vmem:[%s2441_s25 + $0x2c] ss:$0 sps:$4 sm:$0x11]  }
  0x18   : > { %v255_v26 = vsel %vm227_vm1, %v250_v20, %v254_v16  ;;  %v263_v39 = vsel %vm227_vm1, %v258_v33, %v262_v34  ;;  %v266_v45 = vor.u32 %v264_v40, %v262_v34  ;;  %v270_v46 = vrot.slane %v268_v41, 1  ;;  %v2614_v18 = vld [vmem:[%s2441_s25 + $0xc] sm:$0xff]  }
  0x19   : > { %v234_v27 = vor.u32 %v233_v22, %v229_v17  ;;  %2061 = vmatmul.mubr.msk.bf16.vlgmr.msra.gmra.mrb[0].mxu1 %vm296_vm2, %v255_v26  ;;  %v247_v42 = vsel %vm227_vm1, %v242_v37, %v246_v15  ;;  %v505_v49 = vrot.slane %v1860_v44, 1  ;;  %v508_v54 = vrot.slane %v2444_v5, 1  ;;  %v2608_v15 = vld [vmem:[%s2441_s25 + $0x8] sm:$0xf] }
  0x1a   : > { %2073 = vmatpush3.bf16.msra.mxu1 %v2322_v21  ;;  %2064 = vmatprep.mubr.msk.bf16.mxu1 %vm2384_vm0, %v2383_v1  ;;  %v271_v51 = vsel %vm227_vm1, %v266_v45, %v270_v46  ;;  %v690_v61 = vrot.slane %v2551_v57, 1  ;;  %v692_v62 = vrot.slane %v2554_v58, 1  ;;  %v694_v3 = vrot.slane %v2355_v63, 1  ;;  %v2352_v46 = vld [vmem:[%s2952_s1 + $0xd0] sm:$0xff]  }
  0x1b   : > { %v239_v32 = vsel %vm227_vm1, %v234_v27, %v238_v25  ;;  %2074 = vmatprep.subr.bf16.mxu1 %v2383_v1  ;;  %v507_v52 = vsel %vm504_vm3, %v505_v49, %v506_v50  ;;  %v509_v59 = vsel %vm504_vm3, %v506_v50, %v508_v54  ;;  %v510_v4 = vrot.slane %v2447_v6, 1 }
  0x1c   : > { %2053 = vmatmul.mubr.msk.bf16.vlgmr.msra.gmra.mrb[0].mxu0 %vm296_vm2, %v239_v32  ;;  %v2574_v2 = vsel %vm504_vm3, %v690_v61, %v692_v62  ;;  %v2586_v8 = vsel %vm504_vm3, %v692_v62, %v694_v3  ;;  %v512_v11 = vrot.slane %v2465_v14, 1  ;;  %v514_v19 = vrot.slane %v2484_v30, 1  ;;  %v2354_v62 = vld [vmem:[%s2952_s1 + $0xb8] sm:$0xff]  }
  0x1d   : > { %2101 = vmatpush3.bf16.msra.mxu0 %v2327_v28  ;;  %2056 = vmatprep.mubr.msk.bf16.mxu0 %vm2384_vm0, %v2383_v1  ;;  %v511_v10 = vsel %vm504_vm3, %v508_v54, %v510_v4  ;;  %v840_v22 = vshrl.u32 %v2614_v18, 16  ;;  %v843_v23 = vshll.u32 %v2614_v18, 16  ;;  %v2628_v28 = vld [vmem:[%s2441_s25 + $0x14] sm:$0xff]   ;;  %v686_v37 = vrot.slane %v2614_v18, 1 }
  0x1e   : > { %2102 = vmatprep.subr.bf16.mxu0 %v2383_v1  ;;  %2075 = vmatpush3.bf16.msra.mxu1 %v2323_v31  ;;  %v513_v16 = vsel %vm504_vm3, %v510_v4, %v512_v11  ;;  %v515_v24 = vsel %vm504_vm3, %v512_v11, %v514_v19  ;;  %v849_v31 = vshrl.u32 %v2628_v28, 16  ;;  %v852_v32 = vshll.u32 %v2628_v28, 16  ;;  %v2351_v54 = vld [vmem:[%s2952_s1 + $0xb0] sm:$0xff]   ;;  %v1006_v19 = vld [vmem:[%s2441_s25 + $0x4] sm:$0xc] }
  0x1f   : > { %2076 = vmatprep.subr.bf16.mxu1 %v2383_v1  ;;  %v842_v26 = vrot.slane %v840_v22, 1  ;;  %v845_v27 = vrot.slane %v843_v23, 2  ;;  %v858_v40 = vshrl.u32 %v2551_v57, 16  ;;  %v867_v50 = vshrl.u32 %v2554_v58, 16 }
  0x20   : > { %v851_v34 = vrot.slane %v849_v31, 1  ;;  %v1895_v22 = vcombine.low %v1006_v19, %v2608_v15  ;;  %v1022_v31 = vrot.slane %v2628_v28, 2 }
  0x21   : > { %2103 = vmatpush3.bf16.msra.mxu0 %v2329_v36  ;;  %2065 = vmatmul.mubr.msk.bf16.gmra.mrb[4].mxu1 %vm296_vm2, %v263_v39  ;;  %v846_v30 = vor.u32 %v845_v27, %v842_v26  ;;  %v2349_v39 = vld [vmem:[%s2952_s1 + $0xc8] sm:$0xff]   ;;  %v860_v44 = vrot.slane %v858_v40, 1 }
  0x22   : > { %2104 = vmatprep.subr.bf16.mxu0 %v2383_v1  ;;  %2077 = vmatpush3.bf16.msra.mxu1 %v2328_v35  ;;  %v854_v35 = vrot.slane %v852_v32, 2  ;;  %v2365_v26 = vld [vmem:[%s2952_s1 + $0x108] sm:$0xff]  }
  0x23   : > { %2068 = vmatprep.mubr.msk.bf16.mxu1 %vm2384_vm0, %v2383_v1  ;;  %2078 = vmatprep.subr.bf16.mxu1 %v2383_v1  ;;  %v2364_v32 = vld [vmem:[%s2952_s1 + $0xe8] sm:$0xff]  }
  0x24   : > { %2057 = vmatmul.mubr.msk.bf16.gmra.mrb[4].mxu0 %vm296_vm2, %v247_v42  ;;  %v855_v38 = vor.u32 %v854_v35, %v851_v34  ;;  %v2345_v42 = vld [vmem:[%s2952_s1 + $0xa0] sm:$0xff]   ;;  %v2367_v34 = vld [vmem:[%s2952_s1 + $0xf0] sm:$0xff]  }
  0x25   : > { %2105 = vmatpush3.bf16.msra.mxu0 %v2331_v43  ;;  %2108 = vmatprep.mubr.msk.bf16.mxu0 %vm2384_vm0, %v2383_v1 }
  0x26   : > { %2106 = vmatprep.subr.bf16.mxu0 %v2383_v1  ;;  %2079 = vmatpush3.bf16.msra.mxu1 %v2332_v47  ;;  %v856_v43 = vsel %vm830_vm4, %v846_v30, %v855_v38  ;;  %v688_v47 = vrot.slane %v2628_v28, 1 }
  0x27   : > { %2128 = vmatprep.subr.bf16.mxu1 %v2383_v1 }
  0x28   : > { %v691_v4 = vsel %vm504_vm3, %v688_v47, %v690_v61  ;;  %v1152_v61 = vld [vmem:[%s2441_s25 + $0x8] sm:$0xc] }
  0x29   : > { %2107 = vmatpush3.bf16.msra.mxu0 %v2333_v48  ;;  %2069 = vmatmul.mubr.msk.bf16.gmra.mrb[8].mxu1 %vm296_vm2, %v271_v51  ;;  %v2348_v48 = vld [vmem:[%s2952_s1 + $0xa8] sm:$0xff]   ;;  %v870_v51 = vshll.u32 %v2554_v58, 16 }
  0x2a   : > { %2156 = vmatprep.subr.bf16.mxu0 %v2383_v1  ;;  %2080 = vmatprep.mubr.msk.bf16.mxu1 %vm2384_vm0, %v2383_v1 }
  0x2c   : > { %2109 = vmatmul.mubr.msk.bf16.vlgmr.msra.gmra.mrb[8].mxu0 %vm296_vm2, %v507_v52  ;;  %v2357_v52 = vld [vmem:[%s2952_s1 + $0xd8] sm:$0xff]  }
  0x2d   : > { %2157 = vmatpush3.bf16.msra.mxu0 %v2336_v53  ;;  %2112 = vmatprep.mubr.msk.bf16.mxu0 %vm2384_vm0, %v2383_v1  ;;  %v689_v53 = vsel %vm504_vm3, %v686_v37, %v688_v47 }
  0x2e   : > { %2158 = vmatprep.subr.bf16.mxu0 %v2383_v1 }
  0x31   : > { %2159 = vmatpush3.bf16.msra.mxu0 %v2338_v55  ;;  %2081 = vmatmul.mubr.msk.bf16.vlgmr.msra.gmra.mrb[12].mxu1 %vm296_vm2, %v2459_v12  ;;  %v2341_v12 = vld [vmem:[%s2952_s1 + $0x78] sm:$0xff]  }
  0x32   : > { %2160 = vmatprep.subr.bf16.mxu0 %v2383_v1  ;;  %2129 = vmatpush3.bf16.msra.mxu1 %v2335_v56  ;;  %v869_v56 = vrot.slane %v867_v50, 1 }
  0x33   : > { %2084 = vmatprep.mubr.msk.bf16.mxu1 %vm2384_vm0, %v2383_v1  ;;  %2130 = vmatprep.subr.bf16.mxu1 %v2383_v1 }
  0x34   : > { %2113 = vmatmul.mubr.msk.bf16.gmra.mrb[12].mxu0 %vm296_vm2, %v509_v59  ;;  %v872_v59 = vrot.slane %v870_v51, 2 }
  0x35   : > { %2116 = vmatprep.mubr.msk.bf16.mxu0 %vm2384_vm0, %v2383_v1  ;;  %2161 = vmatpush3.bf16.msra.mxu0 %v2340_v60  ;;  %v2690_v60 = vld [vmem:[%s2441_s25 + $0x2c] ss:$0 sps:$4 sm:$0x33]  }
  0x36   : > { %2162 = vmatprep.subr.bf16.mxu0 %v2383_v1  ;;  %2131 = vmatpush3.bf16.msra.mxu1 %v2337_v0  ;;  %v873_v63 = vor.u32 %v872_v59, %v869_v56  ;;  %v876_v0 = vshrl.u32 %v2690_v60, 16  ;;  %v879_v3 = vshll.u32 %v2690_v60, 16  ;;  %v1028_v47 = vrot.slane %v2690_v60, 2 }
  0x37   : > { %2132 = vmatprep.subr.bf16.mxu1 %v2383_v1 }
  0x39   : > { %2163 = vmatpush3.bf16.msra.mxu0 %v2342_v7  ;;  %2085 = vmatmul.mubr.msk.bf16.gmra.mrb[16].mxu1 %vm296_vm2, %v2462_v13  ;;  %v638_v13 = vld [vmem:[%s2441_s25 + $0x4] sm:$0xe] }
  0x3a   : > { %2212 = vmatprep.subr.bf16.mxu0 %v2383_v1  ;;  %2088 = vmatprep.mubr.msk.bf16.mxu1 %vm2384_vm0, %v2383_v1  ;;  %v1870_v17 = vcombine.low %v638_v13, %v2608_v15 }
  0x3b   : > { %2133 = vmatpush3.bf16.msra.mxu1 %v2339_v9  ;;  %v878_v9 = vrot.slane %v876_v0, 1 }
  0x3c   : > { %2117 = vmatmul.mubr.msk.bf16.gmra.mrb[16].mxu0 %vm296_vm2, %v511_v10  ;;  %2134 = vmatprep.subr.bf16.mxu1 %v2383_v1  ;;  %v832_v20 = vshrl.u32 %v1870_v17, 16  ;;  %v835_v21 = vshll.u32 %v1870_v17, 16  ;;  %v685_v36 = vrot.slane %v1870_v17, 1  ;;  %v881_v10 = vrot.slane %v879_v3, 2  ;;  %v2725_v17 = vld [vmem:[%s2441_s25 + $0x10] sm:$0xff]  }
  0x3d   : > { %2120 = vmatprep.mubr.msk.bf16.mxu0 %vm2384_vm0, %v2383_v1  ;;  %v1357_v50 = vshll.u32 %v2725_v17, 16 }
  0x3e   : > { %v834_v25 = vrot.slane %v832_v20, 1  ;;  %v687_v41 = vsel %vm504_vm3, %v685_v36, %v686_v37  ;;  %v882_v11 = vor.u32 %v881_v10, %v878_v9  ;;  %v2793_v36 = vld [vmem:[%s2441_s25 + $0x28] sm:$0xff]   ;;  %v1024_v37 = vrot.slane %v2551_v57, 2 }
  0x3f   : > { %2135 = vmatpush3.bf16.msra.mxu1 %v2341_v12  ;;  %v2718_v12 = vld [vmem:[%s2441_s25 + $0xc] sm:$0xf]  ;;  %v1359_v59 = vrot.slane %v1357_v50, 3 }
  0x40   : > { %2184 = vmatprep.subr.bf16.mxu1 %v2383_v1  ;;  %v883_v13 = vsel %vm830_vm4, %v873_v63, %v882_v11  ;;  %v1025_v40 = vsel %vm1018_vm5, %v1022_v31, %v1024_v37 }
  0x41   : > { %2089 = vmatmul.mubr.msk.bf16.gmra.mrb[20].mxu1 %vm296_vm2, %v2444_v5  ;;  %v837_v5 = vrot.slane %v835_v21, 2  ;;  %v1200_v21 = vrot.slane %v2725_v17, 2 }
  0x42   : > { %2092 = vmatprep.mubr.msk.bf16.mxu1 %vm2384_vm0, %v2383_v1 }
  0x43   : > { %v838_v29 = vor.u32 %v837_v5, %v834_v25  ;;  %v1019_v25 = vrot.slane %v1895_v22, 2  ;;  %v1020_v5 = vrot.slane %v2614_v18, 2  ;;  %v2361_v18 = vld [vmem:[%s2952_s1 + $0xe0] sm:$0xff]  }
  0x44   : > { %2121 = vmatmul.mubr.msk.bf16.gmra.mrb[20].mxu0 %vm296_vm2, %v513_v16  ;;  %v2722_v16 = vcombine.low %v1152_v61, %v2718_v12 }
  0x45   : > { %2124 = vmatprep.mubr.msk.bf16.mxu0 %vm2384_vm0, %v2383_v1  ;;  %v847_v33 = vsel %vm830_vm4, %v838_v29, %v846_v30  ;;  %v2764_v29 = vld [vmem:[%s2441_s25 + $0x20] sm:$0xff]   ;;  %v2368_v30 = vld [vmem:[%s2952_s1 + $0x110] sm:$0xff]   ;;  %v1023_v28 = vsel %vm1018_vm5, %v1020_v5, %v1022_v31 }
  0x46   : > { %v1199_v20 = vrot.slane %v2722_v16, 2 }
  0x48   : > { %v1201_v23 = vsel %vm1018_vm5, %v1199_v20, %v1200_v21 }
  0x49   : > { %2093 = vmatmul.mubr.msk.bf16.gmra.mrb[24].mxu1 %vm296_vm2, %v2447_v6  ;;  %v2346_v6 = vld [vmem:[%s2952_s1 + $0xc0] sm:$0xff]  }
  0x4a   : > { %2096 = vmatprep.mubr.msk.bf16.mxu1 %vm2384_vm0, %v2383_v1 }
  0x4c   : > { %2125 = vmatmul.mubr.msk.bf16.gmra.mrb[24].mxu0 %vm296_vm2, %v515_v24  ;;  %v2743_v24 = vld [vmem:[%s2441_s25 + $0x18] sm:$0xff]  }
  0x4d   : > { %2164 = vmatprep.mubr.msk.bf16.mxu0 %vm2384_vm0, %v2383_v1  ;;  %v1202_v15 = vrot.slane %v2743_v24, 2  ;;  %v1363_v0 = vshrl.u32 %v2743_v24, 16  ;;  %v1366_v3 = vshll.u32 %v2743_v24, 16 }
  0x4f   : > { %v1203_v27 = vsel %vm1018_vm5, %v1200_v21, %v1202_v15  ;;  %v1365_v9 = vrot.slane %v1363_v0, 2  ;;  %v1368_v10 = vrot.slane %v1366_v3, 3 }
  0x51   : > { %2097 = vmatmul.mubr.msk.bf16.gmra.mrb[28].mxu1 %vm296_vm2, %v2465_v14  ;;  %v861_v14 = vshll.u32 %v2551_v57, 16  ;;  %v1369_v61 = vor.u32 %v1368_v10, %v1365_v9 }
  0x52   : > { %2136 = vmatprep.mubr.msk.bf16.mxu1 %vm2384_vm0, %v2383_v1 }
  0x53   : > { %v863_v45 = vrot.slane %v861_v14, 2  ;;  %v2371_v14 = vld [vmem:[%s2441_s25 + $0x30] ss:$0 sps:$4 sm:$0x33]  }
  0x54   : > { %2165 = vmatmul.mubr.msk.bf16.vlgmr.msra.gmra.mrb[28].mxu0 %vm296_vm2, %v847_v33  ;;  %v1204_v33 = vrot.slane %v2764_v29, 2 }
  0x55   : > { %2213 = vmatpush3.bf16.msra.mxu0 %v2346_v6  ;;  %2168 = vmatprep.mubr.msk.bf16.mxu0 %vm2384_vm0, %v2383_v1  ;;  %v864_v49 = vor.u32 %v863_v45, %v860_v44  ;;  %v2372_v6 = vld [vmem:[%s2952_s1 + $0x118] sm:$0xff]  }
  0x56   : > { %2214 = vmatprep.subr.bf16.mxu0 %v2383_v1  ;;  %v1205_v35 = vsel %vm1018_vm5, %v1202_v15, %v1204_v33 }
  0x57   : > { %v865_v55 = vsel %vm830_vm4, %v855_v38, %v864_v49  ;;  %v874_v7 = vsel %vm830_vm4, %v864_v49, %v873_v63  ;;  %v2370_v38 = vld [vmem:[%s2952_s1 + $0xf8] sm:$0xff]   ;;  %v1354_v49 = vshrl.u32 %v2725_v17, 16 }
  0x59   : > { %2215 = vmatpush3.bf16.msra.mxu0 %v2349_v39  ;;  %2137 = vmatmul.mubr.msk.bf16.vlgmr.msra.gmra.mrb[32].mxu1 %vm296_vm2, %v687_v41  ;;  %v1206_v39 = vrot.slane %v2793_v36, 2  ;;  %v1026_v41 = vrot.slane %v2554_v58, 2  ;;  %v1346_v58 = vshrl.u32 %v2722_v16, 16  ;;  %v1356_v56 = vrot.slane %v1354_v49, 2 }
  0x5a   : > { %2216 = vmatprep.subr.bf16.mxu0 %v2383_v1  ;;  %2185 = vmatpush3.bf16.msra.mxu1 %v2345_v42  ;;  %v1208_v42 = vrot.slane %v2371_v14, 2 }
  0x5b   : > { %2140 = vmatprep.mubr.msk.bf16.mxu1 %vm2384_vm0, %v2383_v1  ;;  %2186 = vmatprep.subr.bf16.mxu1 %v2383_v1  ;;  %v1207_v57 = vsel %vm1018_vm5, %v1204_v33, %v1206_v39  ;;  %v1027_v44 = vsel %vm1018_vm5, %v1024_v37, %v1026_v41  ;;  %v1360_v63 = vor.u32 %v1359_v59, %v1356_v56 }
  0x5c   : > { %2169 = vmatmul.mubr.msk.bf16.gmra.mrb[32].mxu0 %vm296_vm2, %v856_v43  ;;  %v1520_v43 = vld [vmem:[%s2441_s25 + $0x8] sm:$0x8]  ;;  %v1209_v45 = vsel %vm1018_vm5, %v1206_v39, %v1208_v42 }
  0x5d   : > { %2172 = vmatprep.mubr.msk.bf16.mxu0 %vm2384_vm0, %v2383_v1  ;;  %2217 = vmatpush3.bf16.msra.mxu0 %v2352_v46  ;;  %v1930_v46 = vcombine.low %v1520_v43, %v2718_v12  ;;  %v1372_v12 = vshrl.u32 %v2764_v29, 16 }
  0x5e   : > { %2218 = vmatprep.subr.bf16.mxu0 %v2383_v1  ;;  %2187 = vmatpush3.bf16.msra.mxu1 %v2348_v48  ;;  %v1349_v48 = vshll.u32 %v2722_v16, 16  ;;  %v1538_v16 = vrot.slane %v2764_v29, 3 }
  0x5f   : > { %2188 = vmatprep.subr.bf16.mxu1 %v2383_v1  ;;  %v1533_v51 = vrot.slane %v1930_v46, 3  ;;  %v1374_v19 = vrot.slane %v1372_v12, 2 }
  0x61   : > { %2219 = vmatpush3.bf16.msra.mxu0 %v2357_v52  ;;  %2141 = vmatmul.mubr.msk.bf16.gmra.mrb[36].mxu1 %vm296_vm2, %v689_v53  ;;  %v1534_v52 = vrot.slane %v2725_v17, 3  ;;  %v1029_v53 = vsel %vm1018_vm5, %v1026_v41, %v1028_v47  ;;  %v1370_v17 = vsel %vm1344_vm7, %v1360_v63, %v1369_v61 }
  0x62   : > { %2268 = vmatprep.subr.bf16.mxu0 %v2383_v1  ;;  %2144 = vmatprep.mubr.msk.bf16.mxu1 %vm2384_vm0, %v2383_v1 }
  0x63   : > { %2189 = vmatpush3.bf16.msra.mxu1 %v2351_v54  ;;  %v1348_v54 = vrot.slane %v1346_v58, 2  ;;  %v1535_v60 = vsel %vm1532_vm6, %v1533_v51, %v1534_v52 }
  0x64   : > { %2173 = vmatmul.mubr.msk.bf16.gmra.mrb[36].mxu0 %vm296_vm2, %v865_v55  ;;  %2190 = vmatprep.subr.bf16.mxu1 %v2383_v1  ;;  %v1351_v55 = vrot.slane %v1349_v48, 3 }
  0x65   : > { %2176 = vmatprep.mubr.msk.bf16.mxu0 %vm2384_vm0, %v2383_v1 }
  0x67   : > { %2191 = vmatpush3.bf16.msra.mxu1 %v2354_v62  ;;  %v1352_v62 = vor.u32 %v1351_v55, %v1348_v54 }
  0x68   : > { %2240 = vmatprep.subr.bf16.mxu1 %v2383_v1 }
  0x69   : > { %2145 = vmatmul.mubr.msk.bf16.gmra.mrb[40].mxu1 %vm296_vm2, %v691_v4  ;;  %v1536_v4 = vrot.slane %v2743_v24, 3  ;;  %v1540_v24 = vrot.slane %v2793_v36, 3 }
  0x6a   : > { %2148 = vmatprep.mubr.msk.bf16.mxu1 %vm2384_vm0, %v2383_v1 }
  0x6b   : > { %v1537_v11 = vsel %vm1532_vm6, %v1534_v52, %v1536_v4  ;;  %v1539_v21 = vsel %vm1532_vm6, %v1536_v4, %v1538_v16 }
  0x6c   : > { %2177 = vmatmul.mubr.msk.bf16.gmra.mrb[40].mxu0 %vm296_vm2, %v874_v7  ;;  %v1361_v7 = vsel %vm1344_vm7, %v1352_v62, %v1360_v63 }
  0x6d   : > { %2180 = vmatprep.mubr.msk.bf16.mxu0 %vm2384_vm0, %v2383_v1 }
  0x71   : > { %2149 = vmatmul.mubr.msk.bf16.gmra.mrb[44].mxu1 %vm296_vm2, %v2574_v2  ;;  %v2362_v2 = vld [vmem:[%s2952_s1 + $0x100] sm:$0xff]  }
  0x72   : > { %2152 = vmatprep.mubr.msk.bf16.mxu1 %vm2384_vm0, %v2383_v1 }
  0x74   : > { %2181 = vmatmul.mubr.msk.bf16.gmra.mrb[44].mxu0 %vm296_vm2, %v883_v13  ;;  %v1375_v13 = vshll.u32 %v2764_v29, 16 }
  0x75   : > { %2220 = vmatprep.mubr.msk.bf16.mxu0 %vm2384_vm0, %v2383_v1 }
  0x76   : > { %v1377_v20 = vrot.slane %v1375_v13, 3 }
  0x78   : > { %v1378_v22 = vor.u32 %v1377_v20, %v1374_v19 }
  0x79   : > { %2153 = vmatmul.mubr.msk.bf16.gmra.mrb[48].mxu1 %vm296_vm2, %v2586_v8  ;;  %v1021_v8 = vsel %vm1018_vm5, %v1019_v25, %v1020_v5 }
  0x7a   : > { %2192 = vmatprep.mubr.msk.bf16.mxu1 %vm2384_vm0, %v2383_v1  ;;  %v1379_v25 = vsel %vm1344_vm7, %v1369_v61, %v1378_v22 }
  0x7c   : > { %2221 = vmatmul.mubr.msk.bf16.vlgmr.msra.gmra.mrb[48].mxu0 %vm296_vm2, %v1201_v23  ;;  %v1381_v23 = vshrl.u32 %v2793_v36, 16 }
  0x7d   : > { %2269 = vmatpush3.bf16.msra.mxu0 %v2362_v2  ;;  %2224 = vmatprep.mubr.msk.bf16.mxu0 %vm2384_vm0, %v2383_v1  ;;  %v1384_v2 = vshll.u32 %v2793_v36, 16 }
  0x7e   : > { %2270 = vmatprep.subr.bf16.mxu0 %v2383_v1  ;;  %v1383_v5 = vrot.slane %v1381_v23, 2 }
  0x7f   : > { %v1386_v15 = vrot.slane %v1384_v2, 3 }
  0x81   : > { %2271 = vmatpush3.bf16.msra.mxu0 %v2365_v26  ;;  %2193 = vmatmul.mubr.msk.bf16.vlgmr.msra.gmra.mrb[52].mxu1 %vm296_vm2, %v1021_v8  ;;  %v2374_v26 = vld [vmem:[%s2441_s25 + $0x30] ss:$0 sps:$4 sm:$0x77]   ;;  %v1541_v8 = vsel %vm1532_vm6, %v1538_v16, %v1540_v24 }
  0x82   : > { %2272 = vmatprep.subr.bf16.mxu0 %v2383_v1  ;;  %2241 = vmatpush3.bf16.msra.mxu1 %v2361_v18  ;;  %v1387_v18 = vor.u32 %v1386_v15, %v1383_v5  ;;  %v1393_v29 = vshll.u32 %v2374_v26, 16 }
  0x83   : > { %2196 = vmatprep.mubr.msk.bf16.mxu1 %vm2384_vm0, %v2383_v1  ;;  %2242 = vmatprep.subr.bf16.mxu1 %v2383_v1 }
  0x84   : > { %2225 = vmatmul.mubr.msk.bf16.gmra.mrb[52].mxu0 %vm296_vm2, %v1203_v27  ;;  %v1390_v27 = vshrl.u32 %v2374_v26, 16  ;;  %v1388_v31 = vsel %vm1344_vm7, %v1378_v22, %v1387_v18  ;;  %v1395_v33 = vrot.slane %v1393_v29, 3 }
  0x85   : > { %2228 = vmatprep.mubr.msk.bf16.mxu0 %vm2384_vm0, %v2383_v1  ;;  %2273 = vmatpush3.bf16.msra.mxu0 %v2368_v30  ;;  %v1542_v30 = vrot.slane %v2374_v26, 3 }
  0x86   : > { %2274 = vmatprep.subr.bf16.mxu0 %v2383_v1  ;;  %2243 = vmatpush3.bf16.msra.mxu1 %v2364_v32  ;;  %v1392_v32 = vrot.slane %v1390_v27, 2 }
  0x87   : > { %2244 = vmatprep.subr.bf16.mxu1 %v2383_v1 }
  0x89   : > { %2275 = vmatpush3.bf16.msra.mxu0 %v2372_v6  ;;  %2197 = vmatmul.mubr.msk.bf16.gmra.mrb[56].mxu1 %vm296_vm2, %v1023_v28  ;;  %v1543_v6 = vsel %vm1532_vm6, %v1540_v24, %v1542_v30  ;;  %v1396_v28 = vor.u32 %v1395_v33, %v1392_v32 }
  0x8a   : > { %2200 = vmatprep.mubr.msk.bf16.mxu1 %vm2384_vm0, %v2383_v1  ;;  %2245 = vmatpush3.bf16.msra.mxu1 %v2367_v34 }
  0x8b   : > { %2246 = vmatprep.subr.bf16.mxu1 %v2383_v1  ;;  %v1397_v34 = vsel %vm1344_vm7, %v1387_v18, %v1396_v28 }
  0x8c   : > { %2229 = vmatmul.mubr.msk.bf16.gmra.mrb[56].mxu0 %vm296_vm2, %v1205_v35 }
  0x8d   : > { %2232 = vmatprep.mubr.msk.bf16.mxu0 %vm2384_vm0, %v2383_v1 }
  0x8e   : > { %2247 = vmatpush3.bf16.msra.mxu1 %v2370_v38 }
  0x91   : > { %2201 = vmatmul.mubr.msk.bf16.gmra.mrb[60].mxu1 %vm296_vm2, %v1025_v40 }
  0x92   : > { %2204 = vmatprep.mubr.msk.bf16.mxu1 %vm2384_vm0, %v2383_v1 }
  0x94   : > { %2233 = vmatmul.mubr.msk.bf16.gmra.mrb[60].mxu0 %vm296_vm2, %v1207_v57 }
  0x95   : > { %2236 = vmatprep.mubr.msk.bf16.mxu0 %vm2384_vm0, %v2383_v1 }
  0x99   : > { %2205 = vmatmul.mubr.msk.bf16.gmra.mrb[64].mxu1 %vm296_vm2, %v1027_v44 }
  0x9a   : > { %2208 = vmatprep.mubr.msk.bf16.mxu1 %vm2384_vm0, %v2383_v1 }
  0x9c   : > { %2237 = vmatmul.mubr.msk.bf16.gmra.mrb[64].mxu0 %vm296_vm2, %v1209_v45 }
  0x9d   : > { %2276 = vmatprep.mubr.msk.bf16.mxu0 %vm2384_vm0, %v2383_v1 }
  0xa1   : > { %2209 = vmatmul.mubr.msk.bf16.gmra.mrb[68].mxu1 %vm296_vm2, %v1029_v53 }
  0xa2   : > { %2248 = vmatprep.mubr.msk.bf16.mxu1 %vm2384_vm0, %v2383_v1 }
  0xa4   : > { %2277 = vmatmul.mubr.msk.bf16.vlgmr.msra.gmra.mrb[68].mxu0 %vm296_vm2, %v1535_v60 }
  0xa5   : > { %2280 = vmatprep.mubr.msk.bf16.mxu0 %vm2384_vm0, %v2383_v1 }
  0xa9   : > { %2249 = vmatmul.mubr.msk.bf16.vlgmr.msra.gmra.mrb[72].mxu1 %vm296_vm2, %v1361_v7 }
  0xaa   : > { %2252 = vmatprep.mubr.msk.bf16.mxu1 %vm2384_vm0, %v2383_v1 }
  0xac   : > { %2281 = vmatmul.mubr.msk.bf16.gmra.mrb[72].mxu0 %vm296_vm2, %v1537_v11 }
  0xad   : > { %2284 = vmatprep.mubr.msk.bf16.mxu0 %vm2384_vm0, %v2383_v1 }
  0xb1   : > { %2253 = vmatmul.mubr.msk.bf16.gmra.mrb[76].mxu1 %vm296_vm2, %v1370_v17 }
  0xb2   : > { %2256 = vmatprep.mubr.msk.bf16.mxu1 %vm2384_vm0, %v2383_v1 }
  0xb4   : > { %2285 = vmatmul.mubr.msk.bf16.gmra.mrb[76].mxu0 %vm296_vm2, %v1539_v21 }
  0xb5   : > { %2288 = vmatprep.mubr.msk.bf16.mxu0 %vm2384_vm0, %v2383_v1 }
  0xb9   : > { %2257 = vmatmul.mubr.msk.bf16.gmra.mrb[80].mxu1 %vm296_vm2, %v1379_v25 }
  0xba   : > { %2260 = vmatprep.mubr.msk.bf16.mxu1 %vm2384_vm0, %v2383_v1 }
  0xbc   : > { %2289 = vmatmul.mubr.msk.bf16.gmra.mrb[80].mxu0 %vm296_vm2, %v1541_v8 }
  0xbd   : > { %2292 = vmatprep.mubr.msk.bf16.mxu0 %vm2384_vm0, %v2383_v1 }
  0xc1   : > { %2261 = vmatmul.mubr.msk.bf16.gmra.mrb[84].mxu1 %vm296_vm2, %v1388_v31 }
  0xc2   : > { %2264 = vmatprep.mubr.msk.bf16.mxu1 %vm2384_vm0, %v2383_v1 }
  0xc4   : > { %2293 = vmatmul.mubr.msk.bf16.gmra.mrb[84].mxu0 %vm296_vm2, %v1543_v6 }
  0xc9   : > { %2265 = vmatmul.mubr.msk.bf16.gmra.mrb[88].mxu1 %vm296_vm2, %v1397_v34 }
  0xec   : > { %v362_v35 = vpop.f32.mrb[0].mxu1 }
  0xed   : > { %v2062_v36 = vpop.f32.mrb[1].mxu1 }
  0xee   : > { %v365_v37 = vpop.f32.mrb[2].mxu1 }
  0xef   : > { %v346_v38 = vpop.f32.mrb[0].mxu0  ;;  %v2063_v39 = vpop.f32.mrb[3].mxu1 }
  0xf0   : > { %v2054_v40 = vpop.f32.mrb[1].mxu0 }
  0xf1   : > { %v349_v57 = vpop.f32.mrb[2].mxu0 }
  0xf2   : > { %v2055_v14 = vpop.f32.mrb[3].mxu0 }
  0xf4   : > { %v370_v41 = vpop.f32.mrb[4].mxu1 }
  0xf5   : > { %v2066_v42 = vpop.f32.mrb[5].mxu1 }
  0xf6   : > { %v373_v43 = vpop.f32.mrb[6].mxu1 }
  0xf7   : > { %v354_v44 = vpop.f32.mrb[4].mxu0  ;;  %v2067_v1 = vpop.f32.mrb[7].mxu1 }
  0xf8   : > { %v2058_v45 = vpop.f32.mrb[5].mxu0 }
  0xf9   : > { %v357_v46 = vpop.f32.mrb[6].mxu0 }
  0xfa   : > { %v2059_v47 = vpop.f32.mrb[7].mxu0 }
  0xfc   : > { %v378_v58 = vpop.f32.mrb[8].mxu1 }
  0xfd   : > { %v2070_v48 = vpop.f32.mrb[9].mxu1 }
  0xfe   : > { %v381_v49 = vpop.f32.mrb[10].mxu1 }
  0xff   : > { %v589_v50 = vpop.f32.mrb[8].mxu0  ;;  %v2071_v51 = vpop.f32.mrb[11].mxu1 }
 0x100   : > { %v2110_v52 = vpop.f32.mrb[9].mxu0 }
 0x101   : > { %v592_v53 = vpop.f32.mrb[10].mxu0 }
 0x102   : > { %v2111_v54 = vpop.f32.mrb[11].mxu0 }
 0x104   : > { %v453_v55 = vpop.f32.mrb[12].mxu1 }
 0x105   : > { %v454_v56 = vadd.f32 %v453_v55, %v346_v38  ;;  %v2082_v59 = vpop.f32.mrb[13].mxu1 }
 0x106   : > { %v456_v60 = vpop.f32.mrb[14].mxu1 }
 0x107   : > { %v597_v62 = vpop.f32.mrb[12].mxu0  ;;  %v628_v63 = vadd.f32 %v589_v50, %v454_v56  ;;  %v457_v0 = vadd.f32 %v456_v60, %v349_v57  ;;  %v2083_v3 = vpop.f32.mrb[15].mxu1 }
 0x108   : > { %v2114_v4 = vpop.f32.mrb[13].mxu0 }
 0x109   : > { %v600_v7 = vpop.f32.mrb[14].mxu0  ;;  %v629_v9 = vadd.f32 %v592_v53, %v457_v0 }
 0x10a   : > { %v2115_v10 = vpop.f32.mrb[15].mxu0 }
 0x10c   : > { %v461_v11 = vpop.f32.mrb[16].mxu1 }
 0x10d   : > { %v462_v61 = vadd.f32 %v461_v11, %v354_v44  ;;  %v2086_v12 = vpop.f32.mrb[17].mxu1 }
 0x10e   : > { %v464_v13 = vpop.f32.mrb[18].mxu1 }
 0x10f   : > { %v605_v16 = vpop.f32.mrb[16].mxu0  ;;  %v630_v17 = vadd.f32 %v597_v62, %v462_v61  ;;  %v465_v19 = vadd.f32 %v464_v13, %v357_v46  ;;  %v2087_v20 = vpop.f32.mrb[19].mxu1 }
 0x110   : > { %v2118_v21 = vpop.f32.mrb[17].mxu0 }
 0x111   : > { %v608_v22 = vpop.f32.mrb[18].mxu0  ;;  %v631_v23 = vadd.f32 %v600_v7, %v465_v19 }
 0x112   : > { %v2119_v2 = vpop.f32.mrb[19].mxu0 }
 0x114   : > { %v469_v24 = vpop.f32.mrb[20].mxu1 }
 0x115   : > { %v470_v25 = vadd.f32 %v469_v24, %v362_v35  ;;  %v2090_v5 = vpop.f32.mrb[21].mxu1 }
 0x116   : > { %v472_v15 = vpop.f32.mrb[22].mxu1 }
 0x117   : > { %v613_v26 = vpop.f32.mrb[20].mxu0  ;;  %v632_v8 = vadd.f32 %v605_v16, %v470_v25  ;;  %v473_v18 = vadd.f32 %v472_v15, %v365_v37  ;;  %v2091_v27 = vpop.f32.mrb[23].mxu1 }
 0x118   : > { %v2122_v29 = vpop.f32.mrb[21].mxu0 }
 0x119   : > { %v616_v30 = vpop.f32.mrb[22].mxu0  ;;  %v633_v31 = vadd.f32 %v608_v22, %v473_v18 }
 0x11a   : > { %v2123_v32 = vpop.f32.mrb[23].mxu0 }
 0x11c   : > { %v477_v33 = vpop.f32.mrb[24].mxu1 }
 0x11d   : > { %v478_v6 = vadd.f32 %v477_v33, %v370_v41  ;;  %v2094_v28 = vpop.f32.mrb[25].mxu1 }
 0x11e   : > { %v480_v34 = vpop.f32.mrb[26].mxu1 }
 0x11f   : > { %v621_v36 = vpop.f32.mrb[24].mxu0  ;;  %v634_v38 = vadd.f32 %v613_v26, %v478_v6  ;;  %v481_v39 = vadd.f32 %v480_v34, %v373_v43  ;;  %v2095_v40 = vpop.f32.mrb[27].mxu1 }
 0x120   : > { %v2126_v57 = vpop.f32.mrb[25].mxu0 }
 0x121   : > { %v624_v35 = vpop.f32.mrb[26].mxu0  ;;  %v635_v14 = vadd.f32 %v616_v30, %v481_v39 }
 0x122   : > { %v2127_v42 = vpop.f32.mrb[27].mxu0 }
 0x124   : > { %v485_v44 = vpop.f32.mrb[28].mxu1 }
 0x125   : > { %v486_v1 = vadd.f32 %v485_v44, %v378_v58  ;;  %v2098_v37 = vpop.f32.mrb[29].mxu1 }
 0x126   : > { %v488_v45 = vpop.f32.mrb[30].mxu1 }
 0x127   : > { %v957_v46 = vpop.f32.mrb[28].mxu0  ;;  %v636_v47 = vadd.f32 %v621_v36, %v486_v1  ;;  %v489_v48 = vadd.f32 %v488_v45, %v381_v49  ;;  %v2099_v50 = vpop.f32.mrb[31].mxu1 }
 0x128   : > { %v2166_v51 = vpop.f32.mrb[29].mxu0 }
 0x129   : > { %v960_v41 = vpop.f32.mrb[30].mxu0  ;;  %v637_v52 = vadd.f32 %v624_v35, %v489_v48 }
 0x12a   : > { %v2167_v53 = vpop.f32.mrb[31].mxu0 }
 0x12c   : > { %v769_v54 = vpop.f32.mrb[32].mxu1 }
 0x12d   : > { %v808_v55 = vadd.f32 %v769_v54, %v628_v63  ;;  %v2138_v43 = vpop.f32.mrb[33].mxu1 }
 0x12e   : > { %v772_v56 = vpop.f32.mrb[34].mxu1 }
 0x12f   : > { %v965_v59 = vpop.f32.mrb[32].mxu0  ;;  %v996_v60 = vadd.f32 %v957_v46, %v808_v55  ;;  %v809_v62 = vadd.f32 %v772_v56, %v629_v9  ;;  %v2139_v0 = vpop.f32.mrb[35].mxu1 }
 0x130   : > { %v2170_v3 = vpop.f32.mrb[33].mxu0 }
 0x131   : > { %v968_v58 = vpop.f32.mrb[34].mxu0  ;;  %v997_v4 = vadd.f32 %v960_v41, %v809_v62 }
 0x132   : > { %v2171_v7 = vpop.f32.mrb[35].mxu0 }
 0x134   : > { %v777_v10 = vpop.f32.mrb[36].mxu1 }
 0x135   : > { %v810_v11 = vadd.f32 %v777_v10, %v630_v17  ;;  %v2142_v49 = vpop.f32.mrb[37].mxu1 }
 0x136   : > { %v780_v61 = vpop.f32.mrb[38].mxu1 }
 0x137   : > { %v973_v12 = vpop.f32.mrb[36].mxu0  ;;  %v998_v13 = vadd.f32 %v965_v59, %v810_v11  ;;  %v811_v16 = vadd.f32 %v780_v61, %v631_v23  ;;  %v2143_v19 = vpop.f32.mrb[39].mxu1 }
 0x138   : > { %v2174_v20 = vpop.f32.mrb[37].mxu0 }
 0x139   : > { %v976_v63 = vpop.f32.mrb[38].mxu0  ;;  %v999_v21 = vadd.f32 %v968_v58, %v811_v16 }
 0x13a   : > { %v2175_v22 = vpop.f32.mrb[39].mxu0 }
 0x13c   : > { %v785_v2 = vpop.f32.mrb[40].mxu1 }
 0x13d   : > { %v812_v24 = vadd.f32 %v785_v2, %v632_v8  ;;  %v2146_v9 = vpop.f32.mrb[41].mxu1 }
 0x13e   : > { %v788_v25 = vpop.f32.mrb[42].mxu1 }
 0x13f   : > { %v981_v5 = vpop.f32.mrb[40].mxu0  ;;  %v1000_v15 = vadd.f32 %v973_v12, %v812_v24  ;;  %v813_v26 = vadd.f32 %v788_v25, %v633_v31  ;;  %v2147_v18 = vpop.f32.mrb[43].mxu1 }
 0x140   : > { %v2178_v27 = vpop.f32.mrb[41].mxu0 }
 0x141   : > { %v984_v17 = vpop.f32.mrb[42].mxu0  ;;  %v1001_v29 = vadd.f32 %v976_v63, %v813_v26 }
 0x142   : > { %v2179_v30 = vpop.f32.mrb[43].mxu0 }
 0x144   : > { %v793_v32 = vpop.f32.mrb[44].mxu1 }
 0x145   : > { %v814_v33 = vadd.f32 %v793_v32, %v634_v38  ;;  %v2150_v23 = vpop.f32.mrb[45].mxu1 }
 0x146   : > { %v796_v6 = vpop.f32.mrb[46].mxu1 }
 0x147   : > { %v989_v28 = vpop.f32.mrb[44].mxu0  ;;  %v1002_v34 = vadd.f32 %v981_v5, %v814_v33  ;;  %v815_v36 = vadd.f32 %v796_v6, %v635_v14  ;;  %v2151_v39 = vpop.f32.mrb[47].mxu1 }
 0x148   : > { %v2182_v40 = vpop.f32.mrb[45].mxu0 }
 0x149   : > { %v992_v8 = vpop.f32.mrb[46].mxu0  ;;  %v1003_v57 = vadd.f32 %v984_v17, %v815_v36 }
 0x14a   : > { %v2183_v35 = vpop.f32.mrb[47].mxu0 }
 0x14c   : > { %v801_v42 = vpop.f32.mrb[48].mxu1 }
 0x14d   : > { %v816_v44 = vadd.f32 %v801_v42, %v636_v47  ;;  %v2154_v31 = vpop.f32.mrb[49].mxu1 }
 0x14e   : > { %v804_v1 = vpop.f32.mrb[50].mxu1 }
 0x14f   : > { %v1283_v37 = vpop.f32.mrb[48].mxu0  ;;  %v1004_v45 = vadd.f32 %v989_v28, %v816_v44  ;;  %v817_v46 = vadd.f32 %v804_v1, %v637_v52  ;;  %v2155_v48 = vpop.f32.mrb[51].mxu1 }
 0x150   : > { %v2222_v50 = vpop.f32.mrb[49].mxu0 }
 0x151   : > { %v1286_v38 = vpop.f32.mrb[50].mxu0  ;;  %v1005_v51 = vadd.f32 %v992_v8, %v817_v46 }
 0x152   : > { %v2223_v41 = vpop.f32.mrb[51].mxu0 }
 0x154   : > { %v1103_v53 = vpop.f32.mrb[52].mxu1 }
 0x155   : > { %v1142_v54 = vadd.f32 %v1103_v53, %v996_v60  ;;  %v2194_v14 = vpop.f32.mrb[53].mxu1 }
 0x156   : > { %v1106_v55 = vpop.f32.mrb[54].mxu1 }
 0x157   : > { %v1291_v43 = vpop.f32.mrb[52].mxu0  ;;  %v1322_v56 = vadd.f32 %v1283_v37, %v1142_v54  ;;  %v1143_v59 = vadd.f32 %v1106_v55, %v997_v4  ;;  %v2195_v62 = vpop.f32.mrb[55].mxu1 }
 0x158   : > { %v2226_v0 = vpop.f32.mrb[53].mxu0 }
 0x159   : > { %v1294_v47 = vpop.f32.mrb[54].mxu0  ;;  %v1323_v3 = vadd.f32 %v1286_v38, %v1143_v59 }
 0x15a   : > { %v2227_v58 = vpop.f32.mrb[55].mxu0 }
 0x15c   : > { %v1111_v7 = vpop.f32.mrb[56].mxu1 }
 0x15d   : > { %v1144_v10 = vadd.f32 %v1111_v7, %v998_v13  ;;  %v2198_v52 = vpop.f32.mrb[57].mxu1 }
 0x15e   : > { %v1114_v11 = vpop.f32.mrb[58].mxu1 }
 0x15f   : > { %v1299_v49 = vpop.f32.mrb[56].mxu0  ;;  %v2883_v61 = vadd.f32 %v1291_v43, %v1144_v10  ;;  %v1145_v12 = vadd.f32 %v1114_v11, %v999_v21  ;;  %v2199_v16 = vpop.f32.mrb[59].mxu1 }
 0x160   : > { %v2230_v60 = vpop.f32.mrb[57].mxu0 }
 0x161   : > { %v1302_v19 = vpop.f32.mrb[58].mxu0  ;;  %v2885_v20 = vadd.f32 %v1294_v47, %v1145_v12 }
 0x162   : > { %v2231_v63 = vpop.f32.mrb[59].mxu0 }
 0x164   : > { %v1119_v4 = vpop.f32.mrb[60].mxu1 }
 0x165   : > { %v1146_v22 = vadd.f32 %v1119_v4, %v1000_v15  ;;  %v2202_v2 = vpop.f32.mrb[61].mxu1 }
 0x166   : > { %v1122_v24 = vpop.f32.mrb[62].mxu1 }
 0x167   : > { %v1307_v9 = vpop.f32.mrb[60].mxu0  ;;  %v2887_v25 = vadd.f32 %v1299_v49, %v1146_v22  ;;  %v1147_v13 = vadd.f32 %v1122_v24, %v1001_v29  ;;  %v2203_v5 = vpop.f32.mrb[63].mxu1 }
 0x168   : > { %v2234_v26 = vpop.f32.mrb[61].mxu0 }
 0x169   : > { %v1310_v18 = vpop.f32.mrb[62].mxu0  ;;  %v2889_v27 = vadd.f32 %v1302_v19, %v1147_v13 }
 0x16a   : > { %v2235_v21 = vpop.f32.mrb[63].mxu0 }
 0x16c   : > { %v1127_v17 = vpop.f32.mrb[64].mxu1 }
 0x16d   : > { %v1148_v30 = vadd.f32 %v1127_v17, %v1002_v34  ;;  %v2206_v32 = vpop.f32.mrb[65].mxu1 }
 0x16e   : > { %v1130_v33 = vpop.f32.mrb[66].mxu1 }
 0x16f   : > { %v1315_v23 = vpop.f32.mrb[64].mxu0  ;;  %v2891_v6 = vadd.f32 %v1307_v9, %v1148_v30  ;;  %v1149_v15 = vadd.f32 %v1130_v33, %v1003_v57  ;;  %v2207_v28 = vpop.f32.mrb[67].mxu1 }
 0x170   : > { %v2238_v36 = vpop.f32.mrb[65].mxu0 }
 0x171   : > { %v1318_v39 = vpop.f32.mrb[66].mxu0  ;;  %v2893_v40 = vadd.f32 %v1310_v18, %v1149_v15 }
 0x172   : > { %v2239_v29 = vpop.f32.mrb[67].mxu0 }
 0x174   : > { %v1135_v8 = vpop.f32.mrb[68].mxu1 }
 0x175   : > { %v1150_v35 = vadd.f32 %v1135_v8, %v1004_v45  ;;  %v2210_v42 = vpop.f32.mrb[69].mxu1  ;;  %v2902_v45 = vld [vmem:[%s2953_s2] ss:$0 sm:$0xff] }
 0x176   : > { %v1138_v44 = vpop.f32.mrb[70].mxu1 }
 0x177   : > { %v1617_v31 = vpop.f32.mrb[68].mxu0  ;;  %v2895_v1 = vadd.f32 %v1315_v23, %v1150_v35  ;;  %v1151_v34 = vadd.f32 %v1138_v44, %v1005_v51  ;;  %v2211_v37 = vpop.f32.mrb[71].mxu1 }
 0x178   : > { %v2278_v46 = vpop.f32.mrb[69].mxu0 }
 0x179   : > { %v1620_v48 = vpop.f32.mrb[70].mxu0  ;;  %v2897_v50 = vadd.f32 %v1318_v39, %v1151_v34 }
 0x17a   : > { %v2279_v57 = vpop.f32.mrb[71].mxu0 }
 0x17c   : > { %v1471_v38 = vpop.f32.mrb[72].mxu1 }
 0x17d   : > { %v1510_v41 = vadd.f32 %v1471_v38, %v1322_v56  ;;  %v2250_v53 = vpop.f32.mrb[73].mxu1 }
 0x17e   : > { %v1474_v54 = vpop.f32.mrb[74].mxu1 }
 0x17f   : > { %v1625_v14 = vpop.f32.mrb[72].mxu0  ;;  %v1656_v55 = vadd.f32 %v1617_v31, %v1510_v41  ;;  %v1511_v43 = vadd.f32 %v1474_v54, %v1323_v3  ;;  %v2251_v51 = vpop.f32.mrb[75].mxu1 }
 0x180   : > { %v2282_v59 = vpop.f32.mrb[73].mxu0 }
 0x181   : > { %v1628_v62 = vpop.f32.mrb[74].mxu0  ;;  %v1673_v0 = vadd.f32 %v2902_v45, %v1656_v55  ;;  %v1657_v47 = vadd.f32 %v1620_v48, %v1511_v43 }
 0x182   : > { %v2283_v58 = vpop.f32.mrb[75].mxu0 }
 0x183   : > { %vm1683_vm8 = vcmp.ge.f32.partialorder %v1673_v0, 0.0  ;;  %v1693_v56 = vmul.f32 0.2, %v1673_v0  ;;  %v1674_v7 = vadd.f32 %v2902_v45, %v1657_v47 }
 0x184   : > { %v1479_v10 = vpop.f32.mrb[76].mxu1 }
 0x185   : > { %v1703_v52 = vsel %vm1683_vm8, %v1673_v0, %v1693_v56  ;;  %vm1684_vm9 = vcmp.ge.f32.partialorder %v1674_v7, 0.0  ;;  %v1694_v11 = vmul.f32 0.2, %v1674_v7  ;;  %v1512_v49 = vadd.f32 %v1479_v10, %v2883_v61  ;;  %v2254_v12 = vpop.f32.mrb[77].mxu1 }
 0x186   : > { %v1713_v3 = vmul.f32 1.4142135, %v1703_v52  ;;  %v1482_v16 = vpop.f32.mrb[78].mxu1 }
 0x187   : > { %v1633_v60 = vpop.f32.mrb[76].mxu0  ;;  %v1704_v19 = vsel %vm1684_vm9, %v1674_v7, %v1694_v11  ;;  %v1658_v63 = vadd.f32 %v1625_v14, %v1512_v49  ;;  %v1513_v4 = vadd.f32 %v1482_v16, %v2885_v20  ;;  %v2255_v22 = vpop.f32.mrb[79].mxu1 }
 0x188   : > { %v2286_v2 = vpop.f32.mrb[77].mxu0  ;;  %v1953_v24 = vpack.c.bf16 %v1713_v3, %v1713_v3  ;;  %v1714_v61 = vmul.f32 1.4142135, %v1704_v19 }
 0x189   : > { %v1636_v9 = vpop.f32.mrb[78].mxu0  ;;  %v1675_v13 = vadd.f32 %v2902_v45, %v1658_v63  ;;  %v1659_v5 = vadd.f32 %v1628_v62, %v1513_v4 }
 0x18a   : > { %v2287_v26 = vpop.f32.mrb[79].mxu0  ;;  %1764 = vst.msk [vmem:[%s2911_s21] sm:$0xf] %vm1763_vm10, %v1953_v24  ;;  %v1954_v18 = vpack.c.bf16 %v1714_v61, %v1714_v61 }
 0x18b   : > { %vm1685_vm11 = vcmp.ge.f32.partialorder %v1675_v13, 0.0  ;;  %v1695_v21 = vmul.f32 0.2, %v1675_v13  ;;  %v1676_v17 = vadd.f32 %v2902_v45, %v1659_v5 }
 0x18c   : > { %1765 = vst.msk [vmem:[%s2911_s21 + $0x4] sm:$0xf] %vm1763_vm10, %v1954_v18  ;;  %v1487_v30 = vpop.f32.mrb[80].mxu1 }
 0x18d   : > { %v1705_v20 = vsel %vm1685_vm11, %v1675_v13, %v1695_v21  ;;  %vm1686_vm12 = vcmp.ge.f32.partialorder %v1676_v17, 0.0  ;;  %v1696_v32 = vmul.f32 0.2, %v1676_v17  ;;  %v1514_v33 = vadd.f32 %v1487_v30, %v2887_v25  ;;  %v2258_v23 = vpop.f32.mrb[81].mxu1 }
 0x18e   : > { %v1715_v15 = vmul.f32 1.4142135, %v1705_v20  ;;  %v1490_v28 = vpop.f32.mrb[82].mxu1 }
 0x18f   : > { %v1641_v36 = vpop.f32.mrb[80].mxu0  ;;  %v1706_v39 = vsel %vm1686_vm12, %v1676_v17, %v1696_v32  ;;  %v1660_v29 = vadd.f32 %v1633_v60, %v1514_v33  ;;  %v1515_v8 = vadd.f32 %v1490_v28, %v2889_v27  ;;  %v2259_v35 = vpop.f32.mrb[83].mxu1 }
 0x190   : > { %v2290_v42 = vpop.f32.mrb[81].mxu0  ;;  %v1955_v44 = vpack.c.bf16 %v1715_v15, %v1715_v15  ;;  %v1716_v31 = vmul.f32 1.4142135, %v1706_v39 }
 0x191   : > { %v1644_v34 = vpop.f32.mrb[82].mxu0  ;;  %v1677_v37 = vadd.f32 %v2902_v45, %v1660_v29  ;;  %v1661_v46 = vadd.f32 %v1636_v9, %v1515_v8 }
 0x192   : > { %v2291_v48 = vpop.f32.mrb[83].mxu0  ;;  %1766 = vst.msk [vmem:[%s2911_s21 + $0x8] sm:$0xf] %vm1763_vm10, %v1955_v44  ;;  %v1956_v25 = vpack.c.bf16 %v1716_v31, %v1716_v31 }
 0x193   : > { %vm1687_vm13 = vcmp.ge.f32.partialorder %v1677_v37, 0.0  ;;  %v1697_v57 = vmul.f32 0.2, %v1677_v37  ;;  %v1678_v38 = vadd.f32 %v2902_v45, %v1661_v46 }
 0x194   : > { %1767 = vst.msk [vmem:[%s2911_s21 + $0xc] sm:$0xf] %vm1763_vm10, %v1956_v25  ;;  %v1495_v41 = vpop.f32.mrb[84].mxu1 }
 0x195   : > { %v1707_v27 = vsel %vm1687_vm13, %v1677_v37, %v1697_v57  ;;  %vm1688_vm14 = vcmp.ge.f32.partialorder %v1678_v38, 0.0  ;;  %v1698_v53 = vmul.f32 0.2, %v1678_v38  ;;  %v1516_v54 = vadd.f32 %v1495_v41, %v2891_v6  ;;  %v2262_v14 = vpop.f32.mrb[85].mxu1 }
 0x196   : > { %v1717_v55 = vmul.f32 1.4142135, %v1707_v27  ;;  %v1498_v43 = vpop.f32.mrb[86].mxu1 }
 0x197   : > { %v1649_v51 = vpop.f32.mrb[84].mxu0  ;;  %v1708_v59 = vsel %vm1688_vm14, %v1678_v38, %v1698_v53  ;;  %v1662_v62 = vadd.f32 %v1641_v36, %v1516_v54  ;;  %v1517_v0 = vadd.f32 %v1498_v43, %v2893_v40  ;;  %v2263_v47 = vpop.f32.mrb[87].mxu1 }
 0x198   : > { %v2294_v58 = vpop.f32.mrb[85].mxu0  ;;  %v1957_v56 = vpack.c.bf16 %v1717_v55, %v1717_v55  ;;  %v1718_v7 = vmul.f32 1.4142135, %v1708_v59 }
 0x199   : > { %v1652_v10 = vpop.f32.mrb[86].mxu0  ;;  %v1679_v52 = vadd.f32 %v2902_v45, %v1662_v62  ;;  %v1663_v11 = vadd.f32 %v1644_v34, %v1517_v0 }
 0x19a   : > { %v2295_v49 = vpop.f32.mrb[87].mxu0  ;;  %1768 = vst.msk [vmem:[%s2911_s21 + $0x10] sm:$0xf] %vm1763_vm10, %v1957_v56  ;;  %v1958_v6 = vpack.c.bf16 %v1718_v7, %v1718_v7 }
 0x19b   : > { %vm1689_vm15 = vcmp.ge.f32.partialorder %v1679_v52, 0.0  ;;  %v1699_v12 = vmul.f32 0.2, %v1679_v52  ;;  %v1680_v3 = vadd.f32 %v2902_v45, %v1663_v11 }
 0x19c   : > { %1769 = vst.msk [vmem:[%s2911_s21 + $0x14] sm:$0xf] %vm1763_vm10, %v1958_v6  ;;  %v1503_v16 = vpop.f32.mrb[88].mxu1 }
 0x19d   : > { %v1709_v40 = vsel %vm1689_vm15, %v1679_v52, %v1699_v12  ;;  %vm1690_vm0 = vcmp.ge.f32.partialorder %v1680_v3, 0.0  ;;  %v1700_v60 = vmul.f32 0.2, %v1680_v3  ;;  %v1518_v19 = vadd.f32 %v1503_v16, %v2895_v1  ;;  %v2266_v63 = vpop.f32.mrb[89].mxu1 }
 0x19e   : > { %v1719_v4 = vmul.f32 1.4142135, %v1709_v40  ;;  %v1506_v22 = vpop.f32.mrb[90].mxu1 }
 0x19f   : > { %v1710_v2 = vsel %vm1690_vm0, %v1680_v3, %v1700_v60  ;;  %v1664_v24 = vadd.f32 %v1649_v51, %v1518_v19  ;;  %v1519_v61 = vadd.f32 %v1506_v22, %v2897_v50  ;;  %v2267_v9 = vpop.f32.mrb[91].mxu1 }
 0x1a0   : > { %v1959_v13 = vpack.c.bf16 %v1719_v4, %v1719_v4  ;;  %v1720_v5 = vmul.f32 1.4142135, %v1710_v2 }
 0x1a1   : > { %v1681_v26 = vadd.f32 %v2902_v45, %v1664_v24  ;;  %v1665_v18 = vadd.f32 %v1652_v10, %v1519_v61 }
 0x1a2   : > { %1770 = vst.msk [vmem:[%s2911_s21 + $0x18] sm:$0xf] %vm1763_vm10, %v1959_v13  ;;  %v1960_v21 = vpack.c.bf16 %v1720_v5, %v1720_v5 }
 0x1a3   : > { %vm1691_vm1 = vcmp.ge.f32.partialorder %v1681_v26, 0.0  ;;  %v1701_v1 = vmul.f32 0.2, %v1681_v26  ;;  %v1682_v17 = vadd.f32 %v2902_v45, %v1665_v18 }
 0x1a4   : > { %1771 = vst.msk [vmem:[%s2911_s21 + $0x1c] sm:$0xf] %vm1763_vm10, %v1960_v21 }
 0x1a5   : > { %v1711_v30 = vsel %vm1691_vm1, %v1681_v26, %v1701_v1  ;;  %vm1692_vm2 = vcmp.ge.f32.partialorder %v1682_v17, 0.0  ;;  %v1702_v50 = vmul.f32 0.2, %v1682_v17 }
 0x1a6   : > { %v1721_v20 = vmul.f32 1.4142135, %v1711_v30 }
 0x1a7   : > { %v1712_v32 = vsel %vm1692_vm2, %v1682_v17, %v1702_v50 }
 0x1a8   : > { %v1961_v33 = vpack.c.bf16 %v1721_v20, %v1721_v20  ;;  %v1722_v23 = vmul.f32 1.4142135, %v1712_v32 }
 0x1aa   : > { %1772 = vst.msk [vmem:[%s2911_s21 + $0x20] sm:$0xf] %vm1763_vm10, %v1961_v33  ;;  %v1962_v15 = vpack.c.bf16 %v1722_v23, %v1722_v23 }
 0x1ac   : > { %1773 = vst.msk [vmem:[%s2911_s21 + $0x24] sm:$0xf] %vm1763_vm10, %v1962_v15 }
 0x1ad PF: > { %s13_s12 = sadd.s32 1, %s2381_s12  }
 0x1ae   : > { %p10_p4 = scmp.ge.s32.totalorder %s13_s12, 6  }
 0x1b0   :  { %12 = sbr.rel (!%p10_p4) target bundleno = 1 (0x1), region = 62 }

// kernel: forward.7
= control target key start
LH: loop header
LB: loop body
LE: loop exit
PB: predicated region body
PF: predicated region fallthrough
CT: control target
= control target key end

     0   :  { %s3918_s18 = smov 0   ;;  %s4971_s0 = inlined_call_operand.vmem [shape: bf16[4,110,128], index: 0, kind: input, shape index: {}]   ;;  %s4972_s1 = inlined_call_operand.vmem [shape: bf16[1152,64], index: 1, kind: input, shape index: {}]   ;;  %s4973_s2 = inlined_call_operand.vmem [shape: f32[1,64], index: 2, kind: input, shape index: {}]   ;;  %s4974_s3 = inlined_call_operand.vmem [shape: bf16[4,100,128], index: 3, kind: input, shape index: {}]   ;;  %s4975_s4 = inlined_call_operand.vmem [shape: bf16[512,64], index: 4, kind: input, shape index: {}]   ;;  %s4976_s5 = inlined_call_operand.vmem [shape: f32[4,80,64], index: 5, kind: output, shape index: {}]  }
   0x1 LB: > { %s2865_s19 = sadd.s32 4294967295, %s3884_s18   ;;  %p2869_p0 = scmp.ge.s32.totalorder %s3884_s18, 1  ;;  %s3884_s18 = sphi %s3918_s18, %s15_s18  }
   0x2   : > { %p197_p1 = scmp.lt.s32.totalorder %s3884_s18, 5 }
   0x4   : > { %p198_p2 = pnand %p2869_p0, %p197_p1 }
   0x5   : > { %v3738_v0 = vld [vmem:[%s4972_s1 + $0x40] sm:$0xff] (!%p198_p2)   ;;  %v3886_v1 = vmov (!%p198_p2), 0.0   ;;  %v3740_v3 = vld [vmem:[%s4972_s1 + $0x48] sm:$0xff] (!%p198_p2)   ;;  %vm3887_vm0 = vmmov (!%p198_p2), 0   ;;  %p230_p3 = scmp.lt.s32.totalorder (!%p198_p2), %s2865_s19, 3  ;;  %v3742_v5 = vld [vmem:[%s4972_s1 + $0x50] sm:$0xff] (!%p198_p2)  }
   0x6   : > { %201 = sbr.rel (%p198_p2) target bundleno = 514 (0x202), region = 40  ;;  %3185 = vmatprep.subr.bf16.mxu0 (!%p198_p2), %v3886_v1  ;;  %3293 = vmatprep.subr.bf16.mxu1 (!%p198_p2), %v3886_v1  ;;  %v3739_v2 = vld [vmem:[%s4972_s1 + $0xc0] sm:$0xff] (!%p198_p2)   ;;  %v3741_v4 = vld [vmem:[%s4972_s1 + $0xc8] sm:$0xff] (!%p198_p2)   ;;  %v3743_v6 = vld [vmem:[%s4972_s1 + $0xd0] sm:$0xff] (!%p198_p2)   ;;  %vm317_vm1 = vsmask.f32 (!%p198_p2), 7424 }
   0x7   : > { %3186 = vmatpush3.bf16.msra.mxu0 (!%p198_p2), %v3738_v0  ;;  %3201 = vmatprep.mubr.msk.bf16.mxu0 (!%p198_p2), %vm3887_vm0, %v3886_v1  ;;  %v3744_v7 = vld [vmem:[%s4972_s1 + $0x58] sm:$0xff] (!%p198_p2)   ;;  %v3746_v9 = vld [vmem:[%s4972_s1 + $0x60] sm:$0xff] (!%p198_p2)   ;;  %v3748_v15 = vld [vmem:[%s4972_s1 + $0x68] sm:$0xff] (!%p198_p2)   ;;  %vm634_vm2 = vcmask (!%p198_p2), 1046528   ;;  %vm1214_vm3 = vcmask (!%p198_p2), 1045504   ;;  %vm1794_vm6 = vcmask (!%p198_p2), 1044480  }
   0x8   : > { %3294 = vmatpush3.bf16.msra.mxu1 (!%p198_p2), %v3739_v2  ;;  %3187 = vmatprep.subr.bf16.mxu0 (!%p198_p2), %v3886_v1  ;;  %v3745_v8 = vld [vmem:[%s4972_s1 + $0xd8] sm:$0xff] (!%p198_p2)   ;;  %v3747_v10 = vld [vmem:[%s4972_s1 + $0xe0] sm:$0xff] (!%p198_p2)   ;;  %v3749_v16 = vld [vmem:[%s4972_s1 + $0xe8] sm:$0xff] (!%p198_p2)   ;;  %vm1004_vm4 = vsmask.f32 (!%p198_p2), 6400  ;;  %vm2787_vm8 = vcmask (!%p198_p2), 523264  }
   0x9   : > { %3295 = vmatprep.subr.bf16.mxu1 (!%p198_p2), %v3886_v1  ;;  %3309 = vmatprep.mubr.msk.bf16.mxu1 (!%p198_p2), %vm3887_vm0, %v3886_v1  ;;  %v3750_v19 = vld [vmem:[%s4972_s1 + $0x70] sm:$0xff] (!%p198_p2)   ;;  %v3752_v27 = vld [vmem:[%s4972_s1 + $0x78] sm:$0xff] (!%p198_p2)   ;;  %v3758_v34 = vld [vmem:[%s4972_s1 + $0x140] sm:$0xff] (!%p198_p2)   ;;  %vm1584_vm5 = vsmask.f32 (!%p198_p2), 5376 }
   0xa   : > { %v3751_v21 = vld [vmem:[%s4972_s1 + $0xf0] sm:$0xff] (!%p198_p2)   ;;  %v3753_v28 = vld [vmem:[%s4972_s1 + $0xf8] sm:$0xff] (!%p198_p2)   ;;  %v3760_v35 = vld [vmem:[%s4972_s1] sm:$0xff] (!%p198_p2)  }
   0xb   : > { %3188 = vmatpush3.bf16.msra.mxu0 (!%p198_p2), %v3740_v3  ;;  %v3759_v41 = vld [vmem:[%s4972_s1 + $0x148] sm:$0xff] (!%p198_p2)   ;;  %v3763_v51 = vld [vmem:[%s4972_s1 + $0x150] sm:$0xff] (!%p198_p2)   ;;  %v3767_v58 = vld [vmem:[%s4972_s1 + $0x158] sm:$0xff] (!%p198_p2)  }
   0xc   : > { %3296 = vmatpush3.bf16.msra.mxu1 (!%p198_p2), %v3741_v4  ;;  %3189 = vmatprep.subr.bf16.mxu0 (!%p198_p2), %v3886_v1  ;;  %v3764_v46 = vld [vmem:[%s4972_s1 + $0x8] sm:$0xff] (!%p198_p2)   ;;  %v3768_v53 = vld [vmem:[%s4972_s1 + $0x10] sm:$0xff] (!%p198_p2)   ;;  %v3769_v59 = vld [vmem:[%s4972_s1 + $0x18] sm:$0xff] (!%p198_p2)  }
   0xd   : > { %s4978_s19 = smov (!%p230_p3, %s2865_s19), 3  ;;  %3297 = vmatprep.subr.bf16.mxu1 %v3886_v1  ;;  %v3770_v60 = vld [vmem:[%s4972_s1 + $0x160] sm:$0xff]  }
   0xe   : > { %s3725_s7 = smul.u32 56, %s4978_s19  ;;  %v3773_v4 = vld [vmem:[%s4972_s1 + $0x20] sm:$0xff]  }
   0xf   : > { %3190 = vmatpush3.bf16.msra.mxu0 %v3742_v5  ;;  %s3726_s6 = smul.u32 52, %s4978_s19 }
  0x10   : > { %3298 = vmatpush3.bf16.msra.mxu1 %v3743_v6  ;;  %3191 = vmatprep.subr.bf16.mxu0 %v3886_v1  ;;  %s3968_s14 = scalar_lea.vmem %s4971_s0, %s3725_s7  ;;  %s3727_s21 = smul.u32 80, %s4978_s19 }
  0x11   : > { %3299 = vmatprep.subr.bf16.mxu1 %v3886_v1  ;;  %v246_v11 = vld [vmem:[%s3968_s14] sm:$0xf]  ;;  %v3980_v12 = vld [vmem:[%s3968_s14 + $0x4] sm:$0xf]  ;;  %v3986_v14 = vld [vmem:[%s3968_s14 + $0x8] sm:$0xff]   ;;  %s4219_s13 = scalar_lea.vmem %s4974_s3, %s3726_s6 }
  0x12   : > { %v3983_v13 = vcombine.low %v246_v11, %v3980_v12  ;;  %v782_v18 = vld [vmem:[%s3968_s14 + $0x4] sm:$0xe]  ;;  %v4002_v20 = vld [vmem:[%s3968_s14 + $0x8] sm:$0xf]  ;;  %v326_v24 = vshll.u32 %v3986_v14, 16  ;;  %v4014_v26 = vld [vmem:[%s3968_s14 + $0xc] sm:$0xff]   ;;  %s4933_s19 = scalar_lea.vmem %s4976_s5, %s3727_s21 }
  0x13   : > { %3192 = vmatpush3.bf16.msra.mxu0 %v3744_v7  ;;  %v4011_v25 = vcombine.low %v782_v18, %v4002_v20  ;;  %v4024_v31 = vld [vmem:[%s3968_s14 + $0x10] sm:$0xff]   ;;  %v838_v33 = vrot.slane %v4014_v26, 1  ;;  %v330_v37 = vshrl.u32 %v3986_v14, 16  ;;  %v4051_v44 = vld [vmem:[%s3968_s14 + $0x18] sm:$0xff]   ;;  %v4079_v56 = vld [vmem:[%s3968_s14 + $0x20] sm:$0xff]   ;;  %v636_v5 = vrot.slane %v3986_v14, 1 }
  0x14   : > { %3300 = vmatpush3.bf16.msra.mxu1 %v3745_v8  ;;  %3193 = vmatprep.subr.bf16.mxu0 %v3886_v1  ;;  %v321_v17 = vshll.u32 %v3983_v13, 16  ;;  %v319_v22 = vshrl.u32 %v3983_v13, 16  ;;  %v328_v30 = vrot.slane %v326_v24, 1  ;;  %v334_v38 = vshll.u32 %v4024_v31, 16  ;;  %v4042_v40 = vld [vmem:[%s3968_s14 + $0x14] sm:$0xff]   ;;  %v4069_v52 = vld [vmem:[%s3968_s14 + $0x1c] sm:$0xff]  }
  0x15   : > { %3301 = vmatprep.subr.bf16.mxu1 %v3886_v1  ;;  %v837_v32 = vrot.slane %v4011_v25, 1  ;;  %v840_v45 = vrot.slane %v4042_v40, 1  ;;  %v338_v48 = vshrl.u32 %v4024_v31, 16  ;;  %v342_v49 = vshll.u32 %v4051_v44, 16  ;;  %v4100_v2 = vld [vmem:[%s3968_s14 + $0x24] sm:$0xff]  }
  0x16   : > { %v323_v23 = vrot.slane %v321_v17, 1  ;;  %v332_v42 = vor.u32 %v330_v37, %v328_v30  ;;  %v336_v43 = vrot.slane %v334_v38, 1  ;;  %v842_v57 = vrot.slane %v4069_v52, 1  ;;  %v4103_v3 = vld [vmem:[%s3968_s14 + $0x28] ss:$0 sps:$4 sm:$0x11]  }
  0x17   : > { %3194 = vmatpush3.bf16.msra.mxu0 %v3746_v9  ;;  %v839_v39 = vsel %vm634_vm2, %v837_v32, %v838_v33  ;;  %v841_v50 = vsel %vm634_vm2, %v838_v33, %v840_v45  ;;  %v344_v55 = vrot.slane %v342_v49, 1  ;;  %v346_v62 = vshrl.u32 %v4051_v44, 16  ;;  %v3778_v17 = vld [vmem:[%s3968_s14 + $0x2c] ss:$0 sps:$4 sm:$0x11]  }
  0x18   : > { %3302 = vmatpush3.bf16.msra.mxu1 %v3747_v10  ;;  %3195 = vmatprep.subr.bf16.mxu0 %v3886_v1  ;;  %v324_v29 = vor.u32 %v323_v23, %v319_v22  ;;  %v337_v47 = vsel %vm317_vm1, %v332_v42, %v336_v43  ;;  %v340_v54 = vor.u32 %v338_v48, %v336_v43  ;;  %v350_v63 = vshll.u32 %v4079_v56, 16  ;;  %v3774_v10 = vld [vmem:[%s4972_s1 + $0x168] sm:$0xff]   ;;  %v3776_v22 = vld [vmem:[%s4972_s1 + $0x170] sm:$0xff]   ;;  %v1194_v32 = vld [vmem:[%s3968_s14 + $0x4] sm:$0xc] }
  0x19   : > { %3303 = vmatprep.subr.bf16.mxu1 %v3886_v1  ;;  %v843_v0 = vsel %vm634_vm2, %v840_v45, %v842_v57  ;;  %v638_v6 = vrot.slane %v4024_v31, 1  ;;  %v348_v7 = vor.u32 %v346_v62, %v344_v55  ;;  %v844_v9 = vrot.slane %v4100_v2, 1  ;;  %v3779_v23 = vld [vmem:[%s4972_s1 + $0x30] sm:$0xff]   ;;  %v614_v33 = vld [vmem:[%s3968_s14] sm:$0xe]  ;;  %v3788_v62 = vld [vmem:[%s4972_s1 + $0x1d8] sm:$0xff]  }
  0x1a   : > { %v329_v36 = vsel %vm317_vm1, %v324_v29, %v328_v30  ;;  %v345_v61 = vsel %vm317_vm1, %v340_v54, %v344_v55  ;;  %v352_v8 = vrot.slane %v350_v63, 1  ;;  %v3780_v29 = vld [vmem:[%s4972_s1 + $0x178] sm:$0xff]   ;;  %v2927_v37 = vcombine.low %v1194_v32, %v4002_v20  ;;  %v3783_v42 = vld [vmem:[%s4972_s1 + $0x1c0] sm:$0xff]   ;;  %v3786_v54 = vld [vmem:[%s4972_s1 + $0x1d0] sm:$0xff]  }
  0x1b   : > { %3196 = vmatpush3.bf16.msra.mxu0 %v3748_v15  ;;  %v4123_v11 = vsel %vm634_vm2, %v636_v5, %v638_v6  ;;  %v3775_v15 = vld [vmem:[%s4972_s1 + $0x28] sm:$0xff]   ;;  %v3781_v30 = vld [vmem:[%s4972_s1 + $0x38] sm:$0xff]   ;;  %v1216_v20 = vrot.slane %v4014_v26, 2  ;;  %v3785_v43 = vld [vmem:[%s4972_s1 + $0x80] sm:$0xff]   ;;  %v1006_v45 = vshrl.u32 %v4011_v25, 16  ;;  %v1014_v48 = vshrl.u32 %v4014_v26, 16 }
  0x1c   : > { %3304 = vmatpush3.bf16.msra.mxu1 %v3749_v16  ;;  %3197 = vmatprep.subr.bf16.mxu0 %v3886_v1  ;;  %v358_v16 = vshll.u32 %v4103_v3, 16  ;;  %v353_v18 = vsel %vm317_vm1, %v348_v7, %v352_v8  ;;  %v1017_v49 = vshll.u32 %v4014_v26, 16 }
  0x1d   : > { %3305 = vmatprep.subr.bf16.mxu1 %v3886_v1  ;;  %v1016_v26 = vrot.slane %v1014_v48, 1 }
  0x1e   : > { %v360_v24 = vrot.slane %v358_v16, 1  ;;  %v1222_v16 = vrot.slane %v4100_v2, 2 }
  0x1f   : > { %3198 = vmatpush3.bf16.msra.mxu0 %v3750_v19  ;;  %v354_v19 = vshrl.u32 %v4079_v56, 16 }
  0x20   : > { %3306 = vmatpush3.bf16.msra.mxu1 %v3751_v21  ;;  %3199 = vmatprep.subr.bf16.mxu0 %v3886_v1  ;;  %v845_v21 = vsel %vm634_vm2, %v842_v57, %v844_v9  ;;  %v3789_v57 = vld [vmem:[%s4972_s1 + $0x90] sm:$0xff]  }
  0x21   : > { %3307 = vmatprep.subr.bf16.mxu1 %v3886_v1 }
  0x23   : > { %3200 = vmatpush3.bf16.msra.mxu0 %v3752_v27  ;;  %v356_v27 = vor.u32 %v354_v19, %v352_v8 }
  0x24   : > { %3308 = vmatpush3.bf16.msra.mxu1 %v3753_v28  ;;  %3221 = vmatprep.subr.bf16.mxu0 %v3886_v1  ;;  %v846_v28 = vrot.slane %v3778_v17, 1  ;;  %v3793_v17 = vld [vmem:[%s4972_s1 + $0x1e8] sm:$0xff]  }
  0x25   : > { %3365 = vmatprep.subr.bf16.mxu1 %v3886_v1 }
  0x26   : > { %3202 = vmatmul.mubr.bf16.vlgmr.msra.gmra.mrb[0].mxu0 %v329_v36  ;;  %v847_v36 = vsel %vm634_vm2, %v844_v9, %v846_v28  ;;  %v1362_v9 = vld [vmem:[%s3968_s14 + $0x8] sm:$0xc]  ;;  %v4267_v28 = vld [vmem:[%s3968_s14 + $0x10] sm:$0xff]  }
  0x27   : > { %3310 = vmatmul.mubr.bf16.vlgmr.msra.gmra.mrb[0].mxu1 %v839_v39  ;;  %3205 = vmatprep.mubr.msk.bf16.mxu0 %vm3887_vm0, %v3886_v1 }
  0x28   : > { %3366 = vmatpush3.bf16.msra.mxu1 %v3758_v34  ;;  %3222 = vmatpush3.bf16.msra.mxu0 %v3760_v35  ;;  %v2895_v34 = vcombine.low %v614_v33, %v3980_v12  ;;  %v361_v35 = vsel %vm317_vm1, %v356_v27, %v360_v24  ;;  %v1215_v12 = vrot.slane %v2927_v37, 2  ;;  %v1035_v27 = vshll.u32 %v4069_v52, 16  ;;  %v3797_v33 = vld [vmem:[%s4972_s1 + $0xb0] sm:$0xff]   ;;  %v3798_v37 = vld [vmem:[%s4972_s1 + $0x1f8] sm:$0xff]  }
  0x29   : > { %3367 = vmatprep.subr.bf16.mxu1 %v3886_v1  ;;  %3313 = vmatprep.mubr.msk.bf16.mxu1 %vm3887_vm0, %v3886_v1 }
  0x2a   : > { %3223 = vmatprep.subr.bf16.mxu0 %v3886_v1  ;;  %v635_v38 = vrot.slane %v2895_v34, 1  ;;  %v1037_v32 = vrot.slane %v1035_v27, 2  ;;  %v3808_v27 = vld [vmem:[%s4972_s1 + $0x108] sm:$0xff]  }
  0x2c   : > { %3368 = vmatpush3.bf16.msra.mxu1 %v3759_v41  ;;  %3224 = vmatpush3.bf16.msra.mxu0 %v3764_v46  ;;  %v4164_v39 = vsel %vm634_vm2, %v635_v38, %v636_v5  ;;  %v1217_v41 = vsel %vm1214_vm3, %v1215_v12, %v1216_v20  ;;  %v1009_v46 = vshll.u32 %v4011_v25, 16  ;;  %v1008_v25 = vrot.slane %v1006_v45, 1  ;;  %v3792_v5 = vld [vmem:[%s4972_s1 + $0xa0] sm:$0xff]   ;;  %v3799_v45 = vld [vmem:[%s4972_s1 + $0xb8] sm:$0xff]  }
  0x2d   : > { %3369 = vmatprep.subr.bf16.mxu1 %v3886_v1  ;;  %3225 = vmatprep.subr.bf16.mxu0 %v3886_v1  ;;  %v1594_v12 = vshrl.u32 %v4267_v28, 16 }
  0x2e   : > { %3206 = vmatmul.mubr.bf16.gmra.mrb[4].mxu0 %v337_v47  ;;  %v3784_v47 = vld [vmem:[%s4972_s1 + $0x1c8] sm:$0xff]  }
  0x2f   : > { %3314 = vmatmul.mubr.bf16.gmra.mrb[4].mxu1 %v841_v50  ;;  %3209 = vmatprep.mubr.msk.bf16.mxu0 %vm3887_vm0, %v3886_v1  ;;  %v1218_v50 = vrot.slane %v4042_v40, 2 }
  0x30   : > { %3370 = vmatpush3.bf16.msra.mxu1 %v3763_v51  ;;  %3317 = vmatprep.mubr.msk.bf16.mxu1 %vm3887_vm0, %v3886_v1  ;;  %v1011_v51 = vrot.slane %v1009_v46, 2 }
  0x31   : > { %3371 = vmatprep.subr.bf16.mxu1 %v3886_v1  ;;  %3226 = vmatpush3.bf16.msra.mxu0 %v3768_v53  ;;  %v1019_v53 = vrot.slane %v1017_v49, 2  ;;  %v1219_v55 = vsel %vm1214_vm3, %v1216_v20, %v1218_v50  ;;  %v1044_v20 = vshll.u32 %v4100_v2, 16  ;;  %v4302_v49 = vld [vmem:[%s3968_s14 + $0x18] sm:$0xff]  }
  0x32   : > { %3227 = vmatprep.subr.bf16.mxu0 %v3886_v1 }
  0x34   : > { %3372 = vmatpush3.bf16.msra.mxu1 %v3767_v58  ;;  %v1012_v58 = vor.u32 %v1011_v51, %v1008_v25 }
  0x35   : > { %3373 = vmatprep.subr.bf16.mxu1 %v3886_v1  ;;  %3228 = vmatpush3.bf16.msra.mxu0 %v3769_v59  ;;  %v1020_v59 = vor.u32 %v1019_v53, %v1016_v26 }
  0x36   : > { %3210 = vmatmul.mubr.bf16.gmra.mrb[8].mxu0 %v345_v61  ;;  %3229 = vmatprep.subr.bf16.mxu0 %v3886_v1  ;;  %v1220_v61 = vrot.slane %v4069_v52, 2 }
  0x37   : > { %3318 = vmatmul.mubr.bf16.gmra.mrb[8].mxu1 %v843_v0  ;;  %3213 = vmatprep.mubr.msk.bf16.mxu0 %vm3887_vm0, %v3886_v1  ;;  %v4227_v63 = vsel %vm1004_vm4, %v1012_v58, %v1020_v59  ;;  %v1026_v0 = vshll.u32 %v4042_v40, 16  ;;  %v1603_v58 = vshrl.u32 %v4302_v49, 16 }
  0x38   : > { %3374 = vmatpush3.bf16.msra.mxu1 %v3770_v60  ;;  %3321 = vmatprep.mubr.msk.bf16.mxu1 %vm3887_vm0, %v3886_v1  ;;  %v1023_v60 = vshrl.u32 %v4042_v40, 16  ;;  %v1221_v8 = vsel %vm1214_vm3, %v1218_v50, %v1220_v61 }
  0x39   : > { %3230 = vmatpush3.bf16.msra.mxu0 %v3773_v4  ;;  %3375 = vmatprep.subr.bf16.mxu1 %v3886_v1  ;;  %v3791_v4 = vld [vmem:[%s4972_s1 + $0x1e0] sm:$0xff]   ;;  %v1028_v40 = vrot.slane %v1026_v0, 2  ;;  %v1418_v0 = vrot.slane %v4267_v28, 2 }
  0x3a   : > { %3231 = vmatprep.subr.bf16.mxu0 %v3886_v1  ;;  %v1025_v7 = vrot.slane %v1023_v60, 1  ;;  %v1606_v60 = vshll.u32 %v4302_v49, 16 }
  0x3c   : > { %3376 = vmatpush3.bf16.msra.mxu1 %v3774_v10  ;;  %v4240_v10 = vld [vmem:[%s3968_s14 + $0xc] sm:$0xf]  ;;  %v1029_v19 = vor.u32 %v1028_v40, %v1025_v7  ;;  %v1605_v40 = vrot.slane %v1603_v58, 2 }
  0x3d   : > { %3232 = vmatpush3.bf16.msra.mxu0 %v3775_v15  ;;  %3377 = vmatprep.subr.bf16.mxu1 %v3886_v1  ;;  %v1032_v15 = vshrl.u32 %v4069_v52, 16  ;;  %v4328_v7 = vld [vmem:[%s3968_s14 + $0x28] sm:$0xff]  }
  0x3e   : > { %3214 = vmatmul.mubr.bf16.gmra.mrb[12].mxu0 %v353_v18  ;;  %3233 = vmatprep.subr.bf16.mxu0 %v3886_v1  ;;  %v3796_v18 = vld [vmem:[%s3968_s14 + $0x2c] ss:$0 sps:$4 sm:$0x33]  }
  0x3f   : > { %3322 = vmatmul.mubr.bf16.gmra.mrb[12].mxu1 %v845_v21  ;;  %3217 = vmatprep.mubr.msk.bf16.mxu0 %vm3887_vm0, %v3886_v1  ;;  %v3794_v21 = vld [vmem:[%s4972_s1 + $0xa8] sm:$0xff]   ;;  %v1034_v24 = vrot.slane %v1032_v15, 1  ;;  %v1224_v52 = vrot.slane %v3796_v18, 2  ;;  %v1050_v51 = vshrl.u32 %v3796_v18, 16  ;;  %v1053_v26 = vshll.u32 %v3796_v18, 16 }
  0x40   : > { %3325 = vmatprep.mubr.msk.bf16.mxu1 %vm3887_vm0, %v3886_v1  ;;  %3378 = vmatpush3.bf16.msra.mxu1 %v3776_v22  ;;  %v4259_v22 = vcombine.low %v1362_v9, %v4240_v10  ;;  %v1420_v9 = vrot.slane %v4302_v49, 2  ;;  %v1608_v18 = vrot.slane %v1606_v60, 3  ;;  %v3817_v60 = vld [vmem:[%s4972_s1 + $0x128] sm:$0xff]  }
  0x41   : > { %3234 = vmatpush3.bf16.msra.mxu0 %v3779_v23  ;;  %3379 = vmatprep.subr.bf16.mxu1 %v3886_v1  ;;  %v4263_v23 = vsel %vm1004_vm4, %v1020_v59, %v1029_v19 }
  0x42   : > { %3235 = vmatprep.subr.bf16.mxu0 %v3886_v1  ;;  %v1586_v34 = vshrl.u32 %v4259_v22, 16  ;;  %v1589_v38 = vshll.u32 %v4259_v22, 16 }
  0x44   : > { %3380 = vmatpush3.bf16.msra.mxu1 %v3780_v29  ;;  %v1223_v29 = vsel %vm1214_vm3, %v1220_v61, %v1222_v16  ;;  %v1588_v46 = vrot.slane %v1586_v34, 2  ;;  %v1591_v48 = vrot.slane %v1589_v38, 3 }
  0x45   : > { %3236 = vmatpush3.bf16.msra.mxu0 %v3781_v30  ;;  %3437 = vmatprep.subr.bf16.mxu1 %v3886_v1  ;;  %v3795_v30 = vld [vmem:[%s4972_s1 + $0x1f0] sm:$0xff]  }
  0x46   : > { %3218 = vmatmul.mubr.bf16.gmra.mrb[16].mxu0 %v361_v35  ;;  %3257 = vmatprep.subr.bf16.mxu0 %v3886_v1  ;;  %v1038_v35 = vor.u32 %v1037_v32, %v1034_v24  ;;  %v3804_v24 = vld [vmem:[%s4975_s4 + $0x48] sm:$0xff]   ;;  %v1798_v32 = vrot.slane %v4302_v49, 3  ;;  %v3813_v49 = vld [vmem:[%s4975_s4 + $0x60] sm:$0xff]  }
  0x47   : > { %3326 = vmatmul.mubr.bf16.gmra.mrb[16].mxu1 %v847_v36  ;;  %3237 = vmatprep.mubr.msk.bf16.mxu0 %vm3887_vm0, %v3886_v1  ;;  %v1041_v36 = vshrl.u32 %v4100_v2, 16  ;;  %v1225_v2 = vsel %vm1214_vm3, %v1222_v16, %v1224_v52 }
  0x48   : > { %3381 = vmatprep.mubr.msk.bf16.mxu1 %vm3887_vm0, %v3886_v1 }
  0x4e   : > { %3238 = vmatmul.mubr.bf16.vlgmr.msra.gmra.mrb[20].mxu0 %v3983_v13  ;;  %v3787_v13 = vld [vmem:[%s4972_s1 + $0x88] sm:$0xff]  }
  0x4f   : > { %3382 = vmatmul.mubr.bf16.vlgmr.msra.gmra.mrb[20].mxu1 %v1217_v41  ;;  %3241 = vmatprep.mubr.msk.bf16.mxu0 %vm3887_vm0, %v3886_v1  ;;  %v1597_v41 = vshll.u32 %v4267_v28, 16 }
  0x50   : > { %3438 = vmatpush3.bf16.msra.mxu1 %v3783_v42  ;;  %3258 = vmatpush3.bf16.msra.mxu0 %v3785_v43  ;;  %v4293_v42 = vsel %vm1004_vm4, %v1029_v19, %v1038_v35  ;;  %v1043_v43 = vrot.slane %v1041_v36, 1  ;;  %v4340_v19 = vsel %vm1214_vm3, %v1418_v0, %v1420_v9 }
  0x51   : > { %3439 = vmatprep.subr.bf16.mxu1 %v3886_v1  ;;  %3385 = vmatprep.mubr.msk.bf16.mxu1 %vm3887_vm0, %v3886_v1  ;;  %v1599_v25 = vrot.slane %v1597_v41, 3  ;;  %v640_v41 = vrot.slane %v4051_v44, 1 }
  0x52   : > { %3259 = vmatprep.subr.bf16.mxu0 %v3886_v1 }
  0x54   : > { %3440 = vmatpush3.bf16.msra.mxu1 %v3784_v47  ;;  %3260 = vmatpush3.bf16.msra.mxu0 %v3787_v13  ;;  %v1046_v47 = vrot.slane %v1044_v20, 2  ;;  %v1596_v13 = vrot.slane %v1594_v12, 2  ;;  %v3811_v12 = vld [vmem:[%s4972_s1 + $0x110] sm:$0xff]  }
  0x55   : > { %3441 = vmatprep.subr.bf16.mxu1 %v3886_v1  ;;  %3261 = vmatprep.subr.bf16.mxu0 %v3886_v1 }
  0x56   : > { %3242 = vmatmul.mubr.bf16.gmra.mrb[24].mxu0 %v3986_v14  ;;  %v3790_v14 = vld [vmem:[%s4972_s1 + $0x98] sm:$0xff]   ;;  %v1047_v50 = vor.u32 %v1046_v47, %v1043_v43  ;;  %v1600_v59 = vor.u32 %v1599_v25, %v1596_v13  ;;  %v1621_v43 = vshrl.u32 %v4328_v7, 16  ;;  %v3819_v47 = vld [vmem:[%s3968_s14 + $0x30] ss:$0 sps:$4 sm:$0x77]  }
  0x57   : > { %3386 = vmatmul.mubr.bf16.gmra.mrb[24].mxu1 %v1219_v55  ;;  %3245 = vmatprep.mubr.msk.bf16.mxu0 %vm3887_vm0, %v3886_v1  ;;  %v1055_v55 = vrot.slane %v1053_v26, 2  ;;  %v1802_v26 = vrot.slane %v4328_v7, 3 }
  0x58   : > { %3442 = vmatpush3.bf16.msra.mxu1 %v3786_v54  ;;  %3389 = vmatprep.mubr.msk.bf16.mxu1 %vm3887_vm0, %v3886_v1  ;;  %v4306_v53 = vsel %vm1004_vm4, %v1038_v35, %v1047_v50  ;;  %v1052_v54 = vrot.slane %v1050_v51, 1 }
  0x59   : > { %3443 = vmatprep.subr.bf16.mxu1 %v3886_v1  ;;  %3262 = vmatpush3.bf16.msra.mxu0 %v3789_v57  ;;  %v1592_v57 = vor.u32 %v1591_v48, %v1588_v46  ;;  %v1624_v46 = vshll.u32 %v4328_v7, 16  ;;  %v641_v48 = vsel %vm634_vm2, %v638_v6, %v640_v41 }
  0x5a   : > { %3263 = vmatprep.subr.bf16.mxu0 %v3886_v1  ;;  %v1056_v61 = vor.u32 %v1055_v55, %v1052_v54  ;;  %v642_v54 = vrot.slane %v4079_v56, 1 }
  0x5b   : > { %v1626_v51 = vrot.slane %v1624_v46, 3 }
  0x5c   : > { %3444 = vmatpush3.bf16.msra.mxu1 %v3788_v62  ;;  %v1417_v62 = vrot.slane %v4259_v22, 2 }
  0x5d   : > { %3445 = vmatprep.subr.bf16.mxu1 %v3886_v1  ;;  %3264 = vmatpush3.bf16.msra.mxu0 %v3790_v14  ;;  %v4318_v14 = vld [vmem:[%s3968_s14 + $0x20] sm:$0xff]  }
  0x5e   : > { %3246 = vmatmul.mubr.bf16.gmra.mrb[28].mxu0 %v4024_v31  ;;  %3265 = vmatprep.subr.bf16.mxu0 %v3886_v1  ;;  %v4335_v15 = vsel %vm1214_vm3, %v1417_v62, %v1418_v0  ;;  %v1422_v16 = vrot.slane %v4318_v14, 2  ;;  %v1615_v34 = vshll.u32 %v4318_v14, 16  ;;  %v1800_v38 = vrot.slane %v4318_v14, 3  ;;  %v3815_v31 = vld [vmem:[%s4972_s1 + $0x120] sm:$0xff]  }
  0x5f   : > { %3390 = vmatmul.mubr.bf16.gmra.mrb[28].mxu1 %v1221_v8  ;;  %3249 = vmatprep.mubr.msk.bf16.mxu0 %vm3887_vm0, %v3886_v1  ;;  %v4331_v8 = vsel %vm1004_vm4, %v1047_v50, %v1056_v61  ;;  %v1623_v50 = vrot.slane %v1621_v43, 2  ;;  %v3818_v61 = vld [vmem:[%s4975_s4 + $0x70] sm:$0xff]   ;;  %v643_v62 = vsel %vm634_vm2, %v640_v41, %v642_v54  ;;  %v4440_v0 = vld [vmem:[%s4219_s13] sm:$0xff]  }
  0x60   : > { %3446 = vmatpush3.bf16.msra.mxu1 %v3791_v4  ;;  %3393 = vmatprep.mubr.msk.bf16.mxu1 %vm3887_vm0, %v3886_v1  ;;  %v3803_v4 = vld [vmem:[%s4975_s4 + $0x40] sm:$0xff]   ;;  %v4344_v22 = vsel %vm1214_vm3, %v1420_v9, %v1422_v16  ;;  %v4383_v20 = vsel %vm1794_vm6, %v1798_v32, %v1800_v38  ;;  %v4418_v55 = vsel %vm1794_vm6, %v1800_v38, %v1802_v26  ;;  %v1804_v9 = vrot.slane %v3819_v47, 3 }
  0x61   : > { %3266 = vmatpush3.bf16.msra.mxu0 %v3792_v5  ;;  %3447 = vmatprep.subr.bf16.mxu1 %v3886_v1  ;;  %v3805_v5 = vld [vmem:[%s4972_s1 + $0x100] sm:$0xff]   ;;  %v1627_v58 = vor.u32 %v1626_v51, %v1623_v50 }
  0x62   : > { %3267 = vmatprep.subr.bf16.mxu0 %v3886_v1  ;;  %v3827_v41 = vld [vmem:[%s4972_s1 + $0x180] sm:$0xff]  }
  0x64   : > { %3448 = vmatpush3.bf16.msra.mxu1 %v3793_v17  ;;  %v1601_v17 = vsel %vm1584_vm5, %v1592_v57, %v1600_v59 }
  0x65   : > { %3268 = vmatpush3.bf16.msra.mxu0 %v3794_v21  ;;  %3449 = vmatprep.subr.bf16.mxu1 %v3886_v1  ;;  %v1424_v21 = vrot.slane %v4328_v7, 2 }
  0x66   : > { %3250 = vmatmul.mubr.bf16.gmra.mrb[32].mxu0 %v4051_v44  ;;  %3269 = vmatprep.subr.bf16.mxu0 %v3886_v1  ;;  %v3812_v44 = vld [vmem:[%s4972_s1 + $0x118] sm:$0xff]  }
  0x67   : > { %3394 = vmatmul.mubr.bf16.gmra.mrb[32].mxu1 %v1223_v29  ;;  %3253 = vmatprep.mubr.msk.bf16.mxu0 %vm3887_vm0, %v3886_v1  ;;  %v1612_v29 = vshrl.u32 %v4318_v14, 16 }
  0x68   : > { %3397 = vmatprep.mubr.msk.bf16.mxu1 %vm3887_vm0, %v3886_v1  ;;  %3450 = vmatpush3.bf16.msra.mxu1 %v3795_v30  ;;  %v4357_v30 = vsel %vm1214_vm3, %v1422_v16, %v1424_v21  ;;  %v4449_v16 = vsel %vm1794_vm6, %v1802_v26, %v1804_v9  ;;  %v3832_v26 = vld [vmem:[%s4975_s4 + $0x18] sm:$0xff]  }
  0x69   : > { %3270 = vmatpush3.bf16.msra.mxu0 %v3797_v33  ;;  %3451 = vmatprep.subr.bf16.mxu1 %v3886_v1  ;;  %v1609_v33 = vor.u32 %v1608_v18, %v1605_v40  ;;  %v1614_v35 = vrot.slane %v1612_v29, 2  ;;  %v3820_v40 = vld [vmem:[%s4972_s1 + $0x130] sm:$0xff]   ;;  %v2063_v29 = vshll.u32 %v4440_v0, 16 }
  0x6a   : > { %3271 = vmatprep.subr.bf16.mxu0 %v3886_v1 }
  0x6b   : > { %v1610_v36 = vsel %vm1584_vm5, %v1600_v59, %v1609_v33  ;;  %v1633_v59 = vshll.u32 %v3819_v47, 16 }
  0x6c   : > { %3452 = vmatpush3.bf16.msra.mxu1 %v3798_v37  ;;  %v1617_v37 = vrot.slane %v1615_v34, 3  ;;  %v2065_v34 = vrot.slane %v2063_v29, 1 }
  0x6d   : > { %3272 = vmatpush3.bf16.msra.mxu0 %v3799_v45  ;;  %3509 = vmatprep.subr.bf16.mxu1 %v3886_v1 }
  0x6e   : > { %3254 = vmatmul.mubr.bf16.gmra.mrb[36].mxu0 %v4079_v56  ;;  %3329 = vmatprep.subr.bf16.mxu0 %v3886_v1  ;;  %v1618_v45 = vor.u32 %v1617_v37, %v1614_v35  ;;  %v3816_v56 = vld [vmem:[%s4975_s4 + $0x68] sm:$0xff]   ;;  %v4479_v37 = vld [vmem:[%s4219_s13 + $0x10] sm:$0xff]  }
  0x6f   : > { %3398 = vmatmul.mubr.bf16.gmra.mrb[36].mxu1 %v1225_v2  ;;  %3273 = vmatprep.mubr.msk.bf16.mxu0 %vm3887_vm0, %v3886_v1  ;;  %v1774_v2 = vld [vmem:[%s3968_s14 + $0x8] sm:$0x8] }
  0x70   : > { %3453 = vmatprep.mubr.msk.bf16.mxu1 %vm3887_vm0, %v3886_v1  ;;  %v2959_v13 = vcombine.low %v1774_v2, %v4240_v10  ;;  %v1619_v25 = vsel %vm1584_vm5, %v1609_v33, %v1618_v45  ;;  %v1630_v10 = vshrl.u32 %v3819_v47, 16  ;;  %v2061_v33 = vshrl.u32 %v4440_v0, 16  ;;  %v4500_v2 = vld [vmem:[%s4219_s13 + $0x18] sm:$0xff]  }
  0x71   : > { %v2084_v50 = vshll.u32 %v4500_v2, 16 }
  0x72   : > { %v1795_v6 = vrot.slane %v2959_v13, 3  ;;  %v1632_v14 = vrot.slane %v1630_v10, 2  ;;  %v2066_v35 = vor.u32 %v2065_v34, %v2061_v33  ;;  %v3833_v13 = vld [vmem:[%s4972_s1 + $0x190] sm:$0xff]   ;;  %v2088_v10 = vshrl.u32 %v4500_v2, 16  ;;  %v3850_v33 = vld [vmem:[%s4975_s4 + $0x98] sm:$0xff]   ;;  %v3854_v34 = vld [vmem:[%s4972_s1 + $0x220] sm:$0xff]  }
  0x73   : > { %v2086_v51 = vrot.slane %v2084_v50, 1  ;;  %v3870_v50 = vld [vmem:[%s4975_s4 + $0xd8] sm:$0xff]  }
  0x76   : > { %3274 = vmatmul.mubr.bf16.vlgmr.msra.gmra.mrb[40].mxu0 %v4164_v39  ;;  %v1796_v39 = vrot.slane %v4267_v28, 3  ;;  %v3807_v28 = vld [vmem:[%s4975_s4 + $0x50] sm:$0xff]  }
  0x77   : > { %3454 = vmatmul.mubr.bf16.vlgmr.msra.gmra.mrb[40].mxu1 %v1601_v17  ;;  %3277 = vmatprep.mubr.msk.bf16.mxu0 %vm3887_vm0, %v3886_v1  ;;  %v644_v17 = vrot.slane %v4103_v3, 1  ;;  %v3822_v3 = vld [vmem:[%s4972_s1 + $0x138] sm:$0xff]  }
  0x78   : > { %3510 = vmatpush3.bf16.msra.mxu1 %v3803_v4  ;;  %3330 = vmatpush3.bf16.msra.mxu0 %v3805_v5  ;;  %v4368_v52 = vsel %vm1794_vm6, %v1796_v39, %v1798_v32  ;;  %v4423_v57 = vsel %vm1794_vm6, %v1795_v6, %v1796_v39  ;;  %v1628_v4 = vsel %vm1584_vm5, %v1618_v45, %v1627_v58  ;;  %v1635_v5 = vrot.slane %v1633_v59, 3 }
  0x79   : > { %3511 = vmatprep.subr.bf16.mxu1 %v3886_v1  ;;  %3457 = vmatprep.mubr.msk.bf16.mxu1 %vm3887_vm0, %v3886_v1  ;;  %v645_v39 = vsel %vm634_vm2, %v642_v54, %v644_v17  ;;  %v2076_v45 = vshll.u32 %v4479_v37, 16  ;;  %v3835_v54 = vld [vmem:[%s4975_s4 + $0x20] sm:$0xff]   ;;  %v2090_v59 = vor.u32 %v2088_v10, %v2086_v51 }
  0x7a   : > { %3331 = vmatprep.subr.bf16.mxu0 %v3886_v1  ;;  %v1636_v18 = vor.u32 %v1635_v5, %v1632_v14  ;;  %v4745_v10 = vld [vmem:[%s4219_s13 + $0x24] sm:$0xff]  }
  0x7b   : > { %v2078_v47 = vrot.slane %v2076_v45, 1  ;;  %v4683_v45 = vld [vmem:[%s4219_s13 + $0xc] sm:$0xff]  }
  0x7c   : > { %3512 = vmatpush3.bf16.msra.mxu1 %v3804_v24  ;;  %3332 = vmatpush3.bf16.msra.mxu0 %v3808_v27  ;;  %v3821_v24 = vld [vmem:[%s4975_s4 + $0x78] sm:$0xff]   ;;  %v4460_v27 = vld [vmem:[%s4219_s13 + $0x8] sm:$0xff]   ;;  %v1637_v32 = vsel %vm1584_vm5, %v1627_v58, %v1636_v18 }
  0x7d   : > { %3513 = vmatprep.subr.bf16.mxu1 %v3886_v1  ;;  %3333 = vmatprep.subr.bf16.mxu0 %v3886_v1  ;;  %v2072_v43 = vshrl.u32 %v4460_v27, 16 }
  0x7e   : > { %3278 = vmatmul.mubr.bf16.gmra.mrb[44].mxu0 %v4123_v11  ;;  %v3810_v11 = vld [vmem:[%s4975_s4 + $0x58] sm:$0xff]  }
  0x7f   : > { %3458 = vmatmul.mubr.bf16.gmra.mrb[44].mxu1 %v1610_v36  ;;  %3281 = vmatprep.mubr.msk.bf16.mxu0 %vm3887_vm0, %v3886_v1 }
  0x80   : > { %3514 = vmatpush3.bf16.msra.mxu1 %v3807_v28  ;;  %3461 = vmatprep.mubr.msk.bf16.mxu1 %vm3887_vm0, %v3886_v1  ;;  %v2068_v28 = vshll.u32 %v4460_v27, 16 }
  0x81   : > { %3515 = vmatprep.subr.bf16.mxu1 %v3886_v1  ;;  %3334 = vmatpush3.bf16.msra.mxu0 %v3811_v12  ;;  %v3825_v12 = vld [vmem:[%s4975_s4] sm:$0xff]  }
  0x82   : > { %3335 = vmatprep.subr.bf16.mxu0 %v3886_v1  ;;  %v2070_v36 = vrot.slane %v2068_v28, 1  ;;  %v3855_v28 = vld [vmem:[%s4975_s4 + $0xa8] sm:$0xff]  }
  0x84   : > { %3516 = vmatpush3.bf16.msra.mxu1 %v3810_v11  ;;  %v2071_v38 = vsel %vm317_vm1, %v2066_v35, %v2070_v36  ;;  %v3826_v11 = vld [vmem:[%s4975_s4 + $0x8] sm:$0xff]   ;;  %v2074_v46 = vor.u32 %v2072_v43, %v2070_v36  ;;  %v3858_v35 = vld [vmem:[%s3968_s14 + $0x30] ss:$0 sps:$4 sm:$0x33]  }
  0x85   : > { %3517 = vmatprep.subr.bf16.mxu1 %v3886_v1  ;;  %3336 = vmatpush3.bf16.msra.mxu0 %v3812_v44  ;;  %v3830_v44 = vld [vmem:[%s4972_s1 + $0x188] sm:$0xff]   ;;  %v3857_v36 = vld [vmem:[%s4975_s4 + $0xb0] sm:$0xff]  }
  0x86   : > { %3282 = vmatmul.mubr.bf16.gmra.mrb[48].mxu0 %v641_v48  ;;  %3337 = vmatprep.subr.bf16.mxu0 %v3886_v1  ;;  %v3829_v48 = vld [vmem:[%s4975_s4 + $0x10] sm:$0xff]   ;;  %v4680_v43 = vld [vmem:[%s4219_s13 + $0x4] sm:$0xfe]  }
  0x87   : > { %3462 = vmatmul.mubr.bf16.gmra.mrb[48].mxu1 %v1619_v25  ;;  %3285 = vmatprep.mubr.msk.bf16.mxu0 %vm3887_vm0, %v3886_v1  ;;  %v2411_v7 = vrot.slane %v4680_v43, 1 }
  0x88   : > { %3518 = vmatpush3.bf16.msra.mxu1 %v3813_v49  ;;  %3465 = vmatprep.mubr.msk.bf16.mxu1 %vm3887_vm0, %v3886_v1  ;;  %v2080_v49 = vshrl.u32 %v4479_v37, 16 }
  0x89   : > { %3338 = vmatpush3.bf16.msra.mxu0 %v3815_v31  ;;  %3519 = vmatprep.subr.bf16.mxu1 %v3886_v1  ;;  %v4526_v31 = vld [vmem:[%s4219_s13 + $0x20] sm:$0xff]  }
  0x8a   : > { %3339 = vmatprep.subr.bf16.mxu0 %v3886_v1  ;;  %v2082_v25 = vor.u32 %v2080_v49, %v2078_v47  ;;  %v2092_v58 = vshll.u32 %v4526_v31, 16  ;;  %v2096_v5 = vshrl.u32 %v4526_v31, 16 }
  0x8c   : > { %3520 = vmatpush3.bf16.msra.mxu1 %v3816_v56  ;;  %v2087_v6 = vsel %vm317_vm1, %v2082_v25, %v2086_v51  ;;  %v3837_v56 = vld [vmem:[%s4972_s1 + $0x1a0] sm:$0xff]  }
  0x8d   : > { %3340 = vmatpush3.bf16.msra.mxu0 %v3817_v60  ;;  %3521 = vmatprep.subr.bf16.mxu1 %v3886_v1  ;;  %v2094_v60 = vrot.slane %v2092_v58, 1 }
  0x8e   : > { %3286 = vmatmul.mubr.bf16.gmra.mrb[52].mxu0 %v643_v62  ;;  %3341 = vmatprep.subr.bf16.mxu0 %v3886_v1  ;;  %v3841_v62 = vld [vmem:[%s4219_s13 + $0x28] ss:$0 sps:$4 sm:$0x11]  }
  0x8f   : > { %3466 = vmatmul.mubr.bf16.gmra.mrb[52].mxu1 %v1628_v4  ;;  %3289 = vmatprep.mubr.msk.bf16.mxu0 %vm3887_vm0, %v3886_v1  ;;  %v2095_v14 = vsel %vm317_vm1, %v2090_v59, %v2094_v60  ;;  %v3840_v4 = vld [vmem:[%s4975_s4 + $0x30] sm:$0xff]   ;;  %v2100_v9 = vshll.u32 %v3841_v62, 16  ;;  %v2098_v17 = vor.u32 %v2096_v5, %v2094_v60  ;;  %v3873_v59 = vld [vmem:[%s4975_s4 + $0xe8] sm:$0xff]  }
  0x90   : > { %3469 = vmatprep.mubr.msk.bf16.mxu1 %vm3887_vm0, %v3886_v1  ;;  %3522 = vmatpush3.bf16.msra.mxu1 %v3818_v61  ;;  %v3838_v61 = vld [vmem:[%s4975_s4 + $0x28] sm:$0xff]  }
  0x91   : > { %3342 = vmatpush3.bf16.msra.mxu0 %v3820_v40  ;;  %3523 = vmatprep.subr.bf16.mxu1 %v3886_v1  ;;  %v3842_v40 = vld [vmem:[%s4972_s1 + $0x1b0] sm:$0xff]   ;;  %v2102_v18 = vrot.slane %v2100_v9, 1 }
  0x92   : > { %3343 = vmatprep.subr.bf16.mxu0 %v3886_v1 }
  0x93   : > { %v2103_v29 = vsel %vm317_vm1, %v2098_v17, %v2102_v18  ;;  %v2579_v18 = vshrl.u32 %v4680_v43, 16 }
  0x94   : > { %3524 = vmatpush3.bf16.msra.mxu1 %v3821_v24  ;;  %v3843_v24 = vld [vmem:[%s4975_s4 + $0x38] sm:$0xff]  }
  0x95   : > { %3344 = vmatpush3.bf16.msra.mxu0 %v3822_v3  ;;  %3545 = vmatprep.subr.bf16.mxu1 %v3886_v1  ;;  %v3845_v3 = vld [vmem:[%s4975_s4 + $0x80] sm:$0xff]  }
  0x96   : > { %3290 = vmatmul.mubr.bf16.gmra.mrb[56].mxu0 %v645_v39  ;;  %3401 = vmatprep.subr.bf16.mxu0 %v3886_v1  ;;  %v3847_v39 = vld [vmem:[%s4972_s1 + $0x200] sm:$0xff]  }
  0x97   : > { %3470 = vmatmul.mubr.bf16.gmra.mrb[56].mxu1 %v1637_v32  ;;  %3345 = vmatprep.mubr.msk.bf16.mxu0 %vm3887_vm0, %v3886_v1  ;;  %v3849_v32 = vld [vmem:[%s4972_s1 + $0x208] sm:$0xff]  }
  0x98   : > { %3525 = vmatprep.mubr.msk.bf16.mxu1 %vm3887_vm0, %v3886_v1 }
  0x9e   : > { %3346 = vmatmul.mubr.bf16.vlgmr.msra.gmra.mrb[60].mxu0 %v4227_v63  ;;  %v2079_v63 = vsel %vm317_vm1, %v2074_v46, %v2078_v47  ;;  %v3865_v46 = vld [vmem:[%s4975_s4 + $0xc0] sm:$0xff]   ;;  %v4699_v47 = vld [vmem:[%s4219_s13 + $0x14] sm:$0xff]  }
  0x9f   : > { %3526 = vmatmul.mubr.bf16.vlgmr.msra.gmra.mrb[60].mxu1 %v2071_v38  ;;  %3349 = vmatprep.mubr.msk.bf16.mxu0 %vm3887_vm0, %v3886_v1  ;;  %v1426_v38 = vrot.slane %v3858_v35, 2 }
  0xa0   : > { %3546 = vmatpush3.bf16.msra.mxu1 %v3825_v12  ;;  %3402 = vmatpush3.bf16.msra.mxu0 %v3827_v41  ;;  %v3860_v12 = vld [vmem:[%s4975_s4 + $0xb8] sm:$0xff]  }
  0xa1   : > { %3547 = vmatprep.subr.bf16.mxu1 %v3886_v1  ;;  %3529 = vmatprep.mubr.msk.bf16.mxu1 %vm3887_vm0, %v3886_v1  ;;  %v1427_v41 = vsel %vm1214_vm3, %v1424_v21, %v1426_v38  ;;  %v2412_v21 = vrot.slane %v4683_v45, 1 }
  0xa2   : > { %3403 = vmatprep.subr.bf16.mxu0 %v3886_v1 }
  0xa4   : > { %3548 = vmatpush3.bf16.msra.mxu1 %v3826_v11  ;;  %3404 = vmatpush3.bf16.msra.mxu0 %v3830_v44  ;;  %v2413_v11 = vsel %vm634_vm2, %v2411_v7, %v2412_v21  ;;  %v3866_v44 = vld [vmem:[%s4975_s4 + $0xc8] sm:$0xff]  }
  0xa5   : > { %3549 = vmatprep.subr.bf16.mxu1 %v3886_v1  ;;  %3405 = vmatprep.subr.bf16.mxu0 %v3886_v1 }
  0xa6   : > { %3350 = vmatmul.mubr.bf16.gmra.mrb[64].mxu0 %v4263_v23  ;;  %v3834_v23 = vld [vmem:[%s4972_s1 + $0x198] sm:$0xff]  }
  0xa7   : > { %3530 = vmatmul.mubr.bf16.gmra.mrb[64].mxu1 %v2079_v63  ;;  %3353 = vmatprep.mubr.msk.bf16.mxu0 %vm3887_vm0, %v3886_v1  ;;  %v3868_v63 = vld [vmem:[%s4975_s4 + $0xd0] sm:$0xff]  }
  0xa8   : > { %3550 = vmatpush3.bf16.msra.mxu1 %v3829_v48  ;;  %3533 = vmatprep.mubr.msk.bf16.mxu1 %vm3887_vm0, %v3886_v1  ;;  %v4717_v48 = vld [vmem:[%s4219_s13 + $0x1c] sm:$0xff]  }
  0xa9   : > { %3551 = vmatprep.subr.bf16.mxu1 %v3886_v1  ;;  %3406 = vmatpush3.bf16.msra.mxu0 %v3833_v13  ;;  %v2416_v49 = vrot.slane %v4717_v48, 1 }
  0xaa   : > { %3407 = vmatprep.subr.bf16.mxu0 %v3886_v1 }
  0xac   : > { %3552 = vmatpush3.bf16.msra.mxu1 %v3832_v26 }
  0xad   : > { %3553 = vmatprep.subr.bf16.mxu1 %v3886_v1  ;;  %3408 = vmatpush3.bf16.msra.mxu0 %v3834_v23 }
  0xae   : > { %3354 = vmatmul.mubr.bf16.gmra.mrb[68].mxu0 %v4293_v42  ;;  %3409 = vmatprep.subr.bf16.mxu0 %v3886_v1  ;;  %v3839_v42 = vld [vmem:[%s4972_s1 + $0x1a8] sm:$0xff]  }
  0xaf   : > { %3534 = vmatmul.mubr.bf16.gmra.mrb[68].mxu1 %v2087_v6  ;;  %3357 = vmatprep.mubr.msk.bf16.mxu0 %vm3887_vm0, %v3886_v1 }
  0xb0   : > { %3554 = vmatpush3.bf16.msra.mxu1 %v3835_v54  ;;  %3537 = vmatprep.mubr.msk.bf16.mxu1 %vm3887_vm0, %v3886_v1  ;;  %v3871_v54 = vld [vmem:[%s4975_s4 + $0xe0] sm:$0xff]  }
  0xb1   : > { %3410 = vmatpush3.bf16.msra.mxu0 %v3837_v56  ;;  %3555 = vmatprep.subr.bf16.mxu1 %v3886_v1  ;;  %v2418_v56 = vrot.slane %v4745_v10, 1 }
  0xb2   : > { %3411 = vmatprep.subr.bf16.mxu0 %v3886_v1 }
  0xb3   : > { %v2419_v5 = vsel %vm634_vm2, %v2416_v49, %v2418_v56 }
  0xb4   : > { %3556 = vmatpush3.bf16.msra.mxu1 %v3838_v61 }
  0xb5   : > { %3412 = vmatpush3.bf16.msra.mxu0 %v3839_v42  ;;  %3557 = vmatprep.subr.bf16.mxu1 %v3886_v1 }
  0xb6   : > { %3358 = vmatmul.mubr.bf16.gmra.mrb[72].mxu0 %v4306_v53  ;;  %3413 = vmatprep.subr.bf16.mxu0 %v3886_v1  ;;  %v3844_v53 = vld [vmem:[%s4972_s1 + $0x1b8] sm:$0xff]  }
  0xb7   : > { %3538 = vmatmul.mubr.bf16.gmra.mrb[72].mxu1 %v2095_v14  ;;  %3361 = vmatprep.mubr.msk.bf16.mxu0 %vm3887_vm0, %v3886_v1  ;;  %v3875_v14 = vld [vmem:[%s4219_s13 + $0x2c] ss:$0 sps:$4 sm:$0x11]  }
  0xb8   : > { %3541 = vmatprep.mubr.msk.bf16.mxu1 %vm3887_vm0, %v3886_v1  ;;  %3558 = vmatpush3.bf16.msra.mxu1 %v3840_v4 }
  0xb9   : > { %3414 = vmatpush3.bf16.msra.mxu0 %v3842_v40  ;;  %3559 = vmatprep.subr.bf16.mxu1 %v3886_v1  ;;  %v3874_v40 = vld [vmem:[%s4975_s4 + $0xf0] sm:$0xff]  }
  0xba   : > { %3415 = vmatprep.subr.bf16.mxu0 %v3886_v1 }
  0xbc   : > { %3560 = vmatpush3.bf16.msra.mxu1 %v3843_v24  ;;  %v2420_v24 = vrot.slane %v3875_v14, 1 }
  0xbd   : > { %3416 = vmatpush3.bf16.msra.mxu0 %v3844_v53  ;;  %3581 = vmatprep.subr.bf16.mxu1 %v3886_v1  ;;  %v2582_v53 = vshll.u32 %v4680_v43, 16 }
  0xbe   : > { %3362 = vmatmul.mubr.bf16.gmra.mrb[76].mxu0 %v4331_v8  ;;  %3473 = vmatprep.subr.bf16.mxu0 %v3886_v1  ;;  %v3846_v8 = vld [vmem:[%s4975_s4 + $0x88] sm:$0xff]  }
  0xbf   : > { %3542 = vmatmul.mubr.bf16.gmra.mrb[76].mxu1 %v2103_v29  ;;  %3417 = vmatprep.mubr.msk.bf16.mxu0 %vm3887_vm0, %v3886_v1  ;;  %v2587_v29 = vshrl.u32 %v4683_v45, 16  ;;  %v2584_v35 = vrot.slane %v2582_v53, 2 }
  0xc0   : > { %3561 = vmatprep.mubr.msk.bf16.mxu1 %vm3887_vm0, %v3886_v1 }
  0xc6   : > { %3418 = vmatmul.mubr.bf16.vlgmr.msra.gmra.mrb[80].mxu0 %v4335_v15  ;;  %v3848_v15 = vld [vmem:[%s4975_s4 + $0x90] sm:$0xff]  }
  0xc7   : > { %3562 = vmatmul.mubr.bf16.vlgmr.msra.gmra.mrb[60].mxu1 %v4440_v0  ;;  %3421 = vmatprep.mubr.msk.bf16.mxu0 %vm3887_vm0, %v3886_v1  ;;  %v3851_v0 = vld [vmem:[%s4972_s1 + $0x210] sm:$0xff]  }
  0xc8   : > { %3582 = vmatpush3.bf16.msra.mxu1 %v3845_v3  ;;  %3474 = vmatpush3.bf16.msra.mxu0 %v3847_v39  ;;  %v2590_v3 = vshll.u32 %v4683_v45, 16  ;;  %v2596_v39 = vshrl.u32 %v4699_v47, 16 }
  0xc9   : > { %3583 = vmatprep.subr.bf16.mxu1 %v3886_v1  ;;  %3565 = vmatprep.mubr.msk.bf16.mxu1 %vm3887_vm0, %v3886_v1 }
  0xca   : > { %3475 = vmatprep.subr.bf16.mxu0 %v3886_v1 }
  0xcc   : > { %3584 = vmatpush3.bf16.msra.mxu1 %v3846_v8  ;;  %3476 = vmatpush3.bf16.msra.mxu0 %v3849_v32  ;;  %v2599_v8 = vshll.u32 %v4699_v47, 16  ;;  %v2605_v32 = vshrl.u32 %v4717_v48, 16 }
  0xcd   : > { %3585 = vmatprep.subr.bf16.mxu1 %v3886_v1  ;;  %3477 = vmatprep.subr.bf16.mxu0 %v3886_v1 }
  0xce   : > { %3422 = vmatmul.mubr.bf16.gmra.mrb[84].mxu0 %v4340_v19  ;;  %v3852_v19 = vld [vmem:[%s4972_s1 + $0x218] sm:$0xff]   ;;  %v2607_v43 = vrot.slane %v2605_v32, 1 }
  0xcf   : > { %3566 = vmatmul.mubr.bf16.gmra.mrb[64].mxu1 %v4460_v27  ;;  %3425 = vmatprep.mubr.msk.bf16.mxu0 %vm3887_vm0, %v3886_v1  ;;  %v3853_v27 = vld [vmem:[%s4975_s4 + $0xa0] sm:$0xff]  }
  0xd0   : > { %3586 = vmatpush3.bf16.msra.mxu1 %v3848_v15  ;;  %3569 = vmatprep.mubr.msk.bf16.mxu1 %vm3887_vm0, %v3886_v1  ;;  %v2608_v15 = vshll.u32 %v4717_v48, 16 }
  0xd1   : > { %3587 = vmatprep.subr.bf16.mxu1 %v3886_v1  ;;  %3478 = vmatpush3.bf16.msra.mxu0 %v3851_v0 }
  0xd2   : > { %3479 = vmatprep.subr.bf16.mxu0 %v3886_v1  ;;  %v2610_v45 = vrot.slane %v2608_v15, 2 }
  0xd4   : > { %3588 = vmatpush3.bf16.msra.mxu1 %v3850_v33 }
  0xd5   : > { %3589 = vmatprep.subr.bf16.mxu1 %v3886_v1  ;;  %3480 = vmatpush3.bf16.msra.mxu0 %v3852_v19 }
  0xd6   : > { %3426 = vmatmul.mubr.bf16.gmra.mrb[88].mxu0 %v4344_v22  ;;  %3481 = vmatprep.subr.bf16.mxu0 %v3886_v1  ;;  %v3856_v22 = vld [vmem:[%s4972_s1 + $0x228] sm:$0xff]  }
  0xd7   : > { %3570 = vmatmul.mubr.bf16.gmra.mrb[68].mxu1 %v4479_v37  ;;  %3429 = vmatprep.mubr.msk.bf16.mxu0 %vm3887_vm0, %v3886_v1  ;;  %v3859_v37 = vld [vmem:[%s4972_s1 + $0x230] sm:$0xff]  }
  0xd8   : > { %3590 = vmatpush3.bf16.msra.mxu1 %v3853_v27  ;;  %3573 = vmatprep.mubr.msk.bf16.mxu1 %vm3887_vm0, %v3886_v1  ;;  %v2581_v27 = vrot.slane %v2579_v18, 1 }
  0xd9   : > { %3482 = vmatpush3.bf16.msra.mxu0 %v3854_v34  ;;  %3591 = vmatprep.subr.bf16.mxu1 %v3886_v1 }
  0xda   : > { %3483 = vmatprep.subr.bf16.mxu0 %v3886_v1 }
  0xdc   : > { %3592 = vmatpush3.bf16.msra.mxu1 %v3855_v28  ;;  %v2421_v28 = vsel %vm634_vm2, %v2418_v56, %v2420_v24 }
  0xdd   : > { %3484 = vmatpush3.bf16.msra.mxu0 %v3856_v22  ;;  %3593 = vmatprep.subr.bf16.mxu1 %v3886_v1 }
  0xde   : > { %3430 = vmatmul.mubr.bf16.gmra.mrb[92].mxu0 %v4357_v30  ;;  %3485 = vmatprep.subr.bf16.mxu0 %v3886_v1  ;;  %v3861_v30 = vld [vmem:[%s4972_s1 + $0x238] sm:$0xff]  }
  0xdf   : > { %3574 = vmatmul.mubr.bf16.gmra.mrb[72].mxu1 %v4500_v2  ;;  %3433 = vmatprep.mubr.msk.bf16.mxu0 %vm3887_vm0, %v3886_v1  ;;  %v2414_v2 = vrot.slane %v4699_v47, 1 }
  0xe0   : > { %3577 = vmatprep.mubr.msk.bf16.mxu1 %vm3887_vm0, %v3886_v1  ;;  %3594 = vmatpush3.bf16.msra.mxu1 %v3857_v36  ;;  %v2589_v36 = vrot.slane %v2587_v29, 1 }
  0xe1   : > { %3486 = vmatpush3.bf16.msra.mxu0 %v3859_v37  ;;  %3595 = vmatprep.subr.bf16.mxu1 %v3886_v1  ;;  %v2417_v23 = vsel %vm634_vm2, %v2414_v2, %v2416_v49  ;;  %v2592_v37 = vrot.slane %v2590_v3, 2 }
  0xe2   : > { %3487 = vmatprep.subr.bf16.mxu0 %v3886_v1 }
  0xe4   : > { %3596 = vmatpush3.bf16.msra.mxu1 %v3860_v12 }
  0xe5   : > { %3488 = vmatpush3.bf16.msra.mxu0 %v3861_v30  ;;  %3653 = vmatprep.subr.bf16.mxu1 %v3886_v1  ;;  %v2598_v30 = vrot.slane %v2596_v39, 1 }
  0xe6   : > { %3434 = vmatmul.mubr.bf16.gmra.mrb[96].mxu0 %v1427_v41  ;;  %3617 = vmatprep.subr.bf16.mxu0 %v3886_v1  ;;  %v2601_v41 = vrot.slane %v2599_v8, 2 }
  0xe7   : > { %3578 = vmatmul.mubr.bf16.gmra.mrb[76].mxu1 %v4526_v31  ;;  %3489 = vmatprep.mubr.msk.bf16.mxu0 %vm3887_vm0, %v3886_v1 }
  0xe8   : > { %3597 = vmatprep.mubr.msk.bf16.mxu1 %vm3887_vm0, %v3886_v1  ;;  %v2602_v47 = vor.u32 %v2601_v41, %v2598_v30 }
  0xee   : > { %3490 = vmatmul.mubr.bf16.vlgmr.msra.gmra.mrb[100].mxu0 %v4423_v57  ;;  %v2415_v57 = vsel %vm634_vm2, %v2412_v21, %v2414_v2  ;;  %v2585_v21 = vor.u32 %v2584_v35, %v2581_v27  ;;  %v2617_v2 = vshll.u32 %v4745_v10, 16 }
  0xef   : > { %3598 = vmatmul.mubr.bf16.vlgmr.msra.gmra.mrb[60].mxu1 %v2413_v11  ;;  %3493 = vmatprep.mubr.msk.bf16.mxu0 %vm3887_vm0, %v3886_v1  ;;  %v2593_v11 = vor.u32 %v2592_v37, %v2589_v36 }
  0xf0   : > { %3661 = vmatpush3.bf16.msra.mxu1 %v3865_v46  ;;  %3601 = vmatprep.mubr.msk.bf16.mxu1 %vm3887_vm0, %v3886_v1 }
  0xf1   : > { %3654 = vmatprep.subr.bf16.mxu1 %v3886_v1  ;;  %3618 = vmatpush3.bf16.msra.mxu0 %v3865_v46  ;;  %v2614_v46 = vshrl.u32 %v4745_v10, 16  ;;  %v2594_v49 = vsel %vm1004_vm4, %v2585_v21, %v2593_v11 }
  0xf2   : > { %3619 = vmatprep.subr.bf16.mxu0 %v3886_v1 }
  0xf4   : > { %3662 = vmatpush3.bf16.msra.mxu1 %v3866_v44 }
  0xf5   : > { %3655 = vmatprep.subr.bf16.mxu1 %v3886_v1  ;;  %3620 = vmatpush3.bf16.msra.mxu0 %v3866_v44  ;;  %v2611_v44 = vor.u32 %v2610_v45, %v2607_v43 }
  0xf6   : > { %3494 = vmatmul.mubr.bf16.gmra.mrb[104].mxu0 %v4368_v52  ;;  %3621 = vmatprep.subr.bf16.mxu0 %v3886_v1 }
  0xf7   : > { %3602 = vmatmul.mubr.bf16.gmra.mrb[64].mxu1 %v2415_v57  ;;  %3497 = vmatprep.mubr.msk.bf16.mxu0 %vm3887_vm0, %v3886_v1 }
  0xf8   : > { %3663 = vmatpush3.bf16.msra.mxu1 %v3868_v63  ;;  %3605 = vmatprep.mubr.msk.bf16.mxu1 %vm3887_vm0, %v3886_v1 }
  0xf9   : > { %v4730_v13 = vpop.f32.mrb[0].mxu0  ;;  %3656 = vmatprep.subr.bf16.mxu1 %v3886_v1  ;;  %3622 = vmatpush3.bf16.msra.mxu0 %v3868_v63 }
  0xfa   : > { %v4733_v52 = vpop.f32.mrb[0].mxu1  ;;  %v3203_v25 = vpop.f32.mrb[1].mxu0  ;;  %3623 = vmatprep.subr.bf16.mxu0 %v3886_v1 }
  0xfb   : > { %v3311_v51 = vpop.f32.mrb[1].mxu1  ;;  %v4736_v26 = vpop.f32.mrb[2].mxu0  ;;  %v2616_v25 = vrot.slane %v2614_v46, 1 }
  0xfc   : > { %v4738_v31 = vpop.f32.mrb[2].mxu1  ;;  %3664 = vmatpush3.bf16.msra.mxu1 %v3870_v50  ;;  %v3204_v6 = vpop.f32.mrb[3].mxu0 }
  0xfd   : > { %v3312_v58 = vpop.f32.mrb[3].mxu1  ;;  %3657 = vmatprep.subr.bf16.mxu1 %v3886_v1  ;;  %3624 = vmatpush3.bf16.msra.mxu0 %v3870_v50 }
  0xfe   : > { %3498 = vmatmul.mubr.bf16.gmra.mrb[108].mxu0 %v4383_v20  ;;  %3625 = vmatprep.subr.bf16.mxu0 %v3886_v1  ;;  %v3877_v58 = vld [vmem:[%s4219_s13 + $0x2c] ss:$0 sps:$4 sm:$0x33]  }
  0xff   : > { %3606 = vmatmul.mubr.bf16.gmra.mrb[68].mxu1 %v2417_v23  ;;  %3501 = vmatprep.mubr.msk.bf16.mxu0 %vm3887_vm0, %v3886_v1  ;;  %v2612_v23 = vsel %vm1004_vm4, %v2602_v47, %v2611_v44 }
 0x100   : > { %3665 = vmatpush3.bf16.msra.mxu1 %v3871_v54  ;;  %3609 = vmatprep.mubr.msk.bf16.mxu1 %vm3887_vm0, %v3886_v1 }
 0x101   : > { %v4758_v60 = vpop.f32.mrb[4].mxu0  ;;  %3626 = vmatpush3.bf16.msra.mxu0 %v3871_v54  ;;  %3658 = vmatprep.subr.bf16.mxu1 %v3886_v1  ;;  %v2619_v54 = vrot.slane %v2617_v2, 2 }
 0x102   : > { %v4761_v20 = vpop.f32.mrb[4].mxu1  ;;  %v3207_v61 = vpop.f32.mrb[5].mxu0  ;;  %3627 = vmatprep.subr.bf16.mxu0 %v3886_v1 }
 0x103   : > { %v3315_v62 = vpop.f32.mrb[5].mxu1  ;;  %v4764_v42 = vpop.f32.mrb[6].mxu0  ;;  %v2620_v10 = vor.u32 %v2619_v54, %v2616_v25  ;;  %v2626_v61 = vshll.u32 %v3877_v58, 16 }
 0x104   : > { %v4767_v4 = vpop.f32.mrb[6].mxu1  ;;  %v3208_v9 = vpop.f32.mrb[7].mxu0  ;;  %3666 = vmatpush3.bf16.msra.mxu1 %v3873_v59 }
 0x105   : > { %v3316_v17 = vpop.f32.mrb[7].mxu1  ;;  %3628 = vmatpush3.bf16.msra.mxu0 %v3873_v59  ;;  %3659 = vmatprep.subr.bf16.mxu1 %v3886_v1  ;;  %v2623_v59 = vshrl.u32 %v3877_v58, 16  ;;  %v2621_v24 = vsel %vm1004_vm4, %v2611_v44, %v2620_v10  ;;  %v2628_v3 = vrot.slane %v2626_v61, 2 }
 0x106   : > { %3502 = vmatmul.mubr.bf16.gmra.mrb[112].mxu0 %v4418_v55  ;;  %3629 = vmatprep.subr.bf16.mxu0 %v3886_v1  ;;  %v3876_v55 = vld [vmem:[%s4975_s4 + $0xf8] sm:$0xff]  }
 0x107   : > { %3610 = vmatmul.mubr.bf16.gmra.mrb[72].mxu1 %v2419_v5  ;;  %3505 = vmatprep.mubr.msk.bf16.mxu0 %vm3887_vm0, %v3886_v1  ;;  %v2625_v29 = vrot.slane %v2623_v59, 1 }
 0x108   : > { %3613 = vmatprep.mubr.msk.bf16.mxu1 %vm3887_vm0, %v3886_v1  ;;  %3667 = vmatpush3.bf16.msra.mxu1 %v3874_v40 }
 0x109   : > { %v4791_v0 = vpop.f32.mrb[8].mxu0  ;;  %3630 = vmatpush3.bf16.msra.mxu0 %v3874_v40  ;;  %3660 = vmatprep.subr.bf16.mxu1 %v3886_v1  ;;  %v2603_v40 = vsel %vm1004_vm4, %v2593_v11, %v2602_v47  ;;  %v2629_v39 = vor.u32 %v2628_v3, %v2625_v29 }
 0x10a   : > { %v4794_v33 = vpop.f32.mrb[8].mxu1  ;;  %v3211_v19 = vpop.f32.mrb[9].mxu0  ;;  %3631 = vmatprep.subr.bf16.mxu0 %v3886_v1 }
 0x10b   : > { %v3319_v34 = vpop.f32.mrb[9].mxu1  ;;  %v4798_v22 = vpop.f32.mrb[10].mxu0  ;;  %v2630_v36 = vsel %vm1004_vm4, %v2620_v10, %v2629_v39 }
 0x10c   : > { %v4800_v38 = vpop.f32.mrb[10].mxu1  ;;  %v3212_v12 = vpop.f32.mrb[11].mxu0  ;;  %3668 = vmatpush3.bf16.msra.mxu1 %v3876_v55 }
 0x10d   : > { %v3320_v7 = vpop.f32.mrb[11].mxu1  ;;  %3632 = vmatpush3.bf16.msra.mxu0 %v3876_v55 }
 0x10e   : > { %3506 = vmatmul.mubr.bf16.gmra.mrb[116].mxu0 %v4449_v16 }
 0x10f   : > { %3614 = vmatmul.mubr.bf16.gmra.mrb[76].mxu1 %v2421_v28  ;;  %3633 = vmatprep.mubr.msk.bf16.mxu0 %vm3887_vm0, %v3886_v1 }
 0x110   : > { %3641 = vmatprep.mubr.msk.bf16.mxu1 %vm3887_vm0, %v3886_v1 }
 0x111   : > { %v4809_v57 = vpop.f32.mrb[12].mxu0 }
 0x112   : > { %v4811_v63 = vpop.f32.mrb[12].mxu1  ;;  %v3215_v16 = vpop.f32.mrb[13].mxu0 }
 0x113   : > { %v3323_v48 = vpop.f32.mrb[13].mxu1  ;;  %v4814_v50 = vpop.f32.mrb[14].mxu0 }
 0x114   : > { %v4816_v51 = vpop.f32.mrb[14].mxu1  ;;  %v3216_v6 = vpop.f32.mrb[15].mxu0 }
 0x115   : > { %v3324_v56 = vpop.f32.mrb[15].mxu1 }
 0x116   : > { %3634 = vmatmul.mubr.bf16.vlgmr.msra.gmra.mrb[120].mxu0 %v2594_v49 }
 0x117   : > { %3642 = vmatmul.mubr.bf16.vlgmr.msra.gmra.mrb[68].mxu1 %v2612_v23  ;;  %3637 = vmatprep.mubr.msk.bf16.mxu0 %vm3887_vm0, %v3886_v1 }
 0x118   : > { %3645 = vmatprep.mubr.msk.bf16.mxu1 %vm3887_vm0, %v3886_v1 }
 0x119   : > { %v481_v62 = vpop.f32.mrb[16].mxu0 }
 0x11a   : > { %v4824_v14 = vpop.f32.mrb[16].mxu1  ;;  %v3219_v5 = vpop.f32.mrb[17].mxu0 }
 0x11b   : > { %v3327_v9 = vpop.f32.mrb[17].mxu1  ;;  %v484_v17 = vpop.f32.mrb[18].mxu0 }
 0x11c   : > { %v4827_v18 = vpop.f32.mrb[18].mxu1  ;;  %v3220_v53 = vpop.f32.mrb[19].mxu0 }
 0x11d   : > { %v3328_v55 = vpop.f32.mrb[19].mxu1 }
 0x11e   : > { %3638 = vmatmul.mubr.bf16.gmra.mrb[124].mxu0 %v2603_v40 }
 0x11f   : > { %3646 = vmatmul.mubr.bf16.gmra.mrb[72].mxu1 %v2621_v24 }
 0x120   : > { %3649 = vmatprep.mubr.msk.bf16.mxu1 %vm3887_vm0, %v3886_v1 }
 0x121   : > { %v575_v8 = vpop.f32.mrb[20].mxu0 }
 0x122   : > { %v576_v32 = vadd.f32 %v575_v8, %v4730_v13  ;;  %v4833_v15 = vpop.f32.mrb[20].mxu1  ;;  %v3239_v19 = vpop.f32.mrb[21].mxu0 }
 0x123   : > { %v3383_v27 = vpop.f32.mrb[21].mxu1  ;;  %v578_v34 = vpop.f32.mrb[22].mxu0 }
 0x124   : > { %v579_v28 = vadd.f32 %v578_v34, %v4736_v26  ;;  %v4836_v35 = vpop.f32.mrb[22].mxu1  ;;  %v3240_v37 = vpop.f32.mrb[23].mxu0 }
 0x125   : > { %v3384_v12 = vpop.f32.mrb[23].mxu1 }
 0x127   : > { %3650 = vmatmul.mubr.bf16.gmra.mrb[76].mxu1 %v2630_v36 }
 0x129   : > { %v583_v30 = vpop.f32.mrb[24].mxu0 }
 0x12a   : > { %v584_v1 = vadd.f32 %v583_v30, %v4758_v60  ;;  %v4840_v41 = vpop.f32.mrb[24].mxu1  ;;  %v3243_v13 = vpop.f32.mrb[25].mxu0 }
 0x12b   : > { %v3387_v43 = vpop.f32.mrb[25].mxu1  ;;  %v586_v45 = vpop.f32.mrb[26].mxu0 }
 0x12c   : > { %v587_v7 = vadd.f32 %v586_v45, %v4764_v42  ;;  %v4843_v21 = vpop.f32.mrb[26].mxu1  ;;  %v3244_v26 = vpop.f32.mrb[27].mxu0 }
 0x12d   : > { %v3388_v11 = vpop.f32.mrb[27].mxu1 }
 0x131   : > { %v591_v46 = vpop.f32.mrb[28].mxu0 }
 0x132   : > { %v592_v47 = vadd.f32 %v591_v46, %v4791_v0  ;;  %v4846_v44 = vpop.f32.mrb[28].mxu1  ;;  %v3247_v2 = vpop.f32.mrb[29].mxu0 }
 0x133   : > { %v3391_v16 = vpop.f32.mrb[29].mxu1  ;;  %v594_v48 = vpop.f32.mrb[30].mxu0 }
 0x134   : > { %v595_v60 = vadd.f32 %v594_v48, %v4798_v22  ;;  %v4849_v49 = vpop.f32.mrb[30].mxu1  ;;  %v3248_v25 = vpop.f32.mrb[31].mxu0 }
 0x135   : > { %v3392_v23 = vpop.f32.mrb[31].mxu1 }
 0x139   : > { %v599_v6 = vpop.f32.mrb[32].mxu0 }
 0x13a   : > { %v600_v42 = vadd.f32 %v599_v6, %v4809_v57  ;;  %v4852_v54 = vpop.f32.mrb[32].mxu1  ;;  %v3251_v58 = vpop.f32.mrb[33].mxu0 }
 0x13b   : > { %v3395_v56 = vpop.f32.mrb[33].mxu1  ;;  %v602_v10 = vpop.f32.mrb[34].mxu0 }
 0x13c   : > { %v603_v0 = vadd.f32 %v602_v10, %v4814_v50  ;;  %v4855_v59 = vpop.f32.mrb[34].mxu1  ;;  %v3252_v61 = vpop.f32.mrb[35].mxu0 }
 0x13d   : > { %v3396_v5 = vpop.f32.mrb[35].mxu1 }
 0x141   : > { %v607_v9 = vpop.f32.mrb[36].mxu0 }
 0x142   : > { %v608_v22 = vadd.f32 %v607_v9, %v481_v62  ;;  %v4857_v40 = vpop.f32.mrb[36].mxu1  ;;  %v3255_v24 = vpop.f32.mrb[37].mxu0 }
 0x143   : > { %v3399_v53 = vpop.f32.mrb[37].mxu1  ;;  %v610_v29 = vpop.f32.mrb[38].mxu0 }
 0x144   : > { %v611_v3 = vadd.f32 %v610_v29, %v484_v17  ;;  %v4859_v57 = vpop.f32.mrb[38].mxu1  ;;  %v3256_v55 = vpop.f32.mrb[39].mxu0 }
 0x145   : > { %v3400_v39 = vpop.f32.mrb[39].mxu1 }
 0x149   : > { %v733_v8 = vpop.f32.mrb[40].mxu0 }
 0x14a   : > { %v772_v19 = vadd.f32 %v733_v8, %v576_v32  ;;  %v4861_v27 = vpop.f32.mrb[40].mxu1  ;;  %v3275_v50 = vpop.f32.mrb[41].mxu0 }
 0x14b   : > { %v3455_v34 = vpop.f32.mrb[41].mxu1  ;;  %v736_v36 = vpop.f32.mrb[42].mxu0 }
 0x14c   : > { %v773_v37 = vadd.f32 %v736_v36, %v579_v28  ;;  %v4863_v12 = vpop.f32.mrb[42].mxu1  ;;  %v3276_v62 = vpop.f32.mrb[43].mxu0  ;;  %v974_v30 = vadd.f32 %v4733_v52, %v772_v19 }
 0x14d   : > { %v3456_v13 = vpop.f32.mrb[43].mxu1 }
 0x14e   : > { %v975_v17 = vadd.f32 %v4738_v31, %v773_v37 }
 0x151   : > { %v741_v43 = vpop.f32.mrb[44].mxu0 }
 0x152   : > { %v774_v45 = vadd.f32 %v741_v43, %v584_v1  ;;  %v4867_v26 = vpop.f32.mrb[44].mxu1  ;;  %v3279_v11 = vpop.f32.mrb[45].mxu0 }
 0x153   : > { %v3459_v32 = vpop.f32.mrb[45].mxu1  ;;  %v744_v46 = vpop.f32.mrb[46].mxu0 }
 0x154   : > { %v775_v2 = vadd.f32 %v744_v46, %v587_v7  ;;  %v4869_v16 = vpop.f32.mrb[46].mxu1  ;;  %v3280_v48 = vpop.f32.mrb[47].mxu0  ;;  %v976_v28 = vadd.f32 %v4761_v20, %v774_v45 }
 0x155   : > { %v3460_v25 = vpop.f32.mrb[47].mxu1 }
 0x156   : > { %v977_v23 = vadd.f32 %v4767_v4, %v775_v2 }
 0x159   : > { %v749_v52 = vpop.f32.mrb[48].mxu0 }
 0x15a   : > { %v776_v6 = vadd.f32 %v749_v52, %v592_v47  ;;  %v4873_v58 = vpop.f32.mrb[48].mxu1  ;;  %v3283_v31 = vpop.f32.mrb[49].mxu0 }
 0x15b   : > { %v3463_v1 = vpop.f32.mrb[49].mxu1  ;;  %v752_v56 = vpop.f32.mrb[50].mxu0 }
 0x15c   : > { %v777_v10 = vadd.f32 %v752_v56, %v595_v60  ;;  %v4875_v61 = vpop.f32.mrb[50].mxu1  ;;  %v3284_v5 = vpop.f32.mrb[51].mxu0  ;;  %v978_v7 = vadd.f32 %v4794_v33, %v776_v6 }
 0x15d   : > { %v3464_v9 = vpop.f32.mrb[51].mxu1 }
 0x15e   : > { %v979_v24 = vadd.f32 %v4800_v38, %v777_v10 }
 0x161   : > { %v757_v20 = vpop.f32.mrb[52].mxu0 }
 0x162   : > { %v778_v53 = vadd.f32 %v757_v20, %v600_v42  ;;  %v4879_v29 = vpop.f32.mrb[52].mxu1  ;;  %v3287_v4 = vpop.f32.mrb[53].mxu0 }
 0x163   : > { %v3467_v47 = vpop.f32.mrb[53].mxu1  ;;  %v760_v55 = vpop.f32.mrb[54].mxu0 }
 0x164   : > { %v779_v39 = vadd.f32 %v760_v55, %v603_v0  ;;  %v4881_v8 = vpop.f32.mrb[54].mxu1  ;;  %v3288_v19 = vpop.f32.mrb[55].mxu0  ;;  %v980_v60 = vadd.f32 %v4811_v63, %v778_v53 }
 0x165   : > { %v3468_v50 = vpop.f32.mrb[55].mxu1 }
 0x166   : > { %v981_v34 = vadd.f32 %v4816_v51, %v779_v39 }
 0x169   : > { %v765_v33 = vpop.f32.mrb[56].mxu0 }
 0x16a   : > { %v780_v36 = vadd.f32 %v765_v33, %v608_v22  ;;  %v4885_v37 = vpop.f32.mrb[56].mxu1  ;;  %v3291_v38 = vpop.f32.mrb[57].mxu0 }
 0x16b   : > { %v3471_v42 = vpop.f32.mrb[57].mxu1  ;;  %v768_v62 = vpop.f32.mrb[58].mxu0 }
 0x16c   : > { %v781_v13 = vadd.f32 %v768_v62, %v611_v3  ;;  %v4887_v43 = vpop.f32.mrb[58].mxu1  ;;  %v3292_v45 = vpop.f32.mrb[59].mxu0  ;;  %v982_v0 = vadd.f32 %v4824_v14, %v780_v36 }
 0x16d   : > { %v3472_v11 = vpop.f32.mrb[59].mxu1 }
 0x16e   : > { %v983_v32 = vadd.f32 %v4827_v18, %v781_v13 }
 0x171   : > { %v1145_v63 = vpop.f32.mrb[60].mxu0 }
 0x172   : > { %v1184_v46 = vadd.f32 %v1145_v63, %v974_v30  ;;  %v3347_v2 = vpop.f32.mrb[61].mxu0 }
 0x173   : > { %v1148_v51 = vpop.f32.mrb[62].mxu0 }
 0x174   : > { %v1185_v48 = vadd.f32 %v1148_v51, %v975_v17  ;;  %v3348_v22 = vpop.f32.mrb[63].mxu0  ;;  %v1352_v25 = vadd.f32 %v4833_v15, %v1184_v46 }
 0x176   : > { %v1353_v52 = vadd.f32 %v4836_v35, %v1185_v48 }
 0x179   : > { %v1153_v6 = vpop.f32.mrb[64].mxu0 }
 0x17a   : > { %v1186_v3 = vadd.f32 %v1153_v6, %v976_v28  ;;  %v3351_v31 = vpop.f32.mrb[65].mxu0 }
 0x17b   : > { %v1156_v1 = vpop.f32.mrb[66].mxu0 }
 0x17c   : > { %v1187_v56 = vadd.f32 %v1156_v1, %v977_v23  ;;  %v3352_v10 = vpop.f32.mrb[67].mxu0  ;;  %v1354_v14 = vadd.f32 %v4840_v41, %v1186_v3 }
 0x17e   : > { %v1355_v18 = vadd.f32 %v4843_v21, %v1187_v56 }
 0x181   : > { %v1161_v5 = vpop.f32.mrb[68].mxu0 }
 0x182   : > { %v1188_v30 = vadd.f32 %v1161_v5, %v978_v7  ;;  %v3355_v9 = vpop.f32.mrb[69].mxu0 }
 0x183   : > { %v1164_v20 = vpop.f32.mrb[70].mxu0 }
 0x184   : > { %v1189_v17 = vadd.f32 %v1164_v20, %v979_v24  ;;  %v3356_v53 = vpop.f32.mrb[71].mxu0  ;;  %v1356_v15 = vadd.f32 %v4846_v44, %v1188_v30 }
 0x186   : > { %v1357_v35 = vadd.f32 %v4849_v49, %v1189_v17 }
 0x189   : > { %v1169_v4 = vpop.f32.mrb[72].mxu0 }
 0x18a   : > { %v1190_v28 = vadd.f32 %v1169_v4, %v980_v60  ;;  %v3359_v47 = vpop.f32.mrb[73].mxu0 }
 0x18b   : > { %v1172_v55 = vpop.f32.mrb[74].mxu0 }
 0x18c   : > { %v1191_v23 = vadd.f32 %v1172_v55, %v981_v34  ;;  %v3360_v39 = vpop.f32.mrb[75].mxu0  ;;  %v1358_v41 = vadd.f32 %v4852_v54, %v1190_v28 }
 0x18e   : > { %v1359_v21 = vadd.f32 %v4855_v59, %v1191_v23 }
 0x191   : > { %v1177_v19 = vpop.f32.mrb[76].mxu0 }
 0x192   : > { %v1192_v7 = vadd.f32 %v1177_v19, %v982_v0  ;;  %v3363_v50 = vpop.f32.mrb[77].mxu0 }
 0x193   : > { %v1180_v33 = vpop.f32.mrb[78].mxu0 }
 0x194   : > { %v1193_v24 = vadd.f32 %v1180_v33, %v983_v32  ;;  %v3364_v36 = vpop.f32.mrb[79].mxu0  ;;  %v1360_v44 = vadd.f32 %v4857_v40, %v1192_v7 }
 0x196   : > { %v1361_v49 = vadd.f32 %v4859_v57, %v1193_v24 }
 0x199   : > { %v1515_v38 = vpop.f32.mrb[80].mxu0 }
 0x19a   : > { %v1554_v60 = vadd.f32 %v1515_v38, %v1352_v25  ;;  %v3419_v42 = vpop.f32.mrb[81].mxu0 }
 0x19b   : > { %v1518_v62 = vpop.f32.mrb[82].mxu0 }
 0x19c   : > { %v1555_v34 = vadd.f32 %v1518_v62, %v1353_v52  ;;  %v3420_v13 = vpop.f32.mrb[83].mxu0  ;;  %v1764_v54 = vadd.f32 %v4861_v27, %v1554_v60 }
 0x19e   : > { %v1765_v59 = vadd.f32 %v4863_v12, %v1555_v34 }
 0x1a1   : > { %v1523_v45 = vpop.f32.mrb[84].mxu0 }
 0x1a2   : > { %v1556_v0 = vadd.f32 %v1523_v45, %v1354_v14  ;;  %v3423_v11 = vpop.f32.mrb[85].mxu0  ;;  %v4918_v45 = vld [vmem:[%s4973_s2] ss:$0 sm:$0xff] }
 0x1a3   : > { %v1526_v63 = vpop.f32.mrb[86].mxu0 }
 0x1a4   : > { %v1557_v32 = vadd.f32 %v1526_v63, %v1355_v18  ;;  %v3424_v46 = vpop.f32.mrb[87].mxu0  ;;  %v1766_v40 = vadd.f32 %v4867_v26, %v1556_v0 }
 0x1a6   : > { %v1767_v57 = vadd.f32 %v4869_v16, %v1557_v32 }
 0x1a9   : > { %v1531_v2 = vpop.f32.mrb[88].mxu0 }
 0x1aa   : > { %v1558_v51 = vadd.f32 %v1531_v2, %v1356_v15  ;;  %v3427_v48 = vpop.f32.mrb[89].mxu0 }
 0x1ab   : > { %v1534_v22 = vpop.f32.mrb[90].mxu0 }
 0x1ac   : > { %v1559_v25 = vadd.f32 %v1534_v22, %v1357_v35  ;;  %v3428_v52 = vpop.f32.mrb[91].mxu0  ;;  %v1768_v27 = vadd.f32 %v4873_v58, %v1558_v51 }
 0x1ae   : > { %v1769_v12 = vadd.f32 %v4875_v61, %v1559_v25 }
 0x1b1   : > { %v1539_v6 = vpop.f32.mrb[92].mxu0 }
 0x1b2   : > { %v1560_v3 = vadd.f32 %v1539_v6, %v1358_v41  ;;  %v3431_v31 = vpop.f32.mrb[93].mxu0 }
 0x1b3   : > { %v1542_v1 = vpop.f32.mrb[94].mxu0 }
 0x1b4   : > { %v1561_v56 = vadd.f32 %v1542_v1, %v1359_v21  ;;  %v3432_v10 = vpop.f32.mrb[95].mxu0  ;;  %v1770_v26 = vadd.f32 %v4879_v29, %v1560_v3 }
 0x1b6   : > { %v1771_v16 = vadd.f32 %v4881_v8, %v1561_v56 }
 0x1b9   : > { %v1547_v14 = vpop.f32.mrb[96].mxu0 }
 0x1ba   : > { %v1562_v18 = vadd.f32 %v1547_v14, %v1360_v44  ;;  %v3435_v5 = vpop.f32.mrb[97].mxu0 }
 0x1bb   : > { %v1550_v30 = vpop.f32.mrb[98].mxu0 }
 0x1bc   : > { %v1563_v9 = vadd.f32 %v1550_v30, %v1361_v49  ;;  %v3436_v20 = vpop.f32.mrb[99].mxu0  ;;  %v1772_v58 = vadd.f32 %v4885_v37, %v1562_v18 }
 0x1be   : > { %v1773_v61 = vadd.f32 %v4887_v43, %v1563_v9 }
 0x1c1   : > { %v1893_v17 = vpop.f32.mrb[100].mxu0 }
 0x1c2   : > { %v1932_v53 = vadd.f32 %v1893_v17, %v1764_v54  ;;  %v2509_v15 = vpop.f32.mrb[60].mxu1  ;;  %v3491_v35 = vpop.f32.mrb[101].mxu0 }
 0x1c3   : > { %v3599_v4 = vpop.f32.mrb[61].mxu1  ;;  %v1896_v28 = vpop.f32.mrb[102].mxu0 }
 0x1c4   : > { %v1933_v47 = vadd.f32 %v1896_v28, %v1765_v59  ;;  %v2512_v29 = vpop.f32.mrb[62].mxu1  ;;  %v3492_v55 = vpop.f32.mrb[103].mxu0  ;;  %v1949_v32 = vadd.f32 %v4918_v45, %v1932_v53 }
 0x1c5   : > { %v3600_v8 = vpop.f32.mrb[63].mxu1 }
 0x1c6   : > { %v1950_v51 = vadd.f32 %v4918_v45, %v1933_v47  ;;  %v1969_v22 = vmul.f32 0.2, %v1949_v32  ;;  %vm1959_vm7 = vcmp.ge.f32.partialorder %v1949_v32, 0.0 }
 0x1c8   : > { %v1979_v1 = vsel %vm1959_vm7, %v1949_v32, %v1969_v22  ;;  %vm1960_vm10 = vcmp.ge.f32.partialorder %v1950_v51, 0.0 }
 0x1c9   : > { %v1901_v23 = vpop.f32.mrb[104].mxu0 }
 0x1ca   : > { %v1934_v39 = vadd.f32 %v1901_v23, %v1766_v40  ;;  %v4911_v41 = vpop.f32.mrb[64].mxu1  ;;  %v3495_v21 = vpop.f32.mrb[105].mxu0 }
 0x1cb   : > { %v3603_v19 = vpop.f32.mrb[65].mxu1  ;;  %v1904_v7 = vpop.f32.mrb[106].mxu0 }
 0x1cc   : > { %v1935_v37 = vadd.f32 %v1904_v7, %v1767_v57  ;;  %v4913_v50 = vpop.f32.mrb[66].mxu1  ;;  %v3496_v43 = vpop.f32.mrb[107].mxu0  ;;  %v1951_v20 = vadd.f32 %v4918_v45, %v1934_v39 }
 0x1cd   : > { %v3604_v33 = vpop.f32.mrb[67].mxu1 }
 0x1ce   : > { %v1971_v23 = vmul.f32 0.2, %v1951_v20  ;;  %vm1961_vm12 = vcmp.ge.f32.partialorder %v1951_v20, 0.0 }
 0x1d1   : > { %v1909_v24 = vpop.f32.mrb[108].mxu0 }
 0x1d2   : > { %v1936_v36 = vadd.f32 %v1909_v24, %v1768_v27  ;;  %v3499_v44 = vpop.f32.mrb[109].mxu0  ;;  %v1970_v27 = vmul.f32 0.2, %v1950_v51 }
 0x1d3   : > { %v1912_v49 = vpop.f32.mrb[110].mxu0 }
 0x1d4   : > { %v1937_v38 = vadd.f32 %v1912_v49, %v1769_v12  ;;  %v3500_v60 = vpop.f32.mrb[111].mxu0  ;;  %v1953_v40 = vadd.f32 %v4918_v45, %v1936_v36  ;;  %v1980_v47 = vsel %vm1960_vm10, %v1950_v51, %v1970_v27 }
 0x1d6   : > { %v1954_v48 = vadd.f32 %v4918_v45, %v1937_v38  ;;  %v1973_v25 = vmul.f32 0.2, %v1953_v40  ;;  %vm1963_vm9 = vcmp.ge.f32.partialorder %v1953_v40, 0.0 }
 0x1d8   : > { %v1974_v12 = vmul.f32 0.2, %v1954_v48  ;;  %vm1964_vm11 = vcmp.ge.f32.partialorder %v1954_v48, 0.0  ;;  %v1983_v18 = vsel %vm1963_vm9, %v1953_v40, %v1973_v25 }
 0x1d9   : > { %v1917_v42 = vpop.f32.mrb[112].mxu0 }
 0x1da   : > { %v1938_v62 = vadd.f32 %v1917_v42, %v1770_v26  ;;  %v3503_v34 = vpop.f32.mrb[113].mxu0  ;;  %v1984_v28 = vsel %vm1964_vm11, %v1954_v48, %v1974_v12 }
 0x1db   : > { %v1920_v13 = vpop.f32.mrb[114].mxu0 }
 0x1dc   : > { %v1939_v54 = vadd.f32 %v1920_v13, %v1771_v16  ;;  %v3504_v59 = vpop.f32.mrb[115].mxu0  ;;  %v1955_v16 = vadd.f32 %v4918_v45, %v1938_v62 }
 0x1de   : > { %v1975_v55 = vmul.f32 0.2, %v1955_v16  ;;  %vm1965_vm13 = vcmp.ge.f32.partialorder %v1955_v16, 0.0 }
 0x1e0   : > { %v1985_v38 = vsel %vm1965_vm13, %v1955_v16, %v1975_v55 }
 0x1e1   : > { %v1925_v0 = vpop.f32.mrb[116].mxu0 }
 0x1e2   : > { %v4920_v11 = vadd.f32 %v1925_v0, %v1772_v58  ;;  %v3507_v63 = vpop.f32.mrb[117].mxu0  ;;  %v1952_v58 = vadd.f32 %v4918_v45, %v1935_v37 }
 0x1e3   : > { %v1928_v46 = vpop.f32.mrb[118].mxu0 }
 0x1e4   : > { %v4924_v57 = vadd.f32 %v1928_v46, %v1773_v61  ;;  %v3508_v2 = vpop.f32.mrb[119].mxu0  ;;  %v1972_v21 = vmul.f32 0.2, %v1952_v58  ;;  %vm1962_vm14 = vcmp.ge.f32.partialorder %v1952_v58, 0.0  ;;  %v1957_v44 = vadd.f32 %v4918_v45, %v4920_v11 }
 0x1e6   : > { %v1958_v59 = vadd.f32 %v4918_v45, %v4924_v57  ;;  %v1982_v32 = vsel %vm1962_vm14, %v1952_v58, %v1972_v21  ;;  %v1977_v46 = vmul.f32 0.2, %v1957_v44  ;;  %vm1967_vm0 = vcmp.ge.f32.partialorder %v1957_v44, 0.0 }
 0x1e8   : > { %v1978_v2 = vmul.f32 0.2, %v1958_v59  ;;  %vm1968_vm1 = vcmp.ge.f32.partialorder %v1958_v59, 0.0  ;;  %v1987_v48 = vsel %vm1967_vm0, %v1957_v44, %v1977_v46 }
 0x1e9   : > { %v2718_v52 = vpop.f32.mrb[120].mxu0 }
 0x1ea   : > { %v3669_v6 = vadd.f32 %v2718_v52, %v2509_v15  ;;  %v2734_v3 = vpop.f32.mrb[68].mxu1  ;;  %v3635_v31 = vpop.f32.mrb[121].mxu0  ;;  %v1956_v15 = vadd.f32 %v4918_v45, %v1939_v54  ;;  %v1988_v12 = vsel %vm1968_vm1, %v1958_v59, %v1978_v2 }
 0x1eb   : > { %v2771_v56 = vmul.f32 0.70710677, %v2734_v3  ;;  %v3643_v10 = vpop.f32.mrb[69].mxu1  ;;  %v2721_v26 = vpop.f32.mrb[122].mxu0 }
 0x1ec   : > { %v2767_v14 = vmul.f32 0.70710677, %v3669_v6  ;;  %v3670_v5 = vadd.f32 %v2721_v26, %v2512_v29  ;;  %v2737_v30 = vpop.f32.mrb[70].mxu1  ;;  %v3636_v9 = vpop.f32.mrb[123].mxu0  ;;  %v1976_v19 = vmul.f32 0.2, %v1956_v15 }
 0x1ed   : > { %v2781_v61 = vadd.f32 %v2771_v56, %v1983_v18  ;;  %v2772_v17 = vmul.f32 0.70710677, %v2737_v30  ;;  %v3644_v53 = vpop.f32.mrb[71].mxu1  ;;  %vm1966_vm15 = vcmp.ge.f32.partialorder %v1956_v15, 0.0 }
 0x1ee   : > { %v2777_v35 = vadd.f32 %v2767_v14, %v1979_v1  ;;  %v2768_v4 = vmul.f32 0.70710677, %v3670_v5  ;;  %v1986_v11 = vsel %vm1966_vm15, %v1956_v15, %v1976_v19 }
 0x1ef   : > { %2792 = vst.msk [vmem:[%s4933_s19 + $0x20] sm:$0xff] %vm2787_vm8, %v2781_v61  ;;  %v2782_v29 = vadd.f32 %v2772_v17, %v1984_v28 }
 0x1f0   : > { %2788 = vst.msk [vmem:[%s4933_s19] sm:$0xff] %vm2787_vm8, %v2777_v35  ;;  %v2778_v8 = vadd.f32 %v2768_v4, %v1980_v47 }
 0x1f1   : > { %2793 = vst.msk [vmem:[%s4933_s19 + $0x28] sm:$0xff] %vm2787_vm8, %v2782_v29  ;;  %v2726_v39 = vpop.f32.mrb[124].mxu0 }
 0x1f2   : > { %2789 = vst.msk [vmem:[%s4933_s19 + $0x8] sm:$0xff] %vm2787_vm8, %v2778_v8  ;;  %v3671_v7 = vadd.f32 %v2726_v39, %v4911_v41  ;;  %v2742_v37 = vpop.f32.mrb[72].mxu1  ;;  %v3639_v43 = vpop.f32.mrb[125].mxu0  ;;  %v1981_v41 = vsel %vm1961_vm12, %v1951_v20, %v1971_v23 }
 0x1f3   : > { %v2773_v33 = vmul.f32 0.70710677, %v2742_v37  ;;  %v3647_v24 = vpop.f32.mrb[73].mxu1  ;;  %v2729_v36 = vpop.f32.mrb[126].mxu0 }
 0x1f4   : > { %v2769_v49 = vmul.f32 0.70710677, %v3671_v7  ;;  %v3672_v60 = vadd.f32 %v2729_v36, %v4913_v50  ;;  %v2745_v42 = vpop.f32.mrb[74].mxu1  ;;  %v3640_v62 = vpop.f32.mrb[127].mxu0 }
 0x1f5   : > { %v2783_v34 = vadd.f32 %v2773_v33, %v1985_v38  ;;  %v2774_v13 = vmul.f32 0.70710677, %v2745_v42  ;;  %v3648_v54 = vpop.f32.mrb[75].mxu1 }
 0x1f6   : > { %v2779_v0 = vadd.f32 %v2769_v49, %v1981_v41  ;;  %v2770_v63 = vmul.f32 0.70710677, %v3672_v60 }
 0x1f7   : > { %2794 = vst.msk [vmem:[%s4933_s19 + $0x30] sm:$0xff] %vm2787_vm8, %v2783_v34  ;;  %v2784_v50 = vadd.f32 %v2774_v13, %v1986_v11 }
 0x1f8   : > { %2790 = vst.msk [vmem:[%s4933_s19 + $0x10] sm:$0xff] %vm2787_vm8, %v2779_v0  ;;  %v2780_v40 = vadd.f32 %v2770_v63, %v1982_v32 }
 0x1f9   : > { %2795 = vst.msk [vmem:[%s4933_s19 + $0x38] sm:$0xff] %vm2787_vm8, %v2784_v50 }
 0x1fa   : > { %2791 = vst.msk [vmem:[%s4933_s19 + $0x18] sm:$0xff] %vm2787_vm8, %v2780_v40  ;;  %v2750_v45 = vpop.f32.mrb[76].mxu1 }
 0x1fb   : > { %v2775_v57 = vmul.f32 0.70710677, %v2750_v45  ;;  %v3651_v51 = vpop.f32.mrb[77].mxu1 }
 0x1fc   : > { %v2753_v22 = vpop.f32.mrb[78].mxu1 }
 0x1fd   : > { %v2785_v25 = vadd.f32 %v2775_v57, %v1987_v48  ;;  %v2776_v52 = vmul.f32 0.70710677, %v2753_v22  ;;  %v3652_v27 = vpop.f32.mrb[79].mxu1 }
 0x1ff   : > { %2796 = vst.msk [vmem:[%s4933_s19 + $0x40] sm:$0xff] %vm2787_vm8, %v2785_v25  ;;  %v2786_v6 = vadd.f32 %v2776_v52, %v1988_v12 }
 0x201   : > { %2797 = vst.msk [vmem:[%s4933_s19 + $0x48] sm:$0xff] %vm2787_vm8, %v2786_v6 }
 0x202 PF: > { %s15_s18 = sadd.s32 1, %s3884_s18  }
 0x203   : > { %p12_p4 = scmp.ge.s32.totalorder %s15_s18, 6  }
 0x205   :  { %14 = sbr.rel (!%p12_p4) target bundleno = 1 (0x1), region = 73 }

// kernel: forward.9
= control target key start
LH: loop header
LB: loop body
LE: loop exit
PB: predicated region body
PF: predicated region fallthrough
CT: control target
= control target key end

     0   :  { %s3962_s18 = smov 0   ;;  %s4761_s0 = inlined_call_operand.vmem [shape: bf16[4,42,256], index: 0, kind: input, shape index: {}]   ;;  %s4762_s1 = inlined_call_operand.vmem [shape: bf16[2304,64], index: 1, kind: input, shape index: {}]   ;;  %s4763_s2 = inlined_call_operand.vmem [shape: f32[1,64], index: 2, kind: input, shape index: {}]   ;;  %s4764_s3 = inlined_call_operand.vmem [shape: bf16[4,36,256], index: 3, kind: input, shape index: {}]   ;;  %s4765_s4 = inlined_call_operand.vmem [shape: bf16[1024,64], index: 4, kind: input, shape index: {}]   ;;  %s4766_s5 = inlined_call_operand.vmem [shape: f32[4,24,64], index: 5, kind: output, shape index: {}]  }
   0x1 LB: > { %s3029_s19 = sadd.s32 4294967295, %s3930_s18   ;;  %p3033_p0 = scmp.ge.s32.totalorder %s3930_s18, 1  ;;  %s3930_s18 = sphi %s3962_s18, %s15_s18  }
   0x2   : > { %p197_p1 = scmp.lt.s32.totalorder %s3930_s18, 5 }
   0x4   : > { %p198_p2 = pnand %p3033_p0, %p197_p1 }
   0x5   : > { %v3677_v0 = vld [vmem:[%s4762_s1 + $0xc0] sm:$0xff] (!%p198_p2)   ;;  %v3681_v4 = vld [vmem:[%s4762_s1 + $0xc8] sm:$0xff] (!%p198_p2)   ;;  %v3685_v8 = vld [vmem:[%s4762_s1 + $0xd0] sm:$0xff] (!%p198_p2)   ;;  %p230_p3 = scmp.lt.s32.totalorder (!%p198_p2), %s3029_s19, 3  ;;  %vm330_vm0 = vsmask.f32 (!%p198_p2), 7424 }
   0x6   : > { %201 = sbr.rel (%p198_p2) target bundleno = 455 (0x1c7), region = 40  ;;  %v3678_v1 = vld [vmem:[%s4762_s1 + $0x40] sm:$0xff] (!%p198_p2)   ;;  %3286 = vmatprep.subr.bf16.mxu0 (!%p198_p2), %v3677_v0  ;;  %v3682_v5 = vld [vmem:[%s4762_s1 + $0x48] sm:$0xff] (!%p198_p2)   ;;  %v3686_v9 = vld [vmem:[%s4762_s1 + $0x50] sm:$0xff] (!%p198_p2)   ;;  %vm697_vm1 = vcmask (!%p198_p2), 1046528   ;;  %vm899_vm2 = vcmask (!%p198_p2), 1044480  }
   0x7   : > { %v3679_v2 = vld [vmem:[%s4762_s1 + $0x80] sm:$0xff] (!%p198_p2)   ;;  %3314 = vmatprep.subr.bf16.mxu1 (!%p198_p2), %v3678_v1  ;;  %v3683_v6 = vld [vmem:[%s4762_s1 + $0x88] sm:$0xff] (!%p198_p2)   ;;  %v3687_v10 = vld [vmem:[%s4762_s1 + $0x90] sm:$0xff] (!%p198_p2)   ;;  %vm1095_vm3 = vsmask.f32 (!%p198_p2), 4352  ;;  %vm1520_vm4 = vcmask (!%p198_p2), 1045504  }
   0x8   : > { %v3680_v3 = vld [vmem:[%s4762_s1] sm:$0xff] (!%p198_p2)   ;;  %3287 = vmatpush3.bf16.msra.mxu0 (!%p198_p2), %v3679_v2  ;;  %v3684_v7 = vld [vmem:[%s4762_s1 + $0x8] sm:$0xff] (!%p198_p2)   ;;  %v3688_v11 = vld [vmem:[%s4762_s1 + $0x10] sm:$0xff] (!%p198_p2)   ;;  %vm1716_vm5 = vsmask.f32 (!%p198_p2), 5376  ;;  %vm2958_vm8 = vcmask (!%p198_p2), 523264  }
   0x9   : > { %3315 = vmatpush3.bf16.msra.mxu1 (!%p198_p2), %v3680_v3  ;;  %3288 = vmatprep.subr.bf16.mxu0 (!%p198_p2), %v3681_v4  ;;  %v3689_v12 = vld [vmem:[%s4762_s1 + $0xd8] sm:$0xff] (!%p198_p2)   ;;  %v3693_v16 = vld [vmem:[%s4762_s1 + $0xe0] sm:$0xff] (!%p198_p2)   ;;  %v3697_v20 = vld [vmem:[%s4762_s1 + $0xe8] sm:$0xff] (!%p198_p2)  }
   0xa   : > { %3316 = vmatprep.subr.bf16.mxu1 (!%p198_p2), %v3682_v5  ;;  %v3690_v13 = vld [vmem:[%s4762_s1 + $0x58] sm:$0xff] (!%p198_p2)   ;;  %v3694_v17 = vld [vmem:[%s4762_s1 + $0x60] sm:$0xff] (!%p198_p2)   ;;  %v3698_v21 = vld [vmem:[%s4762_s1 + $0x68] sm:$0xff] (!%p198_p2)  }
   0xb   : > { %v3691_v14 = vld [vmem:[%s4762_s1 + $0x98] sm:$0xff] (!%p198_p2)   ;;  %v3695_v18 = vld [vmem:[%s4762_s1 + $0xa0] sm:$0xff] (!%p198_p2)   ;;  %v3699_v22 = vld [vmem:[%s4762_s1 + $0xa8] sm:$0xff] (!%p198_p2)  }
   0xc   : > { %3289 = vmatpush3.bf16.msra.mxu0 (!%p198_p2), %v3683_v6  ;;  %v3692_v15 = vld [vmem:[%s4762_s1 + $0x18] sm:$0xff] (!%p198_p2)   ;;  %v3696_v19 = vld [vmem:[%s4762_s1 + $0x20] sm:$0xff] (!%p198_p2)   ;;  %v3700_v23 = vld [vmem:[%s4762_s1 + $0x28] sm:$0xff] (!%p198_p2)  }
   0xd   : > { %3317 = vmatpush3.bf16.msra.mxu1 %v3684_v7  ;;  %3290 = vmatprep.subr.bf16.mxu0 %v3685_v8  ;;  %s4768_s19 = smov (!%p230_p3, %s3029_s19), 3  ;;  %v3701_v24 = vld [vmem:[%s4762_s1 + $0xf0] sm:$0xff]   ;;  %v3705_v28 = vld [vmem:[%s4762_s1 + $0xf8] sm:$0xff]   ;;  %v3713_v41 = vld [vmem:[%s4762_s1 + $0x140] sm:$0xff]  }
   0xe   : > { %3318 = vmatprep.subr.bf16.mxu1 %v3686_v9  ;;  %v3702_v25 = vld [vmem:[%s4762_s1 + $0x70] sm:$0xff]   ;;  %s3666_s26 = smul.u32 48, %s4768_s19  ;;  %v3706_v29 = vld [vmem:[%s4762_s1 + $0x78] sm:$0xff]   ;;  %v3714_v46 = vld [vmem:[%s4762_s1 + $0x1c0] sm:$0xff]  }
   0xf   : > { %v3703_v26 = vld [vmem:[%s4762_s1 + $0xb0] sm:$0xff]   ;;  %v3707_v30 = vld [vmem:[%s4762_s1 + $0xb8] sm:$0xff]   ;;  %v3715_v53 = vld [vmem:[%s4762_s1 + $0x100] sm:$0xff]   ;;  %s3667_s15 = smul.u32 40, %s4768_s19 }
  0x10   : > { %3291 = vmatpush3.bf16.msra.mxu0 %v3687_v10  ;;  %v3704_v27 = vld [vmem:[%s4762_s1 + $0x30] sm:$0xff]   ;;  %s4070_s12 = scalar_lea.vmem %s4761_s0, %s3666_s26  ;;  %v3708_v31 = vld [vmem:[%s4762_s1 + $0x38] sm:$0xff]   ;;  %v3716_v54 = vld [vmem:[%s4762_s1 + $0x180] sm:$0xff]   ;;  %s3668_s23 = smul.u32 24, %s4768_s19 }
  0x11   : > { %3319 = vmatpush3.bf16.msra.mxu1 %v3688_v11  ;;  %3292 = vmatprep.subr.bf16.mxu0 %v3689_v12  ;;  %v246_v32 = vld [vmem:[%s4070_s12] sm:$0xff]  ;;  %v4080_v33 = vld [vmem:[%s4070_s12 + $0x8] sm:$0xff]  ;;  %v4083_v34 = vld [vmem:[%s4070_s12 + $0x10] sm:$0xff]  ;;  %s4543_s28 = scalar_lea.vmem %s4764_s3, %s3667_s15 }
  0x12   : > { %3320 = vmatprep.subr.bf16.mxu1 %v3690_v13  ;;  %v281_v35 = vld [vmem:[%s4070_s12 + $0x18] sm:$0x11]  ;;  %v3038_v36 = vcombine.high %v246_v32, %v4080_v33  ;;  %v3037_v37 = vcombine.low %v246_v32, %v4080_v33  ;;  %v3058_v38 = vcombine.high %v4083_v34, %v4083_v34  ;;  %v3718_v57 = vld [vmem:[%s4762_s1 + $0x1c8] sm:$0xff]   ;;  %v3057_v0 = vcombine.low %v4083_v34, %v4083_v34  ;;  %v3722_v3 = vld [vmem:[%s4762_s1 + $0x1d0] sm:$0xff]   ;;  %s244_s26 = scalar_lea.vmem %s4766_s5, %s3668_s23 }
  0x13   : > { %v4091_v39 = vcombine.high %v4083_v34, %v281_v35  ;;  %v4094_v40 = vcombine.low %v4083_v34, %v281_v35  ;;  %v3717_v61 = vld [vmem:[%s4762_s1 + $0x148] sm:$0xff]   ;;  %v3721_v4 = vld [vmem:[%s4762_s1 + $0x150] sm:$0xff]   ;;  %v3726_v8 = vld [vmem:[%s4762_s1 + $0x1d8] sm:$0xff]  }
  0x14   : > { %3293 = vmatpush3.bf16.msra.mxu0 %v3691_v14  ;;  %v344_v42 = vshrl.u32 %v3038_v36, 16  ;;  %v346_v43 = vshll.u32 %v3038_v36, 16  ;;  %643 = vmatprep.mubr.bf16.mxu1 %v3038_v36  ;;  %v332_v44 = vshrl.u32 %v3037_v37, 16  ;;  %v334_v45 = vshll.u32 %v3037_v37, 16  ;;  %v3720_v62 = vld [vmem:[%s4762_s1 + $0x188] sm:$0xff]   ;;  %v3724_v5 = vld [vmem:[%s4762_s1 + $0x190] sm:$0xff]  }
  0x15   : > { %3321 = vmatpush3.bf16.msra.mxu1 %v3692_v15  ;;  %3294 = vmatprep.subr.bf16.mxu0 %v3693_v16  ;;  %v351_v47 = vshll.u32 %v4091_v39, 16  ;;  %v339_v48 = vshll.u32 %v4094_v40, 16  ;;  %v358_v58 = vshrl.u32 %v4091_v39, 16  ;;  %v3719_v1 = vld [vmem:[%s4762_s1 + $0x108] sm:$0xff]   ;;  %v355_v2 = vshrl.u32 %v4094_v40, 16  ;;  %v3723_v6 = vld [vmem:[%s4762_s1 + $0x110] sm:$0xff]  }
  0x16   : > { %3322 = vmatprep.subr.bf16.mxu1 %v3694_v17  ;;  %v348_v49 = vrot.slane %v346_v43, 1  ;;  %v336_v50 = vrot.slane %v334_v45, 1  ;;  %v3725_v9 = vld [vmem:[%s4762_s1 + $0x158] sm:$0xff]   ;;  %v3730_v12 = vld [vmem:[%s4762_s1 + $0x1e0] sm:$0xff]   ;;  %v3734_v16 = vld [vmem:[%s4762_s1 + $0x1e8] sm:$0xff]  }
  0x17   : > { %v353_v51 = vrot.slane %v351_v47, 1  ;;  %v341_v52 = vrot.slane %v339_v48, 1  ;;  %v3728_v10 = vld [vmem:[%s4762_s1 + $0x198] sm:$0xff]   ;;  %v3729_v13 = vld [vmem:[%s4762_s1 + $0x160] sm:$0xff]   ;;  %v3733_v17 = vld [vmem:[%s4762_s1 + $0x168] sm:$0xff]  }
  0x18   : > { %3295 = vmatpush3.bf16.msra.mxu0 %v3695_v18  ;;  %v349_v55 = vor.u32 %v348_v49, %v344_v42  ;;  %v337_v56 = vor.u32 %v336_v50, %v332_v44  ;;  %v3727_v11 = vld [vmem:[%s4762_s1 + $0x118] sm:$0xff]   ;;  %v3732_v14 = vld [vmem:[%s4762_s1 + $0x1a0] sm:$0xff]   ;;  %v3736_v18 = vld [vmem:[%s4762_s1 + $0x1a8] sm:$0xff]  }
  0x19   : > { %3323 = vmatpush3.bf16.msra.mxu1 %v3696_v19  ;;  %3296 = vmatprep.subr.bf16.mxu0 %v3697_v20  ;;  %v360_v63 = vor.u32 %v358_v58, %v353_v51  ;;  %v357_v7 = vor.u32 %v355_v2, %v341_v52  ;;  %v3731_v15 = vld [vmem:[%s4762_s1 + $0x120] sm:$0xff]   ;;  %v3735_v19 = vld [vmem:[%s4762_s1 + $0x128] sm:$0xff]   ;;  %v3740_v20 = vld [vmem:[%s4762_s1 + $0x1f0] sm:$0xff]  }
  0x1a   : > { %3324 = vmatprep.subr.bf16.mxu1 %v3698_v21  ;;  %v354_v59 = vsel %vm330_vm0, %v349_v55, %v353_v51  ;;  %v342_v60 = vsel %vm330_vm0, %v337_v56, %v341_v52  ;;  %v3739_v21 = vld [vmem:[%s4762_s1 + $0x170] sm:$0xff]   ;;  %v856_v32 = vld [vmem:[%s4070_s12 + $0x18] sm:$0x77]  ;;  %v3754_v47 = vld [vmem:[%s4762_s1 + $0x2c0] sm:$0xff]  }
  0x1b   : > { %493 = vmatprep.mubr.bf16.mxu0 %v354_v59  ;;  %v3756_v51 = vld [vmem:[%s4762_s1 + $0x280] sm:$0xff]   ;;  %v3757_v55 = vld [vmem:[%s4762_s1 + $0x248] sm:$0xff]   ;;  %v3761_v59 = vld [vmem:[%s4762_s1 + $0x250] sm:$0xff]  }
  0x1c   : > { %3297 = vmatpush3.bf16.msra.mxu0 %v3699_v22  ;;  %v3742_v22 = vld [vmem:[%s4762_s1 + $0x1b0] sm:$0xff]   ;;  %v3758_v56 = vld [vmem:[%s4762_s1 + $0x2c8] sm:$0xff]   ;;  %v3767_v2 = vld [vmem:[%s4762_s1 + $0x218] sm:$0xff]  }
  0x1d   : > { %3325 = vmatpush3.bf16.msra.mxu1 %v3700_v23  ;;  %3298 = vmatprep.subr.bf16.mxu0 %v3701_v24  ;;  %v3741_v23 = vld [vmem:[%s4762_s1 + $0x130] sm:$0xff]   ;;  %v3744_v24 = vld [vmem:[%s4762_s1 + $0x1f8] sm:$0xff]   ;;  %v3760_v58 = vld [vmem:[%s4762_s1 + $0x288] sm:$0xff]  }
  0x1e   : > { %3326 = vmatprep.subr.bf16.mxu1 %v3702_v25  ;;  %v3743_v25 = vld [vmem:[%s4762_s1 + $0x178] sm:$0xff]  }
  0x20   : > { %3299 = vmatpush3.bf16.msra.mxu0 %v3703_v26  ;;  %v3746_v26 = vld [vmem:[%s4762_s1 + $0x1b8] sm:$0xff]  }
  0x21   : > { %3327 = vmatpush3.bf16.msra.mxu1 %v3704_v27  ;;  %3300 = vmatprep.subr.bf16.mxu0 %v3705_v28  ;;  %v659_v27 = vld [vmem:[%s4070_s12] sm:$0xee]  ;;  %v702_v28 = vrot.slane %v4091_v39, 1  ;;  %v3096_v39 = vcombine.high %v4083_v34, %v856_v32 }
  0x22   : > { %3328 = vmatprep.subr.bf16.mxu1 %v3706_v29  ;;  %v855_v29 = vld [vmem:[%s4070_s12] sm:$0x88] }
  0x23   : > { %v4204_v35 = vcombine.low %v855_v29, %v4080_v33  ;;  %v4207_v36 = vcombine.high %v855_v29, %v4080_v33  ;;  %v904_v49 = vrot.slane %v3096_v39, 3  ;;  %v3789_v29 = vld [vmem:[%s4762_s1 + $0x340] sm:$0xff]  }
  0x24   : > { %3301 = vmatpush3.bf16.msra.mxu0 %v3707_v30  ;;  %v3075_v30 = vcombine.low %v659_v27, %v4080_v33 }
  0x25   : > { %3329 = vmatpush3.bf16.msra.mxu1 %v3708_v31  ;;  %3342 = vmatprep.subr.bf16.mxu0 %v3713_v41  ;;  %v3076_v31 = vcombine.high %v659_v27, %v4080_v33  ;;  %v699_v41 = vrot.slane %v4094_v40, 1  ;;  %v903_v44 = vrot.slane %v4207_v36, 3  ;;  %v900_v45 = vrot.slane %v4204_v35, 3  ;;  %v3755_v40 = vld [vmem:[%s4762_s1 + $0x200] sm:$0xff]  }
  0x26   : > { %3370 = vmatprep.subr.bf16.mxu1 %v3714_v46  ;;  %v698_v42 = vrot.slane %v3075_v30, 1  ;;  %v3753_v46 = vld [vmem:[%s4762_s1 + $0x240] sm:$0xff]  }
  0x27   : > { %494 = vmatmul.mubr.bf16.vlgmr.msra.gmra.mrb[0].mxu0 %v342_v60  ;;  %v701_v43 = vrot.slane %v3076_v31, 1  ;;  %v905_v52 = vsel %vm899_vm2, %v903_v44, %v904_v49  ;;  %v3762_v60 = vld [vmem:[%s4762_s1 + $0x2d0] sm:$0xff]  }
  0x28   : > { %644 = vmatmul.mubr.bf16.vlgmr.msra.gmra.mrb[0].mxu1 %v3037_v37  ;;  %3343 = vmatpush3.bf16.msra.mxu0 %v3715_v53  ;;  %v3745_v37 = vld [vmem:[%s4762_s1 + $0x138] sm:$0xff]   ;;  %v700_v53 = vsel %vm697_vm1, %v698_v42, %v699_v41  ;;  %v3792_v42 = vld [vmem:[%s4762_s1 + $0x380] sm:$0xff]  }
  0x29   : > { %651 = vmatprep.mubr.bf16.mxu1 %v3058_v38  ;;  %3371 = vmatpush3.bf16.msra.mxu1 %v3716_v54  ;;  %v3095_v38 = vcombine.low %v4083_v34, %v856_v32  ;;  %v703_v50 = vsel %vm697_vm1, %v701_v43, %v702_v28  ;;  %v3131_v32 = vcombine.low %v4080_v33, %v4083_v34 }
  0x2a   : > { %3372 = vmatprep.subr.bf16.mxu1 %v3718_v57  ;;  %3344 = vmatprep.subr.bf16.mxu0 %v3717_v61  ;;  %v3759_v57 = vld [vmem:[%s4762_s1 + $0x208] sm:$0xff]   ;;  %v3763_v61 = vld [vmem:[%s4762_s1 + $0x210] sm:$0xff]  }
  0x2b   : > { %501 = vmatprep.mubr.bf16.mxu0 %v360_v63  ;;  %v901_v48 = vrot.slane %v3095_v38, 3  ;;  %v3765_v63 = vld [vmem:[%s4762_s1 + $0x258] sm:$0xff]  }
  0x2c   : > { %3345 = vmatpush3.bf16.msra.mxu0 %v3719_v1  ;;  %v3132_v1 = vcombine.high %v4080_v33, %v4083_v34 }
  0x2d   : > { %3373 = vmatpush3.bf16.msra.mxu1 %v3720_v62  ;;  %3346 = vmatprep.subr.bf16.mxu0 %v3721_v4  ;;  %v902_v54 = vsel %vm899_vm2, %v900_v45, %v901_v48  ;;  %v3764_v62 = vld [vmem:[%s4762_s1 + $0x290] sm:$0xff]   ;;  %v3769_v4 = vld [vmem:[%s4762_s1 + $0x260] sm:$0xff]  }
  0x2e   : > { %3374 = vmatprep.subr.bf16.mxu1 %v3722_v3  ;;  %v3768_v3 = vld [vmem:[%s4762_s1 + $0x298] sm:$0xff]  }
  0x2f   : > { %502 = vmatmul.mubr.bf16.gmra.mrb[4].mxu0 %v357_v7  ;;  %v3772_v7 = vld [vmem:[%s4762_s1 + $0x2a0] sm:$0xff]  }
  0x30   : > { %652 = vmatmul.mubr.bf16.gmra.mrb[4].mxu1 %v3057_v0  ;;  %3347 = vmatpush3.bf16.msra.mxu0 %v3723_v6  ;;  %v3766_v0 = vld [vmem:[%s4762_s1 + $0x2d8] sm:$0xff]   ;;  %v3771_v6 = vld [vmem:[%s4762_s1 + $0x220] sm:$0xff]  }
  0x31   : > { %3375 = vmatpush3.bf16.msra.mxu1 %v3724_v5  ;;  %3348 = vmatprep.subr.bf16.mxu0 %v3725_v9  ;;  %v3770_v5 = vld [vmem:[%s4762_s1 + $0x2e0] sm:$0xff]   ;;  %v3774_v9 = vld [vmem:[%s4762_s1 + $0x2e8] sm:$0xff]  }
  0x32   : > { %3376 = vmatprep.subr.bf16.mxu1 %v3726_v8  ;;  %836 = vmatprep.mubr.bf16.mxu0 %v703_v50  ;;  %v3773_v8 = vld [vmem:[%s4762_s1 + $0x268] sm:$0xff]  }
  0x33   : > { %1038 = vmatprep.mubr.bf16.mxu1 %v905_v52  ;;  %v3794_v50 = vld [vmem:[%s4762_s1 + $0x3c8] sm:$0xff]  }
  0x34   : > { %3349 = vmatpush3.bf16.msra.mxu0 %v3727_v11  ;;  %v3776_v11 = vld [vmem:[%s4762_s1 + $0x2a8] sm:$0xff]  }
  0x35   : > { %3377 = vmatpush3.bf16.msra.mxu1 %v3728_v10  ;;  %3350 = vmatprep.subr.bf16.mxu0 %v3729_v13  ;;  %v3775_v10 = vld [vmem:[%s4762_s1 + $0x228] sm:$0xff]   ;;  %v1114_v13 = vshrl.u32 %v4207_v36, 16 }
  0x36   : > { %3378 = vmatprep.subr.bf16.mxu1 %v3730_v12  ;;  %v3777_v12 = vld [vmem:[%s4762_s1 + $0x270] sm:$0xff]  }
  0x38   : > { %3351 = vmatpush3.bf16.msra.mxu0 %v3731_v15  ;;  %v1117_v15 = vshll.u32 %v4207_v36, 16 }
  0x39   : > { %3379 = vmatpush3.bf16.msra.mxu1 %v3732_v14  ;;  %3352 = vmatprep.subr.bf16.mxu0 %v3733_v17  ;;  %v3778_v14 = vld [vmem:[%s4762_s1 + $0x2f0] sm:$0xff]   ;;  %v1097_v17 = vshrl.u32 %v4204_v35, 16 }
  0x3a   : > { %3380 = vmatprep.subr.bf16.mxu1 %v3734_v16  ;;  %v3779_v16 = vld [vmem:[%s4762_s1 + $0x230] sm:$0xff]  }
  0x3c   : > { %3353 = vmatpush3.bf16.msra.mxu0 %v3735_v19  ;;  %v1100_v19 = vshll.u32 %v4204_v35, 16  ;;  %v3790_v35 = vld [vmem:[%s4762_s1 + $0x3c0] sm:$0xff]  }
  0x3d   : > { %3381 = vmatpush3.bf16.msra.mxu1 %v3736_v18  ;;  %3354 = vmatprep.subr.bf16.mxu0 %v3739_v21  ;;  %v3780_v18 = vld [vmem:[%s4762_s1 + $0x2b0] sm:$0xff]   ;;  %v1116_v21 = vrot.slane %v1114_v13, 3  ;;  %v3820_v13 = vld [vmem:[%s4762_s1 + $0x3f8] sm:$0xff]  }
  0x3e   : > { %3382 = vmatprep.subr.bf16.mxu1 %v3740_v20  ;;  %v3781_v20 = vld [vmem:[%s4762_s1 + $0x278] sm:$0xff]   ;;  %v1102_v27 = vrot.slane %v1100_v19, 4 }
  0x40   : > { %3355 = vmatpush3.bf16.msra.mxu0 %v3741_v23  ;;  %v1119_v23 = vrot.slane %v1117_v15, 4  ;;  %v3822_v15 = vld [vmem:[%s4762_s1 + $0x3b8] sm:$0xff]  }
  0x41   : > { %3383 = vmatpush3.bf16.msra.mxu1 %v3742_v22  ;;  %3356 = vmatprep.subr.bf16.mxu0 %v3743_v25  ;;  %v3782_v22 = vld [vmem:[%s4762_s1 + $0x2f8] sm:$0xff]   ;;  %v1099_v25 = vrot.slane %v1097_v17, 3  ;;  %v1471_v17 = vld [vmem:[%s4070_s12 + $0x20] sm:$0x33] }
  0x42   : > { %3384 = vmatprep.subr.bf16.mxu1 %v3744_v24  ;;  %v3783_v24 = vld [vmem:[%s4762_s1 + $0x238] sm:$0xff]   ;;  %v1120_v43 = vor.u32 %v1119_v23, %v1116_v21  ;;  %v1678_v23 = vld [vmem:[%s4070_s12 + $0x20] sm:$0x77] }
  0x43   : > { %v1103_v44 = vor.u32 %v1102_v27, %v1099_v25 }
  0x44   : > { %3357 = vmatpush3.bf16.msra.mxu0 %v3745_v37 }
  0x45   : > { %3385 = vmatpush3.bf16.msra.mxu1 %v3746_v26  ;;  %3398 = vmatprep.subr.bf16.mxu0 %v3753_v46  ;;  %v3784_v26 = vld [vmem:[%s4762_s1 + $0x2b8] sm:$0xff]  }
  0x46   : > { %3426 = vmatprep.subr.bf16.mxu1 %v3754_v47 }
  0x47   : > { %837 = vmatmul.mubr.bf16.vlgmr.msra.gmra.mrb[8].mxu0 %v700_v53 }
  0x48   : > { %1039 = vmatmul.mubr.bf16.vlgmr.msra.gmra.mrb[8].mxu1 %v902_v54  ;;  %3399 = vmatpush3.bf16.msra.mxu0 %v3755_v40  ;;  %v3796_v54 = vld [vmem:[%s4762_s1 + $0x388] sm:$0xff]  }
  0x49   : > { %3427 = vmatpush3.bf16.msra.mxu1 %v3756_v51  ;;  %3400 = vmatprep.subr.bf16.mxu0 %v3757_v55  ;;  %v3793_v51 = vld [vmem:[%s4762_s1 + $0x348] sm:$0xff]  }
  0x4a   : > { %3428 = vmatprep.subr.bf16.mxu1 %v3758_v56  ;;  %844 = vmatprep.mubr.bf16.mxu0 %v702_v28  ;;  %v4324_v28 = vld [vmem:[%s4070_s12 + $0x18] sm:$0xff]  ;;  %v3795_v55 = vld [vmem:[%s4762_s1 + $0x308] sm:$0xff]  }
  0x4b   : > { %1046 = vmatprep.mubr.bf16.mxu1 %v904_v49  ;;  %v3114_v30 = vcombine.high %v4083_v34, %v4324_v28  ;;  %v3113_v31 = vcombine.low %v4083_v34, %v4324_v28  ;;  %v3134_v36 = vcombine.high %v4324_v28, %v4324_v28  ;;  %v3133_v56 = vcombine.low %v4324_v28, %v4324_v28 }
  0x4c   : > { %3401 = vmatpush3.bf16.msra.mxu0 %v3759_v57  ;;  %v3798_v57 = vld [vmem:[%s4762_s1 + $0x3d0] sm:$0xff]   ;;  %v3153_v21 = vcombine.low %v4324_v28, %v1471_v17  ;;  %v4445_v25 = vcombine.high %v4324_v28, %v1678_v23 }
  0x4d   : > { %3429 = vmatpush3.bf16.msra.mxu1 %v3760_v58  ;;  %3402 = vmatprep.subr.bf16.mxu0 %v3761_v59  ;;  %v1122_v37 = vshrl.u32 %v3114_v30, 16  ;;  %v1125_v38 = vshll.u32 %v3114_v30, 16  ;;  %v1105_v39 = vshrl.u32 %v3113_v31, 16  ;;  %v3797_v58 = vld [vmem:[%s4762_s1 + $0x350] sm:$0xff]  }
  0x4e   : > { %3430 = vmatprep.subr.bf16.mxu1 %v3762_v60  ;;  %v3801_v59 = vld [vmem:[%s4762_s1 + $0x390] sm:$0xff]   ;;  %v1522_v27 = vrot.slane %v3153_v21, 2  ;;  %v1902_v21 = vld [vmem:[%s4070_s12 + $0x8] sm:$0x88] }
  0x4f   : > { %845 = vmatmul.mubr.bf16.gmra.mrb[12].mxu0 %v699_v41  ;;  %v1108_v41 = vshll.u32 %v3113_v31, 16  ;;  %v1124_v33 = vrot.slane %v1122_v37, 3  ;;  %v1127_v45 = vrot.slane %v1125_v38, 4  ;;  %v1107_v46 = vrot.slane %v1105_v39, 3  ;;  %v3800_v60 = vld [vmem:[%s4762_s1 + $0x310] sm:$0xff]  }
  0x50   : > { %1047 = vmatmul.mubr.bf16.gmra.mrb[12].mxu1 %v901_v48  ;;  %3403 = vmatpush3.bf16.msra.mxu0 %v3763_v61  ;;  %v3791_v48 = vld [vmem:[%s4762_s1 + $0x300] sm:$0xff]   ;;  %v3804_v61 = vld [vmem:[%s4762_s1 + $0x3d8] sm:$0xff]  }
  0x51   : > { %3431 = vmatpush3.bf16.msra.mxu1 %v3764_v62  ;;  %3404 = vmatprep.subr.bf16.mxu0 %v3765_v63  ;;  %v1110_v47 = vrot.slane %v1108_v41, 4  ;;  %v1128_v49 = vor.u32 %v1127_v45, %v1124_v33  ;;  %v3803_v62 = vld [vmem:[%s4762_s1 + $0x358] sm:$0xff]   ;;  %v3831_v45 = vld [vmem:[%s4762_s1 + $0x400] sm:$0xff]  }
  0x52   : > { %3432 = vmatprep.subr.bf16.mxu1 %v3766_v0  ;;  %1449 = vmatprep.mubr.bf16.mxu1 %v3132_v1  ;;  %v3806_v63 = vld [vmem:[%s4762_s1 + $0x398] sm:$0xff]   ;;  %v3808_v1 = vld [vmem:[%s4762_s1 + $0x3e0] sm:$0xff]  }
  0x53   : > { %v1111_v40 = vor.u32 %v1110_v47, %v1107_v46  ;;  %v1129_v52 = vsel %vm1095_vm3, %v1120_v43, %v1128_v49  ;;  %v3805_v0 = vld [vmem:[%s4762_s1 + $0x318] sm:$0xff]  }
  0x54   : > { %3405 = vmatpush3.bf16.msra.mxu0 %v3767_v2  ;;  %1262 = vmatprep.mubr.bf16.mxu0 %v1129_v52  ;;  %v3807_v2 = vld [vmem:[%s4762_s1 + $0x360] sm:$0xff]  }
  0x55   : > { %3433 = vmatpush3.bf16.msra.mxu1 %v3768_v3  ;;  %3406 = vmatprep.subr.bf16.mxu0 %v3769_v4  ;;  %v1112_v53 = vsel %vm1095_vm3, %v1103_v44, %v1111_v40  ;;  %v3810_v3 = vld [vmem:[%s4762_s1 + $0x3a0] sm:$0xff]  }
  0x56   : > { %3434 = vmatprep.subr.bf16.mxu1 %v3770_v5  ;;  %v3809_v4 = vld [vmem:[%s4762_s1 + $0x320] sm:$0xff]   ;;  %v3812_v5 = vld [vmem:[%s4762_s1 + $0x3e8] sm:$0xff]  }
  0x58   : > { %3407 = vmatpush3.bf16.msra.mxu0 %v3771_v6  ;;  %v3811_v6 = vld [vmem:[%s4762_s1 + $0x368] sm:$0xff]  }
  0x59   : > { %3435 = vmatpush3.bf16.msra.mxu1 %v3772_v7  ;;  %3408 = vmatprep.subr.bf16.mxu0 %v3773_v8  ;;  %v3814_v7 = vld [vmem:[%s4762_s1 + $0x3a8] sm:$0xff]  }
  0x5a   : > { %3436 = vmatprep.subr.bf16.mxu1 %v3774_v9  ;;  %v3813_v8 = vld [vmem:[%s4762_s1 + $0x328] sm:$0xff]   ;;  %v3816_v9 = vld [vmem:[%s4762_s1 + $0x3f0] sm:$0xff]  }
  0x5c   : > { %3409 = vmatpush3.bf16.msra.mxu0 %v3775_v10  ;;  %v3815_v10 = vld [vmem:[%s4762_s1 + $0x370] sm:$0xff]  }
  0x5d   : > { %3437 = vmatpush3.bf16.msra.mxu1 %v3776_v11  ;;  %3410 = vmatprep.subr.bf16.mxu0 %v3777_v12  ;;  %v3818_v11 = vld [vmem:[%s4762_s1 + $0x3b0] sm:$0xff]  }
  0x5e   : > { %3438 = vmatprep.subr.bf16.mxu1 %v3778_v14  ;;  %v3817_v12 = vld [vmem:[%s4762_s1 + $0x330] sm:$0xff]   ;;  %v3819_v14 = vld [vmem:[%s4762_s1 + $0x378] sm:$0xff]  }
  0x60   : > { %3411 = vmatpush3.bf16.msra.mxu0 %v3779_v16  ;;  %v1468_v16 = vld [vmem:[%s4070_s12 + $0x8] sm:$0xcc] }
  0x61   : > { %3439 = vmatpush3.bf16.msra.mxu1 %v3780_v18  ;;  %3412 = vmatprep.subr.bf16.mxu0 %v3781_v20  ;;  %v3821_v18 = vld [vmem:[%s4762_s1 + $0x338] sm:$0xff]   ;;  %v3151_v19 = vcombine.low %v1468_v16, %v4083_v34  ;;  %v3152_v20 = vcombine.high %v1468_v16, %v4083_v34  ;;  %v3830_v34 = vld [vmem:[%s4765_s4 + $0xc0] sm:$0xff]   ;;  %v3854_v16 = vld [vmem:[%s4765_s4 + $0xf0] sm:$0xff]  }
  0x62   : > { %3440 = vmatprep.subr.bf16.mxu1 %v3782_v22  ;;  %v3154_v22 = vcombine.high %v4324_v28, %v1471_v17  ;;  %v3857_v17 = vld [vmem:[%s4762_s1 + $0x478] sm:$0xff]  }
  0x63   : > { %v1735_v31 = vshrl.u32 %v3152_v20, 16  ;;  %v1718_v39 = vshrl.u32 %v3151_v19, 16  ;;  %v1721_v41 = vshll.u32 %v3151_v19, 16 }
  0x64   : > { %3413 = vmatpush3.bf16.msra.mxu0 %v3783_v24  ;;  %v4442_v24 = vcombine.low %v4324_v28, %v1678_v23  ;;  %v1525_v30 = vrot.slane %v3154_v22, 2  ;;  %v1746_v28 = vshll.u32 %v4445_v25, 16  ;;  %v2116_v22 = vld [vmem:[%s4543_s28] sm:$0xff]  ;;  %v3860_v23 = vld [vmem:[%s4765_s4 + $0xb8] sm:$0xff]  }
  0x65   : > { %3441 = vmatpush3.bf16.msra.mxu1 %v3784_v26  ;;  %3454 = vmatprep.subr.bf16.mxu0 %v3789_v29  ;;  %v3829_v26 = vld [vmem:[%s4762_s1 + $0x440] sm:$0xff]   ;;  %v1524_v29 = vrot.slane %v3152_v20, 2  ;;  %v1737_v38 = vrot.slane %v1735_v31, 2  ;;  %v1720_v46 = vrot.slane %v1718_v39, 2  ;;  %v1723_v47 = vrot.slane %v1721_v41, 3  ;;  %v4565_v31 = vld [vmem:[%s4543_s28 + $0x10] sm:$0xff] }
  0x66   : > { %3482 = vmatprep.subr.bf16.mxu1 %v3790_v35  ;;  %v1743_v35 = vshrl.u32 %v4445_v25, 16  ;;  %v1748_v44 = vrot.slane %v1746_v28, 3 }
  0x67   : > { %1263 = vmatmul.mubr.bf16.vlgmr.msra.gmra.mrb[16].mxu0 %v1112_v53  ;;  %v1526_v37 = vsel %vm1520_vm4, %v1524_v29, %v1525_v30  ;;  %v1724_v52 = vor.u32 %v1723_v47, %v1720_v46  ;;  %v1944_v29 = vrot.slane %v4445_v25, 3  ;;  %v3867_v25 = vld [vmem:[%s4765_s4 + $0x40] sm:$0xff]  }
  0x68   : > { %1450 = vmatmul.mubr.bf16.vlgmr.msra.gmra.mrb[16].mxu1 %v3131_v32  ;;  %3455 = vmatpush3.bf16.msra.mxu0 %v3791_v48  ;;  %v1738_v32 = vshll.u32 %v3152_v20, 16  ;;  %v1745_v43 = vrot.slane %v1743_v35, 2  ;;  %v1726_v48 = vshrl.u32 %v4442_v24, 16  ;;  %v3858_v20 = vld [vmem:[%s4765_s4 + $0xf8] sm:$0xff]   ;;  %v1941_v35 = vrot.slane %v4442_v24, 3 }
  0x69   : > { %3483 = vmatpush3.bf16.msra.mxu1 %v3792_v42  ;;  %1457 = vmatprep.mubr.bf16.mxu1 %v3134_v36  ;;  %v1521_v36 = vrot.slane %v3151_v19, 2  ;;  %v3859_v19 = vld [vmem:[%s4762_s1 + $0x438] sm:$0xff]  }
  0x6a   : > { %3484 = vmatprep.subr.bf16.mxu1 %v3794_v50  ;;  %1270 = vmatprep.mubr.bf16.mxu0 %v1128_v49  ;;  %v1740_v42 = vrot.slane %v1738_v32, 3  ;;  %v1729_v49 = vshll.u32 %v4442_v24, 16  ;;  %v1749_v50 = vor.u32 %v1748_v44, %v1745_v43  ;;  %v1728_v53 = vrot.slane %v1726_v48, 2  ;;  %v2151_v32 = vld [vmem:[%s4543_s28 + $0x18] sm:$0x11] }
  0x6b   : > { %3456 = vmatprep.subr.bf16.mxu0 %v3793_v51  ;;  %v1523_v33 = vsel %vm1520_vm4, %v1521_v36, %v1522_v27  ;;  %v3833_v51 = vld [vmem:[%s4762_s1 + $0x448] sm:$0xff]  }
  0x6c   : > { %3457 = vmatpush3.bf16.msra.mxu0 %v3795_v55 }
  0x6d   : > { %3485 = vmatpush3.bf16.msra.mxu1 %v3796_v54  ;;  %3458 = vmatprep.subr.bf16.mxu0 %v3797_v58  ;;  %v1731_v54 = vrot.slane %v1729_v49, 3  ;;  %v3835_v58 = vld [vmem:[%s4762_s1 + $0x408] sm:$0xff]  }
  0x6e   : > { %3486 = vmatprep.subr.bf16.mxu1 %v3798_v57 }
  0x6f   : > { %1271 = vmatmul.mubr.bf16.gmra.mrb[20].mxu0 %v1111_v40  ;;  %v1741_v40 = vor.u32 %v1740_v42, %v1737_v38  ;;  %v1732_v57 = vor.u32 %v1731_v54, %v1728_v53  ;;  %v3211_v38 = vcombine.high %v4565_v31, %v2151_v32  ;;  %v3870_v53 = vld [vmem:[%s4765_s4 + $0x100] sm:$0xff]   ;;  %v3871_v54 = vld [vmem:[%s4765_s4 + $0x48] sm:$0xff]  }
  0x70   : > { %1458 = vmatmul.mubr.bf16.gmra.mrb[20].mxu1 %v3133_v56  ;;  %3459 = vmatpush3.bf16.msra.mxu0 %v3800_v60  ;;  %v3832_v56 = vld [vmem:[%s4765_s4 + $0x80] sm:$0xff]  }
  0x71   : > { %3487 = vmatpush3.bf16.msra.mxu1 %v3801_v59  ;;  %3460 = vmatprep.subr.bf16.mxu0 %v3803_v62  ;;  %v1750_v55 = vsel %vm1716_vm5, %v1741_v40, %v1749_v50  ;;  %v3834_v59 = vld [vmem:[%s4765_s4 + $0xc8] sm:$0xff]   ;;  %v1733_v60 = vsel %vm1716_vm5, %v1724_v52, %v1732_v57  ;;  %v2220_v43 = vshll.u32 %v3211_v38, 16 }
  0x72   : > { %3488 = vmatprep.subr.bf16.mxu1 %v3804_v61  ;;  %1659 = vmatprep.mubr.bf16.mxu0 %v1526_v37  ;;  %v3837_v61 = vld [vmem:[%s4762_s1 + $0x450] sm:$0xff]   ;;  %v3836_v62 = vld [vmem:[%s4765_s4 + $0x88] sm:$0xff]   ;;  %v3210_v37 = vcombine.low %v4565_v31, %v2151_v32  ;;  %v3229_v32 = vcombine.high %v4565_v31, %v4565_v31 }
  0x73   : > { %1883 = vmatprep.mubr.bf16.mxu1 %v1750_v55 }
  0x74   : > { %3461 = vmatpush3.bf16.msra.mxu0 %v3805_v0  ;;  %v3838_v0 = vld [vmem:[%s4765_s4 + $0xd0] sm:$0xff]   ;;  %v2208_v49 = vshll.u32 %v3210_v37, 16 }
  0x75   : > { %3489 = vmatpush3.bf16.msra.mxu1 %v3806_v63  ;;  %3462 = vmatprep.subr.bf16.mxu0 %v3807_v2  ;;  %v3839_v63 = vld [vmem:[%s4762_s1 + $0x410] sm:$0xff]  }
  0x76   : > { %3490 = vmatprep.subr.bf16.mxu1 %v3808_v1  ;;  %v3841_v1 = vld [vmem:[%s4762_s1 + $0x458] sm:$0xff]   ;;  %v3840_v2 = vld [vmem:[%s4765_s4 + $0x90] sm:$0xff]   ;;  %v2210_v52 = vrot.slane %v2208_v49, 1 }
  0x77   : > { %v3912_v49 = vld [vmem:[%s4765_s4 + $0x198] sm:$0xff]  }
  0x78   : > { %3463 = vmatpush3.bf16.msra.mxu0 %v3809_v4  ;;  %v3842_v4 = vld [vmem:[%s4765_s4 + $0xd8] sm:$0xff]  }
  0x79   : > { %3491 = vmatpush3.bf16.msra.mxu1 %v3810_v3  ;;  %3464 = vmatprep.subr.bf16.mxu0 %v3811_v6  ;;  %v3843_v3 = vld [vmem:[%s4762_s1 + $0x418] sm:$0xff]  }
  0x7a   : > { %3492 = vmatprep.subr.bf16.mxu1 %v3812_v5  ;;  %v3845_v5 = vld [vmem:[%s4762_s1 + $0x460] sm:$0xff]   ;;  %v3844_v6 = vld [vmem:[%s4765_s4 + $0x98] sm:$0xff]  }
  0x7c   : > { %3465 = vmatpush3.bf16.msra.mxu0 %v3813_v8  ;;  %v3846_v8 = vld [vmem:[%s4765_s4 + $0xe0] sm:$0xff]  }
  0x7d   : > { %3493 = vmatpush3.bf16.msra.mxu1 %v3814_v7  ;;  %3466 = vmatprep.subr.bf16.mxu0 %v3815_v10  ;;  %v3847_v7 = vld [vmem:[%s4762_s1 + $0x420] sm:$0xff]  }
  0x7e   : > { %3494 = vmatprep.subr.bf16.mxu1 %v3816_v9  ;;  %v3849_v9 = vld [vmem:[%s4762_s1 + $0x468] sm:$0xff]   ;;  %v3848_v10 = vld [vmem:[%s4765_s4 + $0xa0] sm:$0xff]  }
  0x80   : > { %3467 = vmatpush3.bf16.msra.mxu0 %v3817_v12  ;;  %v3850_v12 = vld [vmem:[%s4765_s4 + $0xe8] sm:$0xff]  }
  0x81   : > { %3495 = vmatpush3.bf16.msra.mxu1 %v3818_v11  ;;  %3468 = vmatprep.subr.bf16.mxu0 %v3819_v14  ;;  %v3851_v11 = vld [vmem:[%s4762_s1 + $0x428] sm:$0xff]  }
  0x82   : > { %3496 = vmatprep.subr.bf16.mxu1 %v3820_v13  ;;  %v3853_v13 = vld [vmem:[%s4762_s1 + $0x470] sm:$0xff]   ;;  %v3852_v14 = vld [vmem:[%s4765_s4 + $0xa8] sm:$0xff]  }
  0x84   : > { %3469 = vmatpush3.bf16.msra.mxu0 %v3821_v18  ;;  %v3856_v18 = vld [vmem:[%s4765_s4 + $0xb0] sm:$0xff]  }
  0x85   : > { %3497 = vmatpush3.bf16.msra.mxu1 %v3822_v15  ;;  %3510 = vmatprep.subr.bf16.mxu0 %v3829_v26  ;;  %v3855_v15 = vld [vmem:[%s4762_s1 + $0x430] sm:$0xff]  }
  0x86   : > { %3538 = vmatprep.subr.bf16.mxu1 %v3830_v34  ;;  %v3923_v26 = vld [vmem:[%s4070_s12 + $0x10] sm:$0xff] }
  0x87   : > { %1660 = vmatmul.mubr.bf16.vlgmr.msra.gmra.mrb[24].mxu0 %v1523_v33  ;;  %v3189_v34 = vcombine.low %v1902_v21, %v3923_v26  ;;  %v3868_v33 = vld [vmem:[%s4765_s4 + $0x140] sm:$0xff]  }
  0x88   : > { %3511 = vmatpush3.bf16.msra.mxu0 %v3831_v45  ;;  %1667 = vmatprep.mubr.bf16.mxu0 %v1525_v30  ;;  %v4562_v30 = vld [vmem:[%s4543_s28 + $0x8] sm:$0xff]  ;;  %v3869_v45 = vld [vmem:[%s4765_s4] sm:$0xff]  }
  0x89   : > { %3512 = vmatprep.subr.bf16.mxu0 %v3833_v51  ;;  %1884 = vmatmul.mubr.bf16.vlgmr.msra.gmra.mrb[24].mxu1 %v1733_v60  ;;  %v4570_v28 = vcombine.low %v2116_v22, %v4562_v30  ;;  %v3209_v36 = vcombine.high %v2116_v22, %v4562_v30  ;;  %v1940_v39 = vrot.slane %v3189_v34, 3  ;;  %v3873_v60 = vld [vmem:[%s4765_s4 + $0x8] sm:$0xff]   ;;  %v3895_v22 = vld [vmem:[%s4765_s4 + $0x78] sm:$0xff]  }
  0x8a   : > { %3539 = vmatpush3.bf16.msra.mxu1 %v3832_v56  ;;  %1891 = vmatprep.mubr.bf16.mxu1 %v1749_v50  ;;  %v2222_v50 = vrot.slane %v2220_v43, 1  ;;  %v3898_v34 = vld [vmem:[%s4765_s4 + $0x138] sm:$0xff]  }
  0x8b   : > { %3540 = vmatprep.subr.bf16.mxu1 %v3834_v59  ;;  %v2213_v42 = vshrl.u32 %v3209_v36, 16  ;;  %v2215_v24 = vshll.u32 %v3209_v36, 16  ;;  %v2201_v44 = vshrl.u32 %v4570_v28, 16  ;;  %v1942_v47 = vsel %vm899_vm2, %v1940_v39, %v1941_v35  ;;  %v3904_v39 = vld [vmem:[%s4765_s4 + $0x180] sm:$0xff]  }
  0x8c   : > { %3513 = vmatpush3.bf16.msra.mxu0 %v3835_v58  ;;  %v2203_v48 = vshll.u32 %v4570_v28, 16  ;;  %v2227_v58 = vshrl.u32 %v3211_v38, 16 }
  0x8d   : > { %3514 = vmatprep.subr.bf16.mxu0 %v3837_v61  ;;  %v2217_v40 = vrot.slane %v2215_v24, 1 }
  0x8e   : > { %3541 = vmatpush3.bf16.msra.mxu1 %v3836_v62  ;;  %v2205_v51 = vrot.slane %v2203_v48, 1  ;;  %v3874_v62 = vld [vmem:[%s4765_s4 + $0x108] sm:$0xff]   ;;  %v3911_v48 = vld [vmem:[%s4765_s4 + $0x1d8] sm:$0xff]  }
  0x8f   : > { %1668 = vmatmul.mubr.bf16.gmra.mrb[28].mxu0 %v1522_v27  ;;  %3542 = vmatprep.subr.bf16.mxu1 %v3838_v0  ;;  %v3190_v27 = vcombine.high %v1902_v21, %v3923_v26  ;;  %v2218_v55 = vor.u32 %v2217_v40, %v2213_v42  ;;  %v3875_v0 = vld [vmem:[%s4765_s4 + $0x50] sm:$0xff]   ;;  %v3897_v26 = vld [vmem:[%s4765_s4 + $0x38] sm:$0xff]  }
  0x90   : > { %3515 = vmatpush3.bf16.msra.mxu0 %v3839_v63  ;;  %v2206_v56 = vor.u32 %v2205_v51, %v2201_v44  ;;  %v2229_v63 = vor.u32 %v2227_v58, %v2222_v50  ;;  %v3894_v21 = vld [vmem:[%s4765_s4 + $0x130] sm:$0xff]  }
  0x91   : > { %3516 = vmatprep.subr.bf16.mxu0 %v3841_v1  ;;  %1892 = vmatmul.mubr.bf16.gmra.mrb[28].mxu1 %v1732_v57  ;;  %v1943_v41 = vrot.slane %v3190_v27, 3  ;;  %v3872_v57 = vld [vmem:[%s4765_s4 + $0x148] sm:$0xff]   ;;  %v2223_v59 = vsel %vm330_vm0, %v2218_v55, %v2222_v50  ;;  %v2224_v1 = vshrl.u32 %v3210_v37, 16  ;;  %v2528_v27 = vld [vmem:[%s4543_s28] sm:$0x88] }
  0x92   : > { %3543 = vmatpush3.bf16.msra.mxu1 %v3840_v2  ;;  %2362 = vmatprep.mubr.bf16.mxu1 %v2223_v59  ;;  %v2211_v61 = vsel %vm330_vm0, %v2206_v56, %v2210_v52  ;;  %v3876_v2 = vld [vmem:[%s4765_s4 + $0x150] sm:$0xff]   ;;  %v3913_v50 = vld [vmem:[%s4765_s4 + $0x1e0] sm:$0xff]  }
  0x93   : > { %3544 = vmatprep.subr.bf16.mxu1 %v3842_v4  ;;  %v1945_v46 = vsel %vm899_vm2, %v1943_v41, %v1944_v29  ;;  %v3878_v4 = vld [vmem:[%s4765_s4 + $0x110] sm:$0xff]  }
  0x94   : > { %3517 = vmatpush3.bf16.msra.mxu0 %v3843_v3  ;;  %2078 = vmatprep.mubr.bf16.mxu0 %v1945_v46  ;;  %v3877_v3 = vld [vmem:[%s4765_s4 + $0x10] sm:$0xff]   ;;  %v3228_v46 = vcombine.low %v4565_v31, %v4565_v31 }
  0x95   : > { %3518 = vmatprep.subr.bf16.mxu0 %v3845_v5  ;;  %v3879_v5 = vld [vmem:[%s4765_s4 + $0x58] sm:$0xff]  }
  0x96   : > { %3545 = vmatpush3.bf16.msra.mxu1 %v3844_v6  ;;  %v2226_v6 = vor.u32 %v2224_v1, %v2210_v52  ;;  %v3914_v52 = vld [vmem:[%s4765_s4 + $0x1a0] sm:$0xff]  }
  0x97   : > { %3546 = vmatprep.subr.bf16.mxu1 %v3846_v8  ;;  %v3881_v8 = vld [vmem:[%s4765_s4 + $0x18] sm:$0xff]  }
  0x98   : > { %3519 = vmatpush3.bf16.msra.mxu0 %v3847_v7  ;;  %v3880_v7 = vld [vmem:[%s4765_s4 + $0x158] sm:$0xff]  }
  0x99   : > { %3520 = vmatprep.subr.bf16.mxu0 %v3849_v9  ;;  %v3882_v9 = vld [vmem:[%s4765_s4 + $0x118] sm:$0xff]  }
  0x9a   : > { %3547 = vmatpush3.bf16.msra.mxu1 %v3848_v10  ;;  %v3883_v10 = vld [vmem:[%s4765_s4 + $0x60] sm:$0xff]  }
  0x9b   : > { %3548 = vmatprep.subr.bf16.mxu1 %v3850_v12  ;;  %v3885_v12 = vld [vmem:[%s4765_s4 + $0x20] sm:$0xff]  }
  0x9c   : > { %3521 = vmatpush3.bf16.msra.mxu0 %v3851_v11  ;;  %v3884_v11 = vld [vmem:[%s4765_s4 + $0x160] sm:$0xff]  }
  0x9d   : > { %3522 = vmatprep.subr.bf16.mxu0 %v3853_v13  ;;  %v3886_v13 = vld [vmem:[%s4765_s4 + $0x120] sm:$0xff]  }
  0x9e   : > { %3549 = vmatpush3.bf16.msra.mxu1 %v3852_v14  ;;  %v3887_v14 = vld [vmem:[%s4765_s4 + $0x68] sm:$0xff]  }
  0x9f   : > { %3550 = vmatprep.subr.bf16.mxu1 %v3854_v16  ;;  %v3889_v16 = vld [vmem:[%s4765_s4 + $0x28] sm:$0xff]  }
  0xa0   : > { %3523 = vmatpush3.bf16.msra.mxu0 %v3855_v15  ;;  %v3888_v15 = vld [vmem:[%s4765_s4 + $0x168] sm:$0xff]  }
  0xa1   : > { %3524 = vmatprep.subr.bf16.mxu0 %v3857_v17  ;;  %v3890_v17 = vld [vmem:[%s4765_s4 + $0x128] sm:$0xff]  }
  0xa2   : > { %3551 = vmatpush3.bf16.msra.mxu1 %v3856_v18  ;;  %v3891_v18 = vld [vmem:[%s4765_s4 + $0x70] sm:$0xff]  }
  0xa3   : > { %3552 = vmatprep.subr.bf16.mxu1 %v3858_v20  ;;  %v3893_v20 = vld [vmem:[%s4765_s4 + $0x30] sm:$0xff]  }
  0xa4   : > { %3525 = vmatpush3.bf16.msra.mxu0 %v3859_v19  ;;  %v3892_v19 = vld [vmem:[%s4765_s4 + $0x170] sm:$0xff]  }
  0xa5   : > { %3566 = vmatprep.subr.bf16.mxu0 %v3867_v25  ;;  %v3903_v25 = vld [vmem:[%s4765_s4 + $0x1c0] sm:$0xff]  }
  0xa6   : > { %3553 = vmatpush3.bf16.msra.mxu1 %v3860_v23  ;;  %v3896_v23 = vld [vmem:[%s4765_s4 + $0x178] sm:$0xff]  }
  0xa7   : > { %2079 = vmatmul.mubr.bf16.vlgmr.msra.gmra.mrb[32].mxu0 %v1942_v47  ;;  %3594 = vmatprep.subr.bf16.mxu1 %v3868_v33  ;;  %v3906_v33 = vld [vmem:[%s4765_s4 + $0x188] sm:$0xff]   ;;  %v3910_v47 = vld [vmem:[%s4765_s4 + $0x190] sm:$0xff]  }
  0xa8   : > { %3567 = vmatpush3.bf16.msra.mxu0 %v3869_v45  ;;  %2086 = vmatprep.mubr.bf16.mxu0 %v1944_v29  ;;  %v2529_v29 = vld [vmem:[%s4543_s28 + $0x18] sm:$0x77] }
  0xa9   : > { %3568 = vmatprep.subr.bf16.mxu0 %v3871_v54  ;;  %2363 = vmatmul.mubr.bf16.vlgmr.msra.gmra.mrb[32].mxu1 %v2211_v61  ;;  %v3248_v37 = vcombine.low %v4565_v31, %v2529_v29  ;;  %v3249_v38 = vcombine.high %v4565_v31, %v2529_v29  ;;  %v3915_v54 = vld [vmem:[%s4765_s4 + $0x1e8] sm:$0xff]  }
  0xaa   : > { %3595 = vmatpush3.bf16.msra.mxu1 %v3870_v53  ;;  %2370 = vmatprep.mubr.bf16.mxu1 %v2229_v63  ;;  %v2729_v53 = vld [vmem:[%s4543_s28 + $0x18] sm:$0xff]  ;;  %v3916_v61 = vld [vmem:[%s4765_s4 + $0x1a8] sm:$0xff]  }
  0xab   : > { %3596 = vmatprep.subr.bf16.mxu1 %v3872_v57  ;;  %v2573_v41 = vrot.slane %v3248_v37, 3  ;;  %v2576_v24 = vrot.slane %v3249_v38, 3  ;;  %v3266_v55 = vcombine.low %v4565_v31, %v2729_v53  ;;  %v3267_v56 = vcombine.high %v4565_v31, %v2729_v53  ;;  %v3917_v31 = vld [vmem:[%s4765_s4 + $0x1f0] sm:$0xff]  }
  0xac   : > { %3569 = vmatpush3.bf16.msra.mxu0 %v3873_v60 }
  0xad   : > { %3570 = vmatprep.subr.bf16.mxu0 %v3875_v0  ;;  %v2793_v59 = vshrl.u32 %v3267_v56, 16  ;;  %v2796_v60 = vshll.u32 %v3267_v56, 16  ;;  %v2776_v0 = vshrl.u32 %v3266_v55, 16  ;;  %v2779_v1 = vshll.u32 %v3266_v55, 16 }
  0xae   : > { %3597 = vmatpush3.bf16.msra.mxu1 %v3874_v62 }
  0xaf   : > { %2087 = vmatmul.mubr.bf16.gmra.mrb[36].mxu0 %v1941_v35  ;;  %3598 = vmatprep.subr.bf16.mxu1 %v3876_v2  ;;  %v4682_v35 = vcombine.low %v2528_v27, %v4562_v30 }
  0xb0   : > { %3571 = vmatpush3.bf16.msra.mxu0 %v3877_v3  ;;  %2512 = vmatprep.mubr.bf16.mxu0 %v3209_v36  ;;  %v3247_v36 = vcombine.high %v2528_v27, %v4562_v30  ;;  %v3905_v30 = vld [vmem:[%s4765_s4 + $0x1c8] sm:$0xff]   ;;  %v2795_v3 = vrot.slane %v2793_v59, 3 }
  0xb1   : > { %3572 = vmatprep.subr.bf16.mxu0 %v3879_v5  ;;  %2371 = vmatmul.mubr.bf16.gmra.mrb[36].mxu1 %v2226_v6  ;;  %v2572_v43 = vrot.slane %v4682_v35, 3  ;;  %v2768_v62 = vshrl.u32 %v4682_v35, 16  ;;  %v2771_v63 = vshll.u32 %v4682_v35, 16  ;;  %v3918_v6 = vld [vmem:[%s4765_s4 + $0x1b0] sm:$0xff]  }
  0xb2   : > { %3599 = vmatpush3.bf16.msra.mxu1 %v3878_v4  ;;  %v2575_v42 = vrot.slane %v3247_v36, 3  ;;  %v2785_v40 = vshrl.u32 %v3247_v36, 16  ;;  %v2788_v51 = vshll.u32 %v3247_v36, 16  ;;  %v2798_v4 = vrot.slane %v2796_v60, 4 }
  0xb3   : > { %3600 = vmatprep.subr.bf16.mxu1 %v3880_v7  ;;  %v2574_v45 = vsel %vm899_vm2, %v2572_v43, %v2573_v41  ;;  %v2770_v7 = vrot.slane %v2768_v62, 3 }
  0xb4   : > { %3573 = vmatpush3.bf16.msra.mxu0 %v3881_v8  ;;  %v2577_v44 = vsel %vm899_vm2, %v2575_v42, %v2576_v24  ;;  %v2787_v57 = vrot.slane %v2785_v40, 3  ;;  %v2790_v58 = vrot.slane %v2788_v51, 4  ;;  %v2799_v5 = vor.u32 %v2798_v4, %v2795_v3 }
  0xb5   : > { %3574 = vmatprep.subr.bf16.mxu0 %v3883_v10  ;;  %2710 = vmatprep.mubr.bf16.mxu1 %v2577_v44  ;;  %v2773_v8 = vrot.slane %v2771_v63, 4  ;;  %v2781_v10 = vrot.slane %v2779_v1, 4 }
  0xb6   : > { %3601 = vmatpush3.bf16.msra.mxu1 %v3882_v9  ;;  %v2791_v2 = vor.u32 %v2790_v58, %v2787_v57  ;;  %v2778_v9 = vrot.slane %v2776_v0, 3 }
  0xb7   : > { %3602 = vmatprep.subr.bf16.mxu1 %v3884_v11  ;;  %v3919_v11 = vld [vmem:[%s4765_s4 + $0x1f8] sm:$0xff]  }
  0xb8   : > { %3575 = vmatpush3.bf16.msra.mxu0 %v3885_v12  ;;  %v2800_v12 = vsel %vm1095_vm3, %v2791_v2, %v2799_v5 }
  0xb9   : > { %3576 = vmatprep.subr.bf16.mxu0 %v3887_v14  ;;  %v2774_v14 = vor.u32 %v2773_v8, %v2770_v7 }
  0xba   : > { %3603 = vmatpush3.bf16.msra.mxu1 %v3886_v13  ;;  %v3920_v13 = vld [vmem:[%s4765_s4 + $0x1b8] sm:$0xff]  }
  0xbb   : > { %3604 = vmatprep.subr.bf16.mxu1 %v3888_v15  ;;  %v2782_v15 = vor.u32 %v2781_v10, %v2778_v9 }
  0xbc   : > { %3577 = vmatpush3.bf16.msra.mxu0 %v3889_v16 }
  0xbd   : > { %3578 = vmatprep.subr.bf16.mxu0 %v3891_v18  ;;  %v2783_v16 = vsel %vm1095_vm3, %v2774_v14, %v2782_v15 }
  0xbe   : > { %3605 = vmatpush3.bf16.msra.mxu1 %v3890_v17 }
  0xbf   : > { %3606 = vmatprep.subr.bf16.mxu1 %v3892_v19 }
  0xc0   : > { %3579 = vmatpush3.bf16.msra.mxu0 %v3893_v20 }
  0xc1   : > { %3580 = vmatprep.subr.bf16.mxu0 %v3895_v22 }
  0xc2   : > { %3607 = vmatpush3.bf16.msra.mxu1 %v3894_v21 }
  0xc3   : > { %3608 = vmatprep.subr.bf16.mxu1 %v3896_v23 }
  0xc4   : > { %3581 = vmatpush3.bf16.msra.mxu0 %v3897_v26 }
  0xc5   : > { %3622 = vmatprep.subr.bf16.mxu0 %v3903_v25 }
  0xc6   : > { %3609 = vmatpush3.bf16.msra.mxu1 %v3898_v34 }
  0xc7   : > { %2513 = vmatmul.mubr.bf16.vlgmr.msra.gmra.mrb[40].mxu0 %v4570_v28  ;;  %v3909_v28 = vld [vmem:[%s4765_s4 + $0x1d0] sm:$0xff]   ;;  %3650 = vmatprep.subr.bf16.mxu1 %v3903_v25 }
  0xc8   : > { %3623 = vmatpush3.bf16.msra.mxu0 %v3904_v39  ;;  %2520 = vmatprep.mubr.bf16.mxu0 %v3229_v32 }
  0xc9   : > { %3624 = vmatprep.subr.bf16.mxu0 %v3905_v30  ;;  %2711 = vmatmul.mubr.bf16.vlgmr.msra.gmra.mrb[40].mxu1 %v2574_v45 }
  0xca   : > { %3658 = vmatpush3.bf16.msra.mxu1 %v3904_v39  ;;  %2718 = vmatprep.mubr.bf16.mxu1 %v2576_v24 }
  0xcb   : > { %3651 = vmatprep.subr.bf16.mxu1 %v3905_v30 }
  0xcc   : > { %3625 = vmatpush3.bf16.msra.mxu0 %v3906_v33 }
  0xcd   : > { %3626 = vmatprep.subr.bf16.mxu0 %v3909_v28 }
  0xce   : > { %3659 = vmatpush3.bf16.msra.mxu1 %v3906_v33 }
  0xcf   : > { %2521 = vmatmul.mubr.bf16.gmra.mrb[44].mxu0 %v3228_v46  ;;  %3652 = vmatprep.subr.bf16.mxu1 %v3909_v28 }
  0xd0   : > { %3627 = vmatpush3.bf16.msra.mxu0 %v3910_v47  ;;  %2933 = vmatprep.mubr.bf16.mxu0 %v2800_v12 }
  0xd1   : > { %3628 = vmatprep.subr.bf16.mxu0 %v3911_v48  ;;  %2719 = vmatmul.mubr.bf16.gmra.mrb[44].mxu1 %v2573_v41 }
  0xd2   : > { %3660 = vmatpush3.bf16.msra.mxu1 %v3910_v47  ;;  %2941 = vmatprep.mubr.bf16.mxu1 %v2799_v5 }
  0xd3   : > { %3653 = vmatprep.subr.bf16.mxu1 %v3911_v48 }
  0xd4   : > { %3629 = vmatpush3.bf16.msra.mxu0 %v3912_v49 }
  0xd5   : > { %3630 = vmatprep.subr.bf16.mxu0 %v3913_v50 }
  0xd6   : > { %3661 = vmatpush3.bf16.msra.mxu1 %v3912_v49 }
  0xd7   : > { %3654 = vmatprep.subr.bf16.mxu1 %v3913_v50 }
  0xd8   : > { %3631 = vmatpush3.bf16.msra.mxu0 %v3914_v52 }
  0xd9   : > { %3632 = vmatprep.subr.bf16.mxu0 %v3915_v54 }
  0xda   : > { %3662 = vmatpush3.bf16.msra.mxu1 %v3914_v52 }
  0xdb   : > { %3655 = vmatprep.subr.bf16.mxu1 %v3915_v54 }
  0xdc   : > { %3633 = vmatpush3.bf16.msra.mxu0 %v3916_v61 }
  0xdd   : > { %3634 = vmatprep.subr.bf16.mxu0 %v3917_v31 }
  0xde   : > { %3663 = vmatpush3.bf16.msra.mxu1 %v3916_v61 }
  0xdf   : > { %3656 = vmatprep.subr.bf16.mxu1 %v3917_v31 }
  0xe0   : > { %3635 = vmatpush3.bf16.msra.mxu0 %v3918_v6 }
  0xe1   : > { %3636 = vmatprep.subr.bf16.mxu0 %v3919_v11 }
  0xe2   : > { %3664 = vmatpush3.bf16.msra.mxu1 %v3918_v6 }
  0xe3   : > { %3657 = vmatprep.subr.bf16.mxu1 %v3919_v11 }
  0xe4   : > { %3637 = vmatpush3.bf16.msra.mxu0 %v3920_v13 }
  0xe6   : > { %3665 = vmatpush3.bf16.msra.mxu1 %v3920_v13 }
  0xe7   : > { %2934 = vmatmul.mubr.bf16.vlgmr.msra.gmra.mrb[48].mxu0 %v2783_v16 }
  0xe9   : > { %2942 = vmatmul.mubr.bf16.vlgmr.msra.gmra.mrb[48].mxu1 %v2782_v15 }
  0xfa   : > { %v3302_v23 = vpop.f32.mrb[0].mxu0 }
  0xfb   : > { %v3330_v17 = vpop.f32.mrb[0].mxu1  ;;  %v3303_v26 = vpop.f32.mrb[1].mxu0 }
  0xfc   : > { %v3331_v18 = vpop.f32.mrb[1].mxu1  ;;  %v3304_v34 = vadd.f32 %v3303_v26, %v3302_v23  ;;  %v3305_v27 = vpop.f32.mrb[2].mxu0 }
  0xfd   : > { %v3332_v19 = vadd.f32 %v3331_v18, %v3330_v17  ;;  %v3333_v20 = vpop.f32.mrb[2].mxu1  ;;  %v3306_v29 = vpop.f32.mrb[3].mxu0 }
  0xfe   : > { %v3334_v21 = vpop.f32.mrb[3].mxu1  ;;  %v3307_v36 = vadd.f32 %v3306_v29, %v3305_v27 }
  0xff   : > { %v3335_v22 = vadd.f32 %v3334_v21, %v3333_v20  ;;  %v646_v35 = vadd.f32 %v3332_v19, %v3304_v34 }
 0x101   : > { %v649_v39 = vadd.f32 %v3335_v22, %v3307_v36 }
 0x102   : > { %v3308_v42 = vpop.f32.mrb[4].mxu0 }
 0x103   : > { %v3336_v32 = vpop.f32.mrb[4].mxu1  ;;  %v3309_v24 = vpop.f32.mrb[5].mxu0 }
 0x104   : > { %v3337_v37 = vpop.f32.mrb[5].mxu1  ;;  %v3310_v43 = vadd.f32 %v3309_v24, %v3308_v42  ;;  %v3311_v30 = vpop.f32.mrb[6].mxu0 }
 0x105   : > { %v3338_v38 = vadd.f32 %v3337_v37, %v3336_v32  ;;  %v3339_v25 = vpop.f32.mrb[6].mxu1  ;;  %v3312_v44 = vpop.f32.mrb[7].mxu0 }
 0x106   : > { %v3340_v41 = vpop.f32.mrb[7].mxu1 }
 0x107   : > { %v654_v33 = vadd.f32 %v3338_v38, %v3310_v43 }
 0x11a   : > { %v3358_v28 = vpop.f32.mrb[8].mxu0 }
 0x11b   : > { %v3386_v45 = vpop.f32.mrb[8].mxu1  ;;  %v3359_v47 = vpop.f32.mrb[9].mxu0 }
 0x11c   : > { %v3387_v46 = vpop.f32.mrb[9].mxu1  ;;  %v3360_v40 = vadd.f32 %v3359_v47, %v3358_v28  ;;  %v3361_v50 = vpop.f32.mrb[10].mxu0 }
 0x11d   : > { %v3388_v48 = vadd.f32 %v3387_v46, %v3386_v45  ;;  %v3389_v49 = vpop.f32.mrb[10].mxu1  ;;  %v3362_v52 = vpop.f32.mrb[11].mxu0 }
 0x11e   : > { %v3390_v51 = vpop.f32.mrb[11].mxu1  ;;  %v852_v54 = vadd.f32 %v3360_v40, %v646_v35  ;;  %v3363_v55 = vadd.f32 %v3362_v52, %v3361_v50 }
 0x11f   : > { %v3391_v53 = vadd.f32 %v3390_v51, %v3389_v49 }
 0x120   : > { %v1054_v56 = vadd.f32 %v3388_v48, %v852_v54  ;;  %v853_v57 = vadd.f32 %v3363_v55, %v649_v39 }
 0x122   : > { %v1055_v59 = vadd.f32 %v3391_v53, %v853_v57  ;;  %v3364_v60 = vpop.f32.mrb[12].mxu0 }
 0x123   : > { %v3392_v58 = vpop.f32.mrb[12].mxu1  ;;  %v3365_v62 = vpop.f32.mrb[13].mxu0 }
 0x124   : > { %v3393_v61 = vpop.f32.mrb[13].mxu1  ;;  %v3366_v1 = vadd.f32 %v3365_v62, %v3364_v60  ;;  %v3367_v31 = vpop.f32.mrb[14].mxu0 }
 0x125   : > { %v3394_v63 = vadd.f32 %v3393_v61, %v3392_v58  ;;  %v3395_v0 = vpop.f32.mrb[14].mxu1  ;;  %v3368_v3 = vpop.f32.mrb[15].mxu0 }
 0x126   : > { %v3396_v2 = vpop.f32.mrb[15].mxu1  ;;  %v854_v4 = vadd.f32 %v3366_v1, %v654_v33 }
 0x128   : > { %v1056_v5 = vadd.f32 %v3394_v63, %v854_v4 }
 0x13a   : > { %v3414_v12 = vpop.f32.mrb[16].mxu0 }
 0x13b   : > { %v3442_v6 = vpop.f32.mrb[16].mxu1  ;;  %v3415_v13 = vpop.f32.mrb[17].mxu0 }
 0x13c   : > { %v3443_v7 = vpop.f32.mrb[17].mxu1  ;;  %v3416_v14 = vadd.f32 %v3415_v13, %v3414_v12  ;;  %v3417_v15 = vpop.f32.mrb[18].mxu0 }
 0x13d   : > { %v3444_v8 = vadd.f32 %v3443_v7, %v3442_v6  ;;  %v3445_v9 = vpop.f32.mrb[18].mxu1  ;;  %v3418_v16 = vpop.f32.mrb[19].mxu0 }
 0x13e   : > { %v3446_v10 = vpop.f32.mrb[19].mxu1  ;;  %v1278_v18 = vadd.f32 %v3416_v14, %v1054_v56  ;;  %v3419_v19 = vadd.f32 %v3418_v16, %v3417_v15 }
 0x13f   : > { %v3447_v11 = vadd.f32 %v3446_v10, %v3445_v9 }
 0x140   : > { %v1465_v23 = vadd.f32 %v3444_v8, %v1278_v18  ;;  %v1279_v26 = vadd.f32 %v3419_v19, %v1055_v59 }
 0x142   : > { %v1466_v27 = vadd.f32 %v3447_v11, %v1279_v26  ;;  %v3420_v29 = vpop.f32.mrb[20].mxu0 }
 0x143   : > { %v3448_v17 = vpop.f32.mrb[20].mxu1  ;;  %v3421_v32 = vpop.f32.mrb[21].mxu0 }
 0x144   : > { %v3449_v20 = vpop.f32.mrb[21].mxu1  ;;  %v3422_v35 = vadd.f32 %v3421_v32, %v3420_v29  ;;  %v3423_v36 = vpop.f32.mrb[22].mxu0 }
 0x145   : > { %v3450_v21 = vadd.f32 %v3449_v20, %v3448_v17  ;;  %v3451_v22 = vpop.f32.mrb[22].mxu1  ;;  %v3424_v37 = vpop.f32.mrb[23].mxu0 }
 0x146   : > { %v3452_v34 = vpop.f32.mrb[23].mxu1  ;;  %v1280_v38 = vadd.f32 %v3422_v35, %v1056_v5 }
 0x148   : > { %v1467_v25 = vadd.f32 %v3450_v21, %v1280_v38 }
 0x15a   : > { %v3470_v39 = vpop.f32.mrb[24].mxu0 }
 0x15b   : > { %v3471_v41 = vpop.f32.mrb[25].mxu0 }
 0x15c   : > { %v3472_v42 = vadd.f32 %v3471_v41, %v3470_v39  ;;  %v3473_v24 = vpop.f32.mrb[26].mxu0  ;;  %v3498_v30 = vpop.f32.mrb[24].mxu1 }
 0x15d   : > { %v3474_v43 = vpop.f32.mrb[27].mxu0  ;;  %v3499_v45 = vpop.f32.mrb[25].mxu1 }
 0x15e   : > { %v1675_v44 = vadd.f32 %v3472_v42, %v1465_v23  ;;  %v3475_v33 = vadd.f32 %v3474_v43, %v3473_v24  ;;  %v3500_v28 = vadd.f32 %v3499_v45, %v3498_v30  ;;  %v3501_v46 = vpop.f32.mrb[26].mxu1 }
 0x15f   : > { %v3502_v48 = vpop.f32.mrb[27].mxu1 }
 0x160   : > { %v1676_v47 = vadd.f32 %v3475_v33, %v1466_v27  ;;  %v1899_v49 = vadd.f32 %v3500_v28, %v1675_v44  ;;  %v3503_v40 = vadd.f32 %v3502_v48, %v3501_v46 }
 0x162   : > { %v3476_v50 = vpop.f32.mrb[28].mxu0  ;;  %v1900_v52 = vadd.f32 %v3503_v40, %v1676_v47 }
 0x163   : > { %v3477_v51 = vpop.f32.mrb[29].mxu0 }
 0x164   : > { %v3478_v53 = vadd.f32 %v3477_v51, %v3476_v50  ;;  %v3479_v54 = vpop.f32.mrb[30].mxu0  ;;  %v3504_v57 = vpop.f32.mrb[28].mxu1 }
 0x165   : > { %v3480_v55 = vpop.f32.mrb[31].mxu0  ;;  %v3505_v58 = vpop.f32.mrb[29].mxu1 }
 0x166   : > { %v1677_v56 = vadd.f32 %v3478_v53, %v1467_v25  ;;  %v3506_v59 = vadd.f32 %v3505_v58, %v3504_v57  ;;  %v3507_v60 = vpop.f32.mrb[30].mxu1 }
 0x167   : > { %v3508_v61 = vpop.f32.mrb[31].mxu1 }
 0x168   : > { %v1901_v62 = vadd.f32 %v3506_v59, %v1677_v56 }
 0x17a   : > { %v3526_v63 = vpop.f32.mrb[32].mxu0 }
 0x17b   : > { %v3527_v0 = vpop.f32.mrb[33].mxu0 }
 0x17c   : > { %v3528_v1 = vadd.f32 %v3527_v0, %v3526_v63  ;;  %v3529_v31 = vpop.f32.mrb[34].mxu0  ;;  %v3554_v5 = vpop.f32.mrb[32].mxu1 }
 0x17d   : > { %v3530_v2 = vpop.f32.mrb[35].mxu0  ;;  %v3555_v6 = vpop.f32.mrb[33].mxu1 }
 0x17e   : > { %v2094_v3 = vadd.f32 %v3528_v1, %v1899_v49  ;;  %v3531_v4 = vadd.f32 %v3530_v2, %v3529_v31  ;;  %v3556_v8 = vadd.f32 %v3555_v6, %v3554_v5  ;;  %v3557_v9 = vpop.f32.mrb[34].mxu1 }
 0x17f   : > { %v3558_v10 = vpop.f32.mrb[35].mxu1 }
 0x180   : > { %v2095_v7 = vadd.f32 %v3531_v4, %v1900_v52  ;;  %v3559_v12 = vadd.f32 %v3558_v10, %v3557_v9  ;;  %v3207_v52 = vld [vmem:[%s4763_s2] ss:$0 sm:$0xff] }
 0x181   : > { %v2104_v53 = vadd.f32 %v3207_v52, %v2094_v3 }
 0x182   : > { %v3532_v11 = vpop.f32.mrb[36].mxu0  ;;  %v2105_v55 = vadd.f32 %v3207_v52, %v2095_v7 }
 0x183   : > { %v3533_v13 = vpop.f32.mrb[37].mxu0  ;;  %v2110_v59 = vmul.f32 0.2, %v2104_v53  ;;  %vm2107_vm6 = vcmp.ge.f32.partialorder %v2104_v53, 0.0 }
 0x184   : > { %v3534_v14 = vadd.f32 %v3533_v13, %v3532_v11  ;;  %v3535_v15 = vpop.f32.mrb[38].mxu0  ;;  %v3560_v18 = vpop.f32.mrb[36].mxu1  ;;  %v2111_v0 = vmul.f32 0.2, %v2105_v55  ;;  %vm2108_vm7 = vcmp.ge.f32.partialorder %v2105_v55, 0.0 }
 0x185   : > { %v3536_v16 = vpop.f32.mrb[39].mxu0  ;;  %v3561_v19 = vpop.f32.mrb[37].mxu1  ;;  %v2113_v3 = vsel %vm2107_vm6, %v2104_v53, %v2110_v59 }
 0x186   : > { %v2096_v17 = vadd.f32 %v3534_v14, %v1901_v62  ;;  %v3562_v20 = vadd.f32 %v3561_v19, %v3560_v18  ;;  %v3563_v21 = vpop.f32.mrb[38].mxu1 }
 0x187   : > { %v3564_v22 = vpop.f32.mrb[39].mxu1 }
 0x188   : > { %v2106_v61 = vadd.f32 %v3207_v52, %v2096_v17 }
 0x18a   : > { %v2112_v7 = vmul.f32 0.2, %v2106_v61  ;;  %vm2109_vm9 = vcmp.ge.f32.partialorder %v2106_v61, 0.0 }
 0x18c   : > { %v2115_v15 = vsel %vm2109_vm9, %v2106_v61, %v2112_v7 }
 0x19a   : > { %v3582_v23 = vpop.f32.mrb[40].mxu0 }
 0x19b   : > { %v3583_v26 = vpop.f32.mrb[41].mxu0 }
 0x19c   : > { %v3584_v34 = vadd.f32 %v3583_v26, %v3582_v23  ;;  %v3585_v27 = vpop.f32.mrb[42].mxu0  ;;  %v3610_v36 = vpop.f32.mrb[40].mxu1 }
 0x19d   : > { %v3586_v29 = vpop.f32.mrb[43].mxu0  ;;  %v3611_v37 = vpop.f32.mrb[41].mxu1 }
 0x19e   : > { %v2515_v32 = vadd.f32 %v3584_v34, %v3556_v8  ;;  %v3587_v35 = vadd.f32 %v3586_v29, %v3585_v27  ;;  %v3612_v25 = vadd.f32 %v3611_v37, %v3610_v36  ;;  %v3613_v39 = vpop.f32.mrb[42].mxu1 }
 0x19f   : > { %v3614_v41 = vpop.f32.mrb[43].mxu1 }
 0x1a0   : > { %v2518_v38 = vadd.f32 %v3587_v35, %v3559_v12  ;;  %v2726_v24 = vadd.f32 %v3612_v25, %v2515_v32  ;;  %v3615_v43 = vadd.f32 %v3614_v41, %v3613_v39  ;;  %v2114_v12 = vsel %vm2108_vm7, %v2105_v55, %v2111_v0 }
 0x1a2   : > { %v3588_v42 = vpop.f32.mrb[44].mxu0  ;;  %v2727_v45 = vadd.f32 %v3615_v43, %v2518_v38 }
 0x1a3   : > { %v3589_v30 = vpop.f32.mrb[45].mxu0 }
 0x1a4   : > { %v3590_v44 = vadd.f32 %v3589_v30, %v3588_v42  ;;  %v3591_v33 = vpop.f32.mrb[46].mxu0  ;;  %v3616_v47 = vpop.f32.mrb[44].mxu1 }
 0x1a5   : > { %v3592_v28 = vpop.f32.mrb[47].mxu0  ;;  %v3617_v48 = vpop.f32.mrb[45].mxu1 }
 0x1a6   : > { %v2523_v46 = vadd.f32 %v3590_v44, %v3562_v20  ;;  %v3618_v49 = vadd.f32 %v3617_v48, %v3616_v47  ;;  %v3619_v40 = vpop.f32.mrb[46].mxu1 }
 0x1a7   : > { %v3620_v50 = vpop.f32.mrb[47].mxu1 }
 0x1a8   : > { %v2728_v51 = vadd.f32 %v3618_v49, %v2523_v46 }
 0x1ba   : > { %v3638_v54 = vpop.f32.mrb[48].mxu0 }
 0x1bb   : > { %v3639_v56 = vpop.f32.mrb[49].mxu0 }
 0x1bc   : > { %v3640_v57 = vadd.f32 %v3639_v56, %v3638_v54  ;;  %v3641_v58 = vpop.f32.mrb[50].mxu0  ;;  %v3644_v1 = vpop.f32.mrb[48].mxu1 }
 0x1bd   : > { %v3642_v60 = vpop.f32.mrb[51].mxu0  ;;  %v3645_v2 = vpop.f32.mrb[49].mxu1 }
 0x1be   : > { %v2949_v62 = vadd.f32 %v3640_v57, %v2726_v24  ;;  %v3643_v63 = vadd.f32 %v3642_v60, %v3641_v58  ;;  %v3646_v5 = vadd.f32 %v3645_v2, %v3644_v1  ;;  %v3647_v6 = vpop.f32.mrb[50].mxu1 }
 0x1bf   : > { %v3648_v10 = vpop.f32.mrb[51].mxu1 }
 0x1c0   : > { %v2952_v31 = vmul.f32 0.70710677, %v2949_v62  ;;  %v2950_v4 = vadd.f32 %v3643_v63, %v2727_v45  ;;  %v2951_v11 = vadd.f32 %v3646_v5, %v2728_v51 }
 0x1c2   : > { %v2955_v8 = vadd.f32 %v2952_v31, %v2113_v3  ;;  %v2953_v9 = vmul.f32 0.70710677, %v2950_v4  ;;  %v2954_v14 = vmul.f32 0.70710677, %v2951_v11 }
 0x1c4   : > { %2959 = vst.msk [vmem:[%s244_s26] sm:$0xff] %vm2958_vm8, %v2955_v8  ;;  %v2956_v13 = vadd.f32 %v2953_v9, %v2114_v12  ;;  %v2957_v16 = vadd.f32 %v2954_v14, %v2115_v15 }
 0x1c6   : > { %2960 = vst.msk [vmem:[%s244_s26 + $0x8] sm:$0xff] %vm2958_vm8, %v2956_v13  ;;  %2961 = vst.msk [vmem:[%s244_s26 + $0x10] sm:$0xff] %vm2958_vm8, %v2957_v16 }
 0x1c7 PF: > { %s15_s18 = sadd.s32 1, %s3930_s18  }
 0x1c8   : > { %p12_p4 = scmp.ge.s32.totalorder %s15_s18, 6  }
 0x1ca   :  { %14 = sbr.rel (!%p12_p4) target bundleno = 1 (0x1), region = 73 }

</bundles_post_ra>
